<compile_context>
chip_gen: v6e
topology: v6e:2x2x1
jax: 0.10.0
libtpu: 0.0.40
codegen_flags: <defaults>
</compile_context>

<pallas_src>
import jax
import jax.numpy as jnp
import numpy as np
from jax import lax
from jax.experimental import pallas as pl
from jax.experimental.pallas import tpu as pltpu

EPS = 1e-5
_VMEM_LIMIT = 32 * 1024 * 1024        # <= scoped default on v6e/v7x, << physical everywhere


def _pick_row_tile(rows, bytes_per_row, budget_bytes=8 * 1024 * 1024, max_tm=1024):
    """Largest multiple-of-8 divisor of `rows` within the VMEM budget (fallback: full)."""
    cap = min(rows, max_tm, max(8, budget_bytes // max(int(bytes_per_row), 1)))
    best = 0
    t = 8
    while t <= cap:
        if rows % t == 0:
            best = t
        t += 8
    return best if best > 0 else rows


# ----------------------------------------------------------------------------
# Pass 1: Z = X @ W (bf16 inputs, f32 accumulation) + per-tile partial BN stats.
# ----------------------------------------------------------------------------
def _mm_stats_kernel(x_ref, w_ref, z_ref, ssum_ref, ssq_ref):
    z = jnp.dot(x_ref[0], w_ref[0], preferred_element_type=jnp.float32)   # (TM, C) f32
    z_ref[0] = z
    ssum_ref[0, 0] = jnp.sum(z, axis=0, keepdims=True)        # (1, C)
    ssq_ref[0, 0] = jnp.sum(z * z, axis=0, keepdims=True)     # (1, C)


def matmul_partial_stats(x, w, tm):
    """x: (G, R, K) bf16, w: (G, K, C) bf16 ->
       z: (G, R, C) f32, ssum/ssq: (G, R//tm, 1, C) f32 (per-row-tile partial sums)."""
    G, R, K = x.shape
    C = w.shape[2]
    nt = R // tm
    flops = 2 * G * R * K * C
    bytes_acc = G * R * K * 2 + G * K * C * 2 + G * R * C * 4 + 2 * G * nt * C * 4
    return pl.pallas_call(
        _mm_stats_kernel,
        out_shape=(jax.ShapeDtypeStruct((G, R, C), jnp.float32),
                   jax.ShapeDtypeStruct((G, nt, 1, C), jnp.float32),
                   jax.ShapeDtypeStruct((G, nt, 1, C), jnp.float32)),
        grid=(G, nt),
        in_specs=[pl.BlockSpec((1, tm, K), lambda g, i: (g, i, 0)),
                  pl.BlockSpec((1, K, C), lambda g, i: (g, 0, 0))],
        out_specs=(pl.BlockSpec((1, tm, C), lambda g, i: (g, i, 0)),
                   pl.BlockSpec((1, 1, 1, C), lambda g, i: (g, i, 0, 0)),
                   pl.BlockSpec((1, 1, 1, C), lambda g, i: (g, i, 0, 0))),
        compiler_params=pltpu.CompilerParams(
            dimension_semantics=("parallel", "parallel"),
            vmem_limit_bytes=_VMEM_LIMIT),
        cost_estimate=pl.CostEstimate(flops=int(flops), transcendentals=0,
                                      bytes_accessed=int(bytes_acc)),
    )(x, w)


# ----------------------------------------------------------------------------
# Pass 2: Y = relu(Z * scale + shift)   (scale/shift fold BN mu/var/gamma/beta)
# ----------------------------------------------------------------------------
def _scale_shift_relu_kernel(z_ref, sc_ref, sh_ref, o_ref):
    y = z_ref[...] * sc_ref[...] + sh_ref[...]
    o_ref[...] = jnp.maximum(y, 0.0).astype(o_ref.dtype)


def scale_shift_relu(z2d, scale, shift, out_dtype, tm):
    R, C = z2d.shape
    out_isz = jnp.dtype(out_dtype).itemsize
    return pl.pallas_call(
        _scale_shift_relu_kernel,
        out_shape=jax.ShapeDtypeStruct((R, C), out_dtype),
        grid=(R // tm,),
        in_specs=[pl.BlockSpec((tm, C), lambda i: (i, 0)),
                  pl.BlockSpec((1, C), lambda i: (0, 0)),
                  pl.BlockSpec((1, C), lambda i: (0, 0))],
        out_specs=pl.BlockSpec((tm, C), lambda i: (i, 0)),
        compiler_params=pltpu.CompilerParams(
            dimension_semantics=("parallel",),
            vmem_limit_bytes=_VMEM_LIMIT),
        cost_estimate=pl.CostEstimate(flops=int(3 * R * C), transcendentals=0,
                                      bytes_accessed=int(R * C * 4 + R * C * out_isz)),
    )(z2d, scale.reshape(1, C), shift.reshape(1, C))


# ----------------------------------------------------------------------------
# Fused stage: matmul + training-mode BatchNorm + ReLU over a (G, R, K) batch of
# pixel matrices sharing one BN (stats reduced over all G*R rows).
# Conv bias is intentionally dropped: BN mean subtraction cancels it exactly.
# ----------------------------------------------------------------------------
def fused_linear_bn_relu(x, w, gamma, beta, out_dtype):
    G, R, K = x.shape
    C = w.shape[-1]
    xb = x.astype(jnp.bfloat16)
    wb = w.astype(jnp.bfloat16)

    tm = _pick_row_tile(R, bytes_per_row=2 * (2 * K) + 2 * (4 * C))
    z, ssum, ssq = matmul_partial_stats(xb, wb, tm)

    # Tiny cross-tile reduction + BN parameter folding (O(C)) in plain JAX glue.
    n = jnp.float32(G * R)
    mu = jnp.sum(ssum, axis=(0, 1, 2)) / n
    var = jnp.maximum(jnp.sum(ssq, axis=(0, 1, 2)) / n - mu * mu, 0.0)   # biased var
    inv = lax.rsqrt(var + EPS)
    scale = gamma.astype(jnp.float32) * inv
    shift = beta.astype(jnp.float32) - mu * scale

    zf = z.reshape(G * R, C)
    tmb = _pick_row_tile(G * R,
                         bytes_per_row=2 * 4 * C + 2 * jnp.dtype(out_dtype).itemsize * C)
    y = scale_shift_relu(zf, scale, shift, out_dtype, tmb)
    return y.reshape(G, R, C)


# ----------------------------------------------------------------------------
# ConvTranspose2d(k=4, s=2, p=1) as 4 output-phase matmuls:
#   out[n, 2p+rh, 2q+rw, :] = sum over 4 taps of  in[n, p+dh, q+dw, :] @ W[:, :, kh, kw]
# ----------------------------------------------------------------------------
_TAPS = {0: ((0, 1), (-1, 3)),     # even output row/col: (offset, kernel index) pairs
         1: ((1, 0), (0, 2))}      # odd  output row/col


def _deconv_phase_cols(y, wt):
    """y: (N, H, W, C); wt: (Cin, Cout, 4, 4) torch ConvTranspose2d weight.
    Returns cols: (4, N*H*W, 4*Cin), wmat: (4, 4*Cin, Cout), phase-major (rh, rw)."""
    N, H, W, C = y.shape
    yp = jnp.pad(y, ((0, 0), (1, 1), (1, 1), (0, 0)))
    cols_list, w_list = [], []
    for rh in (0, 1):
        for rw in (0, 1):
            c_parts, w_parts = [], []
            for dh, kh in _TAPS[rh]:
                for dw, kw in _TAPS[rw]:
                    c_parts.append(yp[:, 1 + dh:1 + dh + H, 1 + dw:1 + dw + W, :])
                    w_parts.append(wt[:, :, kh, kw])                   # (Cin, Cout)
            cols_list.append(jnp.concatenate(c_parts, axis=-1).reshape(N * H * W, 4 * C))
            w_list.append(jnp.concatenate(w_parts, axis=0))            # (4*Cin, Cout)
    return jnp.stack(cols_list, axis=0), jnp.stack(w_list, axis=0)


# ----------------------------------------------------------------------------
# Full decoder block forward (NCHW in / NCHW out, like the PyTorch module)
# ----------------------------------------------------------------------------
def decoder_block_forward(x_nchw, params):
    N, Cin, H, W = x_nchw.shape
    Cmid = params["w1"].shape[0]      # in_channels // 4
    Cout = params["w3"].shape[0]      # n_filters

    # TODO(synk): the NCHW <-> channels-last transposes exist only to match the PyTorch
    # boundary; drop them if the surrounding network keeps NHWC.
    x = jnp.transpose(x_nchw, (0, 2, 3, 1)).reshape(1, N * H * W, Cin)

    # --- stage 1: conv1 (1x1) + norm1 + relu --------------------------------
    w1 = params["w1"][:, :, 0, 0].T                    # (Cin, Cmid)
    y1 = fused_linear_bn_relu(x, w1[None], params["g1"], params["be1"], jnp.bfloat16)
    y1 = y1.reshape(N, H, W, Cmid)

    # --- stage 2: deconv2 (k=4, s=2, p=1) + norm2 + relu --------------------
    cols, wmat = _deconv_phase_cols(y1, params["wt"])  # (4, NHW, 4*Cmid), (4, 4*Cmid, Cmid)
    y2 = fused_linear_bn_relu(cols, wmat, params["g2"], params["be2"], jnp.bfloat16)

    # --- stage 3: conv3 (1x1) + norm3 + relu --------------------------------
    # 1x1 conv + BN are per-pixel, so stage 3 runs directly on the phase-major
    # layout -- no interleave / transpose between stages 2 and 3.
    w3 = params["w3"][:, :, 0, 0].T                    # (Cmid, Cout)
    y3 = fused_linear_bn_relu(y2.reshape(1, 4 * N * H * W, Cmid), w3[None],
                              params["g3"], params["be3"], jnp.float32)

    # single shuffle at the end: phase interleave + channels-last -> NCHW
    y3 = y3.reshape(2, 2, N, H, W, Cout)
    y3 = jnp.transpose(y3, (2, 5, 3, 0, 4, 1)).reshape(N, Cout, 2 * H, 2 * W)
    return y3


# ----------------------------------------------------------------------------
# Pure-JAX reference (NCHW, independent deconv formulation) for correctness.
# Matmul/conv operands are cast to bf16 with f32 accumulation, matching the MXU path.
# ----------------------------------------------------------------------------
def _ref_bn_relu(z, gamma, beta):
    mu = z.mean(axis=(0, 2, 3), keepdims=True)
    var = ((z - mu) ** 2).mean(axis=(0, 2, 3), keepdims=True)
    y = (z - mu) * lax.rsqrt(var + EPS) * gamma.reshape(1, -1, 1, 1) \
        + beta.reshape(1, -1, 1, 1)
    return jnp.maximum(y, 0.0)


def reference_forward(x_nchw, p):
    bf = jnp.bfloat16

    def conv1x1(z, w, b):
        out = jnp.einsum("nchw,oc->nohw", z.astype(bf), w[:, :, 0, 0].astype(bf),
                         preferred_element_type=jnp.float32)
        return out + b.reshape(1, -1, 1, 1)

    z = _ref_bn_relu(conv1x1(x_nchw, p["w1"], p["b1"]), p["g1"], p["be1"])
    # ConvTranspose2d(4,2,1) via lhs-dilated cross-correlation with flipped kernel
    wk = jnp.transpose(p["wt"][:, :, ::-1, ::-1], (1, 0, 2, 3))        # OIHW
    z = lax.conv_general_dilated(
        z.astype(bf), wk.astype(bf), window_strides=(1, 1), padding=((2, 2), (2, 2)),
        lhs_dilation=(2, 2), dimension_numbers=("NCHW", "OIHW", "NCHW"),
        preferred_element_type=jnp.float32)
    z = _ref_bn_relu(z + p["bt"].reshape(1, -1, 1, 1), p["g2"], p["be2"])
    z = _ref_bn_relu(conv1x1(z, p["w3"], p["b3"]), p["g3"], p["be3"])
    return z


# ----------------------------------------------------------------------------
def init_params(key, in_channels, n_filters):
    cmid = in_channels // 4
    ks = jax.random.split(key, 6)
    f32 = jnp.float32
    return {
        # conv1: Conv2d(in_channels, cmid, 1)
        "w1": 0.1 * jax.random.normal(ks[0], (cmid, in_channels, 1, 1), f32),
        "b1": 0.05 * jax.random.normal(ks[1], (cmid,), f32),
        "g1": jnp.ones((cmid,), f32), "be1": jnp.zeros((cmid,), f32),
        # deconv2: ConvTranspose2d(cmid, cmid, 4, stride=2, padding=1)
        "wt": 0.1 * jax.random.normal(ks[2], (cmid, cmid, 4, 4), f32),
        "bt": 0.05 * jax.random.normal(ks[3], (cmid,), f32),
        "g2": jnp.ones((cmid,), f32), "be2": jnp.zeros((cmid,), f32),
        # conv3: Conv2d(cmid, n_filters, 1)
        "w3": 0.1 * jax.random.normal(ks[4], (n_filters, cmid, 1, 1), f32),
        "b3": 0.05 * jax.random.normal(ks[5], (n_filters,), f32),
        "g3": jnp.ones((n_filters,), f32), "be3": jnp.zeros((n_filters,), f32),
    }


if __name__ == "__main__":
    key = jax.random.PRNGKey(0)
    kx, kp = jax.random.split(key)

    N, IN_CH, H, W = 2, 128, 32, 32
    N_FILTERS = 64

    x = jax.random.normal(kx, (N, IN_CH, H, W), jnp.float32)   # NCHW, like PyTorch
    params = init_params(kp, IN_CH, N_FILTERS)

    fwd = jax.jit(decoder_block_forward)
    out = jax.block_until_ready(fwd(x, params))
    assert out.shape == (N, N_FILTERS, 2 * H, 2 * W), out.shape

    ref = jax.block_until_ready(reference_forward(x, params))
    np.testing.assert_allclose(np.asarray(out), np.asarray(ref), rtol=1e-2, atol=1e-2)

    print("KERNEL_OK")
</pallas_src>

<mosaic_0001>
module attributes {stable_mosaic.version = 11 : i64} {
  func.func @_mm_stats_kernel(%arg0: i32, %arg1: i32, %arg2: memref<1x1024x128xbf16, #tpu.memory_space<vmem>>, %arg3: memref<1x128x32xbf16, #tpu.memory_space<vmem>>, %arg4: memref<1x1024x32xf32, #tpu.memory_space<vmem>>, %arg5: memref<1x1x1x32xf32, #tpu.memory_space<vmem>>, %arg6: memref<1x1x1x32xf32, #tpu.memory_space<vmem>>) attributes {dimension_semantics = [#tpu.dimension_semantics<parallel>, #tpu.dimension_semantics<parallel>], iteration_bounds = array<i64: 1, 2>, scalar_prefetch = 0 : i64, scratch_operands = 0 : i64, tpu.core_type = #tpu.core_type<tc>, window_params = [{transform_indices = @transform_0, window_bounds = array<i64: 1, 1024, 128>}, {transform_indices = @transform_1, window_bounds = array<i64: 1, 128, 32>}, {transform_indices = @transform_2, window_bounds = array<i64: 1, 1024, 32>}, {transform_indices = @transform_3, window_bounds = array<i64: 1, 1, 1, 32>}, {transform_indices = @transform_4, window_bounds = array<i64: 1, 1, 1, 32>}]} {
    %c0 = arith.constant 0 : index
    %c0_0 = arith.constant 0 : index
    %c0_1 = arith.constant 0 : index
    %0 = vector.load %arg2[%c0, %c0_0, %c0_1] : memref<1x1024x128xbf16, #tpu.memory_space<vmem>>, vector<1x1024x128xbf16>
    %1 = vector.shape_cast %0 : vector<1x1024x128xbf16> to vector<1024x128xbf16>
    %c0_2 = arith.constant 0 : index
    %c0_3 = arith.constant 0 : index
    %c0_4 = arith.constant 0 : index
    %2 = vector.load %arg3[%c0_2, %c0_3, %c0_4] : memref<1x128x32xbf16, #tpu.memory_space<vmem>>, vector<1x128x32xbf16>
    %3 = vector.shape_cast %2 : vector<1x128x32xbf16> to vector<128x32xbf16>
    %cst = arith.constant dense<0.000000e+00> : vector<1024x32xf32>
    %4 = tpu.matmul %1, %3, %cst {dimension_numbers = #tpu.dot_dimension_numbers<[1], [0], [0], [1], [0, 0, 1, 1], [], []>} : vector<1024x128xbf16>, vector<128x32xbf16>, vector<1024x32xf32> -> vector<1024x32xf32>
    %c0_5 = arith.constant 0 : index
    %c0_6 = arith.constant 0 : index
    %c0_7 = arith.constant 0 : index
    %5 = vector.load %arg4[%c0_5, %c0_6, %c0_7] : memref<1x1024x32xf32, #tpu.memory_space<vmem>>, vector<1x1024x32xf32>
    %6 = vector.shape_cast %5 : vector<1x1024x32xf32> to vector<1024x32xf32>
    %7 = vector.shape_cast %4 : vector<1024x32xf32> to vector<1x1024x32xf32>
    tpu.vector_store %arg4[%c0_5, %c0_6, %c0_7], %7 {strides = array<i32>} : memref<1x1024x32xf32, #tpu.memory_space<vmem>>, vector<1x1024x32xf32>,
    %cst_8 = arith.constant dense<0.000000e+00> : vector<32xf32>
    %8 = vector.multi_reduction <add>, %4, %cst_8 [0] : vector<1024x32xf32> to vector<32xf32>
    %9 = vector.shape_cast %8 : vector<32xf32> to vector<1x32xf32>
    %c0_9 = arith.constant 0 : index
    %c0_10 = arith.constant 0 : index
    %c0_11 = arith.constant 0 : index
    %c0_12 = arith.constant 0 : index
    %10 = vector.load %arg5[%c0_9, %c0_10, %c0_11, %c0_12] : memref<1x1x1x32xf32, #tpu.memory_space<vmem>>, vector<1x1x1x32xf32>
    %11 = vector.shape_cast %10 : vector<1x1x1x32xf32> to vector<1x32xf32>
    %12 = vector.shape_cast %9 : vector<1x32xf32> to vector<1x1x1x32xf32>
    tpu.vector_store %arg5[%c0_9, %c0_10, %c0_11, %c0_12], %12 {strides = array<i32>} : memref<1x1x1x32xf32, #tpu.memory_space<vmem>>, vector<1x1x1x32xf32>,
    %13 = arith.mulf %4, %4 : vector<1024x32xf32>
    %cst_13 = arith.constant dense<0.000000e+00> : vector<32xf32>
    %14 = vector.multi_reduction <add>, %13, %cst_13 [0] : vector<1024x32xf32> to vector<32xf32>
    %15 = vector.shape_cast %14 : vector<32xf32> to vector<1x32xf32>
    %c0_14 = arith.constant 0 : index
    %c0_15 = arith.constant 0 : index
    %c0_16 = arith.constant 0 : index
    %c0_17 = arith.constant 0 : index
    %16 = vector.load %arg6[%c0_14, %c0_15, %c0_16, %c0_17] : memref<1x1x1x32xf32, #tpu.memory_space<vmem>>, vector<1x1x1x32xf32>
    %17 = vector.shape_cast %16 : vector<1x1x1x32xf32> to vector<1x32xf32>
    %18 = vector.shape_cast %15 : vector<1x32xf32> to vector<1x1x1x32xf32>
    tpu.vector_store %arg6[%c0_14, %c0_15, %c0_16, %c0_17], %18 {strides = array<i32>} : memref<1x1x1x32xf32, #tpu.memory_space<vmem>>, vector<1x1x1x32xf32>,
    return
  }
  func.func @transform_0(%arg0: i32, %arg1: i32) -> (i32, i32, i32) {
    %c0_i32 = arith.constant 0 : i32
    %c0_i32_0 = arith.constant 0 : i32
    return %arg0, %arg1, %c0_i32 : i32, i32, i32
  }
  func.func @transform_1(%arg0: i32, %arg1: i32) -> (i32, i32, i32) {
    %c0_i32 = arith.constant 0 : i32
    %c0_i32_0 = arith.constant 0 : i32
    %c0_i32_1 = arith.constant 0 : i32
    return %arg0, %c0_i32, %c0_i32_0 : i32, i32, i32
  }
  func.func @transform_2(%arg0: i32, %arg1: i32) -> (i32, i32, i32) {
    %c0_i32 = arith.constant 0 : i32
    %c0_i32_0 = arith.constant 0 : i32
    return %arg0, %arg1, %c0_i32 : i32, i32, i32
  }
  func.func @transform_3(%arg0: i32, %arg1: i32) -> (i32, i32, i32, i32) {
    %c0_i32 = arith.constant 0 : i32
    %c0_i32_0 = arith.constant 0 : i32
    %c0_i32_1 = arith.constant 0 : i32
    return %arg0, %arg1, %c0_i32, %c0_i32_0 : i32, i32, i32, i32
  }
  func.func @transform_4(%arg0: i32, %arg1: i32) -> (i32, i32, i32, i32) {
    %c0_i32 = arith.constant 0 : i32
    %c0_i32_0 = arith.constant 0 : i32
    %c0_i32_1 = arith.constant 0 : i32
    return %arg0, %arg1, %c0_i32, %c0_i32_0 : i32, i32, i32, i32
  }
}

module attributes {stable_mosaic.version = 11 : i64} {
  func.func @_scale_shift_relu_kernel(%arg0: i32, %arg1: memref<1024x32xf32, #tpu.memory_space<vmem>>, %arg2: memref<1x32xf32, #tpu.memory_space<vmem>>, %arg3: memref<1x32xf32, #tpu.memory_space<vmem>>, %arg4: memref<1024x32xbf16, #tpu.memory_space<vmem>>) attributes {dimension_semantics = [#tpu.dimension_semantics<parallel>], iteration_bounds = array<i64: 2>, scalar_prefetch = 0 : i64, scratch_operands = 0 : i64, tpu.core_type = #tpu.core_type<tc>, window_params = [{transform_indices = @transform_0, window_bounds = array<i64: 1024, 32>}, {pipeline_mode = #tpu.pipeline_mode<synchronous>, transform_indices = @transform_1, window_bounds = array<i64: 1, 32>}, {pipeline_mode = #tpu.pipeline_mode<synchronous>, transform_indices = @transform_2, window_bounds = array<i64: 1, 32>}, {transform_indices = @transform_3, window_bounds = array<i64: 1024, 32>}]} {
    %c0 = arith.constant 0 : index
    %c0_0 = arith.constant 0 : index
    %0 = vector.load %arg1[%c0, %c0_0] : memref<1024x32xf32, #tpu.memory_space<vmem>>, vector<1024x32xf32>
    %c0_1 = arith.constant 0 : index
    %c0_2 = arith.constant 0 : index
    %1 = vector.load %arg2[%c0_1, %c0_2] : memref<1x32xf32, #tpu.memory_space<vmem>>, vector<1x32xf32>
    %2 = vector.broadcast %1 : vector<1x32xf32> to vector<1024x32xf32>
    %3 = arith.mulf %0, %2 : vector<1024x32xf32>
    %c0_3 = arith.constant 0 : index
    %c0_4 = arith.constant 0 : index
    %4 = vector.load %arg3[%c0_3, %c0_4] : memref<1x32xf32, #tpu.memory_space<vmem>>, vector<1x32xf32>
    %5 = vector.broadcast %4 : vector<1x32xf32> to vector<1024x32xf32>
    %6 = arith.addf %3, %5 : vector<1024x32xf32>
    %cst = arith.constant 0.000000e+00 : f32
    %7 = vector.broadcast %cst : f32 to vector<1024x32xf32>
    %8 = arith.maximumf %6, %7 : vector<1024x32xf32>
    %9 = arith.truncf %8 : vector<1024x32xf32> to vector<1024x32xbf16>
    %c0_5 = arith.constant 0 : index
    %c0_6 = arith.constant 0 : index
    %10 = vector.load %arg4[%c0_5, %c0_6] : memref<1024x32xbf16, #tpu.memory_space<vmem>>, vector<1024x32xbf16>
    tpu.vector_store %arg4[%c0_5, %c0_6], %9 {strides = array<i32>} : memref<1024x32xbf16, #tpu.memory_space<vmem>>, vector<1024x32xbf16>,
    return
  }
  func.func @transform_0(%arg0: i32) -> (i32, i32) {
    %c0_i32 = arith.constant 0 : i32
    %c0_i32_0 = arith.constant 0 : i32
    return %arg0, %c0_i32 : i32, i32
  }
  func.func @transform_1(%arg0: i32) -> (i32, i32) {
    %c0_i32 = arith.constant 0 : i32
    %c0_i32_0 = arith.constant 0 : i32
    %c0_i32_1 = arith.constant 0 : i32
    return %c0_i32, %c0_i32_0 : i32, i32
  }
  func.func @transform_2(%arg0: i32) -> (i32, i32) {
    %c0_i32 = arith.constant 0 : i32
    %c0_i32_0 = arith.constant 0 : i32
    %c0_i32_1 = arith.constant 0 : i32
    return %c0_i32, %c0_i32_0 : i32, i32
  }
  func.func @transform_3(%arg0: i32) -> (i32, i32) {
    %c0_i32 = arith.constant 0 : i32
    %c0_i32_0 = arith.constant 0 : i32
    return %arg0, %c0_i32 : i32, i32
  }
}

module attributes {stable_mosaic.version = 11 : i64} {
  func.func @_mm_stats_kernel(%arg0: i32, %arg1: i32, %arg2: memref<1x1024x128xbf16, #tpu.memory_space<vmem>>, %arg3: memref<1x128x32xbf16, #tpu.memory_space<vmem>>, %arg4: memref<1x1024x32xf32, #tpu.memory_space<vmem>>, %arg5: memref<1x1x1x32xf32, #tpu.memory_space<vmem>>, %arg6: memref<1x1x1x32xf32, #tpu.memory_space<vmem>>) attributes {dimension_semantics = [#tpu.dimension_semantics<parallel>, #tpu.dimension_semantics<parallel>], iteration_bounds = array<i64: 4, 2>, scalar_prefetch = 0 : i64, scratch_operands = 0 : i64, tpu.core_type = #tpu.core_type<tc>, window_params = [{transform_indices = @transform_0, window_bounds = array<i64: 1, 1024, 128>}, {transform_indices = @transform_1, window_bounds = array<i64: 1, 128, 32>}, {transform_indices = @transform_2, window_bounds = array<i64: 1, 1024, 32>}, {transform_indices = @transform_3, window_bounds = array<i64: 1, 1, 1, 32>}, {transform_indices = @transform_4, window_bounds = array<i64: 1, 1, 1, 32>}]} {
    %c0 = arith.constant 0 : index
    %c0_0 = arith.constant 0 : index
    %c0_1 = arith.constant 0 : index
    %0 = vector.load %arg2[%c0, %c0_0, %c0_1] : memref<1x1024x128xbf16, #tpu.memory_space<vmem>>, vector<1x1024x128xbf16>
    %1 = vector.shape_cast %0 : vector<1x1024x128xbf16> to vector<1024x128xbf16>
    %c0_2 = arith.constant 0 : index
    %c0_3 = arith.constant 0 : index
    %c0_4 = arith.constant 0 : index
    %2 = vector.load %arg3[%c0_2, %c0_3, %c0_4] : memref<1x128x32xbf16, #tpu.memory_space<vmem>>, vector<1x128x32xbf16>
    %3 = vector.shape_cast %2 : vector<1x128x32xbf16> to vector<128x32xbf16>
    %cst = arith.constant dense<0.000000e+00> : vector<1024x32xf32>
    %4 = tpu.matmul %1, %3, %cst {dimension_numbers = #tpu.dot_dimension_numbers<[1], [0], [0], [1], [0, 0, 1, 1], [], []>} : vector<1024x128xbf16>, vector<128x32xbf16>, vector<1024x32xf32> -> vector<1024x32xf32>
    %c0_5 = arith.constant 0 : index
    %c0_6 = arith.constant 0 : index
    %c0_7 = arith.constant 0 : index
    %5 = vector.load %arg4[%c0_5, %c0_6, %c0_7] : memref<1x1024x32xf32, #tpu.memory_space<vmem>>, vector<1x1024x32xf32>
    %6 = vector.shape_cast %5 : vector<1x1024x32xf32> to vector<1024x32xf32>
    %7 = vector.shape_cast %4 : vector<1024x32xf32> to vector<1x1024x32xf32>
    tpu.vector_store %arg4[%c0_5, %c0_6, %c0_7], %7 {strides = array<i32>} : memref<1x1024x32xf32, #tpu.memory_space<vmem>>, vector<1x1024x32xf32>,
    %cst_8 = arith.constant dense<0.000000e+00> : vector<32xf32>
    %8 = vector.multi_reduction <add>, %4, %cst_8 [0] : vector<1024x32xf32> to vector<32xf32>
    %9 = vector.shape_cast %8 : vector<32xf32> to vector<1x32xf32>
    %c0_9 = arith.constant 0 : index
    %c0_10 = arith.constant 0 : index
    %c0_11 = arith.constant 0 : index
    %c0_12 = arith.constant 0 : index
    %10 = vector.load %arg5[%c0_9, %c0_10, %c0_11, %c0_12] : memref<1x1x1x32xf32, #tpu.memory_space<vmem>>, vector<1x1x1x32xf32>
    %11 = vector.shape_cast %10 : vector<1x1x1x32xf32> to vector<1x32xf32>
    %12 = vector.shape_cast %9 : vector<1x32xf32> to vector<1x1x1x32xf32>
    tpu.vector_store %arg5[%c0_9, %c0_10, %c0_11, %c0_12], %12 {strides = array<i32>} : memref<1x1x1x32xf32, #tpu.memory_space<vmem>>, vector<1x1x1x32xf32>,
    %13 = arith.mulf %4, %4 : vector<1024x32xf32>
    %cst_13 = arith.constant dense<0.000000e+00> : vector<32xf32>
    %14 = vector.multi_reduction <add>, %13, %cst_13 [0] : vector<1024x32xf32> to vector<32xf32>
    %15 = vector.shape_cast %14 : vector<32xf32> to vector<1x32xf32>
    %c0_14 = arith.constant 0 : index
    %c0_15 = arith.constant 0 : index
    %c0_16 = arith.constant 0 : index
    %c0_17 = arith.constant 0 : index
    %16 = vector.load %arg6[%c0_14, %c0_15, %c0_16, %c0_17] : memref<1x1x1x32xf32, #tpu.memory_space<vmem>>, vector<1x1x1x32xf32>
    %17 = vector.shape_cast %16 : vector<1x1x1x32xf32> to vector<1x32xf32>
    %18 = vector.shape_cast %15 : vector<1x32xf32> to vector<1x1x1x32xf32>
    tpu.vector_store %arg6[%c0_14, %c0_15, %c0_16, %c0_17], %18 {strides = array<i32>} : memref<1x1x1x32xf32, #tpu.memory_space<vmem>>, vector<1x1x1x32xf32>,
    return
  }
  func.func @transform_0(%arg0: i32, %arg1: i32) -> (i32, i32, i32) {
    %c0_i32 = arith.constant 0 : i32
    %c0_i32_0 = arith.constant 0 : i32
    return %arg0, %arg1, %c0_i32 : i32, i32, i32
  }
  func.func @transform_1(%arg0: i32, %arg1: i32) -> (i32, i32, i32) {
    %c0_i32 = arith.constant 0 : i32
    %c0_i32_0 = arith.constant 0 : i32
    %c0_i32_1 = arith.constant 0 : i32
    return %arg0, %c0_i32, %c0_i32_0 : i32, i32, i32
  }
  func.func @transform_2(%arg0: i32, %arg1: i32) -> (i32, i32, i32) {
    %c0_i32 = arith.constant 0 : i32
    %c0_i32_0 = arith.constant 0 : i32
    return %arg0, %arg1, %c0_i32 : i32, i32, i32
  }
  func.func @transform_3(%arg0: i32, %arg1: i32) -> (i32, i32, i32, i32) {
    %c0_i32 = arith.constant 0 : i32
    %c0_i32_0 = arith.constant 0 : i32
    %c0_i32_1 = arith.constant 0 : i32
    return %arg0, %arg1, %c0_i32, %c0_i32_0 : i32, i32, i32, i32
  }
  func.func @transform_4(%arg0: i32, %arg1: i32) -> (i32, i32, i32, i32) {
    %c0_i32 = arith.constant 0 : i32
    %c0_i32_0 = arith.constant 0 : i32
    %c0_i32_1 = arith.constant 0 : i32
    return %arg0, %arg1, %c0_i32, %c0_i32_0 : i32, i32, i32, i32
  }
}

module attributes {stable_mosaic.version = 11 : i64} {
  func.func @_scale_shift_relu_kernel(%arg0: i32, %arg1: memref<1024x32xf32, #tpu.memory_space<vmem>>, %arg2: memref<1x32xf32, #tpu.memory_space<vmem>>, %arg3: memref<1x32xf32, #tpu.memory_space<vmem>>, %arg4: memref<1024x32xbf16, #tpu.memory_space<vmem>>) attributes {dimension_semantics = [#tpu.dimension_semantics<parallel>], iteration_bounds = array<i64: 8>, scalar_prefetch = 0 : i64, scratch_operands = 0 : i64, tpu.core_type = #tpu.core_type<tc>, window_params = [{transform_indices = @transform_0, window_bounds = array<i64: 1024, 32>}, {pipeline_mode = #tpu.pipeline_mode<synchronous>, transform_indices = @transform_1, window_bounds = array<i64: 1, 32>}, {pipeline_mode = #tpu.pipeline_mode<synchronous>, transform_indices = @transform_2, window_bounds = array<i64: 1, 32>}, {transform_indices = @transform_3, window_bounds = array<i64: 1024, 32>}]} {
    %c0 = arith.constant 0 : index
    %c0_0 = arith.constant 0 : index
    %0 = vector.load %arg1[%c0, %c0_0] : memref<1024x32xf32, #tpu.memory_space<vmem>>, vector<1024x32xf32>
    %c0_1 = arith.constant 0 : index
    %c0_2 = arith.constant 0 : index
    %1 = vector.load %arg2[%c0_1, %c0_2] : memref<1x32xf32, #tpu.memory_space<vmem>>, vector<1x32xf32>
    %2 = vector.broadcast %1 : vector<1x32xf32> to vector<1024x32xf32>
    %3 = arith.mulf %0, %2 : vector<1024x32xf32>
    %c0_3 = arith.constant 0 : index
    %c0_4 = arith.constant 0 : index
    %4 = vector.load %arg3[%c0_3, %c0_4] : memref<1x32xf32, #tpu.memory_space<vmem>>, vector<1x32xf32>
    %5 = vector.broadcast %4 : vector<1x32xf32> to vector<1024x32xf32>
    %6 = arith.addf %3, %5 : vector<1024x32xf32>
    %cst = arith.constant 0.000000e+00 : f32
    %7 = vector.broadcast %cst : f32 to vector<1024x32xf32>
    %8 = arith.maximumf %6, %7 : vector<1024x32xf32>
    %9 = arith.truncf %8 : vector<1024x32xf32> to vector<1024x32xbf16>
    %c0_5 = arith.constant 0 : index
    %c0_6 = arith.constant 0 : index
    %10 = vector.load %arg4[%c0_5, %c0_6] : memref<1024x32xbf16, #tpu.memory_space<vmem>>, vector<1024x32xbf16>
    tpu.vector_store %arg4[%c0_5, %c0_6], %9 {strides = array<i32>} : memref<1024x32xbf16, #tpu.memory_space<vmem>>, vector<1024x32xbf16>,
    return
  }
  func.func @transform_0(%arg0: i32) -> (i32, i32) {
    %c0_i32 = arith.constant 0 : i32
    %c0_i32_0 = arith.constant 0 : i32
    return %arg0, %c0_i32 : i32, i32
  }
  func.func @transform_1(%arg0: i32) -> (i32, i32) {
    %c0_i32 = arith.constant 0 : i32
    %c0_i32_0 = arith.constant 0 : i32
    %c0_i32_1 = arith.constant 0 : i32
    return %c0_i32, %c0_i32_0 : i32, i32
  }
  func.func @transform_2(%arg0: i32) -> (i32, i32) {
    %c0_i32 = arith.constant 0 : i32
    %c0_i32_0 = arith.constant 0 : i32
    %c0_i32_1 = arith.constant 0 : i32
    return %c0_i32, %c0_i32_0 : i32, i32
  }
  func.func @transform_3(%arg0: i32) -> (i32, i32) {
    %c0_i32 = arith.constant 0 : i32
    %c0_i32_0 = arith.constant 0 : i32
    return %arg0, %c0_i32 : i32, i32
  }
}

module attributes {stable_mosaic.version = 11 : i64} {
  func.func @_scale_shift_relu_kernel(%arg0: i32, %arg1: memref<1024x64xf32, #tpu.memory_space<vmem>>, %arg2: memref<1x64xf32, #tpu.memory_space<vmem>>, %arg3: memref<1x64xf32, #tpu.memory_space<vmem>>, %arg4: memref<1024x64xf32, #tpu.memory_space<vmem>>) attributes {dimension_semantics = [#tpu.dimension_semantics<parallel>], iteration_bounds = array<i64: 8>, scalar_prefetch = 0 : i64, scratch_operands = 0 : i64, tpu.core_type = #tpu.core_type<tc>, window_params = [{transform_indices = @transform_0, window_bounds = array<i64: 1024, 64>}, {pipeline_mode = #tpu.pipeline_mode<synchronous>, transform_indices = @transform_1, window_bounds = array<i64: 1, 64>}, {pipeline_mode = #tpu.pipeline_mode<synchronous>, transform_indices = @transform_2, window_bounds = array<i64: 1, 64>}, {transform_indices = @transform_3, window_bounds = array<i64: 1024, 64>}]} {
    %c0 = arith.constant 0 : index
    %c0_0 = arith.constant 0 : index
    %0 = vector.load %arg1[%c0, %c0_0] : memref<1024x64xf32, #tpu.memory_space<vmem>>, vector<1024x64xf32>
    %c0_1 = arith.constant 0 : index
    %c0_2 = arith.constant 0 : index
    %1 = vector.load %arg2[%c0_1, %c0_2] : memref<1x64xf32, #tpu.memory_space<vmem>>, vector<1x64xf32>
    %2 = vector.broadcast %1 : vector<1x64xf32> to vector<1024x64xf32>
    %3 = arith.mulf %0, %2 : vector<1024x64xf32>
    %c0_3 = arith.constant 0 : index
    %c0_4 = arith.constant 0 : index
    %4 = vector.load %arg3[%c0_3, %c0_4] : memref<1x64xf32, #tpu.memory_space<vmem>>, vector<1x64xf32>
    %5 = vector.broadcast %4 : vector<1x64xf32> to vector<1024x64xf32>
    %6 = arith.addf %3, %5 : vector<1024x64xf32>
    %cst = arith.constant 0.000000e+00 : f32
    %7 = vector.broadcast %cst : f32 to vector<1024x64xf32>
    %8 = arith.maximumf %6, %7 : vector<1024x64xf32>
    %c0_5 = arith.constant 0 : index
    %c0_6 = arith.constant 0 : index
    %9 = vector.load %arg4[%c0_5, %c0_6] : memref<1024x64xf32, #tpu.memory_space<vmem>>, vector<1024x64xf32>
    tpu.vector_store %arg4[%c0_5, %c0_6], %8 {strides = array<i32>} : memref<1024x64xf32, #tpu.memory_space<vmem>>, vector<1024x64xf32>,
    return
  }
  func.func @transform_0(%arg0: i32) -> (i32, i32) {
    %c0_i32 = arith.constant 0 : i32
    %c0_i32_0 = arith.constant 0 : i32
    return %arg0, %c0_i32 : i32, i32
  }
  func.func @transform_1(%arg0: i32) -> (i32, i32) {
    %c0_i32 = arith.constant 0 : i32
    %c0_i32_0 = arith.constant 0 : i32
    %c0_i32_1 = arith.constant 0 : i32
    return %c0_i32, %c0_i32_0 : i32, i32
  }
  func.func @transform_2(%arg0: i32) -> (i32, i32) {
    %c0_i32 = arith.constant 0 : i32
    %c0_i32_0 = arith.constant 0 : i32
    %c0_i32_1 = arith.constant 0 : i32
    return %c0_i32, %c0_i32_0 : i32, i32
  }
  func.func @transform_3(%arg0: i32) -> (i32, i32) {
    %c0_i32 = arith.constant 0 : i32
    %c0_i32_0 = arith.constant 0 : i32
    return %arg0, %c0_i32 : i32, i32
  }
}

module attributes {stable_mosaic.version = 11 : i64} {
  func.func @_mm_stats_kernel(%arg0: i32, %arg1: i32, %arg2: memref<1x1024x32xbf16, #tpu.memory_space<vmem>>, %arg3: memref<1x32x64xbf16, #tpu.memory_space<vmem>>, %arg4: memref<1x1024x64xf32, #tpu.memory_space<vmem>>, %arg5: memref<1x1x1x64xf32, #tpu.memory_space<vmem>>, %arg6: memref<1x1x1x64xf32, #tpu.memory_space<vmem>>) attributes {dimension_semantics = [#tpu.dimension_semantics<parallel>, #tpu.dimension_semantics<parallel>], iteration_bounds = array<i64: 1, 8>, scalar_prefetch = 0 : i64, scratch_operands = 0 : i64, tpu.core_type = #tpu.core_type<tc>, window_params = [{transform_indices = @transform_0, window_bounds = array<i64: 1, 1024, 32>}, {transform_indices = @transform_1, window_bounds = array<i64: 1, 32, 64>}, {transform_indices = @transform_2, window_bounds = array<i64: 1, 1024, 64>}, {transform_indices = @transform_3, window_bounds = array<i64: 1, 1, 1, 64>}, {transform_indices = @transform_4, window_bounds = array<i64: 1, 1, 1, 64>}]} {
    %c0 = arith.constant 0 : index
    %c0_0 = arith.constant 0 : index
    %c0_1 = arith.constant 0 : index
    %0 = vector.load %arg2[%c0, %c0_0, %c0_1] : memref<1x1024x32xbf16, #tpu.memory_space<vmem>>, vector<1x1024x32xbf16>
    %1 = vector.shape_cast %0 : vector<1x1024x32xbf16> to vector<1024x32xbf16>
    %c0_2 = arith.constant 0 : index
    %c0_3 = arith.constant 0 : index
    %c0_4 = arith.constant 0 : index
    %2 = vector.load %arg3[%c0_2, %c0_3, %c0_4] : memref<1x32x64xbf16, #tpu.memory_space<vmem>>, vector<1x32x64xbf16>
    %3 = vector.shape_cast %2 : vector<1x32x64xbf16> to vector<32x64xbf16>
    %cst = arith.constant dense<0.000000e+00> : vector<1024x64xf32>
    %4 = tpu.matmul %1, %3, %cst {dimension_numbers = #tpu.dot_dimension_numbers<[1], [0], [0], [1], [0, 0, 1, 1], [], []>} : vector<1024x32xbf16>, vector<32x64xbf16>, vector<1024x64xf32> -> vector<1024x64xf32>
    %c0_5 = arith.constant 0 : index
    %c0_6 = arith.constant 0 : index
    %c0_7 = arith.constant 0 : index
    %5 = vector.load %arg4[%c0_5, %c0_6, %c0_7] : memref<1x1024x64xf32, #tpu.memory_space<vmem>>, vector<1x1024x64xf32>
    %6 = vector.shape_cast %5 : vector<1x1024x64xf32> to vector<1024x64xf32>
    %7 = vector.shape_cast %4 : vector<1024x64xf32> to vector<1x1024x64xf32>
    tpu.vector_store %arg4[%c0_5, %c0_6, %c0_7], %7 {strides = array<i32>} : memref<1x1024x64xf32, #tpu.memory_space<vmem>>, vector<1x1024x64xf32>,
    %cst_8 = arith.constant dense<0.000000e+00> : vector<64xf32>
    %8 = vector.multi_reduction <add>, %4, %cst_8 [0] : vector<1024x64xf32> to vector<64xf32>
    %9 = vector.shape_cast %8 : vector<64xf32> to vector<1x64xf32>
    %c0_9 = arith.constant 0 : index
    %c0_10 = arith.constant 0 : index
    %c0_11 = arith.constant 0 : index
    %c0_12 = arith.constant 0 : index
    %10 = vector.load %arg5[%c0_9, %c0_10, %c0_11, %c0_12] : memref<1x1x1x64xf32, #tpu.memory_space<vmem>>, vector<1x1x1x64xf32>
    %11 = vector.shape_cast %10 : vector<1x1x1x64xf32> to vector<1x64xf32>
    %12 = vector.shape_cast %9 : vector<1x64xf32> to vector<1x1x1x64xf32>
    tpu.vector_store %arg5[%c0_9, %c0_10, %c0_11, %c0_12], %12 {strides = array<i32>} : memref<1x1x1x64xf32, #tpu.memory_space<vmem>>, vector<1x1x1x64xf32>,
    %13 = arith.mulf %4, %4 : vector<1024x64xf32>
    %cst_13 = arith.constant dense<0.000000e+00> : vector<64xf32>
    %14 = vector.multi_reduction <add>, %13, %cst_13 [0] : vector<1024x64xf32> to vector<64xf32>
    %15 = vector.shape_cast %14 : vector<64xf32> to vector<1x64xf32>
    %c0_14 = arith.constant 0 : index
    %c0_15 = arith.constant 0 : index
    %c0_16 = arith.constant 0 : index
    %c0_17 = arith.constant 0 : index
    %16 = vector.load %arg6[%c0_14, %c0_15, %c0_16, %c0_17] : memref<1x1x1x64xf32, #tpu.memory_space<vmem>>, vector<1x1x1x64xf32>
    %17 = vector.shape_cast %16 : vector<1x1x1x64xf32> to vector<1x64xf32>
    %18 = vector.shape_cast %15 : vector<1x64xf32> to vector<1x1x1x64xf32>
    tpu.vector_store %arg6[%c0_14, %c0_15, %c0_16, %c0_17], %18 {strides = array<i32>} : memref<1x1x1x64xf32, #tpu.memory_space<vmem>>, vector<1x1x1x64xf32>,
    return
  }
  func.func @transform_0(%arg0: i32, %arg1: i32) -> (i32, i32, i32) {
    %c0_i32 = arith.constant 0 : i32
    %c0_i32_0 = arith.constant 0 : i32
    return %arg0, %arg1, %c0_i32 : i32, i32, i32
  }
  func.func @transform_1(%arg0: i32, %arg1: i32) -> (i32, i32, i32) {
    %c0_i32 = arith.constant 0 : i32
    %c0_i32_0 = arith.constant 0 : i32
    %c0_i32_1 = arith.constant 0 : i32
    return %arg0, %c0_i32, %c0_i32_0 : i32, i32, i32
  }
  func.func @transform_2(%arg0: i32, %arg1: i32) -> (i32, i32, i32) {
    %c0_i32 = arith.constant 0 : i32
    %c0_i32_0 = arith.constant 0 : i32
    return %arg0, %arg1, %c0_i32 : i32, i32, i32
  }
  func.func @transform_3(%arg0: i32, %arg1: i32) -> (i32, i32, i32, i32) {
    %c0_i32 = arith.constant 0 : i32
    %c0_i32_0 = arith.constant 0 : i32
    %c0_i32_1 = arith.constant 0 : i32
    return %arg0, %arg1, %c0_i32, %c0_i32_0 : i32, i32, i32, i32
  }
  func.func @transform_4(%arg0: i32, %arg1: i32) -> (i32, i32, i32, i32) {
    %c0_i32 = arith.constant 0 : i32
    %c0_i32_0 = arith.constant 0 : i32
    %c0_i32_1 = arith.constant 0 : i32
    return %arg0, %arg1, %c0_i32, %c0_i32_0 : i32, i32, i32, i32
  }
}

</mosaic_0001>

<bundles_post_ra>
// kernel: decoder_block_forward.7
= control target key start
LH: loop header
LB: loop body
LE: loop exit
PB: predicated region body
PF: predicated region fallthrough
CT: control target
= control target key end

     0   :  { %s1704_s12 = smov 0   ;;  %s2389_s0 = inlined_call_operand.vmem [shape: f32[2048,32], index: 0, kind: input, shape index: {}]   ;;  %s2390_s1 = inlined_call_operand.vmem [shape: f32[1,32], index: 1, kind: input, shape index: {}]   ;;  %s2391_s2 = inlined_call_operand.vmem [shape: f32[1,32], index: 2, kind: input, shape index: {}]   ;;  %s2392_s3 = inlined_call_operand.vmem [shape: bf16[2048,32], index: 3, kind: output, shape index: {}]  }
   0x1 LB: > { %s1397_s13 = sadd.s32 4294967295, %s1682_s12   ;;  %p1401_p0 = scmp.ge.s32.totalorder %s1682_s12, 1  ;;  %s1682_s12 = sphi %s1704_s12, %s13_s12  }
   0x2   : > { %p138_p1 = scmp.lt.s32.totalorder %s1682_s12, 3 }
   0x4   : > { %p139_p2 = pnand %p1401_p0, %p138_p1 }
   0x5   : > { %s1402_s14 = sshll.u32 (!%p139_p2), %s1397_s13, 7 }
   0x6   : > { %142 = sbr.rel (%p139_p2) target bundleno = 162 (0xa2), region = 32  ;;  %p163_p3 = scmp.lt.s32.totalorder (!%p139_p2), %s1402_s14, 255 }
   0xb   : > { %s2394_s14 = smov (!%p163_p3, %s1402_s14), 255  ;;  %v1718_v0 = vld [vmem:[%s2390_s1] ss:$0 sm:$0xff]  ;;  %vm1212_vm0 = vcmask 257024  }
   0xc   : > { %s1403_s15 = sshll.u32 %s2394_s14, 3  ;;  %v1728_v1 = vld [vmem:[%s2391_s2] ss:$0 sm:$0xff]  ;;  %s1405_s23 = sshll.u32 %s2394_s14, 2 }
   0xd   : > { %s1723_s20 = scalar_lea.vmem %s2389_s0, %s1403_s15  ;;  %s1757_s26 = scalar_lea.vmem %s2392_s3, %s1405_s23 }
   0xe   : > { %v174_v2 = vld [vmem:[%s1723_s20] sm:$0xff]  ;;  %v175_v3 = vld [vmem:[%s1723_s20 + $0x8] sm:$0xff]  ;;  %v176_v4 = vld [vmem:[%s1723_s20 + $0x10] sm:$0xff] }
   0xf   : > { %v309_v5 = vmul.f32 %v1718_v0, %v174_v2  ;;  %v310_v6 = vmul.f32 %v1718_v0, %v175_v3  ;;  %v311_v7 = vmul.f32 %v1718_v0, %v176_v4  ;;  %v177_v8 = vld [vmem:[%s1723_s20 + $0x18] sm:$0xff]  ;;  %v178_v9 = vld [vmem:[%s1723_s20 + $0x20] sm:$0xff]  ;;  %v179_v10 = vld [vmem:[%s1723_s20 + $0x28] sm:$0xff] }
  0x10   : > { %v312_v11 = vmul.f32 %v1718_v0, %v177_v8  ;;  %v313_v12 = vmul.f32 %v1718_v0, %v178_v9  ;;  %v314_v13 = vmul.f32 %v1718_v0, %v179_v10  ;;  %v180_v14 = vld [vmem:[%s1723_s20 + $0x30] sm:$0xff]  ;;  %v181_v15 = vld [vmem:[%s1723_s20 + $0x38] sm:$0xff]  ;;  %v182_v32 = vld [vmem:[%s1723_s20 + $0x40] sm:$0xff] }
  0x11   : > { %v444_v16 = vadd.f32 %v1728_v1, %v309_v5  ;;  %v445_v17 = vadd.f32 %v1728_v1, %v310_v6  ;;  %v446_v18 = vadd.f32 %v1728_v1, %v311_v7  ;;  %v315_v19 = vmul.f32 %v1718_v0, %v180_v14  ;;  %v183_v33 = vld [vmem:[%s1723_s20 + $0x48] sm:$0xff]  ;;  %v184_v34 = vld [vmem:[%s1723_s20 + $0x50] sm:$0xff]  ;;  %v185_v39 = vld [vmem:[%s1723_s20 + $0x58] sm:$0xff] }
  0x12   : > { %v447_v20 = vadd.f32 %v1728_v1, %v312_v11  ;;  %v448_v21 = vadd.f32 %v1728_v1, %v313_v12  ;;  %v449_v22 = vadd.f32 %v1728_v1, %v314_v13  ;;  %v316_v23 = vmul.f32 %v1718_v0, %v181_v15  ;;  %v186_v40 = vld [vmem:[%s1723_s20 + $0x60] sm:$0xff]  ;;  %v187_v41 = vld [vmem:[%s1723_s20 + $0x68] sm:$0xff]  ;;  %v188_v46 = vld [vmem:[%s1723_s20 + $0x70] sm:$0xff] }
  0x13   : > { %v572_v24 = vmax.f32 %v444_v16, 0.0  ;;  %v573_v25 = vmax.f32 %v445_v17, 0.0  ;;  %v574_v26 = vmax.f32 %v446_v18, 0.0  ;;  %v450_v27 = vadd.f32 %v1728_v1, %v315_v19  ;;  %v189_v51 = vld [vmem:[%s1723_s20 + $0x78] sm:$0xff]  ;;  %v190_v10 = vld [vmem:[%s1723_s20 + $0x80] sm:$0xff]  ;;  %v191_v11 = vld [vmem:[%s1723_s20 + $0x88] sm:$0xff] }
  0x14   : > { %v575_v28 = vmax.f32 %v447_v20, 0.0  ;;  %v576_v29 = vmax.f32 %v448_v21, 0.0  ;;  %v577_v30 = vmax.f32 %v449_v22, 0.0  ;;  %v451_v31 = vadd.f32 %v1728_v1, %v316_v23  ;;  %v192_v12 = vld [vmem:[%s1723_s20 + $0x90] sm:$0xff]  ;;  %v193_v17 = vld [vmem:[%s1723_s20 + $0x98] sm:$0xff]  ;;  %v194_v18 = vld [vmem:[%s1723_s20 + $0xa0] sm:$0xff] }
  0x15   : > { %v1538_v35 = vpack.c.bf16 %v572_v24, %v572_v24  ;;  %v1539_v36 = vpack.c.bf16 %v573_v25, %v573_v25  ;;  %v1540_v37 = vpack.c.bf16 %v574_v26, %v574_v26  ;;  %v578_v38 = vmax.f32 %v450_v27, 0.0  ;;  %v195_v19 = vld [vmem:[%s1723_s20 + $0xa8] sm:$0xff]  ;;  %v196_v24 = vld [vmem:[%s1723_s20 + $0xb0] sm:$0xff] }
  0x16   : > { %v1541_v42 = vpack.c.bf16 %v575_v28, %v575_v28  ;;  %v1542_v43 = vpack.c.bf16 %v576_v29, %v576_v29  ;;  %v1543_v44 = vpack.c.bf16 %v577_v30, %v577_v30  ;;  %v579_v45 = vmax.f32 %v451_v31, 0.0  ;;  %v197_v29 = vld [vmem:[%s1723_s20 + $0xb8] sm:$0xff] }
  0x17   : > { %1213 = vst.msk [vmem:[%s1757_s26] sm:$0xf] %vm1212_vm0, %v1538_v35  ;;  %1214 = vst.msk [vmem:[%s1757_s26 + $0x4] sm:$0xf] %vm1212_vm0, %v1539_v36  ;;  %v1544_v47 = vpack.c.bf16 %v578_v38, %v578_v38  ;;  %v317_v48 = vmul.f32 %v1718_v0, %v182_v32  ;;  %v318_v49 = vmul.f32 %v1718_v0, %v183_v33 }
  0x18   : > { %1215 = vst.msk [vmem:[%s1757_s26 + $0x8] sm:$0xf] %vm1212_vm0, %v1540_v37  ;;  %v319_v50 = vmul.f32 %v1718_v0, %v184_v34  ;;  %1216 = vst.msk [vmem:[%s1757_s26 + $0xc] sm:$0xf] %vm1212_vm0, %v1541_v42  ;;  %v1545_v52 = vpack.c.bf16 %v579_v45, %v579_v45  ;;  %v320_v53 = vmul.f32 %v1718_v0, %v185_v39 }
  0x19   : > { %1217 = vst.msk [vmem:[%s1757_s26 + $0x10] sm:$0xf] %vm1212_vm0, %v1542_v43  ;;  %1218 = vst.msk [vmem:[%s1757_s26 + $0x14] sm:$0xf] %vm1212_vm0, %v1543_v44  ;;  %v321_v54 = vmul.f32 %v1718_v0, %v186_v40  ;;  %v322_v55 = vmul.f32 %v1718_v0, %v187_v41  ;;  %v452_v56 = vadd.f32 %v1728_v1, %v317_v48 }
  0x1a   : > { %1219 = vst.msk [vmem:[%s1757_s26 + $0x18] sm:$0xf] %vm1212_vm0, %v1544_v47  ;;  %v453_v57 = vadd.f32 %v1728_v1, %v318_v49  ;;  %v454_v58 = vadd.f32 %v1728_v1, %v319_v50  ;;  %v323_v59 = vmul.f32 %v1718_v0, %v188_v46  ;;  %1220 = vst.msk [vmem:[%s1757_s26 + $0x1c] sm:$0xf] %vm1212_vm0, %v1545_v52  ;;  %v198_v50 = vld [vmem:[%s1723_s20 + $0xc0] sm:$0xff]  ;;  %v200_v52 = vld [vmem:[%s1723_s20 + $0xd0] sm:$0xff] }
  0x1b   : > { %v455_v60 = vadd.f32 %v1728_v1, %v320_v53  ;;  %v456_v61 = vadd.f32 %v1728_v1, %v321_v54  ;;  %v457_v62 = vadd.f32 %v1728_v1, %v322_v55  ;;  %v324_v63 = vmul.f32 %v1718_v0, %v189_v51  ;;  %v199_v51 = vld [vmem:[%s1723_s20 + $0xc8] sm:$0xff] }
  0x1c   : > { %v580_v2 = vmax.f32 %v452_v56, 0.0  ;;  %v581_v3 = vmax.f32 %v453_v57, 0.0  ;;  %v582_v4 = vmax.f32 %v454_v58, 0.0  ;;  %v458_v5 = vadd.f32 %v1728_v1, %v323_v59  ;;  %v201_v57 = vld [vmem:[%s1723_s20 + $0xd8] sm:$0xff]  ;;  %v202_v58 = vld [vmem:[%s1723_s20 + $0xe0] sm:$0xff]  ;;  %v203_v59 = vld [vmem:[%s1723_s20 + $0xe8] sm:$0xff] }
  0x1d   : > { %v583_v6 = vmax.f32 %v455_v60, 0.0  ;;  %v584_v7 = vmax.f32 %v456_v61, 0.0  ;;  %v585_v8 = vmax.f32 %v457_v62, 0.0  ;;  %v459_v9 = vadd.f32 %v1728_v1, %v324_v63 }
  0x1e   : > { %v1546_v13 = vpack.c.bf16 %v580_v2, %v580_v2  ;;  %v1547_v14 = vpack.c.bf16 %v581_v3, %v581_v3  ;;  %v1548_v15 = vpack.c.bf16 %v582_v4, %v582_v4  ;;  %v586_v16 = vmax.f32 %v458_v5, 0.0  ;;  %v204_v2 = vld [vmem:[%s1723_s20 + $0xf0] sm:$0xff] }
  0x1f   : > { %v1549_v20 = vpack.c.bf16 %v583_v6, %v583_v6  ;;  %v1550_v21 = vpack.c.bf16 %v584_v7, %v584_v7  ;;  %v1551_v22 = vpack.c.bf16 %v585_v8, %v585_v8  ;;  %v587_v23 = vmax.f32 %v459_v9, 0.0  ;;  %v205_v7 = vld [vmem:[%s1723_s20 + $0xf8] sm:$0xff] }
  0x20   : > { %1221 = vst.msk [vmem:[%s1757_s26 + $0x20] sm:$0xf] %vm1212_vm0, %v1546_v13  ;;  %1222 = vst.msk [vmem:[%s1757_s26 + $0x24] sm:$0xf] %vm1212_vm0, %v1547_v14  ;;  %v1552_v25 = vpack.c.bf16 %v586_v16, %v586_v16  ;;  %v325_v26 = vmul.f32 %v1718_v0, %v190_v10  ;;  %v326_v27 = vmul.f32 %v1718_v0, %v191_v11 }
  0x21   : > { %1223 = vst.msk [vmem:[%s1757_s26 + $0x28] sm:$0xf] %vm1212_vm0, %v1548_v15  ;;  %v327_v28 = vmul.f32 %v1718_v0, %v192_v12  ;;  %1224 = vst.msk [vmem:[%s1757_s26 + $0x2c] sm:$0xf] %vm1212_vm0, %v1549_v20  ;;  %v1553_v30 = vpack.c.bf16 %v587_v23, %v587_v23  ;;  %v328_v31 = vmul.f32 %v1718_v0, %v193_v17 }
  0x22   : > { %1225 = vst.msk [vmem:[%s1757_s26 + $0x30] sm:$0xf] %vm1212_vm0, %v1550_v21  ;;  %1226 = vst.msk [vmem:[%s1757_s26 + $0x34] sm:$0xf] %vm1212_vm0, %v1551_v22  ;;  %v329_v32 = vmul.f32 %v1718_v0, %v194_v18  ;;  %v330_v33 = vmul.f32 %v1718_v0, %v195_v19  ;;  %v460_v34 = vadd.f32 %v1728_v1, %v325_v26 }
  0x23   : > { %1227 = vst.msk [vmem:[%s1757_s26 + $0x38] sm:$0xf] %vm1212_vm0, %v1552_v25  ;;  %v461_v35 = vadd.f32 %v1728_v1, %v326_v27  ;;  %v462_v36 = vadd.f32 %v1728_v1, %v327_v28  ;;  %v331_v37 = vmul.f32 %v1718_v0, %v196_v24  ;;  %1228 = vst.msk [vmem:[%s1757_s26 + $0x3c] sm:$0xf] %vm1212_vm0, %v1553_v30  ;;  %v206_v28 = vld [vmem:[%s1723_s20 + $0x100] sm:$0xff]  ;;  %v208_v30 = vld [vmem:[%s1723_s20 + $0x110] sm:$0xff] }
  0x24   : > { %v463_v38 = vadd.f32 %v1728_v1, %v328_v31  ;;  %v464_v39 = vadd.f32 %v1728_v1, %v329_v32  ;;  %v465_v40 = vadd.f32 %v1728_v1, %v330_v33  ;;  %v332_v41 = vmul.f32 %v1718_v0, %v197_v29  ;;  %v207_v29 = vld [vmem:[%s1723_s20 + $0x108] sm:$0xff] }
  0x25   : > { %v588_v42 = vmax.f32 %v460_v34, 0.0  ;;  %v589_v43 = vmax.f32 %v461_v35, 0.0  ;;  %v590_v44 = vmax.f32 %v462_v36, 0.0  ;;  %v466_v45 = vadd.f32 %v1728_v1, %v331_v37  ;;  %v209_v35 = vld [vmem:[%s1723_s20 + $0x118] sm:$0xff]  ;;  %v210_v36 = vld [vmem:[%s1723_s20 + $0x120] sm:$0xff]  ;;  %v211_v37 = vld [vmem:[%s1723_s20 + $0x128] sm:$0xff] }
  0x26   : > { %v591_v46 = vmax.f32 %v463_v38, 0.0  ;;  %v592_v47 = vmax.f32 %v464_v39, 0.0  ;;  %v593_v48 = vmax.f32 %v465_v40, 0.0  ;;  %v467_v49 = vadd.f32 %v1728_v1, %v332_v41 }
  0x27   : > { %v1554_v53 = vpack.c.bf16 %v588_v42, %v588_v42  ;;  %v1555_v54 = vpack.c.bf16 %v589_v43, %v589_v43  ;;  %v1556_v55 = vpack.c.bf16 %v590_v44, %v590_v44  ;;  %v594_v56 = vmax.f32 %v466_v45, 0.0  ;;  %v212_v42 = vld [vmem:[%s1723_s20 + $0x130] sm:$0xff] }
  0x28   : > { %v1557_v60 = vpack.c.bf16 %v591_v46, %v591_v46  ;;  %v1558_v61 = vpack.c.bf16 %v592_v47, %v592_v47  ;;  %v1559_v62 = vpack.c.bf16 %v593_v48, %v593_v48  ;;  %v595_v63 = vmax.f32 %v467_v49, 0.0  ;;  %v213_v47 = vld [vmem:[%s1723_s20 + $0x138] sm:$0xff] }
  0x29   : > { %1229 = vst.msk [vmem:[%s1757_s26 + $0x40] sm:$0xf] %vm1212_vm0, %v1554_v53  ;;  %1230 = vst.msk [vmem:[%s1757_s26 + $0x44] sm:$0xf] %vm1212_vm0, %v1555_v54  ;;  %v1560_v3 = vpack.c.bf16 %v594_v56, %v594_v56  ;;  %v333_v4 = vmul.f32 %v1718_v0, %v198_v50  ;;  %v334_v5 = vmul.f32 %v1718_v0, %v199_v51 }
  0x2a   : > { %1231 = vst.msk [vmem:[%s1757_s26 + $0x48] sm:$0xf] %vm1212_vm0, %v1556_v55  ;;  %v335_v6 = vmul.f32 %v1718_v0, %v200_v52  ;;  %1232 = vst.msk [vmem:[%s1757_s26 + $0x4c] sm:$0xf] %vm1212_vm0, %v1557_v60  ;;  %v1561_v8 = vpack.c.bf16 %v595_v63, %v595_v63  ;;  %v336_v9 = vmul.f32 %v1718_v0, %v201_v57 }
  0x2b   : > { %1233 = vst.msk [vmem:[%s1757_s26 + $0x50] sm:$0xf] %vm1212_vm0, %v1558_v61  ;;  %1234 = vst.msk [vmem:[%s1757_s26 + $0x54] sm:$0xf] %vm1212_vm0, %v1559_v62  ;;  %v337_v10 = vmul.f32 %v1718_v0, %v202_v58  ;;  %v338_v11 = vmul.f32 %v1718_v0, %v203_v59  ;;  %v468_v12 = vadd.f32 %v1728_v1, %v333_v4 }
  0x2c   : > { %1235 = vst.msk [vmem:[%s1757_s26 + $0x58] sm:$0xf] %vm1212_vm0, %v1560_v3  ;;  %v469_v13 = vadd.f32 %v1728_v1, %v334_v5  ;;  %v470_v14 = vadd.f32 %v1728_v1, %v335_v6  ;;  %v339_v15 = vmul.f32 %v1718_v0, %v204_v2  ;;  %1236 = vst.msk [vmem:[%s1757_s26 + $0x5c] sm:$0xf] %vm1212_vm0, %v1561_v8  ;;  %v214_v6 = vld [vmem:[%s1723_s20 + $0x140] sm:$0xff]  ;;  %v216_v8 = vld [vmem:[%s1723_s20 + $0x150] sm:$0xff] }
  0x2d   : > { %v471_v16 = vadd.f32 %v1728_v1, %v336_v9  ;;  %v472_v17 = vadd.f32 %v1728_v1, %v337_v10  ;;  %v473_v18 = vadd.f32 %v1728_v1, %v338_v11  ;;  %v340_v19 = vmul.f32 %v1718_v0, %v205_v7  ;;  %v215_v7 = vld [vmem:[%s1723_s20 + $0x148] sm:$0xff] }
  0x2e   : > { %v596_v20 = vmax.f32 %v468_v12, 0.0  ;;  %v597_v21 = vmax.f32 %v469_v13, 0.0  ;;  %v598_v22 = vmax.f32 %v470_v14, 0.0  ;;  %v474_v23 = vadd.f32 %v1728_v1, %v339_v15  ;;  %v217_v13 = vld [vmem:[%s1723_s20 + $0x158] sm:$0xff]  ;;  %v218_v14 = vld [vmem:[%s1723_s20 + $0x160] sm:$0xff]  ;;  %v219_v15 = vld [vmem:[%s1723_s20 + $0x168] sm:$0xff] }
  0x2f   : > { %v599_v24 = vmax.f32 %v471_v16, 0.0  ;;  %v600_v25 = vmax.f32 %v472_v17, 0.0  ;;  %v601_v26 = vmax.f32 %v473_v18, 0.0  ;;  %v475_v27 = vadd.f32 %v1728_v1, %v340_v19 }
  0x30   : > { %v1562_v31 = vpack.c.bf16 %v596_v20, %v596_v20  ;;  %v1563_v32 = vpack.c.bf16 %v597_v21, %v597_v21  ;;  %v1564_v33 = vpack.c.bf16 %v598_v22, %v598_v22  ;;  %v602_v34 = vmax.f32 %v474_v23, 0.0  ;;  %v220_v20 = vld [vmem:[%s1723_s20 + $0x170] sm:$0xff] }
  0x31   : > { %v1565_v38 = vpack.c.bf16 %v599_v24, %v599_v24  ;;  %v1566_v39 = vpack.c.bf16 %v600_v25, %v600_v25  ;;  %v1567_v40 = vpack.c.bf16 %v601_v26, %v601_v26  ;;  %v603_v41 = vmax.f32 %v475_v27, 0.0  ;;  %v221_v25 = vld [vmem:[%s1723_s20 + $0x178] sm:$0xff] }
  0x32   : > { %1237 = vst.msk [vmem:[%s1757_s26 + $0x60] sm:$0xf] %vm1212_vm0, %v1562_v31  ;;  %1238 = vst.msk [vmem:[%s1757_s26 + $0x64] sm:$0xf] %vm1212_vm0, %v1563_v32  ;;  %v1568_v43 = vpack.c.bf16 %v602_v34, %v602_v34  ;;  %v341_v44 = vmul.f32 %v1718_v0, %v206_v28  ;;  %v342_v45 = vmul.f32 %v1718_v0, %v207_v29 }
  0x33   : > { %1239 = vst.msk [vmem:[%s1757_s26 + $0x68] sm:$0xf] %vm1212_vm0, %v1564_v33  ;;  %v343_v46 = vmul.f32 %v1718_v0, %v208_v30  ;;  %1240 = vst.msk [vmem:[%s1757_s26 + $0x6c] sm:$0xf] %vm1212_vm0, %v1565_v38  ;;  %v1569_v48 = vpack.c.bf16 %v603_v41, %v603_v41  ;;  %v344_v49 = vmul.f32 %v1718_v0, %v209_v35 }
  0x34   : > { %1241 = vst.msk [vmem:[%s1757_s26 + $0x70] sm:$0xf] %vm1212_vm0, %v1566_v39  ;;  %1242 = vst.msk [vmem:[%s1757_s26 + $0x74] sm:$0xf] %vm1212_vm0, %v1567_v40  ;;  %v345_v50 = vmul.f32 %v1718_v0, %v210_v36  ;;  %v346_v51 = vmul.f32 %v1718_v0, %v211_v37  ;;  %v476_v52 = vadd.f32 %v1728_v1, %v341_v44 }
  0x35   : > { %1243 = vst.msk [vmem:[%s1757_s26 + $0x78] sm:$0xf] %vm1212_vm0, %v1568_v43  ;;  %v477_v53 = vadd.f32 %v1728_v1, %v342_v45  ;;  %v478_v54 = vadd.f32 %v1728_v1, %v343_v46  ;;  %v347_v55 = vmul.f32 %v1718_v0, %v212_v42  ;;  %1244 = vst.msk [vmem:[%s1757_s26 + $0x7c] sm:$0xf] %vm1212_vm0, %v1569_v48  ;;  %v222_v46 = vld [vmem:[%s1723_s20 + $0x180] sm:$0xff]  ;;  %v224_v48 = vld [vmem:[%s1723_s20 + $0x190] sm:$0xff] }
  0x36   : > { %v479_v56 = vadd.f32 %v1728_v1, %v344_v49  ;;  %v480_v57 = vadd.f32 %v1728_v1, %v345_v50  ;;  %v481_v58 = vadd.f32 %v1728_v1, %v346_v51  ;;  %v348_v59 = vmul.f32 %v1718_v0, %v213_v47  ;;  %v223_v47 = vld [vmem:[%s1723_s20 + $0x188] sm:$0xff] }
  0x37   : > { %v604_v60 = vmax.f32 %v476_v52, 0.0  ;;  %v605_v61 = vmax.f32 %v477_v53, 0.0  ;;  %v606_v62 = vmax.f32 %v478_v54, 0.0  ;;  %v482_v63 = vadd.f32 %v1728_v1, %v347_v55  ;;  %v225_v53 = vld [vmem:[%s1723_s20 + $0x198] sm:$0xff]  ;;  %v226_v54 = vld [vmem:[%s1723_s20 + $0x1a0] sm:$0xff]  ;;  %v227_v55 = vld [vmem:[%s1723_s20 + $0x1a8] sm:$0xff] }
  0x38   : > { %v607_v2 = vmax.f32 %v479_v56, 0.0  ;;  %v608_v3 = vmax.f32 %v480_v57, 0.0  ;;  %v609_v4 = vmax.f32 %v481_v58, 0.0  ;;  %v483_v5 = vadd.f32 %v1728_v1, %v348_v59 }
  0x39   : > { %v1570_v9 = vpack.c.bf16 %v604_v60, %v604_v60  ;;  %v1571_v10 = vpack.c.bf16 %v605_v61, %v605_v61  ;;  %v1572_v11 = vpack.c.bf16 %v606_v62, %v606_v62  ;;  %v610_v12 = vmax.f32 %v482_v63, 0.0  ;;  %v228_v60 = vld [vmem:[%s1723_s20 + $0x1b0] sm:$0xff] }
  0x3a   : > { %v1573_v16 = vpack.c.bf16 %v607_v2, %v607_v2  ;;  %v1574_v17 = vpack.c.bf16 %v608_v3, %v608_v3  ;;  %v1575_v18 = vpack.c.bf16 %v609_v4, %v609_v4  ;;  %v611_v19 = vmax.f32 %v483_v5, 0.0  ;;  %v229_v3 = vld [vmem:[%s1723_s20 + $0x1b8] sm:$0xff] }
  0x3b   : > { %1245 = vst.msk [vmem:[%s1757_s26 + $0x80] sm:$0xf] %vm1212_vm0, %v1570_v9  ;;  %1246 = vst.msk [vmem:[%s1757_s26 + $0x84] sm:$0xf] %vm1212_vm0, %v1571_v10  ;;  %v1576_v21 = vpack.c.bf16 %v610_v12, %v610_v12  ;;  %v349_v22 = vmul.f32 %v1718_v0, %v214_v6  ;;  %v350_v23 = vmul.f32 %v1718_v0, %v215_v7 }
  0x3c   : > { %1247 = vst.msk [vmem:[%s1757_s26 + $0x88] sm:$0xf] %vm1212_vm0, %v1572_v11  ;;  %v351_v24 = vmul.f32 %v1718_v0, %v216_v8  ;;  %1248 = vst.msk [vmem:[%s1757_s26 + $0x8c] sm:$0xf] %vm1212_vm0, %v1573_v16  ;;  %v1577_v26 = vpack.c.bf16 %v611_v19, %v611_v19  ;;  %v352_v27 = vmul.f32 %v1718_v0, %v217_v13 }
  0x3d   : > { %1249 = vst.msk [vmem:[%s1757_s26 + $0x90] sm:$0xf] %vm1212_vm0, %v1574_v17  ;;  %1250 = vst.msk [vmem:[%s1757_s26 + $0x94] sm:$0xf] %vm1212_vm0, %v1575_v18  ;;  %v353_v28 = vmul.f32 %v1718_v0, %v218_v14  ;;  %v354_v29 = vmul.f32 %v1718_v0, %v219_v15  ;;  %v484_v30 = vadd.f32 %v1728_v1, %v349_v22 }
  0x3e   : > { %1251 = vst.msk [vmem:[%s1757_s26 + $0x98] sm:$0xf] %vm1212_vm0, %v1576_v21  ;;  %v485_v31 = vadd.f32 %v1728_v1, %v350_v23  ;;  %v486_v32 = vadd.f32 %v1728_v1, %v351_v24  ;;  %v355_v33 = vmul.f32 %v1718_v0, %v220_v20  ;;  %1252 = vst.msk [vmem:[%s1757_s26 + $0x9c] sm:$0xf] %vm1212_vm0, %v1577_v26  ;;  %v230_v24 = vld [vmem:[%s1723_s20 + $0x1c0] sm:$0xff]  ;;  %v232_v26 = vld [vmem:[%s1723_s20 + $0x1d0] sm:$0xff] }
  0x3f   : > { %v487_v34 = vadd.f32 %v1728_v1, %v352_v27  ;;  %v488_v35 = vadd.f32 %v1728_v1, %v353_v28  ;;  %v489_v36 = vadd.f32 %v1728_v1, %v354_v29  ;;  %v356_v37 = vmul.f32 %v1718_v0, %v221_v25  ;;  %v231_v25 = vld [vmem:[%s1723_s20 + $0x1c8] sm:$0xff] }
  0x40   : > { %v612_v38 = vmax.f32 %v484_v30, 0.0  ;;  %v613_v39 = vmax.f32 %v485_v31, 0.0  ;;  %v614_v40 = vmax.f32 %v486_v32, 0.0  ;;  %v490_v41 = vadd.f32 %v1728_v1, %v355_v33  ;;  %v233_v31 = vld [vmem:[%s1723_s20 + $0x1d8] sm:$0xff]  ;;  %v234_v32 = vld [vmem:[%s1723_s20 + $0x1e0] sm:$0xff]  ;;  %v235_v33 = vld [vmem:[%s1723_s20 + $0x1e8] sm:$0xff] }
  0x41   : > { %v615_v42 = vmax.f32 %v487_v34, 0.0  ;;  %v616_v43 = vmax.f32 %v488_v35, 0.0  ;;  %v617_v44 = vmax.f32 %v489_v36, 0.0  ;;  %v491_v45 = vadd.f32 %v1728_v1, %v356_v37 }
  0x42   : > { %v1578_v49 = vpack.c.bf16 %v612_v38, %v612_v38  ;;  %v1579_v50 = vpack.c.bf16 %v613_v39, %v613_v39  ;;  %v1580_v51 = vpack.c.bf16 %v614_v40, %v614_v40  ;;  %v618_v52 = vmax.f32 %v490_v41, 0.0  ;;  %v236_v38 = vld [vmem:[%s1723_s20 + $0x1f0] sm:$0xff] }
  0x43   : > { %v1581_v56 = vpack.c.bf16 %v615_v42, %v615_v42  ;;  %v1582_v57 = vpack.c.bf16 %v616_v43, %v616_v43  ;;  %v1583_v58 = vpack.c.bf16 %v617_v44, %v617_v44  ;;  %v619_v59 = vmax.f32 %v491_v45, 0.0  ;;  %v237_v43 = vld [vmem:[%s1723_s20 + $0x1f8] sm:$0xff] }
  0x44   : > { %1253 = vst.msk [vmem:[%s1757_s26 + $0xa0] sm:$0xf] %vm1212_vm0, %v1578_v49  ;;  %1254 = vst.msk [vmem:[%s1757_s26 + $0xa4] sm:$0xf] %vm1212_vm0, %v1579_v50  ;;  %v1584_v61 = vpack.c.bf16 %v618_v52, %v618_v52  ;;  %v357_v62 = vmul.f32 %v1718_v0, %v222_v46  ;;  %v358_v63 = vmul.f32 %v1718_v0, %v223_v47 }
  0x45   : > { %1255 = vst.msk [vmem:[%s1757_s26 + $0xa8] sm:$0xf] %vm1212_vm0, %v1580_v51  ;;  %v359_v2 = vmul.f32 %v1718_v0, %v224_v48  ;;  %1256 = vst.msk [vmem:[%s1757_s26 + $0xac] sm:$0xf] %vm1212_vm0, %v1581_v56  ;;  %v1585_v4 = vpack.c.bf16 %v619_v59, %v619_v59  ;;  %v360_v5 = vmul.f32 %v1718_v0, %v225_v53 }
  0x46   : > { %1257 = vst.msk [vmem:[%s1757_s26 + $0xb0] sm:$0xf] %vm1212_vm0, %v1582_v57  ;;  %1258 = vst.msk [vmem:[%s1757_s26 + $0xb4] sm:$0xf] %vm1212_vm0, %v1583_v58  ;;  %v361_v6 = vmul.f32 %v1718_v0, %v226_v54  ;;  %v362_v7 = vmul.f32 %v1718_v0, %v227_v55  ;;  %v492_v8 = vadd.f32 %v1728_v1, %v357_v62 }
  0x47   : > { %1259 = vst.msk [vmem:[%s1757_s26 + $0xb8] sm:$0xf] %vm1212_vm0, %v1584_v61  ;;  %v493_v9 = vadd.f32 %v1728_v1, %v358_v63  ;;  %v494_v10 = vadd.f32 %v1728_v1, %v359_v2  ;;  %v363_v11 = vmul.f32 %v1718_v0, %v228_v60  ;;  %1260 = vst.msk [vmem:[%s1757_s26 + $0xbc] sm:$0xf] %vm1212_vm0, %v1585_v4  ;;  %v238_v2 = vld [vmem:[%s1723_s20 + $0x200] sm:$0xff]  ;;  %v240_v4 = vld [vmem:[%s1723_s20 + $0x210] sm:$0xff] }
  0x48   : > { %v495_v12 = vadd.f32 %v1728_v1, %v360_v5  ;;  %v496_v13 = vadd.f32 %v1728_v1, %v361_v6  ;;  %v497_v14 = vadd.f32 %v1728_v1, %v362_v7  ;;  %v364_v15 = vmul.f32 %v1718_v0, %v229_v3  ;;  %v239_v3 = vld [vmem:[%s1723_s20 + $0x208] sm:$0xff] }
  0x49   : > { %v620_v16 = vmax.f32 %v492_v8, 0.0  ;;  %v621_v17 = vmax.f32 %v493_v9, 0.0  ;;  %v622_v18 = vmax.f32 %v494_v10, 0.0  ;;  %v498_v19 = vadd.f32 %v1728_v1, %v363_v11  ;;  %v241_v9 = vld [vmem:[%s1723_s20 + $0x218] sm:$0xff]  ;;  %v242_v10 = vld [vmem:[%s1723_s20 + $0x220] sm:$0xff]  ;;  %v243_v11 = vld [vmem:[%s1723_s20 + $0x228] sm:$0xff] }
  0x4a   : > { %v623_v20 = vmax.f32 %v495_v12, 0.0  ;;  %v624_v21 = vmax.f32 %v496_v13, 0.0  ;;  %v625_v22 = vmax.f32 %v497_v14, 0.0  ;;  %v499_v23 = vadd.f32 %v1728_v1, %v364_v15 }
  0x4b   : > { %v1586_v27 = vpack.c.bf16 %v620_v16, %v620_v16  ;;  %v1587_v28 = vpack.c.bf16 %v621_v17, %v621_v17  ;;  %v1588_v29 = vpack.c.bf16 %v622_v18, %v622_v18  ;;  %v626_v30 = vmax.f32 %v498_v19, 0.0  ;;  %v244_v16 = vld [vmem:[%s1723_s20 + $0x230] sm:$0xff] }
  0x4c   : > { %v1589_v34 = vpack.c.bf16 %v623_v20, %v623_v20  ;;  %v1590_v35 = vpack.c.bf16 %v624_v21, %v624_v21  ;;  %v1591_v36 = vpack.c.bf16 %v625_v22, %v625_v22  ;;  %v627_v37 = vmax.f32 %v499_v23, 0.0  ;;  %v245_v21 = vld [vmem:[%s1723_s20 + $0x238] sm:$0xff] }
  0x4d   : > { %1261 = vst.msk [vmem:[%s1757_s26 + $0xc0] sm:$0xf] %vm1212_vm0, %v1586_v27  ;;  %1262 = vst.msk [vmem:[%s1757_s26 + $0xc4] sm:$0xf] %vm1212_vm0, %v1587_v28  ;;  %v1592_v39 = vpack.c.bf16 %v626_v30, %v626_v30  ;;  %v365_v40 = vmul.f32 %v1718_v0, %v230_v24  ;;  %v366_v41 = vmul.f32 %v1718_v0, %v231_v25 }
  0x4e   : > { %1263 = vst.msk [vmem:[%s1757_s26 + $0xc8] sm:$0xf] %vm1212_vm0, %v1588_v29  ;;  %v367_v42 = vmul.f32 %v1718_v0, %v232_v26  ;;  %1264 = vst.msk [vmem:[%s1757_s26 + $0xcc] sm:$0xf] %vm1212_vm0, %v1589_v34  ;;  %v1593_v44 = vpack.c.bf16 %v627_v37, %v627_v37  ;;  %v368_v45 = vmul.f32 %v1718_v0, %v233_v31 }
  0x4f   : > { %1265 = vst.msk [vmem:[%s1757_s26 + $0xd0] sm:$0xf] %vm1212_vm0, %v1590_v35  ;;  %1266 = vst.msk [vmem:[%s1757_s26 + $0xd4] sm:$0xf] %vm1212_vm0, %v1591_v36  ;;  %v369_v46 = vmul.f32 %v1718_v0, %v234_v32  ;;  %v370_v47 = vmul.f32 %v1718_v0, %v235_v33  ;;  %v500_v48 = vadd.f32 %v1728_v1, %v365_v40 }
  0x50   : > { %1267 = vst.msk [vmem:[%s1757_s26 + $0xd8] sm:$0xf] %vm1212_vm0, %v1592_v39  ;;  %v501_v49 = vadd.f32 %v1728_v1, %v366_v41  ;;  %v502_v50 = vadd.f32 %v1728_v1, %v367_v42  ;;  %v371_v51 = vmul.f32 %v1718_v0, %v236_v38  ;;  %1268 = vst.msk [vmem:[%s1757_s26 + $0xdc] sm:$0xf] %vm1212_vm0, %v1593_v44  ;;  %v246_v42 = vld [vmem:[%s1723_s20 + $0x240] sm:$0xff]  ;;  %v248_v44 = vld [vmem:[%s1723_s20 + $0x250] sm:$0xff] }
  0x51   : > { %v503_v52 = vadd.f32 %v1728_v1, %v368_v45  ;;  %v504_v53 = vadd.f32 %v1728_v1, %v369_v46  ;;  %v505_v54 = vadd.f32 %v1728_v1, %v370_v47  ;;  %v372_v55 = vmul.f32 %v1718_v0, %v237_v43  ;;  %v247_v43 = vld [vmem:[%s1723_s20 + $0x248] sm:$0xff] }
  0x52   : > { %v628_v56 = vmax.f32 %v500_v48, 0.0  ;;  %v629_v57 = vmax.f32 %v501_v49, 0.0  ;;  %v630_v58 = vmax.f32 %v502_v50, 0.0  ;;  %v506_v59 = vadd.f32 %v1728_v1, %v371_v51  ;;  %v249_v49 = vld [vmem:[%s1723_s20 + $0x258] sm:$0xff]  ;;  %v250_v50 = vld [vmem:[%s1723_s20 + $0x260] sm:$0xff]  ;;  %v251_v51 = vld [vmem:[%s1723_s20 + $0x268] sm:$0xff] }
  0x53   : > { %v631_v60 = vmax.f32 %v503_v52, 0.0  ;;  %v632_v61 = vmax.f32 %v504_v53, 0.0  ;;  %v633_v62 = vmax.f32 %v505_v54, 0.0  ;;  %v507_v63 = vadd.f32 %v1728_v1, %v372_v55 }
  0x54   : > { %v1594_v5 = vpack.c.bf16 %v628_v56, %v628_v56  ;;  %v1595_v6 = vpack.c.bf16 %v629_v57, %v629_v57  ;;  %v1596_v7 = vpack.c.bf16 %v630_v58, %v630_v58  ;;  %v634_v8 = vmax.f32 %v506_v59, 0.0  ;;  %v252_v56 = vld [vmem:[%s1723_s20 + $0x270] sm:$0xff] }
  0x55   : > { %v1597_v12 = vpack.c.bf16 %v631_v60, %v631_v60  ;;  %v1598_v13 = vpack.c.bf16 %v632_v61, %v632_v61  ;;  %v1599_v14 = vpack.c.bf16 %v633_v62, %v633_v62  ;;  %v635_v15 = vmax.f32 %v507_v63, 0.0  ;;  %v253_v61 = vld [vmem:[%s1723_s20 + $0x278] sm:$0xff] }
  0x56   : > { %1269 = vst.msk [vmem:[%s1757_s26 + $0xe0] sm:$0xf] %vm1212_vm0, %v1594_v5  ;;  %1270 = vst.msk [vmem:[%s1757_s26 + $0xe4] sm:$0xf] %vm1212_vm0, %v1595_v6  ;;  %v1600_v17 = vpack.c.bf16 %v634_v8, %v634_v8  ;;  %v373_v18 = vmul.f32 %v1718_v0, %v238_v2  ;;  %v374_v19 = vmul.f32 %v1718_v0, %v239_v3 }
  0x57   : > { %1271 = vst.msk [vmem:[%s1757_s26 + $0xe8] sm:$0xf] %vm1212_vm0, %v1596_v7  ;;  %v375_v20 = vmul.f32 %v1718_v0, %v240_v4  ;;  %1272 = vst.msk [vmem:[%s1757_s26 + $0xec] sm:$0xf] %vm1212_vm0, %v1597_v12  ;;  %v1601_v22 = vpack.c.bf16 %v635_v15, %v635_v15  ;;  %v376_v23 = vmul.f32 %v1718_v0, %v241_v9 }
  0x58   : > { %1273 = vst.msk [vmem:[%s1757_s26 + $0xf0] sm:$0xf] %vm1212_vm0, %v1598_v13  ;;  %1274 = vst.msk [vmem:[%s1757_s26 + $0xf4] sm:$0xf] %vm1212_vm0, %v1599_v14  ;;  %v377_v24 = vmul.f32 %v1718_v0, %v242_v10  ;;  %v378_v25 = vmul.f32 %v1718_v0, %v243_v11  ;;  %v508_v26 = vadd.f32 %v1728_v1, %v373_v18 }
  0x59   : > { %1275 = vst.msk [vmem:[%s1757_s26 + $0xf8] sm:$0xf] %vm1212_vm0, %v1600_v17  ;;  %v509_v27 = vadd.f32 %v1728_v1, %v374_v19  ;;  %v510_v28 = vadd.f32 %v1728_v1, %v375_v20  ;;  %v379_v29 = vmul.f32 %v1718_v0, %v244_v16  ;;  %1276 = vst.msk [vmem:[%s1757_s26 + $0xfc] sm:$0xf] %vm1212_vm0, %v1601_v22  ;;  %v254_v20 = vld [vmem:[%s1723_s20 + $0x280] sm:$0xff]  ;;  %v256_v22 = vld [vmem:[%s1723_s20 + $0x290] sm:$0xff] }
  0x5a   : > { %v511_v30 = vadd.f32 %v1728_v1, %v376_v23  ;;  %v512_v31 = vadd.f32 %v1728_v1, %v377_v24  ;;  %v513_v32 = vadd.f32 %v1728_v1, %v378_v25  ;;  %v380_v33 = vmul.f32 %v1718_v0, %v245_v21  ;;  %v255_v21 = vld [vmem:[%s1723_s20 + $0x288] sm:$0xff] }
  0x5b   : > { %v636_v34 = vmax.f32 %v508_v26, 0.0  ;;  %v637_v35 = vmax.f32 %v509_v27, 0.0  ;;  %v638_v36 = vmax.f32 %v510_v28, 0.0  ;;  %v514_v37 = vadd.f32 %v1728_v1, %v379_v29  ;;  %v257_v27 = vld [vmem:[%s1723_s20 + $0x298] sm:$0xff]  ;;  %v258_v28 = vld [vmem:[%s1723_s20 + $0x2a0] sm:$0xff]  ;;  %v259_v29 = vld [vmem:[%s1723_s20 + $0x2a8] sm:$0xff] }
  0x5c   : > { %v639_v38 = vmax.f32 %v511_v30, 0.0  ;;  %v640_v39 = vmax.f32 %v512_v31, 0.0  ;;  %v641_v40 = vmax.f32 %v513_v32, 0.0  ;;  %v515_v41 = vadd.f32 %v1728_v1, %v380_v33 }
  0x5d   : > { %v1602_v45 = vpack.c.bf16 %v636_v34, %v636_v34  ;;  %v1603_v46 = vpack.c.bf16 %v637_v35, %v637_v35  ;;  %v1604_v47 = vpack.c.bf16 %v638_v36, %v638_v36  ;;  %v642_v48 = vmax.f32 %v514_v37, 0.0  ;;  %v260_v34 = vld [vmem:[%s1723_s20 + $0x2b0] sm:$0xff] }
  0x5e   : > { %v1605_v52 = vpack.c.bf16 %v639_v38, %v639_v38  ;;  %v1606_v53 = vpack.c.bf16 %v640_v39, %v640_v39  ;;  %v1607_v54 = vpack.c.bf16 %v641_v40, %v641_v40  ;;  %v643_v55 = vmax.f32 %v515_v41, 0.0  ;;  %v261_v39 = vld [vmem:[%s1723_s20 + $0x2b8] sm:$0xff] }
  0x5f   : > { %1277 = vst.msk [vmem:[%s1757_s26 + $0x100] sm:$0xf] %vm1212_vm0, %v1602_v45  ;;  %1278 = vst.msk [vmem:[%s1757_s26 + $0x104] sm:$0xf] %vm1212_vm0, %v1603_v46  ;;  %v1608_v57 = vpack.c.bf16 %v642_v48, %v642_v48  ;;  %v381_v58 = vmul.f32 %v1718_v0, %v246_v42  ;;  %v382_v59 = vmul.f32 %v1718_v0, %v247_v43 }
  0x60   : > { %1279 = vst.msk [vmem:[%s1757_s26 + $0x108] sm:$0xf] %vm1212_vm0, %v1604_v47  ;;  %v383_v60 = vmul.f32 %v1718_v0, %v248_v44  ;;  %1280 = vst.msk [vmem:[%s1757_s26 + $0x10c] sm:$0xf] %vm1212_vm0, %v1605_v52  ;;  %v1609_v62 = vpack.c.bf16 %v643_v55, %v643_v55  ;;  %v384_v63 = vmul.f32 %v1718_v0, %v249_v49 }
  0x61   : > { %1281 = vst.msk [vmem:[%s1757_s26 + $0x110] sm:$0xf] %vm1212_vm0, %v1606_v53  ;;  %1282 = vst.msk [vmem:[%s1757_s26 + $0x114] sm:$0xf] %vm1212_vm0, %v1607_v54  ;;  %v385_v2 = vmul.f32 %v1718_v0, %v250_v50  ;;  %v386_v3 = vmul.f32 %v1718_v0, %v251_v51  ;;  %v516_v4 = vadd.f32 %v1728_v1, %v381_v58 }
  0x62   : > { %1283 = vst.msk [vmem:[%s1757_s26 + $0x118] sm:$0xf] %vm1212_vm0, %v1608_v57  ;;  %v517_v5 = vadd.f32 %v1728_v1, %v382_v59  ;;  %v518_v6 = vadd.f32 %v1728_v1, %v383_v60  ;;  %v387_v7 = vmul.f32 %v1718_v0, %v252_v56  ;;  %1284 = vst.msk [vmem:[%s1757_s26 + $0x11c] sm:$0xf] %vm1212_vm0, %v1609_v62  ;;  %v2162_v59 = vld [vmem:[%s2391_s2] ss:$0 sm:$0xff] }
  0x63   : > { %v519_v8 = vadd.f32 %v1728_v1, %v384_v63  ;;  %v520_v9 = vadd.f32 %v1728_v1, %v385_v2  ;;  %v521_v10 = vadd.f32 %v1728_v1, %v386_v3  ;;  %v388_v11 = vmul.f32 %v1718_v0, %v253_v61  ;;  %v263_v61 = vld [vmem:[%s1723_s20 + $0x2c8] sm:$0xff]  ;;  %v264_v62 = vld [vmem:[%s1723_s20 + $0x2d0] sm:$0xff] }
  0x64   : > { %v644_v12 = vmax.f32 %v516_v4, 0.0  ;;  %v645_v13 = vmax.f32 %v517_v5, 0.0  ;;  %v646_v14 = vmax.f32 %v518_v6, 0.0  ;;  %v522_v15 = vadd.f32 %v1728_v1, %v387_v7  ;;  %v265_v4 = vld [vmem:[%s1723_s20 + $0x2d8] sm:$0xff]  ;;  %v266_v5 = vld [vmem:[%s1723_s20 + $0x2e0] sm:$0xff]  ;;  %v267_v6 = vld [vmem:[%s1723_s20 + $0x2e8] sm:$0xff] }
  0x65   : > { %v647_v16 = vmax.f32 %v519_v8, 0.0  ;;  %v648_v17 = vmax.f32 %v520_v9, 0.0  ;;  %v649_v18 = vmax.f32 %v521_v10, 0.0  ;;  %v523_v19 = vadd.f32 %v1728_v1, %v388_v11  ;;  %v268_v11 = vld [vmem:[%s1723_s20 + $0x2f0] sm:$0xff] }
  0x66   : > { %v1610_v23 = vpack.c.bf16 %v644_v12, %v644_v12  ;;  %v1611_v24 = vpack.c.bf16 %v645_v13, %v645_v13  ;;  %v1612_v25 = vpack.c.bf16 %v646_v14, %v646_v14  ;;  %v650_v26 = vmax.f32 %v522_v15, 0.0  ;;  %v2181_v13 = vld [vmem:[%s2390_s1] ss:$0 sm:$0xff] }
  0x67   : > { %v1613_v30 = vpack.c.bf16 %v647_v16, %v647_v16  ;;  %v1614_v31 = vpack.c.bf16 %v648_v17, %v648_v17  ;;  %v1615_v32 = vpack.c.bf16 %v649_v18, %v649_v18  ;;  %v651_v33 = vmax.f32 %v523_v19, 0.0  ;;  %v269_v17 = vld [vmem:[%s1723_s20 + $0x2f8] sm:$0xff] }
  0x68   : > { %1285 = vst.msk [vmem:[%s1757_s26 + $0x120] sm:$0xf] %vm1212_vm0, %v1610_v23  ;;  %1286 = vst.msk [vmem:[%s1757_s26 + $0x124] sm:$0xf] %vm1212_vm0, %v1611_v24  ;;  %v1616_v35 = vpack.c.bf16 %v650_v26, %v650_v26  ;;  %v389_v36 = vmul.f32 %v1718_v0, %v254_v20  ;;  %v390_v37 = vmul.f32 %v1718_v0, %v255_v21 }
  0x69   : > { %1287 = vst.msk [vmem:[%s1757_s26 + $0x128] sm:$0xf] %vm1212_vm0, %v1612_v25  ;;  %v391_v38 = vmul.f32 %v1718_v0, %v256_v22  ;;  %1288 = vst.msk [vmem:[%s1757_s26 + $0x12c] sm:$0xf] %vm1212_vm0, %v1613_v30  ;;  %v1617_v40 = vpack.c.bf16 %v651_v33, %v651_v33  ;;  %v392_v41 = vmul.f32 %v1718_v0, %v257_v27 }
  0x6a   : > { %1289 = vst.msk [vmem:[%s1757_s26 + $0x130] sm:$0xf] %vm1212_vm0, %v1614_v31  ;;  %1290 = vst.msk [vmem:[%s1757_s26 + $0x134] sm:$0xf] %vm1212_vm0, %v1615_v32  ;;  %v393_v42 = vmul.f32 %v1718_v0, %v258_v28  ;;  %v394_v43 = vmul.f32 %v1718_v0, %v259_v29  ;;  %v524_v44 = vadd.f32 %v1728_v1, %v389_v36 }
  0x6b   : > { %1291 = vst.msk [vmem:[%s1757_s26 + $0x138] sm:$0xf] %vm1212_vm0, %v1616_v35  ;;  %v525_v45 = vadd.f32 %v1728_v1, %v390_v37  ;;  %v526_v46 = vadd.f32 %v1728_v1, %v391_v38  ;;  %v395_v47 = vmul.f32 %v1718_v0, %v260_v34  ;;  %1292 = vst.msk [vmem:[%s1757_s26 + $0x13c] sm:$0xf] %vm1212_vm0, %v1617_v40  ;;  %v270_v38 = vld [vmem:[%s1723_s20 + $0x300] sm:$0xff]  ;;  %v272_v40 = vld [vmem:[%s1723_s20 + $0x310] sm:$0xff] }
  0x6c   : > { %v527_v48 = vadd.f32 %v1728_v1, %v392_v41  ;;  %v528_v49 = vadd.f32 %v1728_v1, %v393_v42  ;;  %v529_v50 = vadd.f32 %v1728_v1, %v394_v43  ;;  %v396_v51 = vmul.f32 %v1718_v0, %v261_v39  ;;  %v262_v0 = vld [vmem:[%s1723_s20 + $0x2c0] sm:$0xff]  ;;  %v271_v39 = vld [vmem:[%s1723_s20 + $0x308] sm:$0xff] }
  0x6d   : > { %v652_v52 = vmax.f32 %v524_v44, 0.0  ;;  %v653_v53 = vmax.f32 %v525_v45, 0.0  ;;  %v654_v54 = vmax.f32 %v526_v46, 0.0  ;;  %v530_v55 = vadd.f32 %v1728_v1, %v395_v47  ;;  %v273_v45 = vld [vmem:[%s1723_s20 + $0x318] sm:$0xff]  ;;  %v274_v46 = vld [vmem:[%s1723_s20 + $0x320] sm:$0xff]  ;;  %v275_v47 = vld [vmem:[%s1723_s20 + $0x328] sm:$0xff] }
  0x6e   : > { %v655_v56 = vmax.f32 %v527_v48, 0.0  ;;  %v656_v57 = vmax.f32 %v528_v49, 0.0  ;;  %v657_v58 = vmax.f32 %v529_v50, 0.0  ;;  %v531_v60 = vadd.f32 %v2162_v59, %v396_v51 }
  0x6f   : > { %v1618_v63 = vpack.c.bf16 %v652_v52, %v652_v52  ;;  %v1619_v2 = vpack.c.bf16 %v653_v53, %v653_v53  ;;  %v1620_v1 = vpack.c.bf16 %v654_v54, %v654_v54  ;;  %v658_v3 = vmax.f32 %v530_v55, 0.0  ;;  %v276_v52 = vld [vmem:[%s1723_s20 + $0x330] sm:$0xff] }
  0x70   : > { %v1621_v7 = vpack.c.bf16 %v655_v56, %v655_v56  ;;  %v1622_v8 = vpack.c.bf16 %v656_v57, %v656_v57  ;;  %v1623_v9 = vpack.c.bf16 %v657_v58, %v657_v58  ;;  %v659_v10 = vmax.f32 %v531_v60, 0.0  ;;  %v277_v57 = vld [vmem:[%s1723_s20 + $0x338] sm:$0xff] }
  0x71   : > { %1293 = vst.msk [vmem:[%s1757_s26 + $0x140] sm:$0xf] %vm1212_vm0, %v1618_v63  ;;  %1294 = vst.msk [vmem:[%s1757_s26 + $0x144] sm:$0xf] %vm1212_vm0, %v1619_v2  ;;  %v1624_v12 = vpack.c.bf16 %v658_v3, %v658_v3  ;;  %v397_v14 = vmul.f32 %v2181_v13, %v262_v0  ;;  %v398_v15 = vmul.f32 %v2181_v13, %v263_v61 }
  0x72   : > { %1295 = vst.msk [vmem:[%s1757_s26 + $0x148] sm:$0xf] %vm1212_vm0, %v1620_v1  ;;  %v399_v16 = vmul.f32 %v2181_v13, %v264_v62  ;;  %1296 = vst.msk [vmem:[%s1757_s26 + $0x14c] sm:$0xf] %vm1212_vm0, %v1621_v7  ;;  %v1625_v18 = vpack.c.bf16 %v659_v10, %v659_v10  ;;  %v400_v19 = vmul.f32 %v2181_v13, %v265_v4 }
  0x73   : > { %1297 = vst.msk [vmem:[%s1757_s26 + $0x150] sm:$0xf] %vm1212_vm0, %v1622_v8  ;;  %1298 = vst.msk [vmem:[%s1757_s26 + $0x154] sm:$0xf] %vm1212_vm0, %v1623_v9  ;;  %v401_v20 = vmul.f32 %v2181_v13, %v266_v5  ;;  %v402_v21 = vmul.f32 %v2181_v13, %v267_v6  ;;  %v532_v22 = vadd.f32 %v2162_v59, %v397_v14 }
  0x74   : > { %1299 = vst.msk [vmem:[%s1757_s26 + $0x158] sm:$0xf] %vm1212_vm0, %v1624_v12  ;;  %v533_v23 = vadd.f32 %v2162_v59, %v398_v15  ;;  %v534_v24 = vadd.f32 %v2162_v59, %v399_v16  ;;  %v403_v25 = vmul.f32 %v2181_v13, %v268_v11  ;;  %1300 = vst.msk [vmem:[%s1757_s26 + $0x15c] sm:$0xf] %vm1212_vm0, %v1625_v18  ;;  %v278_v16 = vld [vmem:[%s1723_s20 + $0x340] sm:$0xff]  ;;  %v280_v18 = vld [vmem:[%s1723_s20 + $0x350] sm:$0xff] }
  0x75   : > { %v535_v26 = vadd.f32 %v2162_v59, %v400_v19  ;;  %v536_v27 = vadd.f32 %v2162_v59, %v401_v20  ;;  %v537_v28 = vadd.f32 %v2162_v59, %v402_v21  ;;  %v404_v29 = vmul.f32 %v2181_v13, %v269_v17  ;;  %v279_v17 = vld [vmem:[%s1723_s20 + $0x348] sm:$0xff] }
  0x76   : > { %v660_v30 = vmax.f32 %v532_v22, 0.0  ;;  %v661_v31 = vmax.f32 %v533_v23, 0.0  ;;  %v662_v32 = vmax.f32 %v534_v24, 0.0  ;;  %v538_v33 = vadd.f32 %v2162_v59, %v403_v25  ;;  %v281_v23 = vld [vmem:[%s1723_s20 + $0x358] sm:$0xff]  ;;  %v282_v24 = vld [vmem:[%s1723_s20 + $0x360] sm:$0xff]  ;;  %v283_v25 = vld [vmem:[%s1723_s20 + $0x368] sm:$0xff] }
  0x77   : > { %v663_v34 = vmax.f32 %v535_v26, 0.0  ;;  %v664_v35 = vmax.f32 %v536_v27, 0.0  ;;  %v665_v36 = vmax.f32 %v537_v28, 0.0  ;;  %v539_v37 = vadd.f32 %v2162_v59, %v404_v29 }
  0x78   : > { %v1626_v41 = vpack.c.bf16 %v660_v30, %v660_v30  ;;  %v1627_v42 = vpack.c.bf16 %v661_v31, %v661_v31  ;;  %v1628_v43 = vpack.c.bf16 %v662_v32, %v662_v32  ;;  %v666_v44 = vmax.f32 %v538_v33, 0.0  ;;  %v284_v30 = vld [vmem:[%s1723_s20 + $0x370] sm:$0xff] }
  0x79   : > { %v1629_v48 = vpack.c.bf16 %v663_v34, %v663_v34  ;;  %v1630_v49 = vpack.c.bf16 %v664_v35, %v664_v35  ;;  %v1631_v50 = vpack.c.bf16 %v665_v36, %v665_v36  ;;  %v667_v51 = vmax.f32 %v539_v37, 0.0  ;;  %v285_v35 = vld [vmem:[%s1723_s20 + $0x378] sm:$0xff] }
  0x7a   : > { %1301 = vst.msk [vmem:[%s1757_s26 + $0x160] sm:$0xf] %vm1212_vm0, %v1626_v41  ;;  %1302 = vst.msk [vmem:[%s1757_s26 + $0x164] sm:$0xf] %vm1212_vm0, %v1627_v42  ;;  %v1632_v53 = vpack.c.bf16 %v666_v44, %v666_v44  ;;  %v405_v54 = vmul.f32 %v2181_v13, %v270_v38  ;;  %v406_v55 = vmul.f32 %v2181_v13, %v271_v39 }
  0x7b   : > { %1303 = vst.msk [vmem:[%s1757_s26 + $0x168] sm:$0xf] %vm1212_vm0, %v1628_v43  ;;  %v407_v56 = vmul.f32 %v2181_v13, %v272_v40  ;;  %1304 = vst.msk [vmem:[%s1757_s26 + $0x16c] sm:$0xf] %vm1212_vm0, %v1629_v48  ;;  %v1633_v58 = vpack.c.bf16 %v667_v51, %v667_v51  ;;  %v408_v60 = vmul.f32 %v2181_v13, %v273_v45 }
  0x7c   : > { %1305 = vst.msk [vmem:[%s1757_s26 + $0x170] sm:$0xf] %vm1212_vm0, %v1630_v49  ;;  %1306 = vst.msk [vmem:[%s1757_s26 + $0x174] sm:$0xf] %vm1212_vm0, %v1631_v50  ;;  %v409_v0 = vmul.f32 %v2181_v13, %v274_v46  ;;  %v410_v61 = vmul.f32 %v2181_v13, %v275_v47  ;;  %v540_v62 = vadd.f32 %v2162_v59, %v405_v54 }
  0x7d   : > { %1307 = vst.msk [vmem:[%s1757_s26 + $0x178] sm:$0xf] %vm1212_vm0, %v1632_v53  ;;  %v541_v63 = vadd.f32 %v2162_v59, %v406_v55  ;;  %v542_v2 = vadd.f32 %v2162_v59, %v407_v56  ;;  %v411_v1 = vmul.f32 %v2181_v13, %v276_v52  ;;  %1308 = vst.msk [vmem:[%s1757_s26 + $0x17c] sm:$0xf] %vm1212_vm0, %v1633_v58  ;;  %v286_v56 = vld [vmem:[%s1723_s20 + $0x380] sm:$0xff]  ;;  %v288_v58 = vld [vmem:[%s1723_s20 + $0x390] sm:$0xff] }
  0x7e   : > { %v543_v3 = vadd.f32 %v2162_v59, %v408_v60  ;;  %v544_v4 = vadd.f32 %v2162_v59, %v409_v0  ;;  %v545_v5 = vadd.f32 %v2162_v59, %v410_v61  ;;  %v412_v6 = vmul.f32 %v2181_v13, %v277_v57  ;;  %v287_v57 = vld [vmem:[%s1723_s20 + $0x388] sm:$0xff] }
  0x7f   : > { %v668_v7 = vmax.f32 %v540_v62, 0.0  ;;  %v669_v8 = vmax.f32 %v541_v63, 0.0  ;;  %v670_v9 = vmax.f32 %v542_v2, 0.0  ;;  %v546_v10 = vadd.f32 %v2162_v59, %v411_v1  ;;  %v289_v63 = vld [vmem:[%s1723_s20 + $0x398] sm:$0xff]  ;;  %v290_v2 = vld [vmem:[%s1723_s20 + $0x3a0] sm:$0xff]  ;;  %v291_v1 = vld [vmem:[%s1723_s20 + $0x3a8] sm:$0xff] }
  0x80   : > { %v671_v11 = vmax.f32 %v543_v3, 0.0  ;;  %v672_v12 = vmax.f32 %v544_v4, 0.0  ;;  %v673_v14 = vmax.f32 %v545_v5, 0.0  ;;  %v547_v15 = vadd.f32 %v2162_v59, %v412_v6 }
  0x81   : > { %v1634_v19 = vpack.c.bf16 %v668_v7, %v668_v7  ;;  %v1635_v20 = vpack.c.bf16 %v669_v8, %v669_v8  ;;  %v1636_v21 = vpack.c.bf16 %v670_v9, %v670_v9  ;;  %v674_v22 = vmax.f32 %v546_v10, 0.0  ;;  %v292_v7 = vld [vmem:[%s1723_s20 + $0x3b0] sm:$0xff] }
  0x82   : > { %v1637_v26 = vpack.c.bf16 %v671_v11, %v671_v11  ;;  %v1638_v27 = vpack.c.bf16 %v672_v12, %v672_v12  ;;  %v1639_v28 = vpack.c.bf16 %v673_v14, %v673_v14  ;;  %v675_v29 = vmax.f32 %v547_v15, 0.0  ;;  %v293_v12 = vld [vmem:[%s1723_s20 + $0x3b8] sm:$0xff] }
  0x83   : > { %1309 = vst.msk [vmem:[%s1757_s26 + $0x180] sm:$0xf] %vm1212_vm0, %v1634_v19  ;;  %1310 = vst.msk [vmem:[%s1757_s26 + $0x184] sm:$0xf] %vm1212_vm0, %v1635_v20  ;;  %v1640_v31 = vpack.c.bf16 %v674_v22, %v674_v22  ;;  %v413_v32 = vmul.f32 %v2181_v13, %v278_v16  ;;  %v414_v33 = vmul.f32 %v2181_v13, %v279_v17 }
  0x84   : > { %1311 = vst.msk [vmem:[%s1757_s26 + $0x188] sm:$0xf] %vm1212_vm0, %v1636_v21  ;;  %v415_v34 = vmul.f32 %v2181_v13, %v280_v18  ;;  %1312 = vst.msk [vmem:[%s1757_s26 + $0x18c] sm:$0xf] %vm1212_vm0, %v1637_v26  ;;  %v1641_v36 = vpack.c.bf16 %v675_v29, %v675_v29  ;;  %v416_v37 = vmul.f32 %v2181_v13, %v281_v23 }
  0x85   : > { %1313 = vst.msk [vmem:[%s1757_s26 + $0x190] sm:$0xf] %vm1212_vm0, %v1638_v27  ;;  %1314 = vst.msk [vmem:[%s1757_s26 + $0x194] sm:$0xf] %vm1212_vm0, %v1639_v28  ;;  %v417_v38 = vmul.f32 %v2181_v13, %v282_v24  ;;  %v418_v39 = vmul.f32 %v2181_v13, %v283_v25  ;;  %v548_v40 = vadd.f32 %v2162_v59, %v413_v32 }
  0x86   : > { %1315 = vst.msk [vmem:[%s1757_s26 + $0x198] sm:$0xf] %vm1212_vm0, %v1640_v31  ;;  %v549_v41 = vadd.f32 %v2162_v59, %v414_v33  ;;  %v550_v42 = vadd.f32 %v2162_v59, %v415_v34  ;;  %v419_v43 = vmul.f32 %v2181_v13, %v284_v30  ;;  %1316 = vst.msk [vmem:[%s1757_s26 + $0x19c] sm:$0xf] %vm1212_vm0, %v1641_v36  ;;  %v294_v34 = vld [vmem:[%s1723_s20 + $0x3c0] sm:$0xff]  ;;  %v296_v36 = vld [vmem:[%s1723_s20 + $0x3d0] sm:$0xff] }
  0x87   : > { %v551_v44 = vadd.f32 %v2162_v59, %v416_v37  ;;  %v552_v45 = vadd.f32 %v2162_v59, %v417_v38  ;;  %v553_v46 = vadd.f32 %v2162_v59, %v418_v39  ;;  %v420_v47 = vmul.f32 %v2181_v13, %v285_v35  ;;  %v295_v35 = vld [vmem:[%s1723_s20 + $0x3c8] sm:$0xff] }
  0x88   : > { %v676_v48 = vmax.f32 %v548_v40, 0.0  ;;  %v677_v49 = vmax.f32 %v549_v41, 0.0  ;;  %v678_v50 = vmax.f32 %v550_v42, 0.0  ;;  %v554_v51 = vadd.f32 %v2162_v59, %v419_v43  ;;  %v297_v41 = vld [vmem:[%s1723_s20 + $0x3d8] sm:$0xff]  ;;  %v298_v42 = vld [vmem:[%s1723_s20 + $0x3e0] sm:$0xff]  ;;  %v299_v43 = vld [vmem:[%s1723_s20 + $0x3e8] sm:$0xff] }
  0x89   : > { %v679_v52 = vmax.f32 %v551_v44, 0.0  ;;  %v680_v53 = vmax.f32 %v552_v45, 0.0  ;;  %v681_v54 = vmax.f32 %v553_v46, 0.0  ;;  %v555_v55 = vadd.f32 %v2162_v59, %v420_v47 }
  0x8a   : > { %v1642_v60 = vpack.c.bf16 %v676_v48, %v676_v48  ;;  %v1643_v0 = vpack.c.bf16 %v677_v49, %v677_v49  ;;  %v1644_v61 = vpack.c.bf16 %v678_v50, %v678_v50  ;;  %v682_v62 = vmax.f32 %v554_v51, 0.0  ;;  %v300_v48 = vld [vmem:[%s1723_s20 + $0x3f0] sm:$0xff] }
  0x8b   : > { %v1645_v3 = vpack.c.bf16 %v679_v52, %v679_v52  ;;  %v1646_v4 = vpack.c.bf16 %v680_v53, %v680_v53  ;;  %v1647_v5 = vpack.c.bf16 %v681_v54, %v681_v54  ;;  %v683_v6 = vmax.f32 %v555_v55, 0.0  ;;  %v301_v53 = vld [vmem:[%s1723_s20 + $0x3f8] sm:$0xff] }
  0x8c   : > { %1317 = vst.msk [vmem:[%s1757_s26 + $0x1a0] sm:$0xf] %vm1212_vm0, %v1642_v60  ;;  %1318 = vst.msk [vmem:[%s1757_s26 + $0x1a4] sm:$0xf] %vm1212_vm0, %v1643_v0  ;;  %v1648_v8 = vpack.c.bf16 %v682_v62, %v682_v62  ;;  %v421_v9 = vmul.f32 %v2181_v13, %v286_v56  ;;  %v422_v10 = vmul.f32 %v2181_v13, %v287_v57 }
  0x8d   : > { %1319 = vst.msk [vmem:[%s1757_s26 + $0x1a8] sm:$0xf] %vm1212_vm0, %v1644_v61  ;;  %v423_v11 = vmul.f32 %v2181_v13, %v288_v58  ;;  %1320 = vst.msk [vmem:[%s1757_s26 + $0x1ac] sm:$0xf] %vm1212_vm0, %v1645_v3  ;;  %v1649_v14 = vpack.c.bf16 %v683_v6, %v683_v6  ;;  %v424_v15 = vmul.f32 %v2181_v13, %v289_v63 }
  0x8e   : > { %1321 = vst.msk [vmem:[%s1757_s26 + $0x1b0] sm:$0xf] %vm1212_vm0, %v1646_v4  ;;  %1322 = vst.msk [vmem:[%s1757_s26 + $0x1b4] sm:$0xf] %vm1212_vm0, %v1647_v5  ;;  %v425_v16 = vmul.f32 %v2181_v13, %v290_v2  ;;  %v426_v17 = vmul.f32 %v2181_v13, %v291_v1  ;;  %v556_v18 = vadd.f32 %v2162_v59, %v421_v9 }
  0x8f   : > { %1323 = vst.msk [vmem:[%s1757_s26 + $0x1b8] sm:$0xf] %vm1212_vm0, %v1648_v8  ;;  %v557_v19 = vadd.f32 %v2162_v59, %v422_v10  ;;  %v558_v20 = vadd.f32 %v2162_v59, %v423_v11  ;;  %v427_v21 = vmul.f32 %v2181_v13, %v292_v7  ;;  %1324 = vst.msk [vmem:[%s1757_s26 + $0x1bc] sm:$0xf] %vm1212_vm0, %v1649_v14 }
  0x90   : > { %v559_v22 = vadd.f32 %v2162_v59, %v424_v15  ;;  %v560_v23 = vadd.f32 %v2162_v59, %v425_v16  ;;  %v561_v24 = vadd.f32 %v2162_v59, %v426_v17  ;;  %v428_v25 = vmul.f32 %v2181_v13, %v293_v12 }
  0x91   : > { %v684_v26 = vmax.f32 %v556_v18, 0.0  ;;  %v685_v27 = vmax.f32 %v557_v19, 0.0  ;;  %v686_v28 = vmax.f32 %v558_v20, 0.0  ;;  %v562_v29 = vadd.f32 %v2162_v59, %v427_v21 }
  0x92   : > { %v687_v30 = vmax.f32 %v559_v22, 0.0  ;;  %v688_v31 = vmax.f32 %v560_v23, 0.0  ;;  %v689_v32 = vmax.f32 %v561_v24, 0.0  ;;  %v563_v33 = vadd.f32 %v2162_v59, %v428_v25 }
  0x93   : > { %v1650_v37 = vpack.c.bf16 %v684_v26, %v684_v26  ;;  %v1651_v38 = vpack.c.bf16 %v685_v27, %v685_v27  ;;  %v1652_v39 = vpack.c.bf16 %v686_v28, %v686_v28  ;;  %v690_v40 = vmax.f32 %v562_v29, 0.0 }
  0x94   : > { %v1653_v44 = vpack.c.bf16 %v687_v30, %v687_v30  ;;  %v1654_v45 = vpack.c.bf16 %v688_v31, %v688_v31  ;;  %v1655_v46 = vpack.c.bf16 %v689_v32, %v689_v32  ;;  %v691_v47 = vmax.f32 %v563_v33, 0.0 }
  0x95   : > { %1325 = vst.msk [vmem:[%s1757_s26 + $0x1c0] sm:$0xf] %vm1212_vm0, %v1650_v37  ;;  %1326 = vst.msk [vmem:[%s1757_s26 + $0x1c4] sm:$0xf] %vm1212_vm0, %v1651_v38  ;;  %v1656_v49 = vpack.c.bf16 %v690_v40, %v690_v40  ;;  %v429_v50 = vmul.f32 %v2181_v13, %v294_v34  ;;  %v430_v51 = vmul.f32 %v2181_v13, %v295_v35 }
  0x96   : > { %1327 = vst.msk [vmem:[%s1757_s26 + $0x1c8] sm:$0xf] %vm1212_vm0, %v1652_v39  ;;  %v431_v52 = vmul.f32 %v2181_v13, %v296_v36  ;;  %1328 = vst.msk [vmem:[%s1757_s26 + $0x1cc] sm:$0xf] %vm1212_vm0, %v1653_v44  ;;  %v1657_v54 = vpack.c.bf16 %v691_v47, %v691_v47  ;;  %v432_v55 = vmul.f32 %v2181_v13, %v297_v41 }
  0x97   : > { %1329 = vst.msk [vmem:[%s1757_s26 + $0x1d0] sm:$0xf] %vm1212_vm0, %v1654_v45  ;;  %1330 = vst.msk [vmem:[%s1757_s26 + $0x1d4] sm:$0xf] %vm1212_vm0, %v1655_v46  ;;  %v433_v56 = vmul.f32 %v2181_v13, %v298_v42  ;;  %v434_v57 = vmul.f32 %v2181_v13, %v299_v43  ;;  %v564_v58 = vadd.f32 %v2162_v59, %v429_v50 }
  0x98   : > { %1331 = vst.msk [vmem:[%s1757_s26 + $0x1d8] sm:$0xf] %vm1212_vm0, %v1656_v49  ;;  %v565_v60 = vadd.f32 %v2162_v59, %v430_v51  ;;  %v566_v0 = vadd.f32 %v2162_v59, %v431_v52  ;;  %v435_v61 = vmul.f32 %v2181_v13, %v300_v48  ;;  %1332 = vst.msk [vmem:[%s1757_s26 + $0x1dc] sm:$0xf] %vm1212_vm0, %v1657_v54 }
  0x99   : > { %v567_v62 = vadd.f32 %v2162_v59, %v432_v55  ;;  %v568_v63 = vadd.f32 %v2162_v59, %v433_v56  ;;  %v569_v2 = vadd.f32 %v2162_v59, %v434_v57  ;;  %v436_v1 = vmul.f32 %v2181_v13, %v301_v53 }
  0x9a   : > { %v692_v3 = vmax.f32 %v564_v58, 0.0  ;;  %v693_v4 = vmax.f32 %v565_v60, 0.0  ;;  %v694_v5 = vmax.f32 %v566_v0, 0.0  ;;  %v570_v6 = vadd.f32 %v2162_v59, %v435_v61 }
  0x9b   : > { %v695_v7 = vmax.f32 %v567_v62, 0.0  ;;  %v696_v8 = vmax.f32 %v568_v63, 0.0  ;;  %v697_v9 = vmax.f32 %v569_v2, 0.0  ;;  %v571_v10 = vadd.f32 %v2162_v59, %v436_v1 }
  0x9c   : > { %v1658_v11 = vpack.c.bf16 %v692_v3, %v692_v3  ;;  %v1659_v12 = vpack.c.bf16 %v693_v4, %v693_v4  ;;  %v1660_v13 = vpack.c.bf16 %v694_v5, %v694_v5  ;;  %v698_v14 = vmax.f32 %v570_v6, 0.0 }
  0x9d   : > { %v1661_v15 = vpack.c.bf16 %v695_v7, %v695_v7  ;;  %v1662_v16 = vpack.c.bf16 %v696_v8, %v696_v8  ;;  %v1663_v17 = vpack.c.bf16 %v697_v9, %v697_v9  ;;  %v699_v18 = vmax.f32 %v571_v10, 0.0 }
  0x9e   : > { %1333 = vst.msk [vmem:[%s1757_s26 + $0x1e0] sm:$0xf] %vm1212_vm0, %v1658_v11  ;;  %1334 = vst.msk [vmem:[%s1757_s26 + $0x1e4] sm:$0xf] %vm1212_vm0, %v1659_v12  ;;  %v1664_v19 = vpack.c.bf16 %v698_v14, %v698_v14 }
  0x9f   : > { %1335 = vst.msk [vmem:[%s1757_s26 + $0x1e8] sm:$0xf] %vm1212_vm0, %v1660_v13  ;;  %1336 = vst.msk [vmem:[%s1757_s26 + $0x1ec] sm:$0xf] %vm1212_vm0, %v1661_v15  ;;  %v1665_v59 = vpack.c.bf16 %v699_v18, %v699_v18 }
  0xa0   : > { %1337 = vst.msk [vmem:[%s1757_s26 + $0x1f0] sm:$0xf] %vm1212_vm0, %v1662_v16  ;;  %1338 = vst.msk [vmem:[%s1757_s26 + $0x1f4] sm:$0xf] %vm1212_vm0, %v1663_v17 }
  0xa1   : > { %1339 = vst.msk [vmem:[%s1757_s26 + $0x1f8] sm:$0xf] %vm1212_vm0, %v1664_v19  ;;  %1340 = vst.msk [vmem:[%s1757_s26 + $0x1fc] sm:$0xf] %vm1212_vm0, %v1665_v59 }
  0xa2 PF: > { %s13_s12 = sadd.s32 1, %s1682_s12  }
  0xa3   : > { %p10_p4 = scmp.ge.s32.totalorder %s13_s12, 4  }
  0xa5   :  { %12 = sbr.rel (!%p10_p4) target bundleno = 1 (0x1), region = 62 }

// kernel: decoder_block_forward.6
= control target key start
LH: loop header
LB: loop body
LE: loop exit
PB: predicated region body
PF: predicated region fallthrough
CT: control target
= control target key end

     0   :  { %s2843_s15 = smov 0   ;;  %s2845_s16 = smov 0   ;;  %s3879_s0 = inlined_call_operand.vmem [shape: bf16[1,2048,128], index: 0, kind: input, shape index: {}]   ;;  %s3880_s1 = inlined_call_operand.vmem [shape: bf16[1,128,32], index: 1, kind: input, shape index: {}]   ;;  %s3881_s2 = inlined_call_operand.vmem [shape: f32[1,2048,32], index: 2, kind: output, shape index: {0}]   ;;  %s3882_s3 = inlined_call_operand.vmem [shape: f32[1,2,1,32], index: 3, kind: output, shape index: {1}]   ;;  %s3883_s4 = inlined_call_operand.vmem [shape: f32[1,2,1,32], index: 4, kind: output, shape index: {2}]  }
   0x1   :  { %s2847_s17 = smov 0  }
   0x2 LB: > { %s24_s18 = sadd.s32 1, %s2812_s16  ;;  %p2387_p0 = scmp.ge.s32.totalorder %s2816_s17, 1  ;;  %s2816_s17 = sphi %s2847_s17, %s15_s17   ;;  %s2812_s16 = sphi %s2845_s16, %s3937_s16   ;;  %s2808_s15 = sphi %s2843_s15, %s3936_s15  }
   0x3   : > { %p25_p1 = scmp.ge.s32.totalorder %s24_s18, 2  ;;  %p202_p2 = scmp.lt.s32.totalorder %s2816_s17, 3 }
   0x5   : > { %s3939_s18 = smov (%p25_p1, %s24_s18), 0  ;;  %p203_p3 = pnand %p2387_p0, %p202_p2 }
   0x7   : > { %206 = sbr.rel (%p203_p3) target bundleno = 514 (0x202), region = 28 }
   0xc   : > { %v2722_v0 = vld [vmem:[%s3880_s1 + $0x38] sm:$0xff]   ;;  %s2388_s21 = sshll.u32 %s2808_s15, 7  ;;  %v2723_v1 = vld [vmem:[%s3880_s1 + $0x30] sm:$0xff]   ;;  %v2724_v2 = vld [vmem:[%s3880_s1 + $0x28] sm:$0xff]   ;;  %vm1416_vm0 = vcmask 261120   ;;  %p282_p5 = scmp.lt.s32.totalorder %s2808_s15, 1 }
   0xd   : > { %p258_p4 = scmp.lt.s32.totalorder %s2388_s21, 255  ;;  %2538 = vmatprep.subr.bf16.mxu0 %v2722_v0  ;;  %2682 = vmatprep.subr.bf16.mxu1 %v2722_v0  ;;  %v2725_v3 = vld [vmem:[%s3880_s1 + $0x20] sm:$0xff]   ;;  %v2726_v5 = vld [vmem:[%s3880_s1 + $0x18] sm:$0xff]   ;;  %v2727_v6 = vld [vmem:[%s3880_s1 + $0x10] sm:$0xff]   ;;  %vm1806_vm1 = vcmask 253952  }
   0xe   : > { %2539 = vmatpush3.bf16.msra.mxu0 %v2722_v0  ;;  %2690 = vmatpush3.bf16.msra.mxu1 %v2722_v0  ;;  %v2728_v7 = vld [vmem:[%s3880_s1 + $0x8] sm:$0xff]   ;;  %v2729_v8 = vld [vmem:[%s3880_s1] sm:$0xff]   ;;  %s3943_s15 = smov (!%p282_p5, %s2808_s15), 1 }
   0xf   : > { %s3941_s21 = smov (!%p258_p4, %s2388_s21), 255  ;;  %2540 = vmatprep.subr.bf16.mxu0 %v2723_v1  ;;  %2683 = vmatprep.subr.bf16.mxu1 %v2723_v1  ;;  %s286_s24 = scalar_lea.vmem %s3882_s3, %s3943_s15 }
  0x10   : > { %s2389_s26 = sshll.u32 %s3941_s21, 2  ;;  %s2391_s14 = sshll.u32 %s3941_s21, 3 }
  0x11   : > { %s2879_s29 = scalar_lea.vmem %s3879_s0, %s2389_s26  ;;  %s2964_s22 = scalar_lea.vmem %s3881_s2, %s2391_s14 }
  0x12   : > { %2541 = vmatpush3.bf16.msra.mxu0 %v2723_v1  ;;  %2691 = vmatpush3.bf16.msra.mxu1 %v2723_v1  ;;  %v2730_v4 = vld [vmem:[%s2879_s29] sm:$0xff]   ;;  %v2731_v9 = vld [vmem:[%s2879_s29 + $0x8] sm:$0xff]   ;;  %v2732_v10 = vld [vmem:[%s2879_s29 + $0x10] sm:$0xff]   ;;  %s293_s27 = scalar_lea.vmem %s3883_s4, %s3943_s15 }
  0x13   : > { %2542 = vmatprep.subr.bf16.mxu0 %v2724_v2  ;;  %2684 = vmatprep.subr.bf16.mxu1 %v2724_v2  ;;  %v2733_v11 = vld [vmem:[%s2879_s29 + $0x18] sm:$0xff]   ;;  %v2734_v12 = vld [vmem:[%s2879_s29 + $0x20] sm:$0xff]   ;;  %v2763_v14 = vld [vmem:[%s2879_s29 + $0x108] sm:$0xff]  }
  0x14   : > { %2554 = vmatprep.mubr.bf16.mxu0 %v2730_v4  ;;  %v2762_v13 = vld [vmem:[%s2879_s29 + $0x100] sm:$0xff]   ;;  %v2764_v15 = vld [vmem:[%s2879_s29 + $0x110] sm:$0xff]   ;;  %v2735_v16 = vld [vmem:[%s2879_s29 + $0x28] sm:$0xff]  }
  0x15   : > { %2618 = vmatprep.mubr.bf16.mxu1 %v2762_v13  ;;  %v2736_v17 = vld [vmem:[%s2879_s29 + $0x30] sm:$0xff]   ;;  %v2765_v18 = vld [vmem:[%s2879_s29 + $0x118] sm:$0xff]   ;;  %v2766_v19 = vld [vmem:[%s2879_s29 + $0x120] sm:$0xff]  }
  0x16   : > { %2543 = vmatpush3.bf16.msra.mxu0 %v2724_v2  ;;  %2692 = vmatpush3.bf16.msra.mxu1 %v2724_v2  ;;  %v2737_v20 = vld [vmem:[%s2879_s29 + $0x38] sm:$0xff]   ;;  %v2738_v21 = vld [vmem:[%s2879_s29 + $0x40] sm:$0xff]   ;;  %v2767_v22 = vld [vmem:[%s2879_s29 + $0x128] sm:$0xff]  }
  0x17   : > { %2544 = vmatprep.subr.bf16.mxu0 %v2725_v3  ;;  %2685 = vmatprep.subr.bf16.mxu1 %v2725_v3  ;;  %v2768_v23 = vld [vmem:[%s2879_s29 + $0x130] sm:$0xff]   ;;  %v2739_v24 = vld [vmem:[%s2879_s29 + $0x48] sm:$0xff]   ;;  %v2769_v26 = vld [vmem:[%s2879_s29 + $0x138] sm:$0xff]  }
  0x18   : > { %v2740_v25 = vld [vmem:[%s2879_s29 + $0x50] sm:$0xff]   ;;  %v2770_v27 = vld [vmem:[%s2879_s29 + $0x140] sm:$0xff]   ;;  %v2741_v28 = vld [vmem:[%s2879_s29 + $0x58] sm:$0xff]  }
  0x19   : > { %v2742_v29 = vld [vmem:[%s2879_s29 + $0x60] sm:$0xff]   ;;  %v2771_v30 = vld [vmem:[%s2879_s29 + $0x148] sm:$0xff]   ;;  %v2772_v31 = vld [vmem:[%s2879_s29 + $0x150] sm:$0xff]  }
  0x1a   : > { %2545 = vmatpush3.bf16.msra.mxu0 %v2725_v3  ;;  %2693 = vmatpush3.bf16.msra.mxu1 %v2725_v3  ;;  %v2743_v32 = vld [vmem:[%s2879_s29 + $0x68] sm:$0xff]   ;;  %v2744_v33 = vld [vmem:[%s2879_s29 + $0x70] sm:$0xff]   ;;  %v2773_v34 = vld [vmem:[%s2879_s29 + $0x158] sm:$0xff]  }
  0x1b   : > { %2546 = vmatprep.subr.bf16.mxu0 %v2726_v5  ;;  %2686 = vmatprep.subr.bf16.mxu1 %v2726_v5  ;;  %v2774_v35 = vld [vmem:[%s2879_s29 + $0x160] sm:$0xff]   ;;  %v2745_v36 = vld [vmem:[%s2879_s29 + $0x78] sm:$0xff]   ;;  %v2775_v38 = vld [vmem:[%s2879_s29 + $0x168] sm:$0xff]  }
  0x1c   : > { %v2746_v37 = vld [vmem:[%s2879_s29 + $0x80] sm:$0xff]   ;;  %v2776_v39 = vld [vmem:[%s2879_s29 + $0x170] sm:$0xff]   ;;  %v2747_v40 = vld [vmem:[%s2879_s29 + $0x88] sm:$0xff]  }
  0x1d   : > { %v2748_v41 = vld [vmem:[%s2879_s29 + $0x90] sm:$0xff]   ;;  %v2777_v42 = vld [vmem:[%s2879_s29 + $0x178] sm:$0xff]   ;;  %v2778_v43 = vld [vmem:[%s2879_s29 + $0x180] sm:$0xff]  }
  0x1e   : > { %2547 = vmatpush3.bf16.msra.mxu0 %v2726_v5  ;;  %2694 = vmatpush3.bf16.msra.mxu1 %v2726_v5  ;;  %v2749_v44 = vld [vmem:[%s2879_s29 + $0x98] sm:$0xff]   ;;  %v2750_v45 = vld [vmem:[%s2879_s29 + $0xa0] sm:$0xff]   ;;  %v2779_v46 = vld [vmem:[%s2879_s29 + $0x188] sm:$0xff]  }
  0x1f   : > { %2548 = vmatprep.subr.bf16.mxu0 %v2727_v6  ;;  %2687 = vmatprep.subr.bf16.mxu1 %v2727_v6  ;;  %v2780_v47 = vld [vmem:[%s2879_s29 + $0x190] sm:$0xff]   ;;  %v2751_v48 = vld [vmem:[%s2879_s29 + $0xa8] sm:$0xff]   ;;  %v2781_v50 = vld [vmem:[%s2879_s29 + $0x198] sm:$0xff]  }
  0x20   : > { %v2752_v49 = vld [vmem:[%s2879_s29 + $0xb0] sm:$0xff]   ;;  %v2782_v51 = vld [vmem:[%s2879_s29 + $0x1a0] sm:$0xff]   ;;  %v2753_v52 = vld [vmem:[%s2879_s29 + $0xb8] sm:$0xff]  }
  0x21   : > { %v2754_v53 = vld [vmem:[%s2879_s29 + $0xc0] sm:$0xff]   ;;  %v2783_v54 = vld [vmem:[%s2879_s29 + $0x1a8] sm:$0xff]   ;;  %v2784_v55 = vld [vmem:[%s2879_s29 + $0x1b0] sm:$0xff]  }
  0x22   : > { %2549 = vmatpush3.bf16.msra.mxu0 %v2727_v6  ;;  %2695 = vmatpush3.bf16.msra.mxu1 %v2727_v6  ;;  %v2755_v56 = vld [vmem:[%s2879_s29 + $0xc8] sm:$0xff]   ;;  %v2756_v57 = vld [vmem:[%s2879_s29 + $0xd0] sm:$0xff]   ;;  %v2785_v58 = vld [vmem:[%s2879_s29 + $0x1b8] sm:$0xff]  }
  0x23   : > { %2550 = vmatprep.subr.bf16.mxu0 %v2728_v7  ;;  %2688 = vmatprep.subr.bf16.mxu1 %v2728_v7  ;;  %v2786_v59 = vld [vmem:[%s2879_s29 + $0x1c0] sm:$0xff]   ;;  %v2757_v60 = vld [vmem:[%s2879_s29 + $0xd8] sm:$0xff]   ;;  %v2787_v62 = vld [vmem:[%s2879_s29 + $0x1c8] sm:$0xff]  }
  0x24   : > { %v2758_v61 = vld [vmem:[%s2879_s29 + $0xe0] sm:$0xff]   ;;  %v2788_v63 = vld [vmem:[%s2879_s29 + $0x1d0] sm:$0xff]   ;;  %v2759_v0 = vld [vmem:[%s2879_s29 + $0xe8] sm:$0xff]  }
  0x25   : > { %v2760_v1 = vld [vmem:[%s2879_s29 + $0xf0] sm:$0xff]   ;;  %v2789_v2 = vld [vmem:[%s2879_s29 + $0x1d8] sm:$0xff]   ;;  %v2790_v3 = vld [vmem:[%s2879_s29 + $0x1e0] sm:$0xff]  }
  0x26   : > { %2551 = vmatpush3.bf16.msra.mxu0 %v2728_v7  ;;  %2696 = vmatpush3.bf16.msra.mxu1 %v2728_v7  ;;  %v2761_v4 = vld [vmem:[%s2879_s29 + $0xf8] sm:$0xff]   ;;  %v2791_v5 = vld [vmem:[%s2879_s29 + $0x1e8] sm:$0xff]   ;;  %v2792_v6 = vld [vmem:[%s2879_s29 + $0x1f0] sm:$0xff]  }
  0x27   : > { %2552 = vmatprep.subr.bf16.mxu0 %v2729_v8  ;;  %2689 = vmatprep.subr.bf16.mxu1 %v2729_v8  ;;  %v2793_v7 = vld [vmem:[%s2879_s29 + $0x1f8] sm:$0xff]  }
  0x2a   : > { %2553 = vmatpush3.bf16.msra.mxu0 %v2729_v8  ;;  %2697 = vmatpush3.bf16.msra.mxu1 %v2729_v8 }
  0x2d   : > { %2555 = vmatmul.mubr.bf16.vlgmr.msra.gmra.mxu0 %v2731_v9  ;;  %2619 = vmatmul.mubr.bf16.vlgmr.msra.gmra.mxu1 %v2763_v14 }
  0x2e   : > { %2558 = vmatprep.mubr.bf16.mxu0 %v2732_v10  ;;  %2622 = vmatprep.mubr.bf16.mxu1 %v2764_v15 }
  0x35   : > { %2559 = vmatmul.mubr.bf16.gmra.mxu0 %v2733_v11  ;;  %2623 = vmatmul.mubr.bf16.gmra.mxu1 %v2765_v18 }
  0x36   : > { %2562 = vmatprep.mubr.bf16.mxu0 %v2734_v12  ;;  %2626 = vmatprep.mubr.bf16.mxu1 %v2766_v19 }
  0x3d   : > { %2563 = vmatmul.mubr.bf16.gmra.mxu0 %v2735_v16  ;;  %2627 = vmatmul.mubr.bf16.gmra.mxu1 %v2767_v22 }
  0x3e   : > { %2566 = vmatprep.mubr.bf16.mxu0 %v2736_v17  ;;  %2630 = vmatprep.mubr.bf16.mxu1 %v2768_v23 }
  0x45   : > { %2567 = vmatmul.mubr.bf16.gmra.mxu0 %v2737_v20  ;;  %2631 = vmatmul.mubr.bf16.gmra.mxu1 %v2769_v26 }
  0x46   : > { %2570 = vmatprep.mubr.bf16.mxu0 %v2738_v21  ;;  %2634 = vmatprep.mubr.bf16.mxu1 %v2770_v27 }
  0x4d   : > { %2571 = vmatmul.mubr.bf16.gmra.mxu0 %v2739_v24  ;;  %2635 = vmatmul.mubr.bf16.gmra.mxu1 %v2771_v30 }
  0x4e   : > { %2574 = vmatprep.mubr.bf16.mxu0 %v2740_v25  ;;  %2638 = vmatprep.mubr.bf16.mxu1 %v2772_v31 }
  0x55   : > { %2575 = vmatmul.mubr.bf16.gmra.mxu0 %v2741_v28  ;;  %2639 = vmatmul.mubr.bf16.gmra.mxu1 %v2773_v34 }
  0x56   : > { %2578 = vmatprep.mubr.bf16.mxu0 %v2742_v29  ;;  %2642 = vmatprep.mubr.bf16.mxu1 %v2774_v35 }
  0x5d   : > { %2579 = vmatmul.mubr.bf16.gmra.mxu0 %v2743_v32  ;;  %2643 = vmatmul.mubr.bf16.gmra.mxu1 %v2775_v38 }
  0x5e   : > { %2582 = vmatprep.mubr.bf16.mxu0 %v2744_v33  ;;  %2646 = vmatprep.mubr.bf16.mxu1 %v2776_v39 }
  0x65   : > { %2583 = vmatmul.mubr.bf16.gmra.mxu0 %v2745_v36  ;;  %2647 = vmatmul.mubr.bf16.gmra.mxu1 %v2777_v42 }
  0x66   : > { %2586 = vmatprep.mubr.bf16.mxu0 %v2746_v37  ;;  %2650 = vmatprep.mubr.bf16.mxu1 %v2778_v43 }
  0x6d   : > { %2587 = vmatmul.mubr.bf16.gmra.mxu0 %v2747_v40  ;;  %2651 = vmatmul.mubr.bf16.gmra.mxu1 %v2779_v46 }
  0x6e   : > { %2590 = vmatprep.mubr.bf16.mxu0 %v2748_v41  ;;  %2654 = vmatprep.mubr.bf16.mxu1 %v2780_v47 }
  0x75   : > { %2591 = vmatmul.mubr.bf16.gmra.mxu0 %v2749_v44  ;;  %2655 = vmatmul.mubr.bf16.gmra.mxu1 %v2781_v50 }
  0x76   : > { %2594 = vmatprep.mubr.bf16.mxu0 %v2750_v45  ;;  %2658 = vmatprep.mubr.bf16.mxu1 %v2782_v51 }
  0x7d   : > { %2595 = vmatmul.mubr.bf16.gmra.mxu0 %v2751_v48  ;;  %2659 = vmatmul.mubr.bf16.gmra.mxu1 %v2783_v54 }
  0x7e   : > { %2598 = vmatprep.mubr.bf16.mxu0 %v2752_v49  ;;  %2662 = vmatprep.mubr.bf16.mxu1 %v2784_v55 }
  0x85   : > { %2599 = vmatmul.mubr.bf16.gmra.mxu0 %v2753_v52  ;;  %2663 = vmatmul.mubr.bf16.gmra.mxu1 %v2785_v58 }
  0x86   : > { %2602 = vmatprep.mubr.bf16.mxu0 %v2754_v53  ;;  %2666 = vmatprep.mubr.bf16.mxu1 %v2786_v59 }
  0x8d   : > { %2603 = vmatmul.mubr.bf16.gmra.mxu0 %v2755_v56  ;;  %2667 = vmatmul.mubr.bf16.gmra.mxu1 %v2787_v62 }
  0x8e   : > { %2606 = vmatprep.mubr.bf16.mxu0 %v2756_v57  ;;  %2670 = vmatprep.mubr.bf16.mxu1 %v2788_v63 }
  0x95   : > { %2607 = vmatmul.mubr.bf16.gmra.mxu0 %v2757_v60  ;;  %2671 = vmatmul.mubr.bf16.gmra.mxu1 %v2789_v2 }
  0x96   : > { %2610 = vmatprep.mubr.bf16.mxu0 %v2758_v61  ;;  %2674 = vmatprep.mubr.bf16.mxu1 %v2790_v3 }
  0x9d   : > { %2611 = vmatmul.mubr.bf16.gmra.mxu0 %v2759_v0  ;;  %2675 = vmatmul.mubr.bf16.gmra.mxu1 %v2791_v5 }
  0x9e   : > { %2614 = vmatprep.mubr.bf16.mxu0 %v2760_v1  ;;  %2678 = vmatprep.mubr.bf16.mxu1 %v2792_v6 }
  0xa5   : > { %2615 = vmatmul.mubr.bf16.gmra.mxu0 %v2761_v4  ;;  %2679 = vmatmul.mubr.bf16.gmra.mxu1 %v2793_v7 }
  0xed   : > { %v2556_v8 = vpop.f32.mrf.mxu0  ;;  %v2981_v23 = vpop.f32.mrf.mxu1 }
  0xee   : > { %1419 = vst.msk [vmem:[%s2964_s22 + $0x10] sm:$0xff] %vm1416_vm0, %v2556_v8  ;;  %v1810_v13 = vmul.f32 %v2556_v8, %v2556_v8  ;;  %v1548_v19 = vsel %vm1416_vm0, %v2556_v8, 0.0  ;;  %1483 = vst.msk [vmem:[%s2964_s22 + $0x210] sm:$0xff] %vm1416_vm0, %v2981_v23 }
  0xef   : > { %v905_v9 = vpop.f32.mrf.mxu0  ;;  %v2990_v30 = vpop.f32.mrf.mxu1 }
  0xf0   : > { %1417 = vst.msk [vmem:[%s2964_s22] sm:$0xff] %vm1416_vm0, %v905_v9  ;;  %v1808_v11 = vmul.f32 %v905_v9, %v905_v9  ;;  %v1545_v14 = vsel %vm1416_vm0, %v905_v9, 0.0  ;;  %v1939_v27 = vsel %vm1416_vm0, %v1810_v13, 0.0  ;;  %1481 = vst.msk [vmem:[%s2964_s22 + $0x200] sm:$0xff] %vm1416_vm0, %v2990_v30 }
  0xf1   : > { %v2557_v10 = vpop.f32.mrf.mxu0  ;;  %v2999_v36 = vpop.f32.mrf.mxu1 }
  0xf2   : > { %1420 = vst.msk [vmem:[%s2964_s22 + $0x18] sm:$0xff] %vm1416_vm0, %v2557_v10  ;;  %v1936_v20 = vsel %vm1416_vm0, %v1808_v11, 0.0  ;;  %v1811_v21 = vmul.f32 %v2557_v10, %v2557_v10  ;;  %v1550_v28 = vsel %vm1416_vm0, %v2557_v10, 0.0  ;;  %1484 = vst.msk [vmem:[%s2964_s22 + $0x218] sm:$0xff] %vm1416_vm0, %v2999_v36 }
  0xf3   : > { %v908_v12 = vpop.f32.mrf.mxu0  ;;  %v3008_v44 = vpop.f32.mrf.mxu1 }
  0xf4   : > { %1418 = vst.msk [vmem:[%s2964_s22 + $0x8] sm:$0xff] %vm1416_vm0, %v908_v12  ;;  %v1546_v15 = vsel %vm1416_vm0, %v908_v12, 0.0  ;;  %v1809_v16 = vmul.f32 %v908_v12, %v908_v12  ;;  %v1941_v34 = vsel %vm1416_vm0, %v1811_v21, 0.0  ;;  %1482 = vst.msk [vmem:[%s2964_s22 + $0x208] sm:$0xff] %vm1416_vm0, %v3008_v44 }
  0xf5   : > { %v1547_v17 = vadd.f32 %v1546_v15, %v1545_v14  ;;  %v2560_v18 = vpop.f32.mrf.mxu0  ;;  %v3017_v51 = vpop.f32.mrf.mxu1 }
  0xf6   : > { %v1937_v22 = vsel %vm1416_vm0, %v1809_v16, 0.0  ;;  %1423 = vst.msk [vmem:[%s2964_s22 + $0x30] sm:$0xff] %vm1416_vm0, %v2560_v18  ;;  %v1814_v40 = vmul.f32 %v2560_v18, %v2560_v18  ;;  %v1556_v48 = vsel %vm1416_vm0, %v2560_v18, 0.0  ;;  %1487 = vst.msk [vmem:[%s2964_s22 + $0x230] sm:$0xff] %vm1416_vm0, %v3017_v51 }
  0xf7   : > { %v1549_v24 = vadd.f32 %v1548_v19, %v1547_v17  ;;  %v1938_v25 = vadd.f32 %v1937_v22, %v1936_v20  ;;  %v921_v26 = vpop.f32.mrf.mxu0  ;;  %v3026_v58 = vpop.f32.mrf.mxu1 }
  0xf8   : > { %1421 = vst.msk [vmem:[%s2964_s22 + $0x20] sm:$0xff] %vm1416_vm0, %v921_v26  ;;  %v1812_v29 = vmul.f32 %v921_v26, %v921_v26  ;;  %v1552_v35 = vsel %vm1416_vm0, %v921_v26, 0.0  ;;  %v1947_v55 = vsel %vm1416_vm0, %v1814_v40, 0.0  ;;  %1485 = vst.msk [vmem:[%s2964_s22 + $0x220] sm:$0xff] %vm1416_vm0, %v3026_v58 }
  0xf9   : > { %v1940_v31 = vadd.f32 %v1939_v27, %v1938_v25  ;;  %v1551_v32 = vadd.f32 %v1550_v28, %v1549_v24  ;;  %v2561_v33 = vpop.f32.mrf.mxu0  ;;  %v3035_v0 = vpop.f32.mrf.mxu1 }
  0xfa   : > { %1424 = vst.msk [vmem:[%s2964_s22 + $0x38] sm:$0xff] %vm1416_vm0, %v2561_v33  ;;  %v1943_v41 = vsel %vm1416_vm0, %v1812_v29, 0.0  ;;  %v1815_v49 = vmul.f32 %v2561_v33, %v2561_v33  ;;  %v1558_v56 = vsel %vm1416_vm0, %v2561_v33, 0.0  ;;  %1488 = vst.msk [vmem:[%s2964_s22 + $0x238] sm:$0xff] %vm1416_vm0, %v3035_v0 }
  0xfb   : > { %v1553_v37 = vadd.f32 %v1552_v35, %v1551_v32  ;;  %v1942_v38 = vadd.f32 %v1941_v34, %v1940_v31  ;;  %v924_v39 = vpop.f32.mrf.mxu0  ;;  %v3044_v8 = vpop.f32.mrf.mxu1 }
  0xfc   : > { %1422 = vst.msk [vmem:[%s2964_s22 + $0x28] sm:$0xff] %vm1416_vm0, %v924_v39  ;;  %v1554_v42 = vsel %vm1416_vm0, %v924_v39, 0.0  ;;  %v1813_v43 = vmul.f32 %v924_v39, %v924_v39  ;;  %v1949_v62 = vsel %vm1416_vm0, %v1815_v49, 0.0  ;;  %1486 = vst.msk [vmem:[%s2964_s22 + $0x228] sm:$0xff] %vm1416_vm0, %v3044_v8 }
  0xfd   : > { %v1944_v45 = vadd.f32 %v1943_v41, %v1942_v38  ;;  %v1555_v46 = vadd.f32 %v1554_v42, %v1553_v37  ;;  %v2564_v47 = vpop.f32.mrf.mxu0  ;;  %v3053_v15 = vpop.f32.mrf.mxu1 }
  0xfe   : > { %v1945_v50 = vsel %vm1416_vm0, %v1813_v43, 0.0  ;;  %1427 = vst.msk [vmem:[%s2964_s22 + $0x50] sm:$0xff] %vm1416_vm0, %v2564_v47  ;;  %v1818_v4 = vmul.f32 %v2564_v47, %v2564_v47  ;;  %v1564_v12 = vsel %vm1416_vm0, %v2564_v47, 0.0  ;;  %1491 = vst.msk [vmem:[%s2964_s22 + $0x250] sm:$0xff] %vm1416_vm0, %v3053_v15 }
  0xff   : > { %v1557_v52 = vadd.f32 %v1556_v48, %v1555_v46  ;;  %v1946_v53 = vadd.f32 %v1945_v50, %v1944_v45  ;;  %v937_v54 = vpop.f32.mrf.mxu0  ;;  %v3062_v22 = vpop.f32.mrf.mxu1 }
 0x100   : > { %1425 = vst.msk [vmem:[%s2964_s22 + $0x40] sm:$0xff] %vm1416_vm0, %v937_v54  ;;  %v1816_v57 = vmul.f32 %v937_v54, %v937_v54  ;;  %v1560_v63 = vsel %vm1416_vm0, %v937_v54, 0.0  ;;  %v1955_v19 = vsel %vm1416_vm0, %v1818_v4, 0.0  ;;  %1489 = vst.msk [vmem:[%s2964_s22 + $0x240] sm:$0xff] %vm1416_vm0, %v3062_v22 }
 0x101   : > { %v1948_v59 = vadd.f32 %v1947_v55, %v1946_v53  ;;  %v1559_v60 = vadd.f32 %v1558_v56, %v1557_v52  ;;  %v2565_v61 = vpop.f32.mrf.mxu0  ;;  %v3071_v29 = vpop.f32.mrf.mxu1 }
 0x102   : > { %1428 = vst.msk [vmem:[%s2964_s22 + $0x58] sm:$0xff] %vm1416_vm0, %v2565_v61  ;;  %v1951_v5 = vsel %vm1416_vm0, %v1816_v57, 0.0  ;;  %v1819_v13 = vmul.f32 %v2565_v61, %v2565_v61  ;;  %v1566_v20 = vsel %vm1416_vm0, %v2565_v61, 0.0  ;;  %1492 = vst.msk [vmem:[%s2964_s22 + $0x258] sm:$0xff] %vm1416_vm0, %v3071_v29 }
 0x103   : > { %v1561_v1 = vadd.f32 %v1560_v63, %v1559_v60  ;;  %v1950_v2 = vadd.f32 %v1949_v62, %v1948_v59  ;;  %v940_v3 = vpop.f32.mrf.mxu0  ;;  %v3080_v39 = vpop.f32.mrf.mxu1 }
 0x104   : > { %1426 = vst.msk [vmem:[%s2964_s22 + $0x48] sm:$0xff] %vm1416_vm0, %v940_v3  ;;  %v1562_v6 = vsel %vm1416_vm0, %v940_v3, 0.0  ;;  %v1817_v7 = vmul.f32 %v940_v3, %v940_v3  ;;  %v1957_v27 = vsel %vm1416_vm0, %v1819_v13, 0.0  ;;  %1490 = vst.msk [vmem:[%s2964_s22 + $0x248] sm:$0xff] %vm1416_vm0, %v3080_v39 }
 0x105   : > { %v1952_v9 = vadd.f32 %v1951_v5, %v1950_v2  ;;  %v1563_v10 = vadd.f32 %v1562_v6, %v1561_v1  ;;  %v2568_v11 = vpop.f32.mrf.mxu0  ;;  %v3089_v47 = vpop.f32.mrf.mxu1 }
 0x106   : > { %v1953_v14 = vsel %vm1416_vm0, %v1817_v7, 0.0  ;;  %1431 = vst.msk [vmem:[%s2964_s22 + $0x70] sm:$0xff] %vm1416_vm0, %v2568_v11  ;;  %v1822_v34 = vmul.f32 %v2568_v11, %v2568_v11  ;;  %v1572_v43 = vsel %vm1416_vm0, %v2568_v11, 0.0  ;;  %1495 = vst.msk [vmem:[%s2964_s22 + $0x270] sm:$0xff] %vm1416_vm0, %v3089_v47 }
 0x107   : > { %v1565_v16 = vadd.f32 %v1564_v12, %v1563_v10  ;;  %v1954_v17 = vadd.f32 %v1953_v14, %v1952_v9  ;;  %v953_v18 = vpop.f32.mrf.mxu0  ;;  %v3098_v55 = vpop.f32.mrf.mxu1 }
 0x108   : > { %1429 = vst.msk [vmem:[%s2964_s22 + $0x60] sm:$0xff] %vm1416_vm0, %v953_v18  ;;  %v1820_v21 = vmul.f32 %v953_v18, %v953_v18  ;;  %v1568_v28 = vsel %vm1416_vm0, %v953_v18, 0.0  ;;  %v1963_v52 = vsel %vm1416_vm0, %v1822_v34, 0.0  ;;  %1493 = vst.msk [vmem:[%s2964_s22 + $0x260] sm:$0xff] %vm1416_vm0, %v3098_v55 }
 0x109   : > { %v1956_v24 = vadd.f32 %v1955_v19, %v1954_v17  ;;  %v1567_v25 = vadd.f32 %v1566_v20, %v1565_v16  ;;  %v2569_v26 = vpop.f32.mrf.mxu0  ;;  %v3107_v62 = vpop.f32.mrf.mxu1 }
 0x10a   : > { %1432 = vst.msk [vmem:[%s2964_s22 + $0x78] sm:$0xff] %vm1416_vm0, %v2569_v26  ;;  %v1959_v35 = vsel %vm1416_vm0, %v1820_v21, 0.0  ;;  %v1823_v45 = vmul.f32 %v2569_v26, %v2569_v26  ;;  %v1574_v53 = vsel %vm1416_vm0, %v2569_v26, 0.0  ;;  %1496 = vst.msk [vmem:[%s2964_s22 + $0x278] sm:$0xff] %vm1416_vm0, %v3107_v62 }
 0x10b   : > { %v1569_v31 = vadd.f32 %v1568_v28, %v1567_v25  ;;  %v1958_v32 = vadd.f32 %v1957_v27, %v1956_v24  ;;  %v956_v33 = vpop.f32.mrf.mxu0  ;;  %v3116_v7 = vpop.f32.mrf.mxu1 }
 0x10c   : > { %1430 = vst.msk [vmem:[%s2964_s22 + $0x68] sm:$0xff] %vm1416_vm0, %v956_v33  ;;  %v1570_v37 = vsel %vm1416_vm0, %v956_v33, 0.0  ;;  %v1821_v38 = vmul.f32 %v956_v33, %v956_v33  ;;  %v1965_v60 = vsel %vm1416_vm0, %v1823_v45, 0.0  ;;  %1494 = vst.msk [vmem:[%s2964_s22 + $0x268] sm:$0xff] %vm1416_vm0, %v3116_v7 }
 0x10d   : > { %v1960_v40 = vadd.f32 %v1959_v35, %v1958_v32  ;;  %v1571_v41 = vadd.f32 %v1570_v37, %v1569_v31  ;;  %v2572_v42 = vpop.f32.mrf.mxu0  ;;  %v3125_v16 = vpop.f32.mrf.mxu1 }
 0x10e   : > { %v1961_v46 = vsel %vm1416_vm0, %v1821_v38, 0.0  ;;  %1435 = vst.msk [vmem:[%s2964_s22 + $0x90] sm:$0xff] %vm1416_vm0, %v2572_v42  ;;  %v1826_v3 = vmul.f32 %v2572_v42, %v2572_v42  ;;  %v1580_v12 = vsel %vm1416_vm0, %v2572_v42, 0.0  ;;  %1499 = vst.msk [vmem:[%s2964_s22 + $0x290] sm:$0xff] %vm1416_vm0, %v3125_v16 }
 0x10f   : > { %v1573_v48 = vadd.f32 %v1572_v43, %v1571_v41  ;;  %v1962_v49 = vadd.f32 %v1961_v46, %v1960_v40  ;;  %v969_v50 = vpop.f32.mrf.mxu0  ;;  %v3134_v25 = vpop.f32.mrf.mxu1 }
 0x110   : > { %1433 = vst.msk [vmem:[%s2964_s22 + $0x80] sm:$0xff] %vm1416_vm0, %v969_v50  ;;  %v1824_v54 = vmul.f32 %v969_v50, %v969_v50  ;;  %v1576_v61 = vsel %vm1416_vm0, %v969_v50, 0.0  ;;  %v1971_v20 = vsel %vm1416_vm0, %v1826_v3, 0.0  ;;  %1497 = vst.msk [vmem:[%s2964_s22 + $0x280] sm:$0xff] %vm1416_vm0, %v3134_v25 }
 0x111   : > { %v1964_v56 = vadd.f32 %v1963_v52, %v1962_v49  ;;  %v1575_v57 = vadd.f32 %v1574_v53, %v1573_v48  ;;  %v2573_v59 = vpop.f32.mrf.mxu0  ;;  %v3143_v33 = vpop.f32.mrf.mxu1 }
 0x112   : > { %1436 = vst.msk [vmem:[%s2964_s22 + $0x98] sm:$0xff] %vm1416_vm0, %v2573_v59  ;;  %v1967_v4 = vsel %vm1416_vm0, %v1824_v54, 0.0  ;;  %v1827_v13 = vmul.f32 %v2573_v59, %v2573_v59  ;;  %v1582_v21 = vsel %vm1416_vm0, %v2573_v59, 0.0  ;;  %1500 = vst.msk [vmem:[%s2964_s22 + $0x298] sm:$0xff] %vm1416_vm0, %v3143_v33 }
 0x113   : > { %v1577_v63 = vadd.f32 %v1576_v61, %v1575_v57  ;;  %v1966_v1 = vadd.f32 %v1965_v60, %v1964_v56  ;;  %v972_v2 = vpop.f32.mrf.mxu0  ;;  %v3152_v43 = vpop.f32.mrf.mxu1 }
 0x114   : > { %1434 = vst.msk [vmem:[%s2964_s22 + $0x88] sm:$0xff] %vm1416_vm0, %v972_v2  ;;  %v1578_v5 = vsel %vm1416_vm0, %v972_v2, 0.0  ;;  %v1825_v6 = vmul.f32 %v972_v2, %v972_v2  ;;  %v1973_v31 = vsel %vm1416_vm0, %v1827_v13, 0.0  ;;  %1498 = vst.msk [vmem:[%s2964_s22 + $0x288] sm:$0xff] %vm1416_vm0, %v3152_v43 }
 0x115   : > { %v1968_v9 = vadd.f32 %v1967_v4, %v1966_v1  ;;  %v1579_v10 = vadd.f32 %v1578_v5, %v1577_v63  ;;  %v2576_v11 = vpop.f32.mrf.mxu0  ;;  %v3161_v53 = vpop.f32.mrf.mxu1 }
 0x116   : > { %v1969_v14 = vsel %vm1416_vm0, %v1825_v6, 0.0  ;;  %1439 = vst.msk [vmem:[%s2964_s22 + $0xb0] sm:$0xff] %vm1416_vm0, %v2576_v11  ;;  %v1830_v38 = vmul.f32 %v2576_v11, %v2576_v11  ;;  %v1588_v49 = vsel %vm1416_vm0, %v2576_v11, 0.0  ;;  %1503 = vst.msk [vmem:[%s2964_s22 + $0x2b0] sm:$0xff] %vm1416_vm0, %v3161_v53 }
 0x117   : > { %v1581_v17 = vadd.f32 %v1580_v12, %v1579_v10  ;;  %v1970_v18 = vadd.f32 %v1969_v14, %v1968_v9  ;;  %v985_v19 = vpop.f32.mrf.mxu0  ;;  %v3170_v63 = vpop.f32.mrf.mxu1 }
 0x118   : > { %1437 = vst.msk [vmem:[%s2964_s22 + $0xa0] sm:$0xff] %vm1416_vm0, %v985_v19  ;;  %v1828_v24 = vmul.f32 %v985_v19, %v985_v19  ;;  %v1584_v32 = vsel %vm1416_vm0, %v985_v19, 0.0  ;;  %v1979_v59 = vsel %vm1416_vm0, %v1830_v38, 0.0  ;;  %1501 = vst.msk [vmem:[%s2964_s22 + $0x2a0] sm:$0xff] %vm1416_vm0, %v3170_v63 }
 0x119   : > { %v1972_v26 = vadd.f32 %v1971_v20, %v1970_v18  ;;  %v1583_v27 = vadd.f32 %v1582_v21, %v1581_v17  ;;  %v2577_v28 = vpop.f32.mrf.mxu0  ;;  %v3179_v6 = vpop.f32.mrf.mxu1 }
 0x11a   : > { %1440 = vst.msk [vmem:[%s2964_s22 + $0xb8] sm:$0xff] %vm1416_vm0, %v2577_v28  ;;  %v1975_v40 = vsel %vm1416_vm0, %v1828_v24, 0.0  ;;  %v1831_v50 = vmul.f32 %v2577_v28, %v2577_v28  ;;  %v1590_v60 = vsel %vm1416_vm0, %v2577_v28, 0.0  ;;  %1504 = vst.msk [vmem:[%s2964_s22 + $0x2b8] sm:$0xff] %vm1416_vm0, %v3179_v6 }
 0x11b   : > { %v1585_v34 = vadd.f32 %v1584_v32, %v1583_v27  ;;  %v1974_v35 = vadd.f32 %v1973_v31, %v1972_v26  ;;  %v988_v37 = vpop.f32.mrf.mxu0  ;;  %v3188_v18 = vpop.f32.mrf.mxu1 }
 0x11c   : > { %1438 = vst.msk [vmem:[%s2964_s22 + $0xa8] sm:$0xff] %vm1416_vm0, %v988_v37  ;;  %v1586_v41 = vsel %vm1416_vm0, %v988_v37, 0.0  ;;  %v1829_v42 = vmul.f32 %v988_v37, %v988_v37  ;;  %v1981_v4 = vsel %vm1416_vm0, %v1831_v50, 0.0  ;;  %1502 = vst.msk [vmem:[%s2964_s22 + $0x2a8] sm:$0xff] %vm1416_vm0, %v3188_v18 }
 0x11d   : > { %v1976_v45 = vadd.f32 %v1975_v40, %v1974_v35  ;;  %v1587_v46 = vadd.f32 %v1586_v41, %v1585_v34  ;;  %v2580_v48 = vpop.f32.mrf.mxu0  ;;  %v3197_v28 = vpop.f32.mrf.mxu1 }
 0x11e   : > { %v1977_v52 = vsel %vm1416_vm0, %v1829_v42, 0.0  ;;  %1443 = vst.msk [vmem:[%s2964_s22 + $0xd0] sm:$0xff] %vm1416_vm0, %v2580_v48  ;;  %v1834_v12 = vmul.f32 %v2580_v48, %v2580_v48  ;;  %v1596_v24 = vsel %vm1416_vm0, %v2580_v48, 0.0  ;;  %1507 = vst.msk [vmem:[%s2964_s22 + $0x2d0] sm:$0xff] %vm1416_vm0, %v3197_v28 }
 0x11f   : > { %v1589_v54 = vadd.f32 %v1588_v49, %v1587_v46  ;;  %v1978_v56 = vadd.f32 %v1977_v52, %v1976_v45  ;;  %v1001_v57 = vpop.f32.mrf.mxu0  ;;  %v3206_v40 = vpop.f32.mrf.mxu1 }
 0x120   : > { %1441 = vst.msk [vmem:[%s2964_s22 + $0xc0] sm:$0xff] %vm1416_vm0, %v1001_v57  ;;  %v1832_v61 = vmul.f32 %v1001_v57, %v1001_v57  ;;  %v1592_v5 = vsel %vm1416_vm0, %v1001_v57, 0.0  ;;  %v1987_v35 = vsel %vm1416_vm0, %v1834_v12, 0.0  ;;  %1505 = vst.msk [vmem:[%s2964_s22 + $0x2c0] sm:$0xff] %vm1416_vm0, %v3206_v40 }
 0x121   : > { %v1980_v1 = vadd.f32 %v1979_v59, %v1978_v56  ;;  %v1591_v2 = vadd.f32 %v1590_v60, %v1589_v54  ;;  %v2581_v3 = vpop.f32.mrf.mxu0  ;;  %v3215_v49 = vpop.f32.mrf.mxu1 }
 0x122   : > { %1444 = vst.msk [vmem:[%s2964_s22 + $0xd8] sm:$0xff] %vm1416_vm0, %v2581_v3  ;;  %v1983_v13 = vsel %vm1416_vm0, %v1832_v61, 0.0  ;;  %v1835_v26 = vmul.f32 %v2581_v3, %v2581_v3  ;;  %v1598_v37 = vsel %vm1416_vm0, %v2581_v3, 0.0  ;;  %1508 = vst.msk [vmem:[%s2964_s22 + $0x2d8] sm:$0xff] %vm1416_vm0, %v3215_v49 }
 0x123   : > { %v1593_v9 = vadd.f32 %v1592_v5, %v1591_v2  ;;  %v1982_v10 = vadd.f32 %v1981_v4, %v1980_v1  ;;  %v1004_v11 = vpop.f32.mrf.mxu0  ;;  %v3224_v61 = vpop.f32.mrf.mxu1 }
 0x124   : > { %1442 = vst.msk [vmem:[%s2964_s22 + $0xc8] sm:$0xff] %vm1416_vm0, %v1004_v11  ;;  %v1594_v14 = vsel %vm1416_vm0, %v1004_v11, 0.0  ;;  %v1833_v17 = vmul.f32 %v1004_v11, %v1004_v11  ;;  %v1989_v46 = vsel %vm1416_vm0, %v1835_v26, 0.0  ;;  %1506 = vst.msk [vmem:[%s2964_s22 + $0x2c8] sm:$0xff] %vm1416_vm0, %v3224_v61 }
 0x125   : > { %v1984_v19 = vadd.f32 %v1983_v13, %v1982_v10  ;;  %v1595_v20 = vadd.f32 %v1594_v14, %v1593_v9  ;;  %v2584_v21 = vpop.f32.mrf.mxu0  ;;  %v3233_v10 = vpop.f32.mrf.mxu1 }
 0x126   : > { %v1985_v27 = vsel %vm1416_vm0, %v1833_v17, 0.0  ;;  %1447 = vst.msk [vmem:[%s2964_s22 + $0xf0] sm:$0xff] %vm1416_vm0, %v2584_v21  ;;  %v1838_v56 = vmul.f32 %v2584_v21, %v2584_v21  ;;  %v1604_v4 = vsel %vm1416_vm0, %v2584_v21, 0.0  ;;  %1511 = vst.msk [vmem:[%s2964_s22 + $0x2f0] sm:$0xff] %vm1416_vm0, %v3233_v10 }
 0x127   : > { %v1597_v31 = vadd.f32 %v1596_v24, %v1595_v20  ;;  %v1986_v32 = vadd.f32 %v1985_v27, %v1984_v19  ;;  %v1017_v34 = vpop.f32.mrf.mxu0  ;;  %v3242_v20 = vpop.f32.mrf.mxu1 }
 0x128   : > { %1445 = vst.msk [vmem:[%s2964_s22 + $0xe0] sm:$0xff] %vm1416_vm0, %v1017_v34  ;;  %v1836_v38 = vmul.f32 %v1017_v34, %v1017_v34  ;;  %v1600_v48 = vsel %vm1416_vm0, %v1017_v34, 0.0  ;;  %v1995_v14 = vsel %vm1416_vm0, %v1838_v56, 0.0  ;;  %1509 = vst.msk [vmem:[%s2964_s22 + $0x2e0] sm:$0xff] %vm1416_vm0, %v3242_v20 }
 0x129   : > { %v1988_v41 = vadd.f32 %v1987_v35, %v1986_v32  ;;  %v1599_v42 = vadd.f32 %v1598_v37, %v1597_v31  ;;  %v2585_v45 = vpop.f32.mrf.mxu0  ;;  %v3251_v32 = vpop.f32.mrf.mxu1 }
 0x12a   : > { %1448 = vst.msk [vmem:[%s2964_s22 + $0xf8] sm:$0xff] %vm1416_vm0, %v2585_v45  ;;  %v1991_v57 = vsel %vm1416_vm0, %v1836_v38, 0.0  ;;  %v1839_v5 = vmul.f32 %v2585_v45, %v2585_v45  ;;  %v1606_v17 = vsel %vm1416_vm0, %v2585_v45, 0.0  ;;  %1512 = vst.msk [vmem:[%s2964_s22 + $0x2f8] sm:$0xff] %vm1416_vm0, %v3251_v32 }
 0x12b   : > { %v1601_v50 = vadd.f32 %v1600_v48, %v1599_v42  ;;  %v1990_v52 = vadd.f32 %v1989_v46, %v1988_v41  ;;  %v1020_v54 = vpop.f32.mrf.mxu0  ;;  %v3260_v46 = vpop.f32.mrf.mxu1 }
 0x12c   : > { %1446 = vst.msk [vmem:[%s2964_s22 + $0xe8] sm:$0xff] %vm1416_vm0, %v1020_v54  ;;  %v1602_v59 = vsel %vm1416_vm0, %v1020_v54, 0.0  ;;  %v1837_v60 = vmul.f32 %v1020_v54, %v1020_v54  ;;  %v1997_v27 = vsel %vm1416_vm0, %v1839_v5, 0.0  ;;  %1510 = vst.msk [vmem:[%s2964_s22 + $0x2e8] sm:$0xff] %vm1416_vm0, %v3260_v46 }
 0x12d   : > { %v1992_v1 = vadd.f32 %v1991_v57, %v1990_v52  ;;  %v1603_v2 = vadd.f32 %v1602_v59, %v1601_v50  ;;  %v2588_v3 = vpop.f32.mrf.mxu0  ;;  %v3269_v59 = vpop.f32.mrf.mxu1 }
 0x12e   : > { %v1993_v9 = vsel %vm1416_vm0, %v1837_v60, 0.0  ;;  %1451 = vst.msk [vmem:[%s2964_s22 + $0x110] sm:$0xff] %vm1416_vm0, %v2588_v3  ;;  %v1842_v38 = vmul.f32 %v2588_v3, %v2588_v3  ;;  %v1612_v54 = vsel %vm1416_vm0, %v2588_v3, 0.0  ;;  %1515 = vst.msk [vmem:[%s2964_s22 + $0x310] sm:$0xff] %vm1416_vm0, %v3269_v59 }
 0x12f   : > { %v1605_v11 = vadd.f32 %v1604_v4, %v1603_v2  ;;  %v1994_v12 = vadd.f32 %v1993_v9, %v1992_v1  ;;  %v1033_v13 = vpop.f32.mrf.mxu0  ;;  %v3278_v9 = vpop.f32.mrf.mxu1 }
 0x130   : > { %1449 = vst.msk [vmem:[%s2964_s22 + $0x100] sm:$0xff] %vm1416_vm0, %v1033_v13  ;;  %v1840_v19 = vmul.f32 %v1033_v13, %v1033_v13  ;;  %v1608_v31 = vsel %vm1416_vm0, %v1033_v13, 0.0  ;;  %v2003_v4 = vsel %vm1416_vm0, %v1842_v38, 0.0  ;;  %1513 = vst.msk [vmem:[%s2964_s22 + $0x300] sm:$0xff] %vm1416_vm0, %v3278_v9 }
 0x131   : > { %v1996_v21 = vadd.f32 %v1995_v14, %v1994_v12  ;;  %v1607_v24 = vadd.f32 %v1606_v17, %v1605_v11  ;;  %v2589_v26 = vpop.f32.mrf.mxu0 }
 0x132   : > { %1452 = vst.msk [vmem:[%s2964_s22 + $0x118] sm:$0xff] %vm1416_vm0, %v2589_v26  ;;  %v1999_v41 = vsel %vm1416_vm0, %v1840_v19, 0.0  ;;  %v1843_v56 = vmul.f32 %v2589_v26, %v2589_v26  ;;  %v1614_v3 = vsel %vm1416_vm0, %v2589_v26, 0.0  ;;  %v3287_v19 = vpop.f32.mrf.mxu1 }
 0x133   : > { %v1609_v34 = vadd.f32 %v1608_v31, %v1607_v24  ;;  %v1998_v35 = vadd.f32 %v1997_v27, %v1996_v21  ;;  %v1036_v37 = vpop.f32.mrf.mxu0  ;;  %1516 = vst.msk [vmem:[%s2964_s22 + $0x318] sm:$0xff] %vm1416_vm0, %v3287_v19 }
 0x134   : > { %1450 = vst.msk [vmem:[%s2964_s22 + $0x108] sm:$0xff] %vm1416_vm0, %v1036_v37  ;;  %v1610_v42 = vsel %vm1416_vm0, %v1036_v37, 0.0  ;;  %v1841_v45 = vmul.f32 %v1036_v37, %v1036_v37  ;;  %v2005_v14 = vsel %vm1416_vm0, %v1843_v56, 0.0  ;;  %v3296_v37 = vpop.f32.mrf.mxu1 }
 0x135   : > { %v2000_v48 = vadd.f32 %v1999_v41, %v1998_v35  ;;  %v1611_v50 = vadd.f32 %v1610_v42, %v1609_v34  ;;  %v2592_v52 = vpop.f32.mrf.mxu0  ;;  %1514 = vst.msk [vmem:[%s2964_s22 + $0x308] sm:$0xff] %vm1416_vm0, %v3296_v37 }
 0x136   : > { %v2001_v57 = vsel %vm1416_vm0, %v1841_v45, 0.0  ;;  %1455 = vst.msk [vmem:[%s2964_s22 + $0x130] sm:$0xff] %vm1416_vm0, %v2592_v52  ;;  %v1846_v27 = vmul.f32 %v2592_v52, %v2592_v52  ;;  %v1620_v45 = vsel %vm1416_vm0, %v2592_v52, 0.0 }
 0x137   : > { %v1613_v60 = vadd.f32 %v1612_v54, %v1611_v50  ;;  %v2002_v1 = vadd.f32 %v2001_v57, %v2000_v48  ;;  %v1049_v2 = vpop.f32.mrf.mxu0  ;;  %v3305_v54 = vpop.f32.mrf.mxu1 }
 0x138   : > { %1453 = vst.msk [vmem:[%s2964_s22 + $0x120] sm:$0xff] %vm1416_vm0, %v1049_v2  ;;  %v1844_v5 = vmul.f32 %v1049_v2, %v1049_v2  ;;  %v1616_v17 = vsel %vm1416_vm0, %v1049_v2, 0.0  ;;  %1519 = vst.msk [vmem:[%s2964_s22 + $0x330] sm:$0xff] %vm1416_vm0, %v3305_v54 }
 0x139   : > { %v2004_v11 = vadd.f32 %v2003_v4, %v2002_v1  ;;  %v1615_v12 = vadd.f32 %v1614_v3, %v1613_v60  ;;  %v2593_v13 = vpop.f32.mrf.mxu0  ;;  %v2011_v1 = vsel %vm1416_vm0, %v1846_v27, 0.0  ;;  %v3314_v4 = vpop.f32.mrf.mxu1 }
 0x13a   : > { %1456 = vst.msk [vmem:[%s2964_s22 + $0x138] sm:$0xff] %vm1416_vm0, %v2593_v13  ;;  %v2007_v31 = vsel %vm1416_vm0, %v1844_v5, 0.0  ;;  %v1847_v48 = vmul.f32 %v2593_v13, %v2593_v13  ;;  %v1622_v52 = vsel %vm1416_vm0, %v2593_v13, 0.0  ;;  %1517 = vst.msk [vmem:[%s2964_s22 + $0x320] sm:$0xff] %vm1416_vm0, %v3314_v4 }
 0x13b   : > { %v1617_v21 = vadd.f32 %v1616_v17, %v1615_v12  ;;  %v2006_v24 = vadd.f32 %v2005_v14, %v2004_v11  ;;  %v1052_v26 = vpop.f32.mrf.mxu0  ;;  %v3323_v13 = vpop.f32.mrf.mxu1 }
 0x13c   : > { %1454 = vst.msk [vmem:[%s2964_s22 + $0x128] sm:$0xff] %vm1416_vm0, %v1052_v26  ;;  %v1618_v34 = vsel %vm1416_vm0, %v1052_v26, 0.0  ;;  %v1845_v35 = vmul.f32 %v1052_v26, %v1052_v26  ;;  %v2013_v12 = vsel %vm1416_vm0, %v1847_v48, 0.0  ;;  %1520 = vst.msk [vmem:[%s2964_s22 + $0x338] sm:$0xff] %vm1416_vm0, %v3323_v13 }
 0x13d   : > { %v2008_v38 = vadd.f32 %v2007_v31, %v2006_v24  ;;  %v1619_v41 = vadd.f32 %v1618_v34, %v1617_v21  ;;  %v2596_v42 = vpop.f32.mrf.mxu0 }
 0x13e   : > { %v2009_v50 = vsel %vm1416_vm0, %v1845_v35, 0.0  ;;  %1459 = vst.msk [vmem:[%s2964_s22 + $0x150] sm:$0xff] %vm1416_vm0, %v2596_v42  ;;  %v1850_v26 = vmul.f32 %v2596_v42, %v2596_v42  ;;  %v3332_v35 = vpop.f32.mrf.mxu1  ;;  %v1628_v48 = vsel %vm1416_vm0, %v2596_v42, 0.0 }
 0x13f   : > { %v1621_v56 = vadd.f32 %v1620_v45, %v1619_v41  ;;  %v2010_v57 = vadd.f32 %v2009_v50, %v2008_v38  ;;  %v1065_v60 = vpop.f32.mrf.mxu0  ;;  %1518 = vst.msk [vmem:[%s2964_s22 + $0x328] sm:$0xff] %vm1416_vm0, %v3332_v35 }
 0x140   : > { %1457 = vst.msk [vmem:[%s2964_s22 + $0x140] sm:$0xff] %vm1416_vm0, %v1065_v60  ;;  %v1848_v2 = vmul.f32 %v1065_v60, %v1065_v60  ;;  %v1624_v14 = vsel %vm1416_vm0, %v1065_v60, 0.0 }
 0x141   : > { %v2012_v3 = vadd.f32 %v2011_v1, %v2010_v57  ;;  %v1623_v5 = vadd.f32 %v1622_v52, %v1621_v56  ;;  %v2597_v11 = vpop.f32.mrf.mxu0  ;;  %v3341_v57 = vpop.f32.mrf.mxu1 }
 0x142   : > { %1460 = vst.msk [vmem:[%s2964_s22 + $0x158] sm:$0xff] %vm1416_vm0, %v2597_v11  ;;  %v2015_v27 = vsel %vm1416_vm0, %v1848_v2, 0.0  ;;  %v1851_v50 = vmul.f32 %v2597_v11, %v2597_v11  ;;  %1523 = vst.msk [vmem:[%s2964_s22 + $0x350] sm:$0xff] %vm1416_vm0, %v3341_v57  ;;  %v2019_v2 = vsel %vm1416_vm0, %v1850_v26, 0.0  ;;  %v1630_v42 = vsel %vm1416_vm0, %v2597_v11, 0.0 }
 0x143   : > { %v1625_v17 = vadd.f32 %v1624_v14, %v1623_v5  ;;  %v2014_v21 = vadd.f32 %v2013_v12, %v2012_v3  ;;  %v1068_v24 = vpop.f32.mrf.mxu0  ;;  %v3350_v5 = vpop.f32.mrf.mxu1 }
 0x144   : > { %1458 = vst.msk [vmem:[%s2964_s22 + $0x148] sm:$0xff] %vm1416_vm0, %v1068_v24  ;;  %v1626_v31 = vsel %vm1416_vm0, %v1068_v24, 0.0  ;;  %v1849_v34 = vmul.f32 %v1068_v24, %v1068_v24  ;;  %1521 = vst.msk [vmem:[%s2964_s22 + $0x340] sm:$0xff] %vm1416_vm0, %v3350_v5 }
 0x145   : > { %v2016_v38 = vadd.f32 %v2015_v27, %v2014_v21  ;;  %v1627_v41 = vadd.f32 %v1626_v31, %v1625_v17  ;;  %v2600_v45 = vpop.f32.mrf.mxu0  ;;  %v2021_v21 = vsel %vm1416_vm0, %v1851_v50, 0.0  ;;  %v3359_v11 = vpop.f32.mrf.mxu1 }
 0x146   : > { %v2017_v56 = vsel %vm1416_vm0, %v1849_v34, 0.0  ;;  %1463 = vst.msk [vmem:[%s2964_s22 + $0x170] sm:$0xff] %vm1416_vm0, %v2600_v45  ;;  %1524 = vst.msk [vmem:[%s2964_s22 + $0x358] sm:$0xff] %vm1416_vm0, %v3359_v11  ;;  %v1854_v34 = vmul.f32 %v2600_v45, %v2600_v45 }
 0x147   : > { %v1629_v60 = vadd.f32 %v1628_v48, %v1627_v41  ;;  %v2018_v1 = vadd.f32 %v2017_v56, %v2016_v38  ;;  %v1081_v52 = vpop.f32.mrf.mxu0  ;;  %v3368_v50 = vpop.f32.mrf.mxu1 }
 0x148   : > { %1461 = vst.msk [vmem:[%s2964_s22 + $0x160] sm:$0xff] %vm1416_vm0, %v1081_v52  ;;  %v1852_v3 = vmul.f32 %v1081_v52, %v1081_v52  ;;  %v1632_v24 = vsel %vm1416_vm0, %v1081_v52, 0.0  ;;  %1522 = vst.msk [vmem:[%s2964_s22 + $0x348] sm:$0xff] %vm1416_vm0, %v3368_v50  ;;  %v1636_v52 = vsel %vm1416_vm0, %v2600_v45, 0.0 }
 0x149   : > { %v2020_v12 = vadd.f32 %v2019_v2, %v2018_v1  ;;  %v1631_v14 = vadd.f32 %v1630_v42, %v1629_v60  ;;  %v2601_v17 = vpop.f32.mrf.mxu0 }
 0x14a   : > { %1464 = vst.msk [vmem:[%s2964_s22 + $0x178] sm:$0xff] %vm1416_vm0, %v2601_v17  ;;  %v2023_v38 = vsel %vm1416_vm0, %v1852_v3, 0.0  ;;  %v1855_v2 = vmul.f32 %v2601_v17, %v2601_v17  ;;  %v3377_v3 = vpop.f32.mrf.mxu1  ;;  %v1638_v45 = vsel %vm1416_vm0, %v2601_v17, 0.0 }
 0x14b   : > { %v1633_v26 = vadd.f32 %v1632_v24, %v1631_v14  ;;  %v2022_v27 = vadd.f32 %v2021_v21, %v2020_v12  ;;  %v1084_v31 = vpop.f32.mrf.mxu0  ;;  %3910 = vst [vmem:[#allocation2_spill] sm:$0xff] %v3377_v3  ;;  %1527 = vst.msk [vmem:[%s2964_s22 + $0x370] sm:$0xff] %vm1416_vm0, %v3377_v3  ;;  %v2027_v24 = vsel %vm1416_vm0, %v1854_v34, 0.0 }
 0x14c   : > { %1462 = vst.msk [vmem:[%s2964_s22 + $0x168] sm:$0xff] %vm1416_vm0, %v1084_v31  ;;  %v1634_v41 = vsel %vm1416_vm0, %v1084_v31, 0.0  ;;  %v1853_v48 = vmul.f32 %v1084_v31, %v1084_v31 }
 0x14d   : > { %v2024_v56 = vadd.f32 %v2023_v38, %v2022_v27  ;;  %v1635_v60 = vadd.f32 %v1634_v41, %v1633_v26  ;;  %v2604_v1 = vpop.f32.mrf.mxu0  ;;  %v3386_v27 = vpop.f32.mrf.mxu1 }
 0x14e   : > { %v2025_v42 = vsel %vm1416_vm0, %v1853_v48, 0.0  ;;  %1467 = vst.msk [vmem:[%s2964_s22 + $0x190] sm:$0xff] %vm1416_vm0, %v2604_v1  ;;  %1525 = vst.msk [vmem:[%s2964_s22 + $0x360] sm:$0xff] %vm1416_vm0, %v3386_v27  ;;  %v2029_v48 = vsel %vm1416_vm0, %v1855_v2, 0.0 }
 0x14f   : > { %v1637_v12 = vadd.f32 %v1636_v52, %v1635_v60  ;;  %v2026_v14 = vadd.f32 %v2025_v42, %v2024_v56  ;;  %v1097_v21 = vpop.f32.mrf.mxu0  ;;  %v3395_v17 = vpop.f32.mrf.mxu1  ;;  %v1858_v42 = vmul.f32 %v2604_v1, %v2604_v1 }
 0x150   : > { %1465 = vst.msk [vmem:[%s2964_s22 + $0x180] sm:$0xff] %vm1416_vm0, %v1097_v21  ;;  %v1856_v26 = vmul.f32 %v1097_v21, %v1097_v21  ;;  %v1640_v56 = vsel %vm1416_vm0, %v1097_v21, 0.0  ;;  %3911 = vst [vmem:[#allocation3_spill] sm:$0xff] %v3395_v17 }
 0x151   : > { %v2028_v31 = vadd.f32 %v2027_v24, %v2026_v14  ;;  %v1639_v38 = vadd.f32 %v1638_v45, %v1637_v12  ;;  %v2605_v41 = vpop.f32.mrf.mxu0  ;;  %1528 = vst.msk [vmem:[%s2964_s22 + $0x378] sm:$0xff] %vm1416_vm0, %v3395_v17  ;;  %v3404_v21 = vpop.f32.mrf.mxu1 }
 0x152   : > { %1468 = vst.msk [vmem:[%s2964_s22 + $0x198] sm:$0xff] %vm1416_vm0, %v2605_v41  ;;  %v2031_v12 = vsel %vm1416_vm0, %v1856_v26, 0.0  ;;  %3912 = vst [vmem:[#allocation4_spill] sm:$0xff] %v3404_v21 }
 0x153   : > { %v1641_v34 = vadd.f32 %v1640_v56, %v1639_v38  ;;  %v2030_v60 = vadd.f32 %v2029_v48, %v2028_v31  ;;  %v1100_v52 = vpop.f32.mrf.mxu0  ;;  %1526 = vst.msk [vmem:[%s2964_s22 + $0x368] sm:$0xff] %vm1416_vm0, %v3404_v21  ;;  %v1644_v38 = vsel %vm1416_vm0, %v2604_v1, 0.0  ;;  %v1859_v48 = vmul.f32 %v2605_v41, %v2605_v41  ;;  %v3413_v56 = vpop.f32.mrf.mxu1 }
 0x154   : > { %1466 = vst.msk [vmem:[%s2964_s22 + $0x188] sm:$0xff] %vm1416_vm0, %v1100_v52  ;;  %v1642_v2 = vsel %vm1416_vm0, %v1100_v52, 0.0  ;;  %v1857_v14 = vmul.f32 %v1100_v52, %v1100_v52  ;;  %3913 = vst [vmem:[#allocation5_spill] sm:$0xff] %v3413_v56  ;;  %v1646_v1 = vsel %vm1416_vm0, %v2605_v41, 0.0 }
 0x155   : > { %v2032_v24 = vadd.f32 %v2031_v12, %v2030_v60  ;;  %v1643_v45 = vadd.f32 %v1642_v2, %v1641_v34  ;;  %v2608_v31 = vpop.f32.mrf.mxu0  ;;  %1531 = vst.msk [vmem:[%s2964_s22 + $0x390] sm:$0xff] %vm1416_vm0, %v3413_v56  ;;  %v2035_v34 = vsel %vm1416_vm0, %v1858_v42, 0.0  ;;  %v3422_v12 = vpop.f32.mrf.mxu1 }
 0x156   : > { %v2033_v26 = vsel %vm1416_vm0, %v1857_v14, 0.0  ;;  %1471 = vst.msk [vmem:[%s2964_s22 + $0x1b0] sm:$0xff] %vm1416_vm0, %v2608_v31  ;;  %3914 = vst [vmem:[#allocation6_spill] sm:$0xff] %v3422_v12 }
 0x157   : > { %v1645_v52 = vadd.f32 %v1644_v38, %v1643_v45  ;;  %v2034_v17 = vadd.f32 %v2033_v26, %v2032_v24  ;;  %v1113_v3 = vpop.f32.mrf.mxu0  ;;  %1529 = vst.msk [vmem:[%s2964_s22 + $0x380] sm:$0xff] %vm1416_vm0, %v3422_v12  ;;  %v2037_v24 = vsel %vm1416_vm0, %v1859_v48, 0.0  ;;  %v3431_v41 = vpop.f32.mrf.mxu1 }
 0x158   : > { %1469 = vst.msk [vmem:[%s2964_s22 + $0x1a0] sm:$0xff] %vm1416_vm0, %v1113_v3  ;;  %v1860_v60 = vmul.f32 %v1113_v3, %v1113_v3  ;;  %v1648_v45 = vsel %vm1416_vm0, %v1113_v3, 0.0  ;;  %3915 = vst [vmem:[#allocation7_spill] sm:$0xff] %v3431_v41 }
 0x159   : > { %v2036_v2 = vadd.f32 %v2035_v34, %v2034_v17  ;;  %v1647_v14 = vadd.f32 %v1646_v1, %v1645_v52  ;;  %v2609_v21 = vpop.f32.mrf.mxu0  ;;  %1532 = vst.msk [vmem:[%s2964_s22 + $0x398] sm:$0xff] %vm1416_vm0, %v3431_v41  ;;  %v1862_v17 = vmul.f32 %v2608_v31, %v2608_v31  ;;  %v3440_v34 = vpop.f32.mrf.mxu1 }
 0x15a   : > { %1472 = vst.msk [vmem:[%s2964_s22 + $0x1b8] sm:$0xff] %vm1416_vm0, %v2609_v21  ;;  %v2039_v52 = vsel %vm1416_vm0, %v1860_v60, 0.0  ;;  %3916 = vst [vmem:[#allocation8_spill] sm:$0xff] %v3440_v34 }
 0x15b   : > { %v1649_v42 = vadd.f32 %v1648_v45, %v1647_v14  ;;  %v2038_v38 = vadd.f32 %v2037_v24, %v2036_v2  ;;  %v1116_v26 = vpop.f32.mrf.mxu0  ;;  %1530 = vst.msk [vmem:[%s2964_s22 + $0x388] sm:$0xff] %vm1416_vm0, %v3440_v34  ;;  %v1652_v24 = vsel %vm1416_vm0, %v2608_v31, 0.0  ;;  %v1863_v45 = vmul.f32 %v2609_v21, %v2609_v21  ;;  %v3449_v41 = vpop.f32.mrf.mxu1 }
 0x15c   : > { %1470 = vst.msk [vmem:[%s2964_s22 + $0x1a8] sm:$0xff] %vm1416_vm0, %v1116_v26  ;;  %v1650_v3 = vsel %vm1416_vm0, %v1116_v26, 0.0  ;;  %v1861_v48 = vmul.f32 %v1116_v26, %v1116_v26  ;;  %3917 = vst [vmem:[#allocation9_spill] sm:$0xff] %v3449_v41  ;;  %v1654_v31 = vsel %vm1416_vm0, %v2609_v21, 0.0 }
 0x15d   : > { %v2040_v1 = vadd.f32 %v2039_v52, %v2038_v38  ;;  %v1651_v14 = vadd.f32 %v1650_v3, %v1649_v42  ;;  %v2612_v2 = vpop.f32.mrf.mxu0  ;;  %1535 = vst.msk [vmem:[%s2964_s22 + $0x3b0] sm:$0xff] %vm1416_vm0, %v3449_v41  ;;  %v2043_v42 = vsel %vm1416_vm0, %v1862_v17, 0.0  ;;  %v3458_v52 = vpop.f32.mrf.mxu1 }
 0x15e   : > { %v2041_v60 = vsel %vm1416_vm0, %v1861_v48, 0.0  ;;  %1475 = vst.msk [vmem:[%s2964_s22 + $0x1d0] sm:$0xff] %vm1416_vm0, %v2612_v2  ;;  %3918 = vst [vmem:[#allocation10_spill] sm:$0xff] %v3458_v52 }
 0x15f   : > { %v1653_v26 = vadd.f32 %v1652_v24, %v1651_v14  ;;  %v2042_v56 = vadd.f32 %v2041_v60, %v2040_v1  ;;  %v1129_v12 = vpop.f32.mrf.mxu0  ;;  %1533 = vst.msk [vmem:[%s2964_s22 + $0x3a0] sm:$0xff] %vm1416_vm0, %v3458_v52  ;;  %v2045_v1 = vsel %vm1416_vm0, %v1863_v45, 0.0  ;;  %v3467_v21 = vpop.f32.mrf.mxu1 }
 0x160   : > { %1473 = vst.msk [vmem:[%s2964_s22 + $0x1c0] sm:$0xff] %vm1416_vm0, %v1129_v12  ;;  %v1864_v38 = vmul.f32 %v1129_v12, %v1129_v12  ;;  %v1656_v14 = vsel %vm1416_vm0, %v1129_v12, 0.0  ;;  %3919 = vst [vmem:[#allocation11_spill] sm:$0xff] %v3467_v21 }
 0x161   : > { %v2044_v3 = vadd.f32 %v2043_v42, %v2042_v56  ;;  %v1655_v48 = vadd.f32 %v1654_v31, %v1653_v26  ;;  %v2613_v34 = vpop.f32.mrf.mxu0  ;;  %1536 = vst.msk [vmem:[%s2964_s22 + $0x3b8] sm:$0xff] %vm1416_vm0, %v3467_v21  ;;  %v1866_v56 = vmul.f32 %v2612_v2, %v2612_v2  ;;  %v3476_v42 = vpop.f32.mrf.mxu1 }
 0x162   : > { %1476 = vst.msk [vmem:[%s2964_s22 + $0x1d8] sm:$0xff] %vm1416_vm0, %v2613_v34  ;;  %v2047_v26 = vsel %vm1416_vm0, %v1864_v38, 0.0  ;;  %3920 = vst [vmem:[#allocation12_spill] sm:$0xff] %v3476_v42 }
 0x163   : > { %v1657_v17 = vadd.f32 %v1656_v14, %v1655_v48  ;;  %v2046_v24 = vadd.f32 %v2045_v1, %v2044_v3  ;;  %v1132_v60 = vpop.f32.mrf.mxu0  ;;  %1534 = vst.msk [vmem:[%s2964_s22 + $0x3a8] sm:$0xff] %vm1416_vm0, %v3476_v42  ;;  %v1660_v1 = vsel %vm1416_vm0, %v2612_v2, 0.0  ;;  %v1867_v14 = vmul.f32 %v2613_v34, %v2613_v34  ;;  %v3485_v21 = vpop.f32.mrf.mxu1 }
 0x164   : > { %1474 = vst.msk [vmem:[%s2964_s22 + $0x1c8] sm:$0xff] %vm1416_vm0, %v1132_v60  ;;  %v1658_v12 = vsel %vm1416_vm0, %v1132_v60, 0.0  ;;  %v1865_v45 = vmul.f32 %v1132_v60, %v1132_v60  ;;  %3921 = vst [vmem:[#allocation13_spill] sm:$0xff] %v3485_v21  ;;  %v1662_v2 = vsel %vm1416_vm0, %v2613_v34, 0.0 }
 0x165   : > { %v2048_v31 = vadd.f32 %v2047_v26, %v2046_v24  ;;  %v1659_v48 = vadd.f32 %v1658_v12, %v1657_v17  ;;  %v2616_v3 = vpop.f32.mrf.mxu0  ;;  %1539 = vst.msk [vmem:[%s2964_s22 + $0x3d0] sm:$0xff] %vm1416_vm0, %v3485_v21  ;;  %v2051_v17 = vsel %vm1416_vm0, %v1866_v56, 0.0  ;;  %v3494_v26 = vpop.f32.mrf.mxu1 }
 0x166   : > { %v2049_v38 = vsel %vm1416_vm0, %v1865_v45, 0.0  ;;  %1479 = vst.msk [vmem:[%s2964_s22 + $0x1f0] sm:$0xff] %vm1416_vm0, %v2616_v3  ;;  %1537 = vst.msk [vmem:[%s2964_s22 + $0x3c0] sm:$0xff] %vm1416_vm0, %v3494_v26 }
 0x167   : > { %v1661_v60 = vadd.f32 %v1660_v1, %v1659_v48  ;;  %v2050_v41 = vadd.f32 %v2049_v38, %v2048_v31  ;;  %v1145_v52 = vpop.f32.mrf.mxu0  ;;  %v2053_v31 = vsel %vm1416_vm0, %v1867_v14, 0.0  ;;  %v3503_v34 = vpop.f32.mrf.mxu1 }
 0x168   : > { %1477 = vst.msk [vmem:[%s2964_s22 + $0x1e0] sm:$0xff] %vm1416_vm0, %v1145_v52  ;;  %v1868_v24 = vmul.f32 %v1145_v52, %v1145_v52  ;;  %v1664_v56 = vsel %vm1416_vm0, %v1145_v52, 0.0  ;;  %3922 = vst [vmem:[#allocation14_spill] sm:$0xff] %v3503_v34 }
 0x169   : > { %v2052_v12 = vadd.f32 %v2051_v17, %v2050_v41  ;;  %v1663_v45 = vadd.f32 %v1662_v2, %v1661_v60  ;;  %v2617_v42 = vpop.f32.mrf.mxu0  ;;  %1540 = vst.msk [vmem:[%s2964_s22 + $0x3d8] sm:$0xff] %vm1416_vm0, %v3503_v34  ;;  %v1870_v41 = vmul.f32 %v2616_v3, %v2616_v3  ;;  %v3512_v52 = vpop.f32.mrf.mxu1 }
 0x16a   : > { %1480 = vst.msk [vmem:[%s2964_s22 + $0x1f8] sm:$0xff] %vm1416_vm0, %v2617_v42  ;;  %v2055_v60 = vsel %vm1416_vm0, %v1868_v24, 0.0  ;;  %1538 = vst.msk [vmem:[%s2964_s22 + $0x3c8] sm:$0xff] %vm1416_vm0, %v3512_v52 }
 0x16b   : > { %v1665_v48 = vadd.f32 %v1664_v56, %v1663_v45  ;;  %v2054_v1 = vadd.f32 %v2053_v31, %v2052_v12  ;;  %v1148_v38 = vpop.f32.mrf.mxu0  ;;  %v1668_v12 = vsel %vm1416_vm0, %v2616_v3, 0.0  ;;  %v1871_v45 = vmul.f32 %v2617_v42, %v2617_v42  ;;  %v3519_v56 = vpop.f32.mrf.mxu1 }
 0x16c   : > { %1478 = vst.msk [vmem:[%s2964_s22 + $0x1e8] sm:$0xff] %vm1416_vm0, %v1148_v38  ;;  %v1666_v14 = vsel %vm1416_vm0, %v1148_v38, 0.0  ;;  %v1869_v17 = vmul.f32 %v1148_v38, %v1148_v38  ;;  %1543 = vst.msk [vmem:[%s2964_s22 + $0x3f0] sm:$0xff] %vm1416_vm0, %v3519_v56  ;;  %v1872_v38 = vmul.f32 %v2990_v30, %v2990_v30 }
 0x16d   : > { %v2056_v2 = vadd.f32 %v2055_v60, %v2054_v1  ;;  %v1667_v21 = vadd.f32 %v1666_v14, %v1665_v48  ;;  %v2059_v1 = vsel %vm1416_vm0, %v1870_v41, 0.0  ;;  %v1670_v48 = vsel %vm1416_vm0, %v2617_v42, 0.0  ;;  %v3528_v60 = vpop.f32.mrf.mxu1 }
 0x16e   : > { %v2057_v31 = vsel %vm1416_vm0, %v1869_v17, 0.0  ;;  %1541 = vst.msk [vmem:[%s2964_s22 + $0x3e0] sm:$0xff] %vm1416_vm0, %v3528_v60  ;;  %v1672_v17 = vsel %vm1416_vm0, %v2990_v30, 0.0  ;;  %v1873_v41 = vmul.f32 %v3008_v44, %v3008_v44 }
 0x16f   : > { %v1669_v24 = vadd.f32 %v1668_v12, %v1667_v21  ;;  %v2058_v34 = vadd.f32 %v2057_v31, %v2056_v2  ;;  %v2061_v21 = vsel %vm1416_vm0, %v1871_v45, 0.0  ;;  %v3538_v42 = vpop.f32.mrf.mxu1  ;;  %v2063_v31 = vsel %vm1416_vm0, %v1872_v38, 0.0 }
 0x170   : > { %1544 = vst.msk [vmem:[%s2964_s22 + $0x3f8] sm:$0xff] %vm1416_vm0, %v3538_v42  ;;  %v1674_v45 = vsel %vm1416_vm0, %v3008_v44, 0.0  ;;  %v1678_v44 = vsel %vm1416_vm0, %v2999_v36, 0.0 }
 0x171   : > { %v1671_v3 = vadd.f32 %v1670_v48, %v1669_v24  ;;  %v2060_v14 = vadd.f32 %v2059_v1, %v2058_v34  ;;  %v1874_v34 = vmul.f32 %v2981_v23, %v2981_v23  ;;  %v3548_v24 = vpop.f32.mrf.mxu1  ;;  %v1676_v48 = vsel %vm1416_vm0, %v2981_v23, 0.0 }
 0x172   : > { %1542 = vst.msk [vmem:[%s2964_s22 + $0x3e8] sm:$0xff] %vm1416_vm0, %v3548_v24  ;;  %v1680_v23 = vsel %vm1416_vm0, %v3026_v58, 0.0 }
 0x173   : > { %v1673_v2 = vadd.f32 %v1672_v17, %v1671_v3  ;;  %v2062_v12 = vadd.f32 %v2061_v21, %v2060_v14  ;;  %v1875_v3 = vmul.f32 %v2999_v36, %v2999_v36  ;;  %v2065_v14 = vsel %vm1416_vm0, %v1873_v41, 0.0 }
 0x174   : > { %v2067_v17 = vsel %vm1416_vm0, %v1874_v34, 0.0  ;;  %v1877_v41 = vmul.f32 %v3044_v8, %v3044_v8  ;;  %v1878_v34 = vmul.f32 %v3017_v51, %v3017_v51 }
 0x175   : > { %v2064_v30 = vadd.f32 %v2063_v31, %v2062_v12  ;;  %v1675_v1 = vadd.f32 %v1674_v45, %v1673_v2  ;;  %v1876_v2 = vmul.f32 %v3026_v58, %v3026_v58  ;;  %v2069_v45 = vsel %vm1416_vm0, %v1875_v3, 0.0 }
 0x176   : > { %v1684_v3 = vsel %vm1416_vm0, %v3017_v51, 0.0  ;;  %v1879_v58 = vmul.f32 %v3035_v0, %v3035_v0  ;;  %v1688_v51 = vsel %vm1416_vm0, %v3062_v22, 0.0 }
 0x177   : > { %v1677_v21 = vadd.f32 %v1676_v48, %v1675_v1  ;;  %v2066_v38 = vadd.f32 %v2065_v14, %v2064_v30  ;;  %v2071_v36 = vsel %vm1416_vm0, %v1876_v2, 0.0  ;;  %v1682_v48 = vsel %vm1416_vm0, %v3044_v8, 0.0 }
 0x178   : > { %v1686_v2 = vsel %vm1416_vm0, %v3035_v0, 0.0  ;;  %v1880_v8 = vmul.f32 %v3062_v22, %v3062_v22  ;;  %v1883_v22 = vmul.f32 %v3071_v29, %v3071_v29 }
 0x179   : > { %v2068_v12 = vadd.f32 %v2067_v17, %v2066_v38  ;;  %v1679_v31 = vadd.f32 %v1678_v44, %v1677_v21  ;;  %v2073_v38 = vsel %vm1416_vm0, %v1877_v41, 0.0  ;;  %v1881_v41 = vmul.f32 %v3080_v39, %v3080_v39 }
 0x17a   : > { %v2079_v0 = vsel %vm1416_vm0, %v1880_v8, 0.0  ;;  %v2085_v8 = vsel %vm1416_vm0, %v1883_v22, 0.0 }
 0x17b   : > { %v1681_v1 = vadd.f32 %v1680_v23, %v1679_v31  ;;  %v2070_v30 = vadd.f32 %v2069_v45, %v2068_v12  ;;  %v2075_v12 = vsel %vm1416_vm0, %v1878_v34, 0.0  ;;  %v2077_v23 = vsel %vm1416_vm0, %v1879_v58, 0.0 }
 0x17c   : > { %v1882_v34 = vmul.f32 %v3053_v15, %v3053_v15 }
 0x17d   : > { %v2072_v14 = vadd.f32 %v2071_v36, %v2070_v30  ;;  %v1683_v21 = vadd.f32 %v1682_v48, %v1681_v1  ;;  %v1690_v36 = vsel %vm1416_vm0, %v3080_v39, 0.0  ;;  %v1884_v39 = vmul.f32 %v3098_v55, %v3098_v55 }
 0x17f   : > { %v1685_v17 = vadd.f32 %v1684_v3, %v1683_v21  ;;  %v2074_v44 = vadd.f32 %v2073_v38, %v2072_v14  ;;  %v1692_v21 = vsel %vm1416_vm0, %v3053_v15, 0.0  ;;  %v2081_v3 = vsel %vm1416_vm0, %v1881_v41, 0.0 }
 0x180   : > { %v1696_v15 = vsel %vm1416_vm0, %v3098_v55, 0.0  ;;  %v1698_v41 = vsel %vm1416_vm0, %v3116_v7, 0.0  ;;  %v1887_v55 = vmul.f32 %v3107_v62, %v3107_v62 }
 0x181   : > { %v2076_v31 = vadd.f32 %v2075_v12, %v2074_v44  ;;  %v1687_v45 = vadd.f32 %v1686_v2, %v1685_v17  ;;  %v2083_v17 = vsel %vm1416_vm0, %v1882_v34, 0.0  ;;  %v1694_v44 = vsel %vm1416_vm0, %v3071_v29, 0.0 }
 0x182   : > { %v2087_v29 = vsel %vm1416_vm0, %v1884_v39, 0.0  ;;  %v1700_v34 = vsel %vm1416_vm0, %v3089_v47, 0.0  ;;  %v1890_v39 = vmul.f32 %v3125_v16, %v3125_v16 }
 0x183   : > { %v1689_v1 = vadd.f32 %v1688_v51, %v1687_v45  ;;  %v2078_v30 = vadd.f32 %v2077_v23, %v2076_v31  ;;  %v1885_v31 = vmul.f32 %v3116_v7, %v3116_v7  ;;  %v1886_v51 = vmul.f32 %v3089_v47, %v3089_v47 }
 0x184   : > { %v1888_v7 = vmul.f32 %v3134_v25, %v3134_v25  ;;  %v1704_v47 = vsel %vm1416_vm0, %v3134_v25, 0.0  ;;  %v1891_v25 = vmul.f32 %v3143_v33, %v3143_v33 }
 0x185   : > { %v2080_v48 = vadd.f32 %v2079_v0, %v2078_v30  ;;  %v1691_v14 = vadd.f32 %v1690_v36, %v1689_v1  ;;  %v2089_v0 = vsel %vm1416_vm0, %v1885_v31, 0.0 }
 0x187   : > { %v1693_v58 = vadd.f32 %v1692_v21, %v1691_v14  ;;  %v2082_v38 = vadd.f32 %v2081_v3, %v2080_v48  ;;  %v2091_v14 = vsel %vm1416_vm0, %v1886_v51, 0.0  ;;  %v1702_v21 = vsel %vm1416_vm0, %v3107_v62, 0.0 }
 0x188   : > { %v2095_v62 = vsel %vm1416_vm0, %v1888_v7, 0.0  ;;  %v2099_v51 = vsel %vm1416_vm0, %v1890_v39, 0.0  ;;  %v1716_v7 = vsel %vm1416_vm0, %v3161_v53, 0.0 }
 0x189   : > { %v2084_v12 = vadd.f32 %v2083_v17, %v2082_v38  ;;  %v1695_v2 = vadd.f32 %v1694_v44, %v1693_v58  ;;  %v2093_v58 = vsel %vm1416_vm0, %v1887_v55, 0.0  ;;  %v1889_v38 = vmul.f32 %v3152_v43, %v3152_v43 }
 0x18b   : > { %v1697_v45 = vadd.f32 %v1696_v15, %v1695_v2  ;;  %v2086_v23 = vadd.f32 %v2085_v8, %v2084_v12  ;;  %v1706_v12 = vsel %vm1416_vm0, %v3152_v43, 0.0  ;;  %v1708_v15 = vsel %vm1416_vm0, %v3125_v16, 0.0 }
 0x18c   : > { %v2097_v31 = vsel %vm1416_vm0, %v1889_v38, 0.0  ;;  %v1892_v43 = vmul.f32 %v3170_v63, %v3170_v63  ;;  %v1712_v16 = vsel %vm1416_vm0, %v3170_v63, 0.0  ;;  %v1895_v63 = vmul.f32 %v3179_v6, %v3179_v6 }
 0x18d   : > { %v2088_v1 = vadd.f32 %v2087_v29, %v2086_v23  ;;  %v1699_v30 = vadd.f32 %v1698_v41, %v1697_v45  ;;  %v1710_v29 = vsel %vm1416_vm0, %v3143_v33, 0.0  ;;  %v1718_v38 = vsel %vm1416_vm0, %v3179_v6, 0.0 }
 0x18e   : > { %v2103_v33 = vsel %vm1416_vm0, %v1892_v43, 0.0  ;;  %v2109_v39 = vsel %vm1416_vm0, %v1895_v63, 0.0 }
 0x18f   : > { %v1701_v36 = vadd.f32 %v1700_v34, %v1699_v30  ;;  %v2090_v48 = vadd.f32 %v2089_v0, %v2088_v1  ;;  %v2101_v30 = vsel %vm1416_vm0, %v1891_v25, 0.0  ;;  %v1893_v34 = vmul.f32 %v3188_v18, %v3188_v18 }
 0x191   : > { %v2092_v22 = vadd.f32 %v2091_v14, %v2090_v48  ;;  %v1703_v3 = vadd.f32 %v1702_v21, %v1701_v36  ;;  %v1894_v36 = vmul.f32 %v3161_v53, %v3161_v53  ;;  %v1714_v48 = vsel %vm1416_vm0, %v3188_v18, 0.0 }
 0x192   : > { %v1896_v18 = vmul.f32 %v3206_v40, %v3206_v40  ;;  %v1720_v53 = vsel %vm1416_vm0, %v3206_v40, 0.0  ;;  %v1899_v40 = vmul.f32 %v3215_v49, %v3215_v49 }
 0x193   : > { %v1705_v17 = vadd.f32 %v1704_v47, %v1703_v3  ;;  %v2094_v44 = vadd.f32 %v2093_v58, %v2092_v22  ;;  %v2105_v22 = vsel %vm1416_vm0, %v1893_v34, 0.0  ;;  %v2107_v47 = vsel %vm1416_vm0, %v1894_v36, 0.0 }
 0x194   : > { %v2111_v6 = vsel %vm1416_vm0, %v1896_v18, 0.0  ;;  %v1901_v34 = vmul.f32 %v3260_v46, %v3260_v46  ;;  %v1902_v36 = vmul.f32 %v3233_v10, %v3233_v10 }
 0x195   : > { %v2096_v2 = vadd.f32 %v2095_v62, %v2094_v44  ;;  %v1707_v8 = vadd.f32 %v1706_v12, %v1705_v17  ;;  %v1897_v62 = vmul.f32 %v3224_v61, %v3224_v61 }
 0x197   : > { %v1709_v45 = vadd.f32 %v1708_v15, %v1707_v8  ;;  %v2098_v23 = vadd.f32 %v2097_v31, %v2096_v2  ;;  %v1898_v8 = vmul.f32 %v3197_v28, %v3197_v28  ;;  %v1722_v15 = vsel %vm1416_vm0, %v3224_v61, 0.0 }
 0x198   : > { %v1900_v61 = vmul.f32 %v3242_v20, %v3242_v20 }
 0x199   : > { %v2100_v41 = vadd.f32 %v2099_v51, %v2098_v23  ;;  %v1711_v1 = vadd.f32 %v1710_v29, %v1709_v45  ;;  %v1724_v45 = vsel %vm1416_vm0, %v3197_v28, 0.0  ;;  %v2113_v23 = vsel %vm1416_vm0, %v1897_v62, 0.0 }
 0x19a   : > { %v2115_v43 = vsel %vm1416_vm0, %v1898_v8, 0.0  ;;  %v1728_v28 = vsel %vm1416_vm0, %v3242_v20, 0.0  ;;  %v1903_v20 = vmul.f32 %v3251_v32, %v3251_v32  ;;  %v1738_v62 = vsel %vm1416_vm0, %v3296_v37, 0.0 }
 0x19b   : > { %v1713_v55 = vadd.f32 %v1712_v16, %v1711_v1  ;;  %v2102_v0 = vadd.f32 %v2101_v30, %v2100_v41  ;;  %v1726_v41 = vsel %vm1416_vm0, %v3215_v49, 0.0  ;;  %v2117_v16 = vsel %vm1416_vm0, %v1899_v40, 0.0 }
 0x19c   : > { %v2119_v49 = vsel %vm1416_vm0, %v1900_v61, 0.0  ;;  %v2125_v18 = vsel %vm1416_vm0, %v1903_v20, 0.0  ;;  %v1740_v8 = vsel %vm1416_vm0, %v3269_v59, 0.0  ;;  %v1910_v61 = vmul.f32 %v3305_v54, %v3305_v54 }
 0x19d   : > { %v2104_v14 = vadd.f32 %v2103_v33, %v2102_v0  ;;  %v1715_v21 = vadd.f32 %v1714_v48, %v1713_v55  ;;  %v1730_v33 = vsel %vm1416_vm0, %v3260_v46, 0.0  ;;  %v1904_v46 = vmul.f32 %v3278_v9, %v3278_v9 }
 0x19f   : > { %v1717_v3 = vadd.f32 %v1716_v7, %v1715_v21  ;;  %v2106_v58 = vadd.f32 %v2105_v22, %v2104_v14  ;;  %v1732_v21 = vsel %vm1416_vm0, %v3233_v10, 0.0  ;;  %v2121_v7 = vsel %vm1416_vm0, %v1901_v34, 0.0 }
 0x1a0   : > { %v1736_v10 = vsel %vm1416_vm0, %v3278_v9, 0.0  ;;  %v1907_v9 = vmul.f32 %v3287_v19, %v3287_v19 }
 0x1a1   : > { %v2108_v17 = vadd.f32 %v2107_v47, %v2106_v58  ;;  %v1719_v44 = vadd.f32 %v1718_v38, %v1717_v3  ;;  %v2123_v3 = vsel %vm1416_vm0, %v1902_v36, 0.0  ;;  %v1734_v58 = vsel %vm1416_vm0, %v3251_v32, 0.0 }
 0x1a2   : > { %v2127_v32 = vsel %vm1416_vm0, %v1904_v46, 0.0  ;;  %v2139_v36 = vsel %vm1416_vm0, %v1910_v61, 0.0  ;;  %v1756_v46 = vsel %vm1416_vm0, %v3341_v57, 0.0 }
 0x1a3   : > { %v1721_v12 = vadd.f32 %v1720_v53, %v1719_v44  ;;  %v2110_v2 = vadd.f32 %v2109_v39, %v2108_v17  ;;  %v1905_v17 = vmul.f32 %v3296_v37, %v3296_v37  ;;  %v1906_v53 = vmul.f32 %v3269_v59, %v3269_v59 }
 0x1a4   : > { %v1908_v37 = vmul.f32 %v3314_v4, %v3314_v4  ;;  %v1744_v59 = vsel %vm1416_vm0, %v3314_v4, 0.0  ;;  %v1911_v4 = vmul.f32 %v3323_v13, %v3323_v13 }
 0x1a5   : > { %v2112_v25 = vadd.f32 %v2111_v6, %v2110_v2  ;;  %v1723_v31 = vadd.f32 %v1722_v15, %v1721_v12  ;;  %v2129_v6 = vsel %vm1416_vm0, %v1905_v17, 0.0  ;;  %v1758_v17 = vsel %vm1416_vm0, %v3359_v11, 0.0 }
 0x1a7   : > { %v1725_v51 = vadd.f32 %v1724_v45, %v1723_v31  ;;  %v2114_v29 = vadd.f32 %v2113_v23, %v2112_v25  ;;  %v2131_v31 = vsel %vm1416_vm0, %v1906_v53, 0.0  ;;  %v1742_v45 = vsel %vm1416_vm0, %v3287_v19, 0.0 }
 0x1a8   : > { %v2135_v19 = vsel %vm1416_vm0, %v1908_v37, 0.0 }
 0x1a9   : > { %v2116_v1 = vadd.f32 %v2115_v43, %v2114_v29  ;;  %v1727_v30 = vadd.f32 %v1726_v41, %v1725_v51  ;;  %v2133_v51 = vsel %vm1416_vm0, %v1907_v9, 0.0  ;;  %v1909_v29 = vmul.f32 %v3332_v35, %v3332_v35 }
 0x1ab   : > { %v1729_v55 = vadd.f32 %v1728_v28, %v1727_v30  ;;  %v2118_v0 = vadd.f32 %v2117_v16, %v2116_v1  ;;  %v1746_v1 = vsel %vm1416_vm0, %v3332_v35, 0.0  ;;  %v1748_v28 = vsel %vm1416_vm0, %v3305_v54, 0.0 }
 0x1ac   : > { %v2137_v34 = vsel %vm1416_vm0, %v1909_v29, 0.0  ;;  %v1912_v35 = vmul.f32 %v3350_v5, %v3350_v5  ;;  %v1752_v54 = vsel %vm1416_vm0, %v3350_v5, 0.0  ;;  %v1915_v5 = vmul.f32 %v3359_v11, %v3359_v11  ;;  %v3926_v29 = vld [vmem:[#allocation6_spill] sm:$0xff] }
 0x1ad   : > { %v2120_v48 = vadd.f32 %v2119_v49, %v2118_v0  ;;  %v1731_v14 = vadd.f32 %v1730_v33, %v1729_v55  ;;  %v1750_v49 = vsel %vm1416_vm0, %v3323_v13, 0.0 }
 0x1ae   : > { %v2143_v13 = vsel %vm1416_vm0, %v1912_v35, 0.0  ;;  %v2149_v53 = vsel %vm1416_vm0, %v1915_v5, 0.0 }
 0x1af   : > { %v1733_v63 = vadd.f32 %v1732_v21, %v1731_v14  ;;  %v2122_v22 = vadd.f32 %v2121_v7, %v2120_v48  ;;  %v2141_v14 = vsel %vm1416_vm0, %v1911_v4, 0.0  ;;  %v1913_v21 = vmul.f32 %v3368_v50, %v3368_v50 }
 0x1b1   : > { %v2124_v47 = vadd.f32 %v2123_v3, %v2122_v22  ;;  %v1735_v38 = vadd.f32 %v1734_v58, %v1733_v63  ;;  %v1914_v63 = vmul.f32 %v3341_v57, %v3341_v57  ;;  %v1754_v22 = vsel %vm1416_vm0, %v3368_v50, 0.0 }
 0x1b2   : > { %v1916_v50 = vmul.f32 %v3386_v27, %v3386_v27  ;;  %v1760_v57 = vsel %vm1416_vm0, %v3386_v27, 0.0 }
 0x1b3   : > { %v1737_v44 = vadd.f32 %v1736_v10, %v1735_v38  ;;  %v2126_v39 = vadd.f32 %v2125_v18, %v2124_v47  ;;  %v2145_v47 = vsel %vm1416_vm0, %v1913_v21, 0.0  ;;  %v2147_v10 = vsel %vm1416_vm0, %v1914_v63, 0.0 }
 0x1b4   : > { %v2151_v11 = vsel %vm1416_vm0, %v1916_v50, 0.0 }
 0x1b5   : > { %v2128_v12 = vadd.f32 %v2127_v32, %v2126_v39  ;;  %v1739_v2 = vadd.f32 %v1738_v62, %v1737_v44  ;;  %v3923_v32 = vld [vmem:[#allocation4_spill] sm:$0xff] }
 0x1b6   : > { %v1917_v62 = vmul.f32 %v3923_v32, %v3923_v32 }
 0x1b7   : > { %v1741_v15 = vadd.f32 %v1740_v8, %v1739_v2  ;;  %v2130_v25 = vadd.f32 %v2129_v6, %v2128_v12  ;;  %v3924_v8 = vld [vmem:[#allocation2_spill] sm:$0xff]  ;;  %v1762_v6 = vsel %vm1416_vm0, %v3923_v32, 0.0 }
 0x1b8   : > { %v1918_v9 = vmul.f32 %v3924_v8, %v3924_v8  ;;  %v2153_v37 = vsel %vm1416_vm0, %v1917_v62, 0.0  ;;  %v3933_v62 = vld [vmem:[#allocation11_spill] sm:$0xff] }
 0x1b9   : > { %v2132_v40 = vadd.f32 %v2131_v31, %v2130_v25  ;;  %v1743_v23 = vadd.f32 %v1742_v45, %v1741_v15  ;;  %v1764_v31 = vsel %vm1416_vm0, %v3924_v8, 0.0  ;;  %v3925_v45 = vld [vmem:[#allocation3_spill] sm:$0xff] }
 0x1ba   : > { %v1919_v27 = vmul.f32 %v3925_v45, %v3925_v45 }
 0x1bb   : > { %v1745_v43 = vadd.f32 %v1744_v59, %v1743_v23  ;;  %v2134_v41 = vadd.f32 %v2133_v51, %v2132_v40  ;;  %v2155_v51 = vsel %vm1416_vm0, %v1918_v9, 0.0  ;;  %v1766_v59 = vsel %vm1416_vm0, %v3925_v45, 0.0 }
 0x1bd   : > { %v2136_v30 = vadd.f32 %v2135_v19, %v2134_v41  ;;  %v1747_v16 = vadd.f32 %v1746_v1, %v1745_v43  ;;  %v1920_v43 = vmul.f32 %v3926_v29, %v3926_v29  ;;  %v2157_v19 = vsel %vm1416_vm0, %v1919_v27, 0.0 }
 0x1be   : > { %v1768_v1 = vsel %vm1416_vm0, %v3926_v29, 0.0  ;;  %v1784_v27 = vsel %vm1416_vm0, %v3494_v26, 0.0 }
 0x1bf   : > { %v1749_v55 = vadd.f32 %v1748_v28, %v1747_v16  ;;  %v2138_v0 = vadd.f32 %v2137_v34, %v2136_v30  ;;  %v3927_v30 = vld [vmem:[#allocation8_spill] sm:$0xff]  ;;  %v3928_v34 = vld [vmem:[#allocation5_spill] sm:$0xff] }
 0x1c0   : > { %v1921_v16 = vmul.f32 %v3927_v30, %v3927_v30 }
 0x1c1   : > { %v2140_v33 = vadd.f32 %v2139_v36, %v2138_v0  ;;  %v1751_v48 = vadd.f32 %v1750_v49, %v1749_v55  ;;  %v1922_v55 = vmul.f32 %v3928_v34, %v3928_v34  ;;  %v2159_v0 = vsel %vm1416_vm0, %v1920_v43, 0.0 }
 0x1c2   : > { %v1770_v36 = vsel %vm1416_vm0, %v3927_v30, 0.0  ;;  %v1786_v43 = vsel %vm1416_vm0, %v3512_v52, 0.0 }
 0x1c3   : > { %v1753_v20 = vadd.f32 %v1752_v54, %v1751_v48  ;;  %v2142_v7 = vadd.f32 %v2141_v14, %v2140_v33  ;;  %v1772_v33 = vsel %vm1416_vm0, %v3928_v34, 0.0  ;;  %v3929_v48 = vld [vmem:[#allocation7_spill] sm:$0xff]  ;;  %v2161_v54 = vsel %vm1416_vm0, %v1921_v16, 0.0 }
 0x1c4   : > { %v1923_v14 = vmul.f32 %v3929_v48, %v3929_v48  ;;  %v1774_v63 = vsel %vm1416_vm0, %v3929_v48, 0.0 }
 0x1c5   : > { %v2144_v3 = vadd.f32 %v2143_v13, %v2142_v7  ;;  %v1755_v58 = vadd.f32 %v1754_v22, %v1753_v20  ;;  %v2163_v7 = vsel %vm1416_vm0, %v1922_v55, 0.0  ;;  %v3930_v13 = vld [vmem:[#allocation10_spill] sm:$0xff] }
 0x1c6   : > { %v1924_v22 = vmul.f32 %v3930_v13, %v3930_v13  ;;  %v1776_v5 = vsel %vm1416_vm0, %v3930_v13, 0.0 }
 0x1c7   : > { %v1757_v38 = vadd.f32 %v1756_v46, %v1755_v58  ;;  %v2146_v18 = vadd.f32 %v2145_v47, %v2144_v3  ;;  %v2165_v46 = vsel %vm1416_vm0, %v1923_v14, 0.0  ;;  %v3931_v47 = vld [vmem:[#allocation12_spill] sm:$0xff]  ;;  %v1934_v14 = vmul.f32 %v3519_v56, %v3519_v56 }
 0x1c9   : > { %v2148_v44 = vadd.f32 %v2147_v10, %v2146_v18  ;;  %v1759_v39 = vadd.f32 %v1758_v17, %v1757_v38  ;;  %v1925_v38 = vmul.f32 %v3931_v47, %v3931_v47  ;;  %v3932_v17 = vld [vmem:[#allocation9_spill] sm:$0xff] }
 0x1ca   : > { %v1926_v50 = vmul.f32 %v3932_v17, %v3932_v17  ;;  %v1780_v32 = vsel %vm1416_vm0, %v3932_v17, 0.0 }
 0x1cb   : > { %v1761_v12 = vadd.f32 %v1760_v57, %v1759_v39  ;;  %v2150_v2 = vadd.f32 %v2149_v53, %v2148_v44  ;;  %v2167_v44 = vsel %vm1416_vm0, %v1924_v22, 0.0  ;;  %v1778_v39 = vsel %vm1416_vm0, %v3931_v47, 0.0 }
 0x1cd   : > { %v2152_v15 = vadd.f32 %v2151_v11, %v2150_v2  ;;  %v1763_v25 = vadd.f32 %v1762_v6, %v1761_v12  ;;  %v1927_v12 = vmul.f32 %v3933_v62, %v3933_v62  ;;  %v2169_v2 = vsel %vm1416_vm0, %v1925_v38, 0.0 }
 0x1ce   : > { %v2171_v11 = vsel %vm1416_vm0, %v1926_v50, 0.0  ;;  %v1782_v6 = vsel %vm1416_vm0, %v3933_v62, 0.0 }
 0x1cf   : > { %v1765_v40 = vadd.f32 %v1764_v31, %v1763_v25  ;;  %v2154_v23 = vadd.f32 %v2153_v37, %v2152_v15  ;;  %v1928_v15 = vmul.f32 %v3494_v26, %v3494_v26  ;;  %v2173_v45 = vsel %vm1416_vm0, %v1927_v12, 0.0 }
 0x1d0   : > { %v1929_v37 = vmul.f32 %v3512_v52, %v3512_v52  ;;  %v1932_v52 = vmul.f32 %v3528_v60, %v3528_v60 }
 0x1d1   : > { %v2156_v41 = vadd.f32 %v2155_v51, %v2154_v23  ;;  %v1767_v61 = vadd.f32 %v1766_v59, %v1765_v40  ;;  %v3934_v51 = vld [vmem:[#allocation13_spill] sm:$0xff]  ;;  %v2175_v29 = vsel %vm1416_vm0, %v1928_v15, 0.0 }
 0x1d2   : > { %v1930_v59 = vmul.f32 %v3934_v51, %v3934_v51  ;;  %v2177_v30 = vsel %vm1416_vm0, %v1929_v37, 0.0 }
 0x1d3   : > { %v1769_v28 = vadd.f32 %v1768_v1, %v1767_v61  ;;  %v2158_v4 = vadd.f32 %v2157_v19, %v2156_v41  ;;  %v1788_v19 = vsel %vm1416_vm0, %v3934_v51, 0.0  ;;  %v3935_v1 = vld [vmem:[#allocation14_spill] sm:$0xff] }
 0x1d4   : > { %v1931_v26 = vmul.f32 %v3935_v1, %v3935_v1  ;;  %v1790_v34 = vsel %vm1416_vm0, %v3935_v1, 0.0 }
 0x1d5   : > { %v2160_v49 = vadd.f32 %v2159_v0, %v2158_v4  ;;  %v1771_v35 = vadd.f32 %v1770_v36, %v1769_v28  ;;  %v2179_v4 = vsel %vm1416_vm0, %v1930_v59, 0.0 }
 0x1d6   : > { %v2181_v36 = vsel %vm1416_vm0, %v1931_v26, 0.0 }
 0x1d7   : > { %v1773_v21 = vadd.f32 %v1772_v33, %v1771_v35  ;;  %v2162_v20 = vadd.f32 %v2161_v54, %v2160_v49  ;;  %v1792_v49 = vsel %vm1416_vm0, %v3528_v60, 0.0  ;;  %v1933_v35 = vmul.f32 %v3548_v24, %v3548_v24 }
 0x1d8   : > { %v2183_v54 = vsel %vm1416_vm0, %v1932_v52, 0.0  ;;  %v1935_v60 = vmul.f32 %v3538_v42, %v3538_v42 }
 0x1d9   : > { %v2164_v3 = vadd.f32 %v2163_v7, %v2162_v20  ;;  %v1775_v58 = vadd.f32 %v1774_v63, %v1773_v21  ;;  %v1794_v21 = vsel %vm1416_vm0, %v3548_v24, 0.0  ;;  %v1796_v63 = vsel %vm1416_vm0, %v3519_v56, 0.0 }
 0x1da   : > { %v2185_v13 = vsel %vm1416_vm0, %v1933_v35, 0.0  ;;  %v2189_v47 = vsel %vm1416_vm0, %v1935_v60, 0.0 }
 0x1db   : > { %v1777_v18 = vadd.f32 %v1776_v5, %v1775_v58  ;;  %v2166_v10 = vadd.f32 %v2165_v46, %v2164_v3  ;;  %v2187_v58 = vsel %vm1416_vm0, %v1934_v14, 0.0  ;;  %v1798_v46 = vsel %vm1416_vm0, %v3538_v42, 0.0 }
 0x1dd   : > { %v2168_v53 = vadd.f32 %v2167_v44, %v2166_v10  ;;  %v1779_v57 = vadd.f32 %v1778_v39, %v1777_v18 }
 0x1df   : > { %v1781_v8 = vadd.f32 %v1780_v32, %v1779_v57  ;;  %v2170_v9 = vadd.f32 %v2169_v2, %v2168_v53 }
 0x1e1   : > { %v2172_v25 = vadd.f32 %v2171_v11, %v2170_v9  ;;  %v1783_v31 = vadd.f32 %v1782_v6, %v1781_v8 }
 0x1e3   : > { %v1785_v40 = vadd.f32 %v1784_v27, %v1783_v31  ;;  %v2174_v23 = vadd.f32 %v2173_v45, %v2172_v25 }
 0x1e5   : > { %v2176_v41 = vadd.f32 %v2175_v29, %v2174_v23  ;;  %v1787_v61 = vadd.f32 %v1786_v43, %v1785_v40 }
 0x1e7   : > { %v1789_v16 = vadd.f32 %v1788_v19, %v1787_v61  ;;  %v2178_v28 = vadd.f32 %v2177_v30, %v2176_v41 }
 0x1e9   : > { %v2180_v55 = vadd.f32 %v2179_v4, %v2178_v28  ;;  %v1791_v0 = vadd.f32 %v1790_v34, %v1789_v16 }
 0x1eb   : > { %v1793_v33 = vadd.f32 %v1792_v49, %v1791_v0  ;;  %v2182_v48 = vadd.f32 %v2181_v36, %v2180_v55 }
 0x1ed   : > { %v2184_v20 = vadd.f32 %v2183_v54, %v2182_v48  ;;  %v1795_v7 = vadd.f32 %v1794_v21, %v1793_v33 }
 0x1ef   : > { %v1797_v22 = vadd.f32 %v1796_v63, %v1795_v7  ;;  %v2186_v3 = vadd.f32 %v2185_v13, %v2184_v20 }
 0x1f1   : > { %v1799_v5 = vadd.f32 %v1798_v46, %v1797_v22  ;;  %v2188_v24 = vadd.f32 %v2187_v58, %v2186_v3 }
 0x1f3   : > { %v1800_v38 = vrot.slane %v1799_v5, 4  ;;  %v2190_v18 = vadd.f32 %v2189_v47, %v2188_v24 }
 0x1f5   : > { %v1801_v56 = vadd.f32 %v1800_v38, %v1799_v5  ;;  %v2191_v10 = vrot.slane %v2190_v18, 4 }
 0x1f7   : > { %v1802_v17 = vrot.slane %v1801_v56, 2  ;;  %v2192_v50 = vadd.f32 %v2191_v10, %v2190_v18 }
 0x1f9   : > { %v1803_v44 = vadd.f32 %v1802_v17, %v1801_v56  ;;  %v2193_v39 = vrot.slane %v2192_v50, 2 }
 0x1fb   : > { %v1804_v53 = vrot.slane %v1803_v44, 1  ;;  %v2194_v57 = vadd.f32 %v2193_v39, %v2192_v50 }
 0x1fd   : > { %v1805_v42 = vadd.f32 %v1804_v53, %v1803_v44  ;;  %v2195_v32 = vrot.slane %v2194_v57, 1 }
 0x1ff   : > { %1807 = vst.msk [vmem:[%s286_s24] sm:$0x1] %vm1806_vm1, %v1805_v42  ;;  %v2196_v62 = vadd.f32 %v2195_v32, %v2194_v57 }
 0x201   : > { %2197 = vst.msk [vmem:[%s293_s27] sm:$0x1] %vm1806_vm1, %v2196_v62 }
 0x202 PF: > { %s15_s17 = sadd.s32 1, %s2816_s17   ;;  %s3936_s15 = smov %s2812_s16 }
 0x203   : > { %p12_p6 = scmp.ge.s32.totalorder %s15_s17, 4   ;;  %s3937_s16 = smov %s3939_s18 }
 0x205   :  { %14 = sbr.rel (!%p12_p6) target bundleno = 2 (0x2), region = 85 }

// kernel: decoder_block_forward.9
= control target key start
LH: loop header
LB: loop body
LE: loop exit
PB: predicated region body
PF: predicated region fallthrough
CT: control target
= control target key end

     0   :  { %s1704_s12 = smov 0   ;;  %s2389_s0 = inlined_call_operand.vmem [shape: f32[8192,32], index: 0, kind: input, shape index: {}]   ;;  %s2390_s1 = inlined_call_operand.vmem [shape: f32[1,32], index: 1, kind: input, shape index: {}]   ;;  %s2391_s2 = inlined_call_operand.vmem [shape: f32[1,32], index: 2, kind: input, shape index: {}]   ;;  %s2392_s3 = inlined_call_operand.vmem [shape: bf16[8192,32], index: 3, kind: output, shape index: {}]  }
   0x1 LB: > { %s1397_s13 = sadd.s32 4294967295, %s1682_s12   ;;  %p1401_p0 = scmp.ge.s32.totalorder %s1682_s12, 1  ;;  %s1682_s12 = sphi %s1704_s12, %s13_s12  }
   0x2   : > { %p138_p1 = scmp.lt.s32.totalorder %s1682_s12, 9 }
   0x4   : > { %p139_p2 = pnand %p1401_p0, %p138_p1 }
   0x5   : > { %s1402_s14 = sshll.u32 (!%p139_p2), %s1397_s13, 7 }
   0x6   : > { %142 = sbr.rel (%p139_p2) target bundleno = 162 (0xa2), region = 32  ;;  %p163_p3 = scmp.lt.s32.totalorder (!%p139_p2), %s1402_s14, 1023 }
   0xb   : > { %s2394_s14 = smov (!%p163_p3, %s1402_s14), 1023  ;;  %v1718_v0 = vld [vmem:[%s2390_s1] ss:$0 sm:$0xff]  ;;  %vm1212_vm0 = vcmask 257024  }
   0xc   : > { %s1403_s15 = sshll.u32 %s2394_s14, 3  ;;  %v1728_v1 = vld [vmem:[%s2391_s2] ss:$0 sm:$0xff]  ;;  %s1405_s23 = sshll.u32 %s2394_s14, 2 }
   0xd   : > { %s1723_s20 = scalar_lea.vmem %s2389_s0, %s1403_s15  ;;  %s1757_s26 = scalar_lea.vmem %s2392_s3, %s1405_s23 }
   0xe   : > { %v174_v2 = vld [vmem:[%s1723_s20] sm:$0xff]  ;;  %v175_v3 = vld [vmem:[%s1723_s20 + $0x8] sm:$0xff]  ;;  %v176_v4 = vld [vmem:[%s1723_s20 + $0x10] sm:$0xff] }
   0xf   : > { %v309_v5 = vmul.f32 %v1718_v0, %v174_v2  ;;  %v310_v6 = vmul.f32 %v1718_v0, %v175_v3  ;;  %v311_v7 = vmul.f32 %v1718_v0, %v176_v4  ;;  %v177_v8 = vld [vmem:[%s1723_s20 + $0x18] sm:$0xff]  ;;  %v178_v9 = vld [vmem:[%s1723_s20 + $0x20] sm:$0xff]  ;;  %v179_v10 = vld [vmem:[%s1723_s20 + $0x28] sm:$0xff] }
  0x10   : > { %v312_v11 = vmul.f32 %v1718_v0, %v177_v8  ;;  %v313_v12 = vmul.f32 %v1718_v0, %v178_v9  ;;  %v314_v13 = vmul.f32 %v1718_v0, %v179_v10  ;;  %v180_v14 = vld [vmem:[%s1723_s20 + $0x30] sm:$0xff]  ;;  %v181_v15 = vld [vmem:[%s1723_s20 + $0x38] sm:$0xff]  ;;  %v182_v32 = vld [vmem:[%s1723_s20 + $0x40] sm:$0xff] }
  0x11   : > { %v444_v16 = vadd.f32 %v1728_v1, %v309_v5  ;;  %v445_v17 = vadd.f32 %v1728_v1, %v310_v6  ;;  %v446_v18 = vadd.f32 %v1728_v1, %v311_v7  ;;  %v315_v19 = vmul.f32 %v1718_v0, %v180_v14  ;;  %v183_v33 = vld [vmem:[%s1723_s20 + $0x48] sm:$0xff]  ;;  %v184_v34 = vld [vmem:[%s1723_s20 + $0x50] sm:$0xff]  ;;  %v185_v39 = vld [vmem:[%s1723_s20 + $0x58] sm:$0xff] }
  0x12   : > { %v447_v20 = vadd.f32 %v1728_v1, %v312_v11  ;;  %v448_v21 = vadd.f32 %v1728_v1, %v313_v12  ;;  %v449_v22 = vadd.f32 %v1728_v1, %v314_v13  ;;  %v316_v23 = vmul.f32 %v1718_v0, %v181_v15  ;;  %v186_v40 = vld [vmem:[%s1723_s20 + $0x60] sm:$0xff]  ;;  %v187_v41 = vld [vmem:[%s1723_s20 + $0x68] sm:$0xff]  ;;  %v188_v46 = vld [vmem:[%s1723_s20 + $0x70] sm:$0xff] }
  0x13   : > { %v572_v24 = vmax.f32 %v444_v16, 0.0  ;;  %v573_v25 = vmax.f32 %v445_v17, 0.0  ;;  %v574_v26 = vmax.f32 %v446_v18, 0.0  ;;  %v450_v27 = vadd.f32 %v1728_v1, %v315_v19  ;;  %v189_v51 = vld [vmem:[%s1723_s20 + $0x78] sm:$0xff]  ;;  %v190_v10 = vld [vmem:[%s1723_s20 + $0x80] sm:$0xff]  ;;  %v191_v11 = vld [vmem:[%s1723_s20 + $0x88] sm:$0xff] }
  0x14   : > { %v575_v28 = vmax.f32 %v447_v20, 0.0  ;;  %v576_v29 = vmax.f32 %v448_v21, 0.0  ;;  %v577_v30 = vmax.f32 %v449_v22, 0.0  ;;  %v451_v31 = vadd.f32 %v1728_v1, %v316_v23  ;;  %v192_v12 = vld [vmem:[%s1723_s20 + $0x90] sm:$0xff]  ;;  %v193_v17 = vld [vmem:[%s1723_s20 + $0x98] sm:$0xff]  ;;  %v194_v18 = vld [vmem:[%s1723_s20 + $0xa0] sm:$0xff] }
  0x15   : > { %v1538_v35 = vpack.c.bf16 %v572_v24, %v572_v24  ;;  %v1539_v36 = vpack.c.bf16 %v573_v25, %v573_v25  ;;  %v1540_v37 = vpack.c.bf16 %v574_v26, %v574_v26  ;;  %v578_v38 = vmax.f32 %v450_v27, 0.0  ;;  %v195_v19 = vld [vmem:[%s1723_s20 + $0xa8] sm:$0xff]  ;;  %v196_v24 = vld [vmem:[%s1723_s20 + $0xb0] sm:$0xff] }
  0x16   : > { %v1541_v42 = vpack.c.bf16 %v575_v28, %v575_v28  ;;  %v1542_v43 = vpack.c.bf16 %v576_v29, %v576_v29  ;;  %v1543_v44 = vpack.c.bf16 %v577_v30, %v577_v30  ;;  %v579_v45 = vmax.f32 %v451_v31, 0.0  ;;  %v197_v29 = vld [vmem:[%s1723_s20 + $0xb8] sm:$0xff] }
  0x17   : > { %1213 = vst.msk [vmem:[%s1757_s26] sm:$0xf] %vm1212_vm0, %v1538_v35  ;;  %1214 = vst.msk [vmem:[%s1757_s26 + $0x4] sm:$0xf] %vm1212_vm0, %v1539_v36  ;;  %v1544_v47 = vpack.c.bf16 %v578_v38, %v578_v38  ;;  %v317_v48 = vmul.f32 %v1718_v0, %v182_v32  ;;  %v318_v49 = vmul.f32 %v1718_v0, %v183_v33 }
  0x18   : > { %1215 = vst.msk [vmem:[%s1757_s26 + $0x8] sm:$0xf] %vm1212_vm0, %v1540_v37  ;;  %v319_v50 = vmul.f32 %v1718_v0, %v184_v34  ;;  %1216 = vst.msk [vmem:[%s1757_s26 + $0xc] sm:$0xf] %vm1212_vm0, %v1541_v42  ;;  %v1545_v52 = vpack.c.bf16 %v579_v45, %v579_v45  ;;  %v320_v53 = vmul.f32 %v1718_v0, %v185_v39 }
  0x19   : > { %1217 = vst.msk [vmem:[%s1757_s26 + $0x10] sm:$0xf] %vm1212_vm0, %v1542_v43  ;;  %1218 = vst.msk [vmem:[%s1757_s26 + $0x14] sm:$0xf] %vm1212_vm0, %v1543_v44  ;;  %v321_v54 = vmul.f32 %v1718_v0, %v186_v40  ;;  %v322_v55 = vmul.f32 %v1718_v0, %v187_v41  ;;  %v452_v56 = vadd.f32 %v1728_v1, %v317_v48 }
  0x1a   : > { %1219 = vst.msk [vmem:[%s1757_s26 + $0x18] sm:$0xf] %vm1212_vm0, %v1544_v47  ;;  %v453_v57 = vadd.f32 %v1728_v1, %v318_v49  ;;  %v454_v58 = vadd.f32 %v1728_v1, %v319_v50  ;;  %v323_v59 = vmul.f32 %v1718_v0, %v188_v46  ;;  %1220 = vst.msk [vmem:[%s1757_s26 + $0x1c] sm:$0xf] %vm1212_vm0, %v1545_v52  ;;  %v198_v50 = vld [vmem:[%s1723_s20 + $0xc0] sm:$0xff]  ;;  %v200_v52 = vld [vmem:[%s1723_s20 + $0xd0] sm:$0xff] }
  0x1b   : > { %v455_v60 = vadd.f32 %v1728_v1, %v320_v53  ;;  %v456_v61 = vadd.f32 %v1728_v1, %v321_v54  ;;  %v457_v62 = vadd.f32 %v1728_v1, %v322_v55  ;;  %v324_v63 = vmul.f32 %v1718_v0, %v189_v51  ;;  %v199_v51 = vld [vmem:[%s1723_s20 + $0xc8] sm:$0xff] }
  0x1c   : > { %v580_v2 = vmax.f32 %v452_v56, 0.0  ;;  %v581_v3 = vmax.f32 %v453_v57, 0.0  ;;  %v582_v4 = vmax.f32 %v454_v58, 0.0  ;;  %v458_v5 = vadd.f32 %v1728_v1, %v323_v59  ;;  %v201_v57 = vld [vmem:[%s1723_s20 + $0xd8] sm:$0xff]  ;;  %v202_v58 = vld [vmem:[%s1723_s20 + $0xe0] sm:$0xff]  ;;  %v203_v59 = vld [vmem:[%s1723_s20 + $0xe8] sm:$0xff] }
  0x1d   : > { %v583_v6 = vmax.f32 %v455_v60, 0.0  ;;  %v584_v7 = vmax.f32 %v456_v61, 0.0  ;;  %v585_v8 = vmax.f32 %v457_v62, 0.0  ;;  %v459_v9 = vadd.f32 %v1728_v1, %v324_v63 }
  0x1e   : > { %v1546_v13 = vpack.c.bf16 %v580_v2, %v580_v2  ;;  %v1547_v14 = vpack.c.bf16 %v581_v3, %v581_v3  ;;  %v1548_v15 = vpack.c.bf16 %v582_v4, %v582_v4  ;;  %v586_v16 = vmax.f32 %v458_v5, 0.0  ;;  %v204_v2 = vld [vmem:[%s1723_s20 + $0xf0] sm:$0xff] }
  0x1f   : > { %v1549_v20 = vpack.c.bf16 %v583_v6, %v583_v6  ;;  %v1550_v21 = vpack.c.bf16 %v584_v7, %v584_v7  ;;  %v1551_v22 = vpack.c.bf16 %v585_v8, %v585_v8  ;;  %v587_v23 = vmax.f32 %v459_v9, 0.0  ;;  %v205_v7 = vld [vmem:[%s1723_s20 + $0xf8] sm:$0xff] }
  0x20   : > { %1221 = vst.msk [vmem:[%s1757_s26 + $0x20] sm:$0xf] %vm1212_vm0, %v1546_v13  ;;  %1222 = vst.msk [vmem:[%s1757_s26 + $0x24] sm:$0xf] %vm1212_vm0, %v1547_v14  ;;  %v1552_v25 = vpack.c.bf16 %v586_v16, %v586_v16  ;;  %v325_v26 = vmul.f32 %v1718_v0, %v190_v10  ;;  %v326_v27 = vmul.f32 %v1718_v0, %v191_v11 }
  0x21   : > { %1223 = vst.msk [vmem:[%s1757_s26 + $0x28] sm:$0xf] %vm1212_vm0, %v1548_v15  ;;  %v327_v28 = vmul.f32 %v1718_v0, %v192_v12  ;;  %1224 = vst.msk [vmem:[%s1757_s26 + $0x2c] sm:$0xf] %vm1212_vm0, %v1549_v20  ;;  %v1553_v30 = vpack.c.bf16 %v587_v23, %v587_v23  ;;  %v328_v31 = vmul.f32 %v1718_v0, %v193_v17 }
  0x22   : > { %1225 = vst.msk [vmem:[%s1757_s26 + $0x30] sm:$0xf] %vm1212_vm0, %v1550_v21  ;;  %1226 = vst.msk [vmem:[%s1757_s26 + $0x34] sm:$0xf] %vm1212_vm0, %v1551_v22  ;;  %v329_v32 = vmul.f32 %v1718_v0, %v194_v18  ;;  %v330_v33 = vmul.f32 %v1718_v0, %v195_v19  ;;  %v460_v34 = vadd.f32 %v1728_v1, %v325_v26 }
  0x23   : > { %1227 = vst.msk [vmem:[%s1757_s26 + $0x38] sm:$0xf] %vm1212_vm0, %v1552_v25  ;;  %v461_v35 = vadd.f32 %v1728_v1, %v326_v27  ;;  %v462_v36 = vadd.f32 %v1728_v1, %v327_v28  ;;  %v331_v37 = vmul.f32 %v1718_v0, %v196_v24  ;;  %1228 = vst.msk [vmem:[%s1757_s26 + $0x3c] sm:$0xf] %vm1212_vm0, %v1553_v30  ;;  %v206_v28 = vld [vmem:[%s1723_s20 + $0x100] sm:$0xff]  ;;  %v208_v30 = vld [vmem:[%s1723_s20 + $0x110] sm:$0xff] }
  0x24   : > { %v463_v38 = vadd.f32 %v1728_v1, %v328_v31  ;;  %v464_v39 = vadd.f32 %v1728_v1, %v329_v32  ;;  %v465_v40 = vadd.f32 %v1728_v1, %v330_v33  ;;  %v332_v41 = vmul.f32 %v1718_v0, %v197_v29  ;;  %v207_v29 = vld [vmem:[%s1723_s20 + $0x108] sm:$0xff] }
  0x25   : > { %v588_v42 = vmax.f32 %v460_v34, 0.0  ;;  %v589_v43 = vmax.f32 %v461_v35, 0.0  ;;  %v590_v44 = vmax.f32 %v462_v36, 0.0  ;;  %v466_v45 = vadd.f32 %v1728_v1, %v331_v37  ;;  %v209_v35 = vld [vmem:[%s1723_s20 + $0x118] sm:$0xff]  ;;  %v210_v36 = vld [vmem:[%s1723_s20 + $0x120] sm:$0xff]  ;;  %v211_v37 = vld [vmem:[%s1723_s20 + $0x128] sm:$0xff] }
  0x26   : > { %v591_v46 = vmax.f32 %v463_v38, 0.0  ;;  %v592_v47 = vmax.f32 %v464_v39, 0.0  ;;  %v593_v48 = vmax.f32 %v465_v40, 0.0  ;;  %v467_v49 = vadd.f32 %v1728_v1, %v332_v41 }
  0x27   : > { %v1554_v53 = vpack.c.bf16 %v588_v42, %v588_v42  ;;  %v1555_v54 = vpack.c.bf16 %v589_v43, %v589_v43  ;;  %v1556_v55 = vpack.c.bf16 %v590_v44, %v590_v44  ;;  %v594_v56 = vmax.f32 %v466_v45, 0.0  ;;  %v212_v42 = vld [vmem:[%s1723_s20 + $0x130] sm:$0xff] }
  0x28   : > { %v1557_v60 = vpack.c.bf16 %v591_v46, %v591_v46  ;;  %v1558_v61 = vpack.c.bf16 %v592_v47, %v592_v47  ;;  %v1559_v62 = vpack.c.bf16 %v593_v48, %v593_v48  ;;  %v595_v63 = vmax.f32 %v467_v49, 0.0  ;;  %v213_v47 = vld [vmem:[%s1723_s20 + $0x138] sm:$0xff] }
  0x29   : > { %1229 = vst.msk [vmem:[%s1757_s26 + $0x40] sm:$0xf] %vm1212_vm0, %v1554_v53  ;;  %1230 = vst.msk [vmem:[%s1757_s26 + $0x44] sm:$0xf] %vm1212_vm0, %v1555_v54  ;;  %v1560_v3 = vpack.c.bf16 %v594_v56, %v594_v56  ;;  %v333_v4 = vmul.f32 %v1718_v0, %v198_v50  ;;  %v334_v5 = vmul.f32 %v1718_v0, %v199_v51 }
  0x2a   : > { %1231 = vst.msk [vmem:[%s1757_s26 + $0x48] sm:$0xf] %vm1212_vm0, %v1556_v55  ;;  %v335_v6 = vmul.f32 %v1718_v0, %v200_v52  ;;  %1232 = vst.msk [vmem:[%s1757_s26 + $0x4c] sm:$0xf] %vm1212_vm0, %v1557_v60  ;;  %v1561_v8 = vpack.c.bf16 %v595_v63, %v595_v63  ;;  %v336_v9 = vmul.f32 %v1718_v0, %v201_v57 }
  0x2b   : > { %1233 = vst.msk [vmem:[%s1757_s26 + $0x50] sm:$0xf] %vm1212_vm0, %v1558_v61  ;;  %1234 = vst.msk [vmem:[%s1757_s26 + $0x54] sm:$0xf] %vm1212_vm0, %v1559_v62  ;;  %v337_v10 = vmul.f32 %v1718_v0, %v202_v58  ;;  %v338_v11 = vmul.f32 %v1718_v0, %v203_v59  ;;  %v468_v12 = vadd.f32 %v1728_v1, %v333_v4 }
  0x2c   : > { %1235 = vst.msk [vmem:[%s1757_s26 + $0x58] sm:$0xf] %vm1212_vm0, %v1560_v3  ;;  %v469_v13 = vadd.f32 %v1728_v1, %v334_v5  ;;  %v470_v14 = vadd.f32 %v1728_v1, %v335_v6  ;;  %v339_v15 = vmul.f32 %v1718_v0, %v204_v2  ;;  %1236 = vst.msk [vmem:[%s1757_s26 + $0x5c] sm:$0xf] %vm1212_vm0, %v1561_v8  ;;  %v214_v6 = vld [vmem:[%s1723_s20 + $0x140] sm:$0xff]  ;;  %v216_v8 = vld [vmem:[%s1723_s20 + $0x150] sm:$0xff] }
  0x2d   : > { %v471_v16 = vadd.f32 %v1728_v1, %v336_v9  ;;  %v472_v17 = vadd.f32 %v1728_v1, %v337_v10  ;;  %v473_v18 = vadd.f32 %v1728_v1, %v338_v11  ;;  %v340_v19 = vmul.f32 %v1718_v0, %v205_v7  ;;  %v215_v7 = vld [vmem:[%s1723_s20 + $0x148] sm:$0xff] }
  0x2e   : > { %v596_v20 = vmax.f32 %v468_v12, 0.0  ;;  %v597_v21 = vmax.f32 %v469_v13, 0.0  ;;  %v598_v22 = vmax.f32 %v470_v14, 0.0  ;;  %v474_v23 = vadd.f32 %v1728_v1, %v339_v15  ;;  %v217_v13 = vld [vmem:[%s1723_s20 + $0x158] sm:$0xff]  ;;  %v218_v14 = vld [vmem:[%s1723_s20 + $0x160] sm:$0xff]  ;;  %v219_v15 = vld [vmem:[%s1723_s20 + $0x168] sm:$0xff] }
  0x2f   : > { %v599_v24 = vmax.f32 %v471_v16, 0.0  ;;  %v600_v25 = vmax.f32 %v472_v17, 0.0  ;;  %v601_v26 = vmax.f32 %v473_v18, 0.0  ;;  %v475_v27 = vadd.f32 %v1728_v1, %v340_v19 }
  0x30   : > { %v1562_v31 = vpack.c.bf16 %v596_v20, %v596_v20  ;;  %v1563_v32 = vpack.c.bf16 %v597_v21, %v597_v21  ;;  %v1564_v33 = vpack.c.bf16 %v598_v22, %v598_v22  ;;  %v602_v34 = vmax.f32 %v474_v23, 0.0  ;;  %v220_v20 = vld [vmem:[%s1723_s20 + $0x170] sm:$0xff] }
  0x31   : > { %v1565_v38 = vpack.c.bf16 %v599_v24, %v599_v24  ;;  %v1566_v39 = vpack.c.bf16 %v600_v25, %v600_v25  ;;  %v1567_v40 = vpack.c.bf16 %v601_v26, %v601_v26  ;;  %v603_v41 = vmax.f32 %v475_v27, 0.0  ;;  %v221_v25 = vld [vmem:[%s1723_s20 + $0x178] sm:$0xff] }
  0x32   : > { %1237 = vst.msk [vmem:[%s1757_s26 + $0x60] sm:$0xf] %vm1212_vm0, %v1562_v31  ;;  %1238 = vst.msk [vmem:[%s1757_s26 + $0x64] sm:$0xf] %vm1212_vm0, %v1563_v32  ;;  %v1568_v43 = vpack.c.bf16 %v602_v34, %v602_v34  ;;  %v341_v44 = vmul.f32 %v1718_v0, %v206_v28  ;;  %v342_v45 = vmul.f32 %v1718_v0, %v207_v29 }
  0x33   : > { %1239 = vst.msk [vmem:[%s1757_s26 + $0x68] sm:$0xf] %vm1212_vm0, %v1564_v33  ;;  %v343_v46 = vmul.f32 %v1718_v0, %v208_v30  ;;  %1240 = vst.msk [vmem:[%s1757_s26 + $0x6c] sm:$0xf] %vm1212_vm0, %v1565_v38  ;;  %v1569_v48 = vpack.c.bf16 %v603_v41, %v603_v41  ;;  %v344_v49 = vmul.f32 %v1718_v0, %v209_v35 }
  0x34   : > { %1241 = vst.msk [vmem:[%s1757_s26 + $0x70] sm:$0xf] %vm1212_vm0, %v1566_v39  ;;  %1242 = vst.msk [vmem:[%s1757_s26 + $0x74] sm:$0xf] %vm1212_vm0, %v1567_v40  ;;  %v345_v50 = vmul.f32 %v1718_v0, %v210_v36  ;;  %v346_v51 = vmul.f32 %v1718_v0, %v211_v37  ;;  %v476_v52 = vadd.f32 %v1728_v1, %v341_v44 }
  0x35   : > { %1243 = vst.msk [vmem:[%s1757_s26 + $0x78] sm:$0xf] %vm1212_vm0, %v1568_v43  ;;  %v477_v53 = vadd.f32 %v1728_v1, %v342_v45  ;;  %v478_v54 = vadd.f32 %v1728_v1, %v343_v46  ;;  %v347_v55 = vmul.f32 %v1718_v0, %v212_v42  ;;  %1244 = vst.msk [vmem:[%s1757_s26 + $0x7c] sm:$0xf] %vm1212_vm0, %v1569_v48  ;;  %v222_v46 = vld [vmem:[%s1723_s20 + $0x180] sm:$0xff]  ;;  %v224_v48 = vld [vmem:[%s1723_s20 + $0x190] sm:$0xff] }
  0x36   : > { %v479_v56 = vadd.f32 %v1728_v1, %v344_v49  ;;  %v480_v57 = vadd.f32 %v1728_v1, %v345_v50  ;;  %v481_v58 = vadd.f32 %v1728_v1, %v346_v51  ;;  %v348_v59 = vmul.f32 %v1718_v0, %v213_v47  ;;  %v223_v47 = vld [vmem:[%s1723_s20 + $0x188] sm:$0xff] }
  0x37   : > { %v604_v60 = vmax.f32 %v476_v52, 0.0  ;;  %v605_v61 = vmax.f32 %v477_v53, 0.0  ;;  %v606_v62 = vmax.f32 %v478_v54, 0.0  ;;  %v482_v63 = vadd.f32 %v1728_v1, %v347_v55  ;;  %v225_v53 = vld [vmem:[%s1723_s20 + $0x198] sm:$0xff]  ;;  %v226_v54 = vld [vmem:[%s1723_s20 + $0x1a0] sm:$0xff]  ;;  %v227_v55 = vld [vmem:[%s1723_s20 + $0x1a8] sm:$0xff] }
  0x38   : > { %v607_v2 = vmax.f32 %v479_v56, 0.0  ;;  %v608_v3 = vmax.f32 %v480_v57, 0.0  ;;  %v609_v4 = vmax.f32 %v481_v58, 0.0  ;;  %v483_v5 = vadd.f32 %v1728_v1, %v348_v59 }
  0x39   : > { %v1570_v9 = vpack.c.bf16 %v604_v60, %v604_v60  ;;  %v1571_v10 = vpack.c.bf16 %v605_v61, %v605_v61  ;;  %v1572_v11 = vpack.c.bf16 %v606_v62, %v606_v62  ;;  %v610_v12 = vmax.f32 %v482_v63, 0.0  ;;  %v228_v60 = vld [vmem:[%s1723_s20 + $0x1b0] sm:$0xff] }
  0x3a   : > { %v1573_v16 = vpack.c.bf16 %v607_v2, %v607_v2  ;;  %v1574_v17 = vpack.c.bf16 %v608_v3, %v608_v3  ;;  %v1575_v18 = vpack.c.bf16 %v609_v4, %v609_v4  ;;  %v611_v19 = vmax.f32 %v483_v5, 0.0  ;;  %v229_v3 = vld [vmem:[%s1723_s20 + $0x1b8] sm:$0xff] }
  0x3b   : > { %1245 = vst.msk [vmem:[%s1757_s26 + $0x80] sm:$0xf] %vm1212_vm0, %v1570_v9  ;;  %1246 = vst.msk [vmem:[%s1757_s26 + $0x84] sm:$0xf] %vm1212_vm0, %v1571_v10  ;;  %v1576_v21 = vpack.c.bf16 %v610_v12, %v610_v12  ;;  %v349_v22 = vmul.f32 %v1718_v0, %v214_v6  ;;  %v350_v23 = vmul.f32 %v1718_v0, %v215_v7 }
  0x3c   : > { %1247 = vst.msk [vmem:[%s1757_s26 + $0x88] sm:$0xf] %vm1212_vm0, %v1572_v11  ;;  %v351_v24 = vmul.f32 %v1718_v0, %v216_v8  ;;  %1248 = vst.msk [vmem:[%s1757_s26 + $0x8c] sm:$0xf] %vm1212_vm0, %v1573_v16  ;;  %v1577_v26 = vpack.c.bf16 %v611_v19, %v611_v19  ;;  %v352_v27 = vmul.f32 %v1718_v0, %v217_v13 }
  0x3d   : > { %1249 = vst.msk [vmem:[%s1757_s26 + $0x90] sm:$0xf] %vm1212_vm0, %v1574_v17  ;;  %1250 = vst.msk [vmem:[%s1757_s26 + $0x94] sm:$0xf] %vm1212_vm0, %v1575_v18  ;;  %v353_v28 = vmul.f32 %v1718_v0, %v218_v14  ;;  %v354_v29 = vmul.f32 %v1718_v0, %v219_v15  ;;  %v484_v30 = vadd.f32 %v1728_v1, %v349_v22 }
  0x3e   : > { %1251 = vst.msk [vmem:[%s1757_s26 + $0x98] sm:$0xf] %vm1212_vm0, %v1576_v21  ;;  %v485_v31 = vadd.f32 %v1728_v1, %v350_v23  ;;  %v486_v32 = vadd.f32 %v1728_v1, %v351_v24  ;;  %v355_v33 = vmul.f32 %v1718_v0, %v220_v20  ;;  %1252 = vst.msk [vmem:[%s1757_s26 + $0x9c] sm:$0xf] %vm1212_vm0, %v1577_v26  ;;  %v230_v24 = vld [vmem:[%s1723_s20 + $0x1c0] sm:$0xff]  ;;  %v232_v26 = vld [vmem:[%s1723_s20 + $0x1d0] sm:$0xff] }
  0x3f   : > { %v487_v34 = vadd.f32 %v1728_v1, %v352_v27  ;;  %v488_v35 = vadd.f32 %v1728_v1, %v353_v28  ;;  %v489_v36 = vadd.f32 %v1728_v1, %v354_v29  ;;  %v356_v37 = vmul.f32 %v1718_v0, %v221_v25  ;;  %v231_v25 = vld [vmem:[%s1723_s20 + $0x1c8] sm:$0xff] }
  0x40   : > { %v612_v38 = vmax.f32 %v484_v30, 0.0  ;;  %v613_v39 = vmax.f32 %v485_v31, 0.0  ;;  %v614_v40 = vmax.f32 %v486_v32, 0.0  ;;  %v490_v41 = vadd.f32 %v1728_v1, %v355_v33  ;;  %v233_v31 = vld [vmem:[%s1723_s20 + $0x1d8] sm:$0xff]  ;;  %v234_v32 = vld [vmem:[%s1723_s20 + $0x1e0] sm:$0xff]  ;;  %v235_v33 = vld [vmem:[%s1723_s20 + $0x1e8] sm:$0xff] }
  0x41   : > { %v615_v42 = vmax.f32 %v487_v34, 0.0  ;;  %v616_v43 = vmax.f32 %v488_v35, 0.0  ;;  %v617_v44 = vmax.f32 %v489_v36, 0.0  ;;  %v491_v45 = vadd.f32 %v1728_v1, %v356_v37 }
  0x42   : > { %v1578_v49 = vpack.c.bf16 %v612_v38, %v612_v38  ;;  %v1579_v50 = vpack.c.bf16 %v613_v39, %v613_v39  ;;  %v1580_v51 = vpack.c.bf16 %v614_v40, %v614_v40  ;;  %v618_v52 = vmax.f32 %v490_v41, 0.0  ;;  %v236_v38 = vld [vmem:[%s1723_s20 + $0x1f0] sm:$0xff] }
  0x43   : > { %v1581_v56 = vpack.c.bf16 %v615_v42, %v615_v42  ;;  %v1582_v57 = vpack.c.bf16 %v616_v43, %v616_v43  ;;  %v1583_v58 = vpack.c.bf16 %v617_v44, %v617_v44  ;;  %v619_v59 = vmax.f32 %v491_v45, 0.0  ;;  %v237_v43 = vld [vmem:[%s1723_s20 + $0x1f8] sm:$0xff] }
  0x44   : > { %1253 = vst.msk [vmem:[%s1757_s26 + $0xa0] sm:$0xf] %vm1212_vm0, %v1578_v49  ;;  %1254 = vst.msk [vmem:[%s1757_s26 + $0xa4] sm:$0xf] %vm1212_vm0, %v1579_v50  ;;  %v1584_v61 = vpack.c.bf16 %v618_v52, %v618_v52  ;;  %v357_v62 = vmul.f32 %v1718_v0, %v222_v46  ;;  %v358_v63 = vmul.f32 %v1718_v0, %v223_v47 }
  0x45   : > { %1255 = vst.msk [vmem:[%s1757_s26 + $0xa8] sm:$0xf] %vm1212_vm0, %v1580_v51  ;;  %v359_v2 = vmul.f32 %v1718_v0, %v224_v48  ;;  %1256 = vst.msk [vmem:[%s1757_s26 + $0xac] sm:$0xf] %vm1212_vm0, %v1581_v56  ;;  %v1585_v4 = vpack.c.bf16 %v619_v59, %v619_v59  ;;  %v360_v5 = vmul.f32 %v1718_v0, %v225_v53 }
  0x46   : > { %1257 = vst.msk [vmem:[%s1757_s26 + $0xb0] sm:$0xf] %vm1212_vm0, %v1582_v57  ;;  %1258 = vst.msk [vmem:[%s1757_s26 + $0xb4] sm:$0xf] %vm1212_vm0, %v1583_v58  ;;  %v361_v6 = vmul.f32 %v1718_v0, %v226_v54  ;;  %v362_v7 = vmul.f32 %v1718_v0, %v227_v55  ;;  %v492_v8 = vadd.f32 %v1728_v1, %v357_v62 }
  0x47   : > { %1259 = vst.msk [vmem:[%s1757_s26 + $0xb8] sm:$0xf] %vm1212_vm0, %v1584_v61  ;;  %v493_v9 = vadd.f32 %v1728_v1, %v358_v63  ;;  %v494_v10 = vadd.f32 %v1728_v1, %v359_v2  ;;  %v363_v11 = vmul.f32 %v1718_v0, %v228_v60  ;;  %1260 = vst.msk [vmem:[%s1757_s26 + $0xbc] sm:$0xf] %vm1212_vm0, %v1585_v4  ;;  %v238_v2 = vld [vmem:[%s1723_s20 + $0x200] sm:$0xff]  ;;  %v240_v4 = vld [vmem:[%s1723_s20 + $0x210] sm:$0xff] }
  0x48   : > { %v495_v12 = vadd.f32 %v1728_v1, %v360_v5  ;;  %v496_v13 = vadd.f32 %v1728_v1, %v361_v6  ;;  %v497_v14 = vadd.f32 %v1728_v1, %v362_v7  ;;  %v364_v15 = vmul.f32 %v1718_v0, %v229_v3  ;;  %v239_v3 = vld [vmem:[%s1723_s20 + $0x208] sm:$0xff] }
  0x49   : > { %v620_v16 = vmax.f32 %v492_v8, 0.0  ;;  %v621_v17 = vmax.f32 %v493_v9, 0.0  ;;  %v622_v18 = vmax.f32 %v494_v10, 0.0  ;;  %v498_v19 = vadd.f32 %v1728_v1, %v363_v11  ;;  %v241_v9 = vld [vmem:[%s1723_s20 + $0x218] sm:$0xff]  ;;  %v242_v10 = vld [vmem:[%s1723_s20 + $0x220] sm:$0xff]  ;;  %v243_v11 = vld [vmem:[%s1723_s20 + $0x228] sm:$0xff] }
  0x4a   : > { %v623_v20 = vmax.f32 %v495_v12, 0.0  ;;  %v624_v21 = vmax.f32 %v496_v13, 0.0  ;;  %v625_v22 = vmax.f32 %v497_v14, 0.0  ;;  %v499_v23 = vadd.f32 %v1728_v1, %v364_v15 }
  0x4b   : > { %v1586_v27 = vpack.c.bf16 %v620_v16, %v620_v16  ;;  %v1587_v28 = vpack.c.bf16 %v621_v17, %v621_v17  ;;  %v1588_v29 = vpack.c.bf16 %v622_v18, %v622_v18  ;;  %v626_v30 = vmax.f32 %v498_v19, 0.0  ;;  %v244_v16 = vld [vmem:[%s1723_s20 + $0x230] sm:$0xff] }
  0x4c   : > { %v1589_v34 = vpack.c.bf16 %v623_v20, %v623_v20  ;;  %v1590_v35 = vpack.c.bf16 %v624_v21, %v624_v21  ;;  %v1591_v36 = vpack.c.bf16 %v625_v22, %v625_v22  ;;  %v627_v37 = vmax.f32 %v499_v23, 0.0  ;;  %v245_v21 = vld [vmem:[%s1723_s20 + $0x238] sm:$0xff] }
  0x4d   : > { %1261 = vst.msk [vmem:[%s1757_s26 + $0xc0] sm:$0xf] %vm1212_vm0, %v1586_v27  ;;  %1262 = vst.msk [vmem:[%s1757_s26 + $0xc4] sm:$0xf] %vm1212_vm0, %v1587_v28  ;;  %v1592_v39 = vpack.c.bf16 %v626_v30, %v626_v30  ;;  %v365_v40 = vmul.f32 %v1718_v0, %v230_v24  ;;  %v366_v41 = vmul.f32 %v1718_v0, %v231_v25 }
  0x4e   : > { %1263 = vst.msk [vmem:[%s1757_s26 + $0xc8] sm:$0xf] %vm1212_vm0, %v1588_v29  ;;  %v367_v42 = vmul.f32 %v1718_v0, %v232_v26  ;;  %1264 = vst.msk [vmem:[%s1757_s26 + $0xcc] sm:$0xf] %vm1212_vm0, %v1589_v34  ;;  %v1593_v44 = vpack.c.bf16 %v627_v37, %v627_v37  ;;  %v368_v45 = vmul.f32 %v1718_v0, %v233_v31 }
  0x4f   : > { %1265 = vst.msk [vmem:[%s1757_s26 + $0xd0] sm:$0xf] %vm1212_vm0, %v1590_v35  ;;  %1266 = vst.msk [vmem:[%s1757_s26 + $0xd4] sm:$0xf] %vm1212_vm0, %v1591_v36  ;;  %v369_v46 = vmul.f32 %v1718_v0, %v234_v32  ;;  %v370_v47 = vmul.f32 %v1718_v0, %v235_v33  ;;  %v500_v48 = vadd.f32 %v1728_v1, %v365_v40 }
  0x50   : > { %1267 = vst.msk [vmem:[%s1757_s26 + $0xd8] sm:$0xf] %vm1212_vm0, %v1592_v39  ;;  %v501_v49 = vadd.f32 %v1728_v1, %v366_v41  ;;  %v502_v50 = vadd.f32 %v1728_v1, %v367_v42  ;;  %v371_v51 = vmul.f32 %v1718_v0, %v236_v38  ;;  %1268 = vst.msk [vmem:[%s1757_s26 + $0xdc] sm:$0xf] %vm1212_vm0, %v1593_v44  ;;  %v246_v42 = vld [vmem:[%s1723_s20 + $0x240] sm:$0xff]  ;;  %v248_v44 = vld [vmem:[%s1723_s20 + $0x250] sm:$0xff] }
  0x51   : > { %v503_v52 = vadd.f32 %v1728_v1, %v368_v45  ;;  %v504_v53 = vadd.f32 %v1728_v1, %v369_v46  ;;  %v505_v54 = vadd.f32 %v1728_v1, %v370_v47  ;;  %v372_v55 = vmul.f32 %v1718_v0, %v237_v43  ;;  %v247_v43 = vld [vmem:[%s1723_s20 + $0x248] sm:$0xff] }
  0x52   : > { %v628_v56 = vmax.f32 %v500_v48, 0.0  ;;  %v629_v57 = vmax.f32 %v501_v49, 0.0  ;;  %v630_v58 = vmax.f32 %v502_v50, 0.0  ;;  %v506_v59 = vadd.f32 %v1728_v1, %v371_v51  ;;  %v249_v49 = vld [vmem:[%s1723_s20 + $0x258] sm:$0xff]  ;;  %v250_v50 = vld [vmem:[%s1723_s20 + $0x260] sm:$0xff]  ;;  %v251_v51 = vld [vmem:[%s1723_s20 + $0x268] sm:$0xff] }
  0x53   : > { %v631_v60 = vmax.f32 %v503_v52, 0.0  ;;  %v632_v61 = vmax.f32 %v504_v53, 0.0  ;;  %v633_v62 = vmax.f32 %v505_v54, 0.0  ;;  %v507_v63 = vadd.f32 %v1728_v1, %v372_v55 }
  0x54   : > { %v1594_v5 = vpack.c.bf16 %v628_v56, %v628_v56  ;;  %v1595_v6 = vpack.c.bf16 %v629_v57, %v629_v57  ;;  %v1596_v7 = vpack.c.bf16 %v630_v58, %v630_v58  ;;  %v634_v8 = vmax.f32 %v506_v59, 0.0  ;;  %v252_v56 = vld [vmem:[%s1723_s20 + $0x270] sm:$0xff] }
  0x55   : > { %v1597_v12 = vpack.c.bf16 %v631_v60, %v631_v60  ;;  %v1598_v13 = vpack.c.bf16 %v632_v61, %v632_v61  ;;  %v1599_v14 = vpack.c.bf16 %v633_v62, %v633_v62  ;;  %v635_v15 = vmax.f32 %v507_v63, 0.0  ;;  %v253_v61 = vld [vmem:[%s1723_s20 + $0x278] sm:$0xff] }
  0x56   : > { %1269 = vst.msk [vmem:[%s1757_s26 + $0xe0] sm:$0xf] %vm1212_vm0, %v1594_v5  ;;  %1270 = vst.msk [vmem:[%s1757_s26 + $0xe4] sm:$0xf] %vm1212_vm0, %v1595_v6  ;;  %v1600_v17 = vpack.c.bf16 %v634_v8, %v634_v8  ;;  %v373_v18 = vmul.f32 %v1718_v0, %v238_v2  ;;  %v374_v19 = vmul.f32 %v1718_v0, %v239_v3 }
  0x57   : > { %1271 = vst.msk [vmem:[%s1757_s26 + $0xe8] sm:$0xf] %vm1212_vm0, %v1596_v7  ;;  %v375_v20 = vmul.f32 %v1718_v0, %v240_v4  ;;  %1272 = vst.msk [vmem:[%s1757_s26 + $0xec] sm:$0xf] %vm1212_vm0, %v1597_v12  ;;  %v1601_v22 = vpack.c.bf16 %v635_v15, %v635_v15  ;;  %v376_v23 = vmul.f32 %v1718_v0, %v241_v9 }
  0x58   : > { %1273 = vst.msk [vmem:[%s1757_s26 + $0xf0] sm:$0xf] %vm1212_vm0, %v1598_v13  ;;  %1274 = vst.msk [vmem:[%s1757_s26 + $0xf4] sm:$0xf] %vm1212_vm0, %v1599_v14  ;;  %v377_v24 = vmul.f32 %v1718_v0, %v242_v10  ;;  %v378_v25 = vmul.f32 %v1718_v0, %v243_v11  ;;  %v508_v26 = vadd.f32 %v1728_v1, %v373_v18 }
  0x59   : > { %1275 = vst.msk [vmem:[%s1757_s26 + $0xf8] sm:$0xf] %vm1212_vm0, %v1600_v17  ;;  %v509_v27 = vadd.f32 %v1728_v1, %v374_v19  ;;  %v510_v28 = vadd.f32 %v1728_v1, %v375_v20  ;;  %v379_v29 = vmul.f32 %v1718_v0, %v244_v16  ;;  %1276 = vst.msk [vmem:[%s1757_s26 + $0xfc] sm:$0xf] %vm1212_vm0, %v1601_v22  ;;  %v254_v20 = vld [vmem:[%s1723_s20 + $0x280] sm:$0xff]  ;;  %v256_v22 = vld [vmem:[%s1723_s20 + $0x290] sm:$0xff] }
  0x5a   : > { %v511_v30 = vadd.f32 %v1728_v1, %v376_v23  ;;  %v512_v31 = vadd.f32 %v1728_v1, %v377_v24  ;;  %v513_v32 = vadd.f32 %v1728_v1, %v378_v25  ;;  %v380_v33 = vmul.f32 %v1718_v0, %v245_v21  ;;  %v255_v21 = vld [vmem:[%s1723_s20 + $0x288] sm:$0xff] }
  0x5b   : > { %v636_v34 = vmax.f32 %v508_v26, 0.0  ;;  %v637_v35 = vmax.f32 %v509_v27, 0.0  ;;  %v638_v36 = vmax.f32 %v510_v28, 0.0  ;;  %v514_v37 = vadd.f32 %v1728_v1, %v379_v29  ;;  %v257_v27 = vld [vmem:[%s1723_s20 + $0x298] sm:$0xff]  ;;  %v258_v28 = vld [vmem:[%s1723_s20 + $0x2a0] sm:$0xff]  ;;  %v259_v29 = vld [vmem:[%s1723_s20 + $0x2a8] sm:$0xff] }
  0x5c   : > { %v639_v38 = vmax.f32 %v511_v30, 0.0  ;;  %v640_v39 = vmax.f32 %v512_v31, 0.0  ;;  %v641_v40 = vmax.f32 %v513_v32, 0.0  ;;  %v515_v41 = vadd.f32 %v1728_v1, %v380_v33 }
  0x5d   : > { %v1602_v45 = vpack.c.bf16 %v636_v34, %v636_v34  ;;  %v1603_v46 = vpack.c.bf16 %v637_v35, %v637_v35  ;;  %v1604_v47 = vpack.c.bf16 %v638_v36, %v638_v36  ;;  %v642_v48 = vmax.f32 %v514_v37, 0.0  ;;  %v260_v34 = vld [vmem:[%s1723_s20 + $0x2b0] sm:$0xff] }
  0x5e   : > { %v1605_v52 = vpack.c.bf16 %v639_v38, %v639_v38  ;;  %v1606_v53 = vpack.c.bf16 %v640_v39, %v640_v39  ;;  %v1607_v54 = vpack.c.bf16 %v641_v40, %v641_v40  ;;  %v643_v55 = vmax.f32 %v515_v41, 0.0  ;;  %v261_v39 = vld [vmem:[%s1723_s20 + $0x2b8] sm:$0xff] }
  0x5f   : > { %1277 = vst.msk [vmem:[%s1757_s26 + $0x100] sm:$0xf] %vm1212_vm0, %v1602_v45  ;;  %1278 = vst.msk [vmem:[%s1757_s26 + $0x104] sm:$0xf] %vm1212_vm0, %v1603_v46  ;;  %v1608_v57 = vpack.c.bf16 %v642_v48, %v642_v48  ;;  %v381_v58 = vmul.f32 %v1718_v0, %v246_v42  ;;  %v382_v59 = vmul.f32 %v1718_v0, %v247_v43 }
  0x60   : > { %1279 = vst.msk [vmem:[%s1757_s26 + $0x108] sm:$0xf] %vm1212_vm0, %v1604_v47  ;;  %v383_v60 = vmul.f32 %v1718_v0, %v248_v44  ;;  %1280 = vst.msk [vmem:[%s1757_s26 + $0x10c] sm:$0xf] %vm1212_vm0, %v1605_v52  ;;  %v1609_v62 = vpack.c.bf16 %v643_v55, %v643_v55  ;;  %v384_v63 = vmul.f32 %v1718_v0, %v249_v49 }
  0x61   : > { %1281 = vst.msk [vmem:[%s1757_s26 + $0x110] sm:$0xf] %vm1212_vm0, %v1606_v53  ;;  %1282 = vst.msk [vmem:[%s1757_s26 + $0x114] sm:$0xf] %vm1212_vm0, %v1607_v54  ;;  %v385_v2 = vmul.f32 %v1718_v0, %v250_v50  ;;  %v386_v3 = vmul.f32 %v1718_v0, %v251_v51  ;;  %v516_v4 = vadd.f32 %v1728_v1, %v381_v58 }
  0x62   : > { %1283 = vst.msk [vmem:[%s1757_s26 + $0x118] sm:$0xf] %vm1212_vm0, %v1608_v57  ;;  %v517_v5 = vadd.f32 %v1728_v1, %v382_v59  ;;  %v518_v6 = vadd.f32 %v1728_v1, %v383_v60  ;;  %v387_v7 = vmul.f32 %v1718_v0, %v252_v56  ;;  %1284 = vst.msk [vmem:[%s1757_s26 + $0x11c] sm:$0xf] %vm1212_vm0, %v1609_v62  ;;  %v2162_v59 = vld [vmem:[%s2391_s2] ss:$0 sm:$0xff] }
  0x63   : > { %v519_v8 = vadd.f32 %v1728_v1, %v384_v63  ;;  %v520_v9 = vadd.f32 %v1728_v1, %v385_v2  ;;  %v521_v10 = vadd.f32 %v1728_v1, %v386_v3  ;;  %v388_v11 = vmul.f32 %v1718_v0, %v253_v61  ;;  %v263_v61 = vld [vmem:[%s1723_s20 + $0x2c8] sm:$0xff]  ;;  %v264_v62 = vld [vmem:[%s1723_s20 + $0x2d0] sm:$0xff] }
  0x64   : > { %v644_v12 = vmax.f32 %v516_v4, 0.0  ;;  %v645_v13 = vmax.f32 %v517_v5, 0.0  ;;  %v646_v14 = vmax.f32 %v518_v6, 0.0  ;;  %v522_v15 = vadd.f32 %v1728_v1, %v387_v7  ;;  %v265_v4 = vld [vmem:[%s1723_s20 + $0x2d8] sm:$0xff]  ;;  %v266_v5 = vld [vmem:[%s1723_s20 + $0x2e0] sm:$0xff]  ;;  %v267_v6 = vld [vmem:[%s1723_s20 + $0x2e8] sm:$0xff] }
  0x65   : > { %v647_v16 = vmax.f32 %v519_v8, 0.0  ;;  %v648_v17 = vmax.f32 %v520_v9, 0.0  ;;  %v649_v18 = vmax.f32 %v521_v10, 0.0  ;;  %v523_v19 = vadd.f32 %v1728_v1, %v388_v11  ;;  %v268_v11 = vld [vmem:[%s1723_s20 + $0x2f0] sm:$0xff] }
  0x66   : > { %v1610_v23 = vpack.c.bf16 %v644_v12, %v644_v12  ;;  %v1611_v24 = vpack.c.bf16 %v645_v13, %v645_v13  ;;  %v1612_v25 = vpack.c.bf16 %v646_v14, %v646_v14  ;;  %v650_v26 = vmax.f32 %v522_v15, 0.0  ;;  %v2181_v13 = vld [vmem:[%s2390_s1] ss:$0 sm:$0xff] }
  0x67   : > { %v1613_v30 = vpack.c.bf16 %v647_v16, %v647_v16  ;;  %v1614_v31 = vpack.c.bf16 %v648_v17, %v648_v17  ;;  %v1615_v32 = vpack.c.bf16 %v649_v18, %v649_v18  ;;  %v651_v33 = vmax.f32 %v523_v19, 0.0  ;;  %v269_v17 = vld [vmem:[%s1723_s20 + $0x2f8] sm:$0xff] }
  0x68   : > { %1285 = vst.msk [vmem:[%s1757_s26 + $0x120] sm:$0xf] %vm1212_vm0, %v1610_v23  ;;  %1286 = vst.msk [vmem:[%s1757_s26 + $0x124] sm:$0xf] %vm1212_vm0, %v1611_v24  ;;  %v1616_v35 = vpack.c.bf16 %v650_v26, %v650_v26  ;;  %v389_v36 = vmul.f32 %v1718_v0, %v254_v20  ;;  %v390_v37 = vmul.f32 %v1718_v0, %v255_v21 }
  0x69   : > { %1287 = vst.msk [vmem:[%s1757_s26 + $0x128] sm:$0xf] %vm1212_vm0, %v1612_v25  ;;  %v391_v38 = vmul.f32 %v1718_v0, %v256_v22  ;;  %1288 = vst.msk [vmem:[%s1757_s26 + $0x12c] sm:$0xf] %vm1212_vm0, %v1613_v30  ;;  %v1617_v40 = vpack.c.bf16 %v651_v33, %v651_v33  ;;  %v392_v41 = vmul.f32 %v1718_v0, %v257_v27 }
  0x6a   : > { %1289 = vst.msk [vmem:[%s1757_s26 + $0x130] sm:$0xf] %vm1212_vm0, %v1614_v31  ;;  %1290 = vst.msk [vmem:[%s1757_s26 + $0x134] sm:$0xf] %vm1212_vm0, %v1615_v32  ;;  %v393_v42 = vmul.f32 %v1718_v0, %v258_v28  ;;  %v394_v43 = vmul.f32 %v1718_v0, %v259_v29  ;;  %v524_v44 = vadd.f32 %v1728_v1, %v389_v36 }
  0x6b   : > { %1291 = vst.msk [vmem:[%s1757_s26 + $0x138] sm:$0xf] %vm1212_vm0, %v1616_v35  ;;  %v525_v45 = vadd.f32 %v1728_v1, %v390_v37  ;;  %v526_v46 = vadd.f32 %v1728_v1, %v391_v38  ;;  %v395_v47 = vmul.f32 %v1718_v0, %v260_v34  ;;  %1292 = vst.msk [vmem:[%s1757_s26 + $0x13c] sm:$0xf] %vm1212_vm0, %v1617_v40  ;;  %v270_v38 = vld [vmem:[%s1723_s20 + $0x300] sm:$0xff]  ;;  %v272_v40 = vld [vmem:[%s1723_s20 + $0x310] sm:$0xff] }
  0x6c   : > { %v527_v48 = vadd.f32 %v1728_v1, %v392_v41  ;;  %v528_v49 = vadd.f32 %v1728_v1, %v393_v42  ;;  %v529_v50 = vadd.f32 %v1728_v1, %v394_v43  ;;  %v396_v51 = vmul.f32 %v1718_v0, %v261_v39  ;;  %v262_v0 = vld [vmem:[%s1723_s20 + $0x2c0] sm:$0xff]  ;;  %v271_v39 = vld [vmem:[%s1723_s20 + $0x308] sm:$0xff] }
  0x6d   : > { %v652_v52 = vmax.f32 %v524_v44, 0.0  ;;  %v653_v53 = vmax.f32 %v525_v45, 0.0  ;;  %v654_v54 = vmax.f32 %v526_v46, 0.0  ;;  %v530_v55 = vadd.f32 %v1728_v1, %v395_v47  ;;  %v273_v45 = vld [vmem:[%s1723_s20 + $0x318] sm:$0xff]  ;;  %v274_v46 = vld [vmem:[%s1723_s20 + $0x320] sm:$0xff]  ;;  %v275_v47 = vld [vmem:[%s1723_s20 + $0x328] sm:$0xff] }
  0x6e   : > { %v655_v56 = vmax.f32 %v527_v48, 0.0  ;;  %v656_v57 = vmax.f32 %v528_v49, 0.0  ;;  %v657_v58 = vmax.f32 %v529_v50, 0.0  ;;  %v531_v60 = vadd.f32 %v2162_v59, %v396_v51 }
  0x6f   : > { %v1618_v63 = vpack.c.bf16 %v652_v52, %v652_v52  ;;  %v1619_v2 = vpack.c.bf16 %v653_v53, %v653_v53  ;;  %v1620_v1 = vpack.c.bf16 %v654_v54, %v654_v54  ;;  %v658_v3 = vmax.f32 %v530_v55, 0.0  ;;  %v276_v52 = vld [vmem:[%s1723_s20 + $0x330] sm:$0xff] }
  0x70   : > { %v1621_v7 = vpack.c.bf16 %v655_v56, %v655_v56  ;;  %v1622_v8 = vpack.c.bf16 %v656_v57, %v656_v57  ;;  %v1623_v9 = vpack.c.bf16 %v657_v58, %v657_v58  ;;  %v659_v10 = vmax.f32 %v531_v60, 0.0  ;;  %v277_v57 = vld [vmem:[%s1723_s20 + $0x338] sm:$0xff] }
  0x71   : > { %1293 = vst.msk [vmem:[%s1757_s26 + $0x140] sm:$0xf] %vm1212_vm0, %v1618_v63  ;;  %1294 = vst.msk [vmem:[%s1757_s26 + $0x144] sm:$0xf] %vm1212_vm0, %v1619_v2  ;;  %v1624_v12 = vpack.c.bf16 %v658_v3, %v658_v3  ;;  %v397_v14 = vmul.f32 %v2181_v13, %v262_v0  ;;  %v398_v15 = vmul.f32 %v2181_v13, %v263_v61 }
  0x72   : > { %1295 = vst.msk [vmem:[%s1757_s26 + $0x148] sm:$0xf] %vm1212_vm0, %v1620_v1  ;;  %v399_v16 = vmul.f32 %v2181_v13, %v264_v62  ;;  %1296 = vst.msk [vmem:[%s1757_s26 + $0x14c] sm:$0xf] %vm1212_vm0, %v1621_v7  ;;  %v1625_v18 = vpack.c.bf16 %v659_v10, %v659_v10  ;;  %v400_v19 = vmul.f32 %v2181_v13, %v265_v4 }
  0x73   : > { %1297 = vst.msk [vmem:[%s1757_s26 + $0x150] sm:$0xf] %vm1212_vm0, %v1622_v8  ;;  %1298 = vst.msk [vmem:[%s1757_s26 + $0x154] sm:$0xf] %vm1212_vm0, %v1623_v9  ;;  %v401_v20 = vmul.f32 %v2181_v13, %v266_v5  ;;  %v402_v21 = vmul.f32 %v2181_v13, %v267_v6  ;;  %v532_v22 = vadd.f32 %v2162_v59, %v397_v14 }
  0x74   : > { %1299 = vst.msk [vmem:[%s1757_s26 + $0x158] sm:$0xf] %vm1212_vm0, %v1624_v12  ;;  %v533_v23 = vadd.f32 %v2162_v59, %v398_v15  ;;  %v534_v24 = vadd.f32 %v2162_v59, %v399_v16  ;;  %v403_v25 = vmul.f32 %v2181_v13, %v268_v11  ;;  %1300 = vst.msk [vmem:[%s1757_s26 + $0x15c] sm:$0xf] %vm1212_vm0, %v1625_v18  ;;  %v278_v16 = vld [vmem:[%s1723_s20 + $0x340] sm:$0xff]  ;;  %v280_v18 = vld [vmem:[%s1723_s20 + $0x350] sm:$0xff] }
  0x75   : > { %v535_v26 = vadd.f32 %v2162_v59, %v400_v19  ;;  %v536_v27 = vadd.f32 %v2162_v59, %v401_v20  ;;  %v537_v28 = vadd.f32 %v2162_v59, %v402_v21  ;;  %v404_v29 = vmul.f32 %v2181_v13, %v269_v17  ;;  %v279_v17 = vld [vmem:[%s1723_s20 + $0x348] sm:$0xff] }
  0x76   : > { %v660_v30 = vmax.f32 %v532_v22, 0.0  ;;  %v661_v31 = vmax.f32 %v533_v23, 0.0  ;;  %v662_v32 = vmax.f32 %v534_v24, 0.0  ;;  %v538_v33 = vadd.f32 %v2162_v59, %v403_v25  ;;  %v281_v23 = vld [vmem:[%s1723_s20 + $0x358] sm:$0xff]  ;;  %v282_v24 = vld [vmem:[%s1723_s20 + $0x360] sm:$0xff]  ;;  %v283_v25 = vld [vmem:[%s1723_s20 + $0x368] sm:$0xff] }
  0x77   : > { %v663_v34 = vmax.f32 %v535_v26, 0.0  ;;  %v664_v35 = vmax.f32 %v536_v27, 0.0  ;;  %v665_v36 = vmax.f32 %v537_v28, 0.0  ;;  %v539_v37 = vadd.f32 %v2162_v59, %v404_v29 }
  0x78   : > { %v1626_v41 = vpack.c.bf16 %v660_v30, %v660_v30  ;;  %v1627_v42 = vpack.c.bf16 %v661_v31, %v661_v31  ;;  %v1628_v43 = vpack.c.bf16 %v662_v32, %v662_v32  ;;  %v666_v44 = vmax.f32 %v538_v33, 0.0  ;;  %v284_v30 = vld [vmem:[%s1723_s20 + $0x370] sm:$0xff] }
  0x79   : > { %v1629_v48 = vpack.c.bf16 %v663_v34, %v663_v34  ;;  %v1630_v49 = vpack.c.bf16 %v664_v35, %v664_v35  ;;  %v1631_v50 = vpack.c.bf16 %v665_v36, %v665_v36  ;;  %v667_v51 = vmax.f32 %v539_v37, 0.0  ;;  %v285_v35 = vld [vmem:[%s1723_s20 + $0x378] sm:$0xff] }
  0x7a   : > { %1301 = vst.msk [vmem:[%s1757_s26 + $0x160] sm:$0xf] %vm1212_vm0, %v1626_v41  ;;  %1302 = vst.msk [vmem:[%s1757_s26 + $0x164] sm:$0xf] %vm1212_vm0, %v1627_v42  ;;  %v1632_v53 = vpack.c.bf16 %v666_v44, %v666_v44  ;;  %v405_v54 = vmul.f32 %v2181_v13, %v270_v38  ;;  %v406_v55 = vmul.f32 %v2181_v13, %v271_v39 }
  0x7b   : > { %1303 = vst.msk [vmem:[%s1757_s26 + $0x168] sm:$0xf] %vm1212_vm0, %v1628_v43  ;;  %v407_v56 = vmul.f32 %v2181_v13, %v272_v40  ;;  %1304 = vst.msk [vmem:[%s1757_s26 + $0x16c] sm:$0xf] %vm1212_vm0, %v1629_v48  ;;  %v1633_v58 = vpack.c.bf16 %v667_v51, %v667_v51  ;;  %v408_v60 = vmul.f32 %v2181_v13, %v273_v45 }
  0x7c   : > { %1305 = vst.msk [vmem:[%s1757_s26 + $0x170] sm:$0xf] %vm1212_vm0, %v1630_v49  ;;  %1306 = vst.msk [vmem:[%s1757_s26 + $0x174] sm:$0xf] %vm1212_vm0, %v1631_v50  ;;  %v409_v0 = vmul.f32 %v2181_v13, %v274_v46  ;;  %v410_v61 = vmul.f32 %v2181_v13, %v275_v47  ;;  %v540_v62 = vadd.f32 %v2162_v59, %v405_v54 }
  0x7d   : > { %1307 = vst.msk [vmem:[%s1757_s26 + $0x178] sm:$0xf] %vm1212_vm0, %v1632_v53  ;;  %v541_v63 = vadd.f32 %v2162_v59, %v406_v55  ;;  %v542_v2 = vadd.f32 %v2162_v59, %v407_v56  ;;  %v411_v1 = vmul.f32 %v2181_v13, %v276_v52  ;;  %1308 = vst.msk [vmem:[%s1757_s26 + $0x17c] sm:$0xf] %vm1212_vm0, %v1633_v58  ;;  %v286_v56 = vld [vmem:[%s1723_s20 + $0x380] sm:$0xff]  ;;  %v288_v58 = vld [vmem:[%s1723_s20 + $0x390] sm:$0xff] }
  0x7e   : > { %v543_v3 = vadd.f32 %v2162_v59, %v408_v60  ;;  %v544_v4 = vadd.f32 %v2162_v59, %v409_v0  ;;  %v545_v5 = vadd.f32 %v2162_v59, %v410_v61  ;;  %v412_v6 = vmul.f32 %v2181_v13, %v277_v57  ;;  %v287_v57 = vld [vmem:[%s1723_s20 + $0x388] sm:$0xff] }
  0x7f   : > { %v668_v7 = vmax.f32 %v540_v62, 0.0  ;;  %v669_v8 = vmax.f32 %v541_v63, 0.0  ;;  %v670_v9 = vmax.f32 %v542_v2, 0.0  ;;  %v546_v10 = vadd.f32 %v2162_v59, %v411_v1  ;;  %v289_v63 = vld [vmem:[%s1723_s20 + $0x398] sm:$0xff]  ;;  %v290_v2 = vld [vmem:[%s1723_s20 + $0x3a0] sm:$0xff]  ;;  %v291_v1 = vld [vmem:[%s1723_s20 + $0x3a8] sm:$0xff] }
  0x80   : > { %v671_v11 = vmax.f32 %v543_v3, 0.0  ;;  %v672_v12 = vmax.f32 %v544_v4, 0.0  ;;  %v673_v14 = vmax.f32 %v545_v5, 0.0  ;;  %v547_v15 = vadd.f32 %v2162_v59, %v412_v6 }
  0x81   : > { %v1634_v19 = vpack.c.bf16 %v668_v7, %v668_v7  ;;  %v1635_v20 = vpack.c.bf16 %v669_v8, %v669_v8  ;;  %v1636_v21 = vpack.c.bf16 %v670_v9, %v670_v9  ;;  %v674_v22 = vmax.f32 %v546_v10, 0.0  ;;  %v292_v7 = vld [vmem:[%s1723_s20 + $0x3b0] sm:$0xff] }
  0x82   : > { %v1637_v26 = vpack.c.bf16 %v671_v11, %v671_v11  ;;  %v1638_v27 = vpack.c.bf16 %v672_v12, %v672_v12  ;;  %v1639_v28 = vpack.c.bf16 %v673_v14, %v673_v14  ;;  %v675_v29 = vmax.f32 %v547_v15, 0.0  ;;  %v293_v12 = vld [vmem:[%s1723_s20 + $0x3b8] sm:$0xff] }
  0x83   : > { %1309 = vst.msk [vmem:[%s1757_s26 + $0x180] sm:$0xf] %vm1212_vm0, %v1634_v19  ;;  %1310 = vst.msk [vmem:[%s1757_s26 + $0x184] sm:$0xf] %vm1212_vm0, %v1635_v20  ;;  %v1640_v31 = vpack.c.bf16 %v674_v22, %v674_v22  ;;  %v413_v32 = vmul.f32 %v2181_v13, %v278_v16  ;;  %v414_v33 = vmul.f32 %v2181_v13, %v279_v17 }
  0x84   : > { %1311 = vst.msk [vmem:[%s1757_s26 + $0x188] sm:$0xf] %vm1212_vm0, %v1636_v21  ;;  %v415_v34 = vmul.f32 %v2181_v13, %v280_v18  ;;  %1312 = vst.msk [vmem:[%s1757_s26 + $0x18c] sm:$0xf] %vm1212_vm0, %v1637_v26  ;;  %v1641_v36 = vpack.c.bf16 %v675_v29, %v675_v29  ;;  %v416_v37 = vmul.f32 %v2181_v13, %v281_v23 }
  0x85   : > { %1313 = vst.msk [vmem:[%s1757_s26 + $0x190] sm:$0xf] %vm1212_vm0, %v1638_v27  ;;  %1314 = vst.msk [vmem:[%s1757_s26 + $0x194] sm:$0xf] %vm1212_vm0, %v1639_v28  ;;  %v417_v38 = vmul.f32 %v2181_v13, %v282_v24  ;;  %v418_v39 = vmul.f32 %v2181_v13, %v283_v25  ;;  %v548_v40 = vadd.f32 %v2162_v59, %v413_v32 }
  0x86   : > { %1315 = vst.msk [vmem:[%s1757_s26 + $0x198] sm:$0xf] %vm1212_vm0, %v1640_v31  ;;  %v549_v41 = vadd.f32 %v2162_v59, %v414_v33  ;;  %v550_v42 = vadd.f32 %v2162_v59, %v415_v34  ;;  %v419_v43 = vmul.f32 %v2181_v13, %v284_v30  ;;  %1316 = vst.msk [vmem:[%s1757_s26 + $0x19c] sm:$0xf] %vm1212_vm0, %v1641_v36  ;;  %v294_v34 = vld [vmem:[%s1723_s20 + $0x3c0] sm:$0xff]  ;;  %v296_v36 = vld [vmem:[%s1723_s20 + $0x3d0] sm:$0xff] }
  0x87   : > { %v551_v44 = vadd.f32 %v2162_v59, %v416_v37  ;;  %v552_v45 = vadd.f32 %v2162_v59, %v417_v38  ;;  %v553_v46 = vadd.f32 %v2162_v59, %v418_v39  ;;  %v420_v47 = vmul.f32 %v2181_v13, %v285_v35  ;;  %v295_v35 = vld [vmem:[%s1723_s20 + $0x3c8] sm:$0xff] }
  0x88   : > { %v676_v48 = vmax.f32 %v548_v40, 0.0  ;;  %v677_v49 = vmax.f32 %v549_v41, 0.0  ;;  %v678_v50 = vmax.f32 %v550_v42, 0.0  ;;  %v554_v51 = vadd.f32 %v2162_v59, %v419_v43  ;;  %v297_v41 = vld [vmem:[%s1723_s20 + $0x3d8] sm:$0xff]  ;;  %v298_v42 = vld [vmem:[%s1723_s20 + $0x3e0] sm:$0xff]  ;;  %v299_v43 = vld [vmem:[%s1723_s20 + $0x3e8] sm:$0xff] }
  0x89   : > { %v679_v52 = vmax.f32 %v551_v44, 0.0  ;;  %v680_v53 = vmax.f32 %v552_v45, 0.0  ;;  %v681_v54 = vmax.f32 %v553_v46, 0.0  ;;  %v555_v55 = vadd.f32 %v2162_v59, %v420_v47 }
  0x8a   : > { %v1642_v60 = vpack.c.bf16 %v676_v48, %v676_v48  ;;  %v1643_v0 = vpack.c.bf16 %v677_v49, %v677_v49  ;;  %v1644_v61 = vpack.c.bf16 %v678_v50, %v678_v50  ;;  %v682_v62 = vmax.f32 %v554_v51, 0.0  ;;  %v300_v48 = vld [vmem:[%s1723_s20 + $0x3f0] sm:$0xff] }
  0x8b   : > { %v1645_v3 = vpack.c.bf16 %v679_v52, %v679_v52  ;;  %v1646_v4 = vpack.c.bf16 %v680_v53, %v680_v53  ;;  %v1647_v5 = vpack.c.bf16 %v681_v54, %v681_v54  ;;  %v683_v6 = vmax.f32 %v555_v55, 0.0  ;;  %v301_v53 = vld [vmem:[%s1723_s20 + $0x3f8] sm:$0xff] }
  0x8c   : > { %1317 = vst.msk [vmem:[%s1757_s26 + $0x1a0] sm:$0xf] %vm1212_vm0, %v1642_v60  ;;  %1318 = vst.msk [vmem:[%s1757_s26 + $0x1a4] sm:$0xf] %vm1212_vm0, %v1643_v0  ;;  %v1648_v8 = vpack.c.bf16 %v682_v62, %v682_v62  ;;  %v421_v9 = vmul.f32 %v2181_v13, %v286_v56  ;;  %v422_v10 = vmul.f32 %v2181_v13, %v287_v57 }
  0x8d   : > { %1319 = vst.msk [vmem:[%s1757_s26 + $0x1a8] sm:$0xf] %vm1212_vm0, %v1644_v61  ;;  %v423_v11 = vmul.f32 %v2181_v13, %v288_v58  ;;  %1320 = vst.msk [vmem:[%s1757_s26 + $0x1ac] sm:$0xf] %vm1212_vm0, %v1645_v3  ;;  %v1649_v14 = vpack.c.bf16 %v683_v6, %v683_v6  ;;  %v424_v15 = vmul.f32 %v2181_v13, %v289_v63 }
  0x8e   : > { %1321 = vst.msk [vmem:[%s1757_s26 + $0x1b0] sm:$0xf] %vm1212_vm0, %v1646_v4  ;;  %1322 = vst.msk [vmem:[%s1757_s26 + $0x1b4] sm:$0xf] %vm1212_vm0, %v1647_v5  ;;  %v425_v16 = vmul.f32 %v2181_v13, %v290_v2  ;;  %v426_v17 = vmul.f32 %v2181_v13, %v291_v1  ;;  %v556_v18 = vadd.f32 %v2162_v59, %v421_v9 }
  0x8f   : > { %1323 = vst.msk [vmem:[%s1757_s26 + $0x1b8] sm:$0xf] %vm1212_vm0, %v1648_v8  ;;  %v557_v19 = vadd.f32 %v2162_v59, %v422_v10  ;;  %v558_v20 = vadd.f32 %v2162_v59, %v423_v11  ;;  %v427_v21 = vmul.f32 %v2181_v13, %v292_v7  ;;  %1324 = vst.msk [vmem:[%s1757_s26 + $0x1bc] sm:$0xf] %vm1212_vm0, %v1649_v14 }
  0x90   : > { %v559_v22 = vadd.f32 %v2162_v59, %v424_v15  ;;  %v560_v23 = vadd.f32 %v2162_v59, %v425_v16  ;;  %v561_v24 = vadd.f32 %v2162_v59, %v426_v17  ;;  %v428_v25 = vmul.f32 %v2181_v13, %v293_v12 }
  0x91   : > { %v684_v26 = vmax.f32 %v556_v18, 0.0  ;;  %v685_v27 = vmax.f32 %v557_v19, 0.0  ;;  %v686_v28 = vmax.f32 %v558_v20, 0.0  ;;  %v562_v29 = vadd.f32 %v2162_v59, %v427_v21 }
  0x92   : > { %v687_v30 = vmax.f32 %v559_v22, 0.0  ;;  %v688_v31 = vmax.f32 %v560_v23, 0.0  ;;  %v689_v32 = vmax.f32 %v561_v24, 0.0  ;;  %v563_v33 = vadd.f32 %v2162_v59, %v428_v25 }
  0x93   : > { %v1650_v37 = vpack.c.bf16 %v684_v26, %v684_v26  ;;  %v1651_v38 = vpack.c.bf16 %v685_v27, %v685_v27  ;;  %v1652_v39 = vpack.c.bf16 %v686_v28, %v686_v28  ;;  %v690_v40 = vmax.f32 %v562_v29, 0.0 }
  0x94   : > { %v1653_v44 = vpack.c.bf16 %v687_v30, %v687_v30  ;;  %v1654_v45 = vpack.c.bf16 %v688_v31, %v688_v31  ;;  %v1655_v46 = vpack.c.bf16 %v689_v32, %v689_v32  ;;  %v691_v47 = vmax.f32 %v563_v33, 0.0 }
  0x95   : > { %1325 = vst.msk [vmem:[%s1757_s26 + $0x1c0] sm:$0xf] %vm1212_vm0, %v1650_v37  ;;  %1326 = vst.msk [vmem:[%s1757_s26 + $0x1c4] sm:$0xf] %vm1212_vm0, %v1651_v38  ;;  %v1656_v49 = vpack.c.bf16 %v690_v40, %v690_v40  ;;  %v429_v50 = vmul.f32 %v2181_v13, %v294_v34  ;;  %v430_v51 = vmul.f32 %v2181_v13, %v295_v35 }
  0x96   : > { %1327 = vst.msk [vmem:[%s1757_s26 + $0x1c8] sm:$0xf] %vm1212_vm0, %v1652_v39  ;;  %v431_v52 = vmul.f32 %v2181_v13, %v296_v36  ;;  %1328 = vst.msk [vmem:[%s1757_s26 + $0x1cc] sm:$0xf] %vm1212_vm0, %v1653_v44  ;;  %v1657_v54 = vpack.c.bf16 %v691_v47, %v691_v47  ;;  %v432_v55 = vmul.f32 %v2181_v13, %v297_v41 }
  0x97   : > { %1329 = vst.msk [vmem:[%s1757_s26 + $0x1d0] sm:$0xf] %vm1212_vm0, %v1654_v45  ;;  %1330 = vst.msk [vmem:[%s1757_s26 + $0x1d4] sm:$0xf] %vm1212_vm0, %v1655_v46  ;;  %v433_v56 = vmul.f32 %v2181_v13, %v298_v42  ;;  %v434_v57 = vmul.f32 %v2181_v13, %v299_v43  ;;  %v564_v58 = vadd.f32 %v2162_v59, %v429_v50 }
  0x98   : > { %1331 = vst.msk [vmem:[%s1757_s26 + $0x1d8] sm:$0xf] %vm1212_vm0, %v1656_v49  ;;  %v565_v60 = vadd.f32 %v2162_v59, %v430_v51  ;;  %v566_v0 = vadd.f32 %v2162_v59, %v431_v52  ;;  %v435_v61 = vmul.f32 %v2181_v13, %v300_v48  ;;  %1332 = vst.msk [vmem:[%s1757_s26 + $0x1dc] sm:$0xf] %vm1212_vm0, %v1657_v54 }
  0x99   : > { %v567_v62 = vadd.f32 %v2162_v59, %v432_v55  ;;  %v568_v63 = vadd.f32 %v2162_v59, %v433_v56  ;;  %v569_v2 = vadd.f32 %v2162_v59, %v434_v57  ;;  %v436_v1 = vmul.f32 %v2181_v13, %v301_v53 }
  0x9a   : > { %v692_v3 = vmax.f32 %v564_v58, 0.0  ;;  %v693_v4 = vmax.f32 %v565_v60, 0.0  ;;  %v694_v5 = vmax.f32 %v566_v0, 0.0  ;;  %v570_v6 = vadd.f32 %v2162_v59, %v435_v61 }
  0x9b   : > { %v695_v7 = vmax.f32 %v567_v62, 0.0  ;;  %v696_v8 = vmax.f32 %v568_v63, 0.0  ;;  %v697_v9 = vmax.f32 %v569_v2, 0.0  ;;  %v571_v10 = vadd.f32 %v2162_v59, %v436_v1 }
  0x9c   : > { %v1658_v11 = vpack.c.bf16 %v692_v3, %v692_v3  ;;  %v1659_v12 = vpack.c.bf16 %v693_v4, %v693_v4  ;;  %v1660_v13 = vpack.c.bf16 %v694_v5, %v694_v5  ;;  %v698_v14 = vmax.f32 %v570_v6, 0.0 }
  0x9d   : > { %v1661_v15 = vpack.c.bf16 %v695_v7, %v695_v7  ;;  %v1662_v16 = vpack.c.bf16 %v696_v8, %v696_v8  ;;  %v1663_v17 = vpack.c.bf16 %v697_v9, %v697_v9  ;;  %v699_v18 = vmax.f32 %v571_v10, 0.0 }
  0x9e   : > { %1333 = vst.msk [vmem:[%s1757_s26 + $0x1e0] sm:$0xf] %vm1212_vm0, %v1658_v11  ;;  %1334 = vst.msk [vmem:[%s1757_s26 + $0x1e4] sm:$0xf] %vm1212_vm0, %v1659_v12  ;;  %v1664_v19 = vpack.c.bf16 %v698_v14, %v698_v14 }
  0x9f   : > { %1335 = vst.msk [vmem:[%s1757_s26 + $0x1e8] sm:$0xf] %vm1212_vm0, %v1660_v13  ;;  %1336 = vst.msk [vmem:[%s1757_s26 + $0x1ec] sm:$0xf] %vm1212_vm0, %v1661_v15  ;;  %v1665_v59 = vpack.c.bf16 %v699_v18, %v699_v18 }
  0xa0   : > { %1337 = vst.msk [vmem:[%s1757_s26 + $0x1f0] sm:$0xf] %vm1212_vm0, %v1662_v16  ;;  %1338 = vst.msk [vmem:[%s1757_s26 + $0x1f4] sm:$0xf] %vm1212_vm0, %v1663_v17 }
  0xa1   : > { %1339 = vst.msk [vmem:[%s1757_s26 + $0x1f8] sm:$0xf] %vm1212_vm0, %v1664_v19  ;;  %1340 = vst.msk [vmem:[%s1757_s26 + $0x1fc] sm:$0xf] %vm1212_vm0, %v1665_v59 }
  0xa2 PF: > { %s13_s12 = sadd.s32 1, %s1682_s12  }
  0xa3   : > { %p10_p4 = scmp.ge.s32.totalorder %s13_s12, 10  }
  0xa5   :  { %12 = sbr.rel (!%p10_p4) target bundleno = 1 (0x1), region = 62 }

// kernel: decoder_block_forward.8
= control target key start
LH: loop header
LB: loop body
LE: loop exit
PB: predicated region body
PF: predicated region fallthrough
CT: control target
= control target key end

     0   :  { %s2881_s15 = smov 0   ;;  %s2883_s16 = smov 0   ;;  %s3929_s0 = inlined_call_operand.vmem [shape: bf16[4,2048,128], index: 0, kind: input, shape index: {}]   ;;  %s3930_s1 = inlined_call_operand.vmem [shape: bf16[4,128,32], index: 1, kind: input, shape index: {}]   ;;  %s3931_s2 = inlined_call_operand.vmem [shape: f32[4,2048,32], index: 2, kind: output, shape index: {0}]   ;;  %s3932_s3 = inlined_call_operand.vmem [shape: f32[4,2,1,32], index: 3, kind: output, shape index: {1}]   ;;  %s3933_s4 = inlined_call_operand.vmem [shape: f32[4,2,1,32], index: 4, kind: output, shape index: {2}]  }
   0x1   :  { %s2885_s17 = smov 0   ;;  %s2887_s18 = smov 0  }
   0x2   :  { %s2889_s19 = smov 0  }
   0x3 LB: > { %s24_s20 = sadd.s32 1, %s2846_s17  ;;  %s27_s21 = sadd.s32 1, %s2850_s18  ;;  %s2854_s19 = sphi %s2889_s19, %s15_s19   ;;  %s2850_s18 = sphi %s2887_s18, %s3989_s18   ;;  %s2846_s17 = sphi %s2885_s17, %s3988_s17   ;;  %s2842_s16 = sphi %s2883_s16, %s3987_s16   ;;  %s2838_s15 = sphi %s2881_s15, %s3986_s15  }
   0x4   : > { %p25_p0 = scmp.ge.s32.totalorder %s24_s20, 2  ;;  %p2386_p1 = scmp.ge.s32.totalorder %s2854_s19, 1 }
   0x5   : > { %p202_p2 = scmp.lt.s32.totalorder %s2854_s19, 9 }
   0x6   : > { %s3991_s20 = smov (%p25_p0, %s24_s20), 0  ;;  %s3993_s21 = smov (!%p25_p0, %s27_s21), %s2850_s18 }
   0x7   : > { %p203_p3 = pnand %p2386_p1, %p202_p2  ;;  %p29_p4 = scmp.ge.s32.totalorder %s3993_s21, 4 }
   0x9   : > { %s3995_s21 = smov (%p29_p4, %s3993_s21), 0  ;;  %206 = sbr.rel (%p203_p3) target bundleno = 522 (0x20a), region = 28 }
   0xe   : > { %s2387_s22 = sshll.u32 %s2838_s15, 7  ;;  %p256_p5 = scmp.lt.s32.totalorder %s2842_s16, 3  ;;  %vm1416_vm0 = vcmask 261120   ;;  %vm1806_vm1 = vcmask 253952  }
   0xf   : > { %p258_p6 = scmp.lt.s32.totalorder %s2387_s22, 255  ;;  %p282_p7 = scmp.lt.s32.totalorder %s2838_s15, 1 }
  0x10   : > { %s3997_s16 = smov (!%p256_p5, %s2842_s16), 3 }
  0x11   : > { %s3999_s22 = smov (!%p258_p6, %s2387_s22), 255  ;;  %s2388_s23 = sshll.u32 %s3997_s16, 8 }
  0x12   : > { %s2471_s24 = sshll.u32 %s3997_s16, 6  ;;  %s2923_s28 = sadd.s32 %s2388_s23, %s3999_s22 }
  0x13   : > { %s2921_s27 = scalar_lea.vmem %s3930_s1, %s2471_s24  ;;  %s2389_s29 = sshll.u32 %s2923_s28, 2 }
  0x14   : > { %v2744_v0 = vld [vmem:[%s2921_s27 + $0x38] sm:$0xff]   ;;  %v2745_v1 = vld [vmem:[%s2921_s27 + $0x30] sm:$0xff]   ;;  %v2746_v2 = vld [vmem:[%s2921_s27 + $0x28] sm:$0xff]   ;;  %s2932_s6 = scalar_lea.vmem %s3929_s0, %s2389_s29  ;;  %s2394_s7 = sshll.u32 %s2923_s28, 3 }
  0x15   : > { %2544 = vmatprep.subr.bf16.mxu0 %v2744_v0  ;;  %2688 = vmatprep.subr.bf16.mxu1 %v2744_v0  ;;  %v2747_v3 = vld [vmem:[%s2921_s27 + $0x20] sm:$0xff]   ;;  %v2748_v5 = vld [vmem:[%s2921_s27 + $0x18] sm:$0xff]   ;;  %v2749_v6 = vld [vmem:[%s2921_s27 + $0x10] sm:$0xff]   ;;  %s3007_s10 = scalar_lea.vmem %s3931_s2, %s2394_s7  ;;  %s4001_s15 = smov (!%p282_p7, %s2838_s15), 1 }
  0x16   : > { %2545 = vmatpush3.bf16.msra.mxu0 %v2744_v0  ;;  %2696 = vmatpush3.bf16.msra.mxu1 %v2744_v0  ;;  %v2752_v4 = vld [vmem:[%s2932_s6] sm:$0xff]   ;;  %v2750_v7 = vld [vmem:[%s2921_s27 + $0x8] sm:$0xff]   ;;  %v2754_v10 = vld [vmem:[%s2932_s6 + $0x10] sm:$0xff]   ;;  %s2395_s11 = sshll.u32 %s3997_s16, 1 }
  0x17   : > { %2546 = vmatprep.subr.bf16.mxu0 %v2745_v1  ;;  %2689 = vmatprep.subr.bf16.mxu1 %v2745_v1  ;;  %v2751_v8 = vld [vmem:[%s2921_s27] sm:$0xff]   ;;  %v2753_v9 = vld [vmem:[%s2932_s6 + $0x8] sm:$0xff]   ;;  %v2755_v11 = vld [vmem:[%s2932_s6 + $0x18] sm:$0xff]   ;;  %s285_s12 = sadd.s32 %s2395_s11, %s4001_s15 }
  0x18   : > { %2560 = vmatprep.mubr.bf16.mxu0 %v2752_v4  ;;  %v2756_v12 = vld [vmem:[%s2932_s6 + $0x20] sm:$0xff]   ;;  %v2785_v14 = vld [vmem:[%s2932_s6 + $0x108] sm:$0xff]   ;;  %v2786_v15 = vld [vmem:[%s2932_s6 + $0x110] sm:$0xff]   ;;  %s286_s22 = scalar_lea.vmem %s3932_s3, %s285_s12  ;;  %s293_s25 = scalar_lea.vmem %s3933_s4, %s285_s12 }
  0x19   : > { %v2784_v13 = vld [vmem:[%s2932_s6 + $0x100] sm:$0xff]   ;;  %v2757_v16 = vld [vmem:[%s2932_s6 + $0x28] sm:$0xff]   ;;  %v2758_v17 = vld [vmem:[%s2932_s6 + $0x30] sm:$0xff]  }
  0x1a   : > { %2547 = vmatpush3.bf16.msra.mxu0 %v2745_v1  ;;  %2697 = vmatpush3.bf16.msra.mxu1 %v2745_v1  ;;  %v2787_v18 = vld [vmem:[%s2932_s6 + $0x118] sm:$0xff]   ;;  %v2788_v19 = vld [vmem:[%s2932_s6 + $0x120] sm:$0xff]   ;;  %v2789_v22 = vld [vmem:[%s2932_s6 + $0x128] sm:$0xff]  }
  0x1b   : > { %2548 = vmatprep.subr.bf16.mxu0 %v2746_v2  ;;  %2690 = vmatprep.subr.bf16.mxu1 %v2746_v2  ;;  %v2759_v20 = vld [vmem:[%s2932_s6 + $0x38] sm:$0xff]   ;;  %v2760_v21 = vld [vmem:[%s2932_s6 + $0x40] sm:$0xff]   ;;  %v2790_v23 = vld [vmem:[%s2932_s6 + $0x130] sm:$0xff]  }
  0x1c   : > { %2624 = vmatprep.mubr.bf16.mxu1 %v2784_v13  ;;  %v2761_v24 = vld [vmem:[%s2932_s6 + $0x48] sm:$0xff]   ;;  %v2762_v25 = vld [vmem:[%s2932_s6 + $0x50] sm:$0xff]   ;;  %v2791_v26 = vld [vmem:[%s2932_s6 + $0x138] sm:$0xff]  }
  0x1d   : > { %v2792_v27 = vld [vmem:[%s2932_s6 + $0x140] sm:$0xff]   ;;  %v2763_v28 = vld [vmem:[%s2932_s6 + $0x58] sm:$0xff]   ;;  %v2793_v30 = vld [vmem:[%s2932_s6 + $0x148] sm:$0xff]  }
  0x1e   : > { %2549 = vmatpush3.bf16.msra.mxu0 %v2746_v2  ;;  %2698 = vmatpush3.bf16.msra.mxu1 %v2746_v2  ;;  %v2764_v29 = vld [vmem:[%s2932_s6 + $0x60] sm:$0xff]   ;;  %v2794_v31 = vld [vmem:[%s2932_s6 + $0x150] sm:$0xff]   ;;  %v2765_v32 = vld [vmem:[%s2932_s6 + $0x68] sm:$0xff]  }
  0x1f   : > { %2550 = vmatprep.subr.bf16.mxu0 %v2747_v3  ;;  %2691 = vmatprep.subr.bf16.mxu1 %v2747_v3  ;;  %v2766_v33 = vld [vmem:[%s2932_s6 + $0x70] sm:$0xff]   ;;  %v2795_v34 = vld [vmem:[%s2932_s6 + $0x158] sm:$0xff]   ;;  %v2796_v35 = vld [vmem:[%s2932_s6 + $0x160] sm:$0xff]  }
  0x20   : > { %v2767_v36 = vld [vmem:[%s2932_s6 + $0x78] sm:$0xff]   ;;  %v2768_v37 = vld [vmem:[%s2932_s6 + $0x80] sm:$0xff]   ;;  %v2797_v38 = vld [vmem:[%s2932_s6 + $0x168] sm:$0xff]  }
  0x21   : > { %v2798_v39 = vld [vmem:[%s2932_s6 + $0x170] sm:$0xff]   ;;  %v2769_v40 = vld [vmem:[%s2932_s6 + $0x88] sm:$0xff]   ;;  %v2799_v42 = vld [vmem:[%s2932_s6 + $0x178] sm:$0xff]  }
  0x22   : > { %2551 = vmatpush3.bf16.msra.mxu0 %v2747_v3  ;;  %2699 = vmatpush3.bf16.msra.mxu1 %v2747_v3  ;;  %v2770_v41 = vld [vmem:[%s2932_s6 + $0x90] sm:$0xff]   ;;  %v2800_v43 = vld [vmem:[%s2932_s6 + $0x180] sm:$0xff]   ;;  %v2771_v44 = vld [vmem:[%s2932_s6 + $0x98] sm:$0xff]  }
  0x23   : > { %2552 = vmatprep.subr.bf16.mxu0 %v2748_v5  ;;  %2692 = vmatprep.subr.bf16.mxu1 %v2748_v5  ;;  %v2772_v45 = vld [vmem:[%s2932_s6 + $0xa0] sm:$0xff]   ;;  %v2801_v46 = vld [vmem:[%s2932_s6 + $0x188] sm:$0xff]   ;;  %v2802_v47 = vld [vmem:[%s2932_s6 + $0x190] sm:$0xff]  }
  0x24   : > { %v2773_v48 = vld [vmem:[%s2932_s6 + $0xa8] sm:$0xff]   ;;  %v2774_v49 = vld [vmem:[%s2932_s6 + $0xb0] sm:$0xff]   ;;  %v2803_v50 = vld [vmem:[%s2932_s6 + $0x198] sm:$0xff]  }
  0x25   : > { %v2804_v51 = vld [vmem:[%s2932_s6 + $0x1a0] sm:$0xff]   ;;  %v2775_v52 = vld [vmem:[%s2932_s6 + $0xb8] sm:$0xff]   ;;  %v2805_v54 = vld [vmem:[%s2932_s6 + $0x1a8] sm:$0xff]  }
  0x26   : > { %2553 = vmatpush3.bf16.msra.mxu0 %v2748_v5  ;;  %2700 = vmatpush3.bf16.msra.mxu1 %v2748_v5  ;;  %v2776_v53 = vld [vmem:[%s2932_s6 + $0xc0] sm:$0xff]   ;;  %v2806_v55 = vld [vmem:[%s2932_s6 + $0x1b0] sm:$0xff]   ;;  %v2777_v56 = vld [vmem:[%s2932_s6 + $0xc8] sm:$0xff]  }
  0x27   : > { %2554 = vmatprep.subr.bf16.mxu0 %v2749_v6  ;;  %2693 = vmatprep.subr.bf16.mxu1 %v2749_v6  ;;  %v2778_v57 = vld [vmem:[%s2932_s6 + $0xd0] sm:$0xff]   ;;  %v2807_v58 = vld [vmem:[%s2932_s6 + $0x1b8] sm:$0xff]   ;;  %v2808_v59 = vld [vmem:[%s2932_s6 + $0x1c0] sm:$0xff]  }
  0x28   : > { %v2779_v60 = vld [vmem:[%s2932_s6 + $0xd8] sm:$0xff]   ;;  %v2780_v61 = vld [vmem:[%s2932_s6 + $0xe0] sm:$0xff]   ;;  %v2809_v62 = vld [vmem:[%s2932_s6 + $0x1c8] sm:$0xff]  }
  0x29   : > { %v2810_v63 = vld [vmem:[%s2932_s6 + $0x1d0] sm:$0xff]   ;;  %v2781_v0 = vld [vmem:[%s2932_s6 + $0xe8] sm:$0xff]   ;;  %v2811_v2 = vld [vmem:[%s2932_s6 + $0x1d8] sm:$0xff]  }
  0x2a   : > { %2555 = vmatpush3.bf16.msra.mxu0 %v2749_v6  ;;  %2701 = vmatpush3.bf16.msra.mxu1 %v2749_v6  ;;  %v2782_v1 = vld [vmem:[%s2932_s6 + $0xf0] sm:$0xff]   ;;  %v2812_v3 = vld [vmem:[%s2932_s6 + $0x1e0] sm:$0xff]   ;;  %v2783_v4 = vld [vmem:[%s2932_s6 + $0xf8] sm:$0xff]  }
  0x2b   : > { %2556 = vmatprep.subr.bf16.mxu0 %v2750_v7  ;;  %2694 = vmatprep.subr.bf16.mxu1 %v2750_v7  ;;  %v2813_v5 = vld [vmem:[%s2932_s6 + $0x1e8] sm:$0xff]   ;;  %v2814_v6 = vld [vmem:[%s2932_s6 + $0x1f0] sm:$0xff]  }
  0x2e   : > { %2557 = vmatpush3.bf16.msra.mxu0 %v2750_v7  ;;  %2702 = vmatpush3.bf16.msra.mxu1 %v2750_v7  ;;  %v2815_v7 = vld [vmem:[%s2932_s6 + $0x1f8] sm:$0xff]  }
  0x2f   : > { %2558 = vmatprep.subr.bf16.mxu0 %v2751_v8  ;;  %2695 = vmatprep.subr.bf16.mxu1 %v2751_v8 }
  0x32   : > { %2559 = vmatpush3.bf16.msra.mxu0 %v2751_v8  ;;  %2703 = vmatpush3.bf16.msra.mxu1 %v2751_v8 }
  0x35   : > { %2561 = vmatmul.mubr.bf16.vlgmr.msra.gmra.mxu0 %v2753_v9  ;;  %2625 = vmatmul.mubr.bf16.vlgmr.msra.gmra.mxu1 %v2785_v14 }
  0x36   : > { %2564 = vmatprep.mubr.bf16.mxu0 %v2754_v10  ;;  %2628 = vmatprep.mubr.bf16.mxu1 %v2786_v15 }
  0x3d   : > { %2565 = vmatmul.mubr.bf16.gmra.mxu0 %v2755_v11  ;;  %2629 = vmatmul.mubr.bf16.gmra.mxu1 %v2787_v18 }
  0x3e   : > { %2568 = vmatprep.mubr.bf16.mxu0 %v2756_v12  ;;  %2632 = vmatprep.mubr.bf16.mxu1 %v2788_v19 }
  0x45   : > { %2569 = vmatmul.mubr.bf16.gmra.mxu0 %v2757_v16  ;;  %2633 = vmatmul.mubr.bf16.gmra.mxu1 %v2789_v22 }
  0x46   : > { %2572 = vmatprep.mubr.bf16.mxu0 %v2758_v17  ;;  %2636 = vmatprep.mubr.bf16.mxu1 %v2790_v23 }
  0x4d   : > { %2573 = vmatmul.mubr.bf16.gmra.mxu0 %v2759_v20  ;;  %2637 = vmatmul.mubr.bf16.gmra.mxu1 %v2791_v26 }
  0x4e   : > { %2576 = vmatprep.mubr.bf16.mxu0 %v2760_v21  ;;  %2640 = vmatprep.mubr.bf16.mxu1 %v2792_v27 }
  0x55   : > { %2577 = vmatmul.mubr.bf16.gmra.mxu0 %v2761_v24  ;;  %2641 = vmatmul.mubr.bf16.gmra.mxu1 %v2793_v30 }
  0x56   : > { %2580 = vmatprep.mubr.bf16.mxu0 %v2762_v25  ;;  %2644 = vmatprep.mubr.bf16.mxu1 %v2794_v31 }
  0x5d   : > { %2581 = vmatmul.mubr.bf16.gmra.mxu0 %v2763_v28  ;;  %2645 = vmatmul.mubr.bf16.gmra.mxu1 %v2795_v34 }
  0x5e   : > { %2584 = vmatprep.mubr.bf16.mxu0 %v2764_v29  ;;  %2648 = vmatprep.mubr.bf16.mxu1 %v2796_v35 }
  0x65   : > { %2585 = vmatmul.mubr.bf16.gmra.mxu0 %v2765_v32  ;;  %2649 = vmatmul.mubr.bf16.gmra.mxu1 %v2797_v38 }
  0x66   : > { %2588 = vmatprep.mubr.bf16.mxu0 %v2766_v33  ;;  %2652 = vmatprep.mubr.bf16.mxu1 %v2798_v39 }
  0x6d   : > { %2589 = vmatmul.mubr.bf16.gmra.mxu0 %v2767_v36  ;;  %2653 = vmatmul.mubr.bf16.gmra.mxu1 %v2799_v42 }
  0x6e   : > { %2592 = vmatprep.mubr.bf16.mxu0 %v2768_v37  ;;  %2656 = vmatprep.mubr.bf16.mxu1 %v2800_v43 }
  0x75   : > { %2593 = vmatmul.mubr.bf16.gmra.mxu0 %v2769_v40  ;;  %2657 = vmatmul.mubr.bf16.gmra.mxu1 %v2801_v46 }
  0x76   : > { %2596 = vmatprep.mubr.bf16.mxu0 %v2770_v41  ;;  %2660 = vmatprep.mubr.bf16.mxu1 %v2802_v47 }
  0x7d   : > { %2597 = vmatmul.mubr.bf16.gmra.mxu0 %v2771_v44  ;;  %2661 = vmatmul.mubr.bf16.gmra.mxu1 %v2803_v50 }
  0x7e   : > { %2600 = vmatprep.mubr.bf16.mxu0 %v2772_v45  ;;  %2664 = vmatprep.mubr.bf16.mxu1 %v2804_v51 }
  0x85   : > { %2601 = vmatmul.mubr.bf16.gmra.mxu0 %v2773_v48  ;;  %2665 = vmatmul.mubr.bf16.gmra.mxu1 %v2805_v54 }
  0x86   : > { %2604 = vmatprep.mubr.bf16.mxu0 %v2774_v49  ;;  %2668 = vmatprep.mubr.bf16.mxu1 %v2806_v55 }
  0x8d   : > { %2605 = vmatmul.mubr.bf16.gmra.mxu0 %v2775_v52  ;;  %2669 = vmatmul.mubr.bf16.gmra.mxu1 %v2807_v58 }
  0x8e   : > { %2608 = vmatprep.mubr.bf16.mxu0 %v2776_v53  ;;  %2672 = vmatprep.mubr.bf16.mxu1 %v2808_v59 }
  0x95   : > { %2609 = vmatmul.mubr.bf16.gmra.mxu0 %v2777_v56  ;;  %2673 = vmatmul.mubr.bf16.gmra.mxu1 %v2809_v62 }
  0x96   : > { %2612 = vmatprep.mubr.bf16.mxu0 %v2778_v57  ;;  %2676 = vmatprep.mubr.bf16.mxu1 %v2810_v63 }
  0x9d   : > { %2613 = vmatmul.mubr.bf16.gmra.mxu0 %v2779_v60  ;;  %2677 = vmatmul.mubr.bf16.gmra.mxu1 %v2811_v2 }
  0x9e   : > { %2616 = vmatprep.mubr.bf16.mxu0 %v2780_v61  ;;  %2680 = vmatprep.mubr.bf16.mxu1 %v2812_v3 }
  0xa5   : > { %2617 = vmatmul.mubr.bf16.gmra.mxu0 %v2781_v0  ;;  %2681 = vmatmul.mubr.bf16.gmra.mxu1 %v2813_v5 }
  0xa6   : > { %2620 = vmatprep.mubr.bf16.mxu0 %v2782_v1  ;;  %2684 = vmatprep.mubr.bf16.mxu1 %v2814_v6 }
  0xad   : > { %2621 = vmatmul.mubr.bf16.gmra.mxu0 %v2783_v4  ;;  %2685 = vmatmul.mubr.bf16.gmra.mxu1 %v2815_v7 }
  0xf5   : > { %v2562_v8 = vpop.f32.mrf.mxu0  ;;  %v3024_v23 = vpop.f32.mrf.mxu1 }
  0xf6   : > { %1419 = vst.msk [vmem:[%s3007_s10 + $0x10] sm:$0xff] %vm1416_vm0, %v2562_v8  ;;  %v1810_v13 = vmul.f32 %v2562_v8, %v2562_v8  ;;  %v1548_v19 = vsel %vm1416_vm0, %v2562_v8, 0.0  ;;  %1483 = vst.msk [vmem:[%s3007_s10 + $0x210] sm:$0xff] %vm1416_vm0, %v3024_v23 }
  0xf7   : > { %v905_v9 = vpop.f32.mrf.mxu0  ;;  %v3033_v30 = vpop.f32.mrf.mxu1 }
  0xf8   : > { %1417 = vst.msk [vmem:[%s3007_s10] sm:$0xff] %vm1416_vm0, %v905_v9  ;;  %v1808_v11 = vmul.f32 %v905_v9, %v905_v9  ;;  %v1545_v14 = vsel %vm1416_vm0, %v905_v9, 0.0  ;;  %v1939_v27 = vsel %vm1416_vm0, %v1810_v13, 0.0  ;;  %1481 = vst.msk [vmem:[%s3007_s10 + $0x200] sm:$0xff] %vm1416_vm0, %v3033_v30 }
  0xf9   : > { %v2563_v10 = vpop.f32.mrf.mxu0  ;;  %v3042_v36 = vpop.f32.mrf.mxu1 }
  0xfa   : > { %1420 = vst.msk [vmem:[%s3007_s10 + $0x18] sm:$0xff] %vm1416_vm0, %v2563_v10  ;;  %v1936_v20 = vsel %vm1416_vm0, %v1808_v11, 0.0  ;;  %v1811_v21 = vmul.f32 %v2563_v10, %v2563_v10  ;;  %v1550_v28 = vsel %vm1416_vm0, %v2563_v10, 0.0  ;;  %1484 = vst.msk [vmem:[%s3007_s10 + $0x218] sm:$0xff] %vm1416_vm0, %v3042_v36 }
  0xfb   : > { %v908_v12 = vpop.f32.mrf.mxu0  ;;  %v3051_v44 = vpop.f32.mrf.mxu1 }
  0xfc   : > { %1418 = vst.msk [vmem:[%s3007_s10 + $0x8] sm:$0xff] %vm1416_vm0, %v908_v12  ;;  %v1546_v15 = vsel %vm1416_vm0, %v908_v12, 0.0  ;;  %v1809_v16 = vmul.f32 %v908_v12, %v908_v12  ;;  %v1941_v34 = vsel %vm1416_vm0, %v1811_v21, 0.0  ;;  %1482 = vst.msk [vmem:[%s3007_s10 + $0x208] sm:$0xff] %vm1416_vm0, %v3051_v44 }
  0xfd   : > { %v1547_v17 = vadd.f32 %v1546_v15, %v1545_v14  ;;  %v2566_v18 = vpop.f32.mrf.mxu0  ;;  %v3060_v51 = vpop.f32.mrf.mxu1 }
  0xfe   : > { %v1937_v22 = vsel %vm1416_vm0, %v1809_v16, 0.0  ;;  %1423 = vst.msk [vmem:[%s3007_s10 + $0x30] sm:$0xff] %vm1416_vm0, %v2566_v18  ;;  %v1814_v40 = vmul.f32 %v2566_v18, %v2566_v18  ;;  %v1556_v48 = vsel %vm1416_vm0, %v2566_v18, 0.0  ;;  %1487 = vst.msk [vmem:[%s3007_s10 + $0x230] sm:$0xff] %vm1416_vm0, %v3060_v51 }
  0xff   : > { %v1549_v24 = vadd.f32 %v1548_v19, %v1547_v17  ;;  %v1938_v25 = vadd.f32 %v1937_v22, %v1936_v20  ;;  %v921_v26 = vpop.f32.mrf.mxu0  ;;  %v3069_v58 = vpop.f32.mrf.mxu1 }
 0x100   : > { %1421 = vst.msk [vmem:[%s3007_s10 + $0x20] sm:$0xff] %vm1416_vm0, %v921_v26  ;;  %v1812_v29 = vmul.f32 %v921_v26, %v921_v26  ;;  %v1552_v35 = vsel %vm1416_vm0, %v921_v26, 0.0  ;;  %v1947_v55 = vsel %vm1416_vm0, %v1814_v40, 0.0  ;;  %1485 = vst.msk [vmem:[%s3007_s10 + $0x220] sm:$0xff] %vm1416_vm0, %v3069_v58 }
 0x101   : > { %v1940_v31 = vadd.f32 %v1939_v27, %v1938_v25  ;;  %v1551_v32 = vadd.f32 %v1550_v28, %v1549_v24  ;;  %v2567_v33 = vpop.f32.mrf.mxu0  ;;  %v3078_v0 = vpop.f32.mrf.mxu1 }
 0x102   : > { %1424 = vst.msk [vmem:[%s3007_s10 + $0x38] sm:$0xff] %vm1416_vm0, %v2567_v33  ;;  %v1943_v41 = vsel %vm1416_vm0, %v1812_v29, 0.0  ;;  %v1815_v49 = vmul.f32 %v2567_v33, %v2567_v33  ;;  %v1558_v56 = vsel %vm1416_vm0, %v2567_v33, 0.0  ;;  %1488 = vst.msk [vmem:[%s3007_s10 + $0x238] sm:$0xff] %vm1416_vm0, %v3078_v0 }
 0x103   : > { %v1553_v37 = vadd.f32 %v1552_v35, %v1551_v32  ;;  %v1942_v38 = vadd.f32 %v1941_v34, %v1940_v31  ;;  %v924_v39 = vpop.f32.mrf.mxu0  ;;  %v3087_v8 = vpop.f32.mrf.mxu1 }
 0x104   : > { %1422 = vst.msk [vmem:[%s3007_s10 + $0x28] sm:$0xff] %vm1416_vm0, %v924_v39  ;;  %v1554_v42 = vsel %vm1416_vm0, %v924_v39, 0.0  ;;  %v1813_v43 = vmul.f32 %v924_v39, %v924_v39  ;;  %v1949_v62 = vsel %vm1416_vm0, %v1815_v49, 0.0  ;;  %1486 = vst.msk [vmem:[%s3007_s10 + $0x228] sm:$0xff] %vm1416_vm0, %v3087_v8 }
 0x105   : > { %v1944_v45 = vadd.f32 %v1943_v41, %v1942_v38  ;;  %v1555_v46 = vadd.f32 %v1554_v42, %v1553_v37  ;;  %v2570_v47 = vpop.f32.mrf.mxu0  ;;  %v3096_v15 = vpop.f32.mrf.mxu1 }
 0x106   : > { %v1945_v50 = vsel %vm1416_vm0, %v1813_v43, 0.0  ;;  %1427 = vst.msk [vmem:[%s3007_s10 + $0x50] sm:$0xff] %vm1416_vm0, %v2570_v47  ;;  %v1818_v4 = vmul.f32 %v2570_v47, %v2570_v47  ;;  %v1564_v12 = vsel %vm1416_vm0, %v2570_v47, 0.0  ;;  %1491 = vst.msk [vmem:[%s3007_s10 + $0x250] sm:$0xff] %vm1416_vm0, %v3096_v15 }
 0x107   : > { %v1557_v52 = vadd.f32 %v1556_v48, %v1555_v46  ;;  %v1946_v53 = vadd.f32 %v1945_v50, %v1944_v45  ;;  %v937_v54 = vpop.f32.mrf.mxu0  ;;  %v3105_v22 = vpop.f32.mrf.mxu1 }
 0x108   : > { %1425 = vst.msk [vmem:[%s3007_s10 + $0x40] sm:$0xff] %vm1416_vm0, %v937_v54  ;;  %v1816_v57 = vmul.f32 %v937_v54, %v937_v54  ;;  %v1560_v63 = vsel %vm1416_vm0, %v937_v54, 0.0  ;;  %v1955_v19 = vsel %vm1416_vm0, %v1818_v4, 0.0  ;;  %1489 = vst.msk [vmem:[%s3007_s10 + $0x240] sm:$0xff] %vm1416_vm0, %v3105_v22 }
 0x109   : > { %v1948_v59 = vadd.f32 %v1947_v55, %v1946_v53  ;;  %v1559_v60 = vadd.f32 %v1558_v56, %v1557_v52  ;;  %v2571_v61 = vpop.f32.mrf.mxu0  ;;  %v3114_v29 = vpop.f32.mrf.mxu1 }
 0x10a   : > { %1428 = vst.msk [vmem:[%s3007_s10 + $0x58] sm:$0xff] %vm1416_vm0, %v2571_v61  ;;  %v1951_v5 = vsel %vm1416_vm0, %v1816_v57, 0.0  ;;  %v1819_v13 = vmul.f32 %v2571_v61, %v2571_v61  ;;  %v1566_v20 = vsel %vm1416_vm0, %v2571_v61, 0.0  ;;  %1492 = vst.msk [vmem:[%s3007_s10 + $0x258] sm:$0xff] %vm1416_vm0, %v3114_v29 }
 0x10b   : > { %v1561_v1 = vadd.f32 %v1560_v63, %v1559_v60  ;;  %v1950_v2 = vadd.f32 %v1949_v62, %v1948_v59  ;;  %v940_v3 = vpop.f32.mrf.mxu0  ;;  %v3123_v39 = vpop.f32.mrf.mxu1 }
 0x10c   : > { %1426 = vst.msk [vmem:[%s3007_s10 + $0x48] sm:$0xff] %vm1416_vm0, %v940_v3  ;;  %v1562_v6 = vsel %vm1416_vm0, %v940_v3, 0.0  ;;  %v1817_v7 = vmul.f32 %v940_v3, %v940_v3  ;;  %v1957_v27 = vsel %vm1416_vm0, %v1819_v13, 0.0  ;;  %1490 = vst.msk [vmem:[%s3007_s10 + $0x248] sm:$0xff] %vm1416_vm0, %v3123_v39 }
 0x10d   : > { %v1952_v9 = vadd.f32 %v1951_v5, %v1950_v2  ;;  %v1563_v10 = vadd.f32 %v1562_v6, %v1561_v1  ;;  %v2574_v11 = vpop.f32.mrf.mxu0  ;;  %v3132_v47 = vpop.f32.mrf.mxu1 }
 0x10e   : > { %v1953_v14 = vsel %vm1416_vm0, %v1817_v7, 0.0  ;;  %1431 = vst.msk [vmem:[%s3007_s10 + $0x70] sm:$0xff] %vm1416_vm0, %v2574_v11  ;;  %v1822_v34 = vmul.f32 %v2574_v11, %v2574_v11  ;;  %v1572_v43 = vsel %vm1416_vm0, %v2574_v11, 0.0  ;;  %1495 = vst.msk [vmem:[%s3007_s10 + $0x270] sm:$0xff] %vm1416_vm0, %v3132_v47 }
 0x10f   : > { %v1565_v16 = vadd.f32 %v1564_v12, %v1563_v10  ;;  %v1954_v17 = vadd.f32 %v1953_v14, %v1952_v9  ;;  %v953_v18 = vpop.f32.mrf.mxu0  ;;  %v3141_v55 = vpop.f32.mrf.mxu1 }
 0x110   : > { %1429 = vst.msk [vmem:[%s3007_s10 + $0x60] sm:$0xff] %vm1416_vm0, %v953_v18  ;;  %v1820_v21 = vmul.f32 %v953_v18, %v953_v18  ;;  %v1568_v28 = vsel %vm1416_vm0, %v953_v18, 0.0  ;;  %v1963_v52 = vsel %vm1416_vm0, %v1822_v34, 0.0  ;;  %1493 = vst.msk [vmem:[%s3007_s10 + $0x260] sm:$0xff] %vm1416_vm0, %v3141_v55 }
 0x111   : > { %v1956_v24 = vadd.f32 %v1955_v19, %v1954_v17  ;;  %v1567_v25 = vadd.f32 %v1566_v20, %v1565_v16  ;;  %v2575_v26 = vpop.f32.mrf.mxu0  ;;  %v3150_v62 = vpop.f32.mrf.mxu1 }
 0x112   : > { %1432 = vst.msk [vmem:[%s3007_s10 + $0x78] sm:$0xff] %vm1416_vm0, %v2575_v26  ;;  %v1959_v35 = vsel %vm1416_vm0, %v1820_v21, 0.0  ;;  %v1823_v45 = vmul.f32 %v2575_v26, %v2575_v26  ;;  %v1574_v53 = vsel %vm1416_vm0, %v2575_v26, 0.0  ;;  %1496 = vst.msk [vmem:[%s3007_s10 + $0x278] sm:$0xff] %vm1416_vm0, %v3150_v62 }
 0x113   : > { %v1569_v31 = vadd.f32 %v1568_v28, %v1567_v25  ;;  %v1958_v32 = vadd.f32 %v1957_v27, %v1956_v24  ;;  %v956_v33 = vpop.f32.mrf.mxu0  ;;  %v3159_v7 = vpop.f32.mrf.mxu1 }
 0x114   : > { %1430 = vst.msk [vmem:[%s3007_s10 + $0x68] sm:$0xff] %vm1416_vm0, %v956_v33  ;;  %v1570_v37 = vsel %vm1416_vm0, %v956_v33, 0.0  ;;  %v1821_v38 = vmul.f32 %v956_v33, %v956_v33  ;;  %v1965_v60 = vsel %vm1416_vm0, %v1823_v45, 0.0  ;;  %1494 = vst.msk [vmem:[%s3007_s10 + $0x268] sm:$0xff] %vm1416_vm0, %v3159_v7 }
 0x115   : > { %v1960_v40 = vadd.f32 %v1959_v35, %v1958_v32  ;;  %v1571_v41 = vadd.f32 %v1570_v37, %v1569_v31  ;;  %v2578_v42 = vpop.f32.mrf.mxu0  ;;  %v3168_v16 = vpop.f32.mrf.mxu1 }
 0x116   : > { %v1961_v46 = vsel %vm1416_vm0, %v1821_v38, 0.0  ;;  %1435 = vst.msk [vmem:[%s3007_s10 + $0x90] sm:$0xff] %vm1416_vm0, %v2578_v42  ;;  %v1826_v3 = vmul.f32 %v2578_v42, %v2578_v42  ;;  %v1580_v12 = vsel %vm1416_vm0, %v2578_v42, 0.0  ;;  %1499 = vst.msk [vmem:[%s3007_s10 + $0x290] sm:$0xff] %vm1416_vm0, %v3168_v16 }
 0x117   : > { %v1573_v48 = vadd.f32 %v1572_v43, %v1571_v41  ;;  %v1962_v49 = vadd.f32 %v1961_v46, %v1960_v40  ;;  %v969_v50 = vpop.f32.mrf.mxu0  ;;  %v3177_v25 = vpop.f32.mrf.mxu1 }
 0x118   : > { %1433 = vst.msk [vmem:[%s3007_s10 + $0x80] sm:$0xff] %vm1416_vm0, %v969_v50  ;;  %v1824_v54 = vmul.f32 %v969_v50, %v969_v50  ;;  %v1576_v61 = vsel %vm1416_vm0, %v969_v50, 0.0  ;;  %v1971_v20 = vsel %vm1416_vm0, %v1826_v3, 0.0  ;;  %1497 = vst.msk [vmem:[%s3007_s10 + $0x280] sm:$0xff] %vm1416_vm0, %v3177_v25 }
 0x119   : > { %v1964_v56 = vadd.f32 %v1963_v52, %v1962_v49  ;;  %v1575_v57 = vadd.f32 %v1574_v53, %v1573_v48  ;;  %v2579_v59 = vpop.f32.mrf.mxu0  ;;  %v3186_v33 = vpop.f32.mrf.mxu1 }
 0x11a   : > { %1436 = vst.msk [vmem:[%s3007_s10 + $0x98] sm:$0xff] %vm1416_vm0, %v2579_v59  ;;  %v1967_v4 = vsel %vm1416_vm0, %v1824_v54, 0.0  ;;  %v1827_v13 = vmul.f32 %v2579_v59, %v2579_v59  ;;  %v1582_v21 = vsel %vm1416_vm0, %v2579_v59, 0.0  ;;  %1500 = vst.msk [vmem:[%s3007_s10 + $0x298] sm:$0xff] %vm1416_vm0, %v3186_v33 }
 0x11b   : > { %v1577_v63 = vadd.f32 %v1576_v61, %v1575_v57  ;;  %v1966_v1 = vadd.f32 %v1965_v60, %v1964_v56  ;;  %v972_v2 = vpop.f32.mrf.mxu0  ;;  %v3195_v43 = vpop.f32.mrf.mxu1 }
 0x11c   : > { %1434 = vst.msk [vmem:[%s3007_s10 + $0x88] sm:$0xff] %vm1416_vm0, %v972_v2  ;;  %v1578_v5 = vsel %vm1416_vm0, %v972_v2, 0.0  ;;  %v1825_v6 = vmul.f32 %v972_v2, %v972_v2  ;;  %v1973_v31 = vsel %vm1416_vm0, %v1827_v13, 0.0  ;;  %1498 = vst.msk [vmem:[%s3007_s10 + $0x288] sm:$0xff] %vm1416_vm0, %v3195_v43 }
 0x11d   : > { %v1968_v9 = vadd.f32 %v1967_v4, %v1966_v1  ;;  %v1579_v10 = vadd.f32 %v1578_v5, %v1577_v63  ;;  %v2582_v11 = vpop.f32.mrf.mxu0  ;;  %v3204_v53 = vpop.f32.mrf.mxu1 }
 0x11e   : > { %v1969_v14 = vsel %vm1416_vm0, %v1825_v6, 0.0  ;;  %1439 = vst.msk [vmem:[%s3007_s10 + $0xb0] sm:$0xff] %vm1416_vm0, %v2582_v11  ;;  %v1830_v38 = vmul.f32 %v2582_v11, %v2582_v11  ;;  %v1588_v49 = vsel %vm1416_vm0, %v2582_v11, 0.0  ;;  %1503 = vst.msk [vmem:[%s3007_s10 + $0x2b0] sm:$0xff] %vm1416_vm0, %v3204_v53 }
 0x11f   : > { %v1581_v17 = vadd.f32 %v1580_v12, %v1579_v10  ;;  %v1970_v18 = vadd.f32 %v1969_v14, %v1968_v9  ;;  %v985_v19 = vpop.f32.mrf.mxu0  ;;  %v3213_v63 = vpop.f32.mrf.mxu1 }
 0x120   : > { %1437 = vst.msk [vmem:[%s3007_s10 + $0xa0] sm:$0xff] %vm1416_vm0, %v985_v19  ;;  %v1828_v24 = vmul.f32 %v985_v19, %v985_v19  ;;  %v1584_v32 = vsel %vm1416_vm0, %v985_v19, 0.0  ;;  %v1979_v59 = vsel %vm1416_vm0, %v1830_v38, 0.0  ;;  %1501 = vst.msk [vmem:[%s3007_s10 + $0x2a0] sm:$0xff] %vm1416_vm0, %v3213_v63 }
 0x121   : > { %v1972_v26 = vadd.f32 %v1971_v20, %v1970_v18  ;;  %v1583_v27 = vadd.f32 %v1582_v21, %v1581_v17  ;;  %v2583_v28 = vpop.f32.mrf.mxu0  ;;  %v3222_v6 = vpop.f32.mrf.mxu1 }
 0x122   : > { %1440 = vst.msk [vmem:[%s3007_s10 + $0xb8] sm:$0xff] %vm1416_vm0, %v2583_v28  ;;  %v1975_v40 = vsel %vm1416_vm0, %v1828_v24, 0.0  ;;  %v1831_v50 = vmul.f32 %v2583_v28, %v2583_v28  ;;  %v1590_v60 = vsel %vm1416_vm0, %v2583_v28, 0.0  ;;  %1504 = vst.msk [vmem:[%s3007_s10 + $0x2b8] sm:$0xff] %vm1416_vm0, %v3222_v6 }
 0x123   : > { %v1585_v34 = vadd.f32 %v1584_v32, %v1583_v27  ;;  %v1974_v35 = vadd.f32 %v1973_v31, %v1972_v26  ;;  %v988_v37 = vpop.f32.mrf.mxu0  ;;  %v3231_v18 = vpop.f32.mrf.mxu1 }
 0x124   : > { %1438 = vst.msk [vmem:[%s3007_s10 + $0xa8] sm:$0xff] %vm1416_vm0, %v988_v37  ;;  %v1586_v41 = vsel %vm1416_vm0, %v988_v37, 0.0  ;;  %v1829_v42 = vmul.f32 %v988_v37, %v988_v37  ;;  %v1981_v4 = vsel %vm1416_vm0, %v1831_v50, 0.0  ;;  %1502 = vst.msk [vmem:[%s3007_s10 + $0x2a8] sm:$0xff] %vm1416_vm0, %v3231_v18 }
 0x125   : > { %v1976_v45 = vadd.f32 %v1975_v40, %v1974_v35  ;;  %v1587_v46 = vadd.f32 %v1586_v41, %v1585_v34  ;;  %v2586_v48 = vpop.f32.mrf.mxu0  ;;  %v3240_v28 = vpop.f32.mrf.mxu1 }
 0x126   : > { %v1977_v52 = vsel %vm1416_vm0, %v1829_v42, 0.0  ;;  %1443 = vst.msk [vmem:[%s3007_s10 + $0xd0] sm:$0xff] %vm1416_vm0, %v2586_v48  ;;  %v1834_v12 = vmul.f32 %v2586_v48, %v2586_v48  ;;  %v1596_v24 = vsel %vm1416_vm0, %v2586_v48, 0.0  ;;  %1507 = vst.msk [vmem:[%s3007_s10 + $0x2d0] sm:$0xff] %vm1416_vm0, %v3240_v28 }
 0x127   : > { %v1589_v54 = vadd.f32 %v1588_v49, %v1587_v46  ;;  %v1978_v56 = vadd.f32 %v1977_v52, %v1976_v45  ;;  %v1001_v57 = vpop.f32.mrf.mxu0  ;;  %v3249_v40 = vpop.f32.mrf.mxu1 }
 0x128   : > { %1441 = vst.msk [vmem:[%s3007_s10 + $0xc0] sm:$0xff] %vm1416_vm0, %v1001_v57  ;;  %v1832_v61 = vmul.f32 %v1001_v57, %v1001_v57  ;;  %v1592_v5 = vsel %vm1416_vm0, %v1001_v57, 0.0  ;;  %v1987_v35 = vsel %vm1416_vm0, %v1834_v12, 0.0  ;;  %1505 = vst.msk [vmem:[%s3007_s10 + $0x2c0] sm:$0xff] %vm1416_vm0, %v3249_v40 }
 0x129   : > { %v1980_v1 = vadd.f32 %v1979_v59, %v1978_v56  ;;  %v1591_v2 = vadd.f32 %v1590_v60, %v1589_v54  ;;  %v2587_v3 = vpop.f32.mrf.mxu0  ;;  %v3258_v49 = vpop.f32.mrf.mxu1 }
 0x12a   : > { %1444 = vst.msk [vmem:[%s3007_s10 + $0xd8] sm:$0xff] %vm1416_vm0, %v2587_v3  ;;  %v1983_v13 = vsel %vm1416_vm0, %v1832_v61, 0.0  ;;  %v1835_v26 = vmul.f32 %v2587_v3, %v2587_v3  ;;  %v1598_v37 = vsel %vm1416_vm0, %v2587_v3, 0.0  ;;  %1508 = vst.msk [vmem:[%s3007_s10 + $0x2d8] sm:$0xff] %vm1416_vm0, %v3258_v49 }
 0x12b   : > { %v1593_v9 = vadd.f32 %v1592_v5, %v1591_v2  ;;  %v1982_v10 = vadd.f32 %v1981_v4, %v1980_v1  ;;  %v1004_v11 = vpop.f32.mrf.mxu0  ;;  %v3267_v61 = vpop.f32.mrf.mxu1 }
 0x12c   : > { %1442 = vst.msk [vmem:[%s3007_s10 + $0xc8] sm:$0xff] %vm1416_vm0, %v1004_v11  ;;  %v1594_v14 = vsel %vm1416_vm0, %v1004_v11, 0.0  ;;  %v1833_v17 = vmul.f32 %v1004_v11, %v1004_v11  ;;  %v1989_v46 = vsel %vm1416_vm0, %v1835_v26, 0.0  ;;  %1506 = vst.msk [vmem:[%s3007_s10 + $0x2c8] sm:$0xff] %vm1416_vm0, %v3267_v61 }
 0x12d   : > { %v1984_v19 = vadd.f32 %v1983_v13, %v1982_v10  ;;  %v1595_v20 = vadd.f32 %v1594_v14, %v1593_v9  ;;  %v2590_v21 = vpop.f32.mrf.mxu0  ;;  %v3276_v10 = vpop.f32.mrf.mxu1 }
 0x12e   : > { %v1985_v27 = vsel %vm1416_vm0, %v1833_v17, 0.0  ;;  %1447 = vst.msk [vmem:[%s3007_s10 + $0xf0] sm:$0xff] %vm1416_vm0, %v2590_v21  ;;  %v1838_v56 = vmul.f32 %v2590_v21, %v2590_v21  ;;  %v1604_v4 = vsel %vm1416_vm0, %v2590_v21, 0.0  ;;  %1511 = vst.msk [vmem:[%s3007_s10 + $0x2f0] sm:$0xff] %vm1416_vm0, %v3276_v10 }
 0x12f   : > { %v1597_v31 = vadd.f32 %v1596_v24, %v1595_v20  ;;  %v1986_v32 = vadd.f32 %v1985_v27, %v1984_v19  ;;  %v1017_v34 = vpop.f32.mrf.mxu0  ;;  %v3285_v20 = vpop.f32.mrf.mxu1 }
 0x130   : > { %1445 = vst.msk [vmem:[%s3007_s10 + $0xe0] sm:$0xff] %vm1416_vm0, %v1017_v34  ;;  %v1836_v38 = vmul.f32 %v1017_v34, %v1017_v34  ;;  %v1600_v48 = vsel %vm1416_vm0, %v1017_v34, 0.0  ;;  %v1995_v14 = vsel %vm1416_vm0, %v1838_v56, 0.0  ;;  %1509 = vst.msk [vmem:[%s3007_s10 + $0x2e0] sm:$0xff] %vm1416_vm0, %v3285_v20 }
 0x131   : > { %v1988_v41 = vadd.f32 %v1987_v35, %v1986_v32  ;;  %v1599_v42 = vadd.f32 %v1598_v37, %v1597_v31  ;;  %v2591_v45 = vpop.f32.mrf.mxu0  ;;  %v3294_v32 = vpop.f32.mrf.mxu1 }
 0x132   : > { %1448 = vst.msk [vmem:[%s3007_s10 + $0xf8] sm:$0xff] %vm1416_vm0, %v2591_v45  ;;  %v1991_v57 = vsel %vm1416_vm0, %v1836_v38, 0.0  ;;  %v1839_v5 = vmul.f32 %v2591_v45, %v2591_v45  ;;  %v1606_v17 = vsel %vm1416_vm0, %v2591_v45, 0.0  ;;  %1512 = vst.msk [vmem:[%s3007_s10 + $0x2f8] sm:$0xff] %vm1416_vm0, %v3294_v32 }
 0x133   : > { %v1601_v50 = vadd.f32 %v1600_v48, %v1599_v42  ;;  %v1990_v52 = vadd.f32 %v1989_v46, %v1988_v41  ;;  %v1020_v54 = vpop.f32.mrf.mxu0  ;;  %v3303_v46 = vpop.f32.mrf.mxu1 }
 0x134   : > { %1446 = vst.msk [vmem:[%s3007_s10 + $0xe8] sm:$0xff] %vm1416_vm0, %v1020_v54  ;;  %v1602_v59 = vsel %vm1416_vm0, %v1020_v54, 0.0  ;;  %v1837_v60 = vmul.f32 %v1020_v54, %v1020_v54  ;;  %v1997_v27 = vsel %vm1416_vm0, %v1839_v5, 0.0  ;;  %1510 = vst.msk [vmem:[%s3007_s10 + $0x2e8] sm:$0xff] %vm1416_vm0, %v3303_v46 }
 0x135   : > { %v1992_v1 = vadd.f32 %v1991_v57, %v1990_v52  ;;  %v1603_v2 = vadd.f32 %v1602_v59, %v1601_v50  ;;  %v2594_v3 = vpop.f32.mrf.mxu0  ;;  %v3312_v59 = vpop.f32.mrf.mxu1 }
 0x136   : > { %v1993_v9 = vsel %vm1416_vm0, %v1837_v60, 0.0  ;;  %1451 = vst.msk [vmem:[%s3007_s10 + $0x110] sm:$0xff] %vm1416_vm0, %v2594_v3  ;;  %v1842_v38 = vmul.f32 %v2594_v3, %v2594_v3  ;;  %v1612_v54 = vsel %vm1416_vm0, %v2594_v3, 0.0  ;;  %1515 = vst.msk [vmem:[%s3007_s10 + $0x310] sm:$0xff] %vm1416_vm0, %v3312_v59 }
 0x137   : > { %v1605_v11 = vadd.f32 %v1604_v4, %v1603_v2  ;;  %v1994_v12 = vadd.f32 %v1993_v9, %v1992_v1  ;;  %v1033_v13 = vpop.f32.mrf.mxu0  ;;  %v3321_v9 = vpop.f32.mrf.mxu1 }
 0x138   : > { %1449 = vst.msk [vmem:[%s3007_s10 + $0x100] sm:$0xff] %vm1416_vm0, %v1033_v13  ;;  %v1840_v19 = vmul.f32 %v1033_v13, %v1033_v13  ;;  %v1608_v31 = vsel %vm1416_vm0, %v1033_v13, 0.0  ;;  %v2003_v4 = vsel %vm1416_vm0, %v1842_v38, 0.0  ;;  %1513 = vst.msk [vmem:[%s3007_s10 + $0x300] sm:$0xff] %vm1416_vm0, %v3321_v9 }
 0x139   : > { %v1996_v21 = vadd.f32 %v1995_v14, %v1994_v12  ;;  %v1607_v24 = vadd.f32 %v1606_v17, %v1605_v11  ;;  %v2595_v26 = vpop.f32.mrf.mxu0 }
 0x13a   : > { %1452 = vst.msk [vmem:[%s3007_s10 + $0x118] sm:$0xff] %vm1416_vm0, %v2595_v26  ;;  %v1999_v41 = vsel %vm1416_vm0, %v1840_v19, 0.0  ;;  %v1843_v56 = vmul.f32 %v2595_v26, %v2595_v26  ;;  %v1614_v3 = vsel %vm1416_vm0, %v2595_v26, 0.0  ;;  %v3330_v19 = vpop.f32.mrf.mxu1 }
 0x13b   : > { %v1609_v34 = vadd.f32 %v1608_v31, %v1607_v24  ;;  %v1998_v35 = vadd.f32 %v1997_v27, %v1996_v21  ;;  %v1036_v37 = vpop.f32.mrf.mxu0  ;;  %1516 = vst.msk [vmem:[%s3007_s10 + $0x318] sm:$0xff] %vm1416_vm0, %v3330_v19 }
 0x13c   : > { %1450 = vst.msk [vmem:[%s3007_s10 + $0x108] sm:$0xff] %vm1416_vm0, %v1036_v37  ;;  %v1610_v42 = vsel %vm1416_vm0, %v1036_v37, 0.0  ;;  %v1841_v45 = vmul.f32 %v1036_v37, %v1036_v37  ;;  %v2005_v14 = vsel %vm1416_vm0, %v1843_v56, 0.0  ;;  %v3339_v37 = vpop.f32.mrf.mxu1 }
 0x13d   : > { %v2000_v48 = vadd.f32 %v1999_v41, %v1998_v35  ;;  %v1611_v50 = vadd.f32 %v1610_v42, %v1609_v34  ;;  %v2598_v52 = vpop.f32.mrf.mxu0  ;;  %1514 = vst.msk [vmem:[%s3007_s10 + $0x308] sm:$0xff] %vm1416_vm0, %v3339_v37 }
 0x13e   : > { %v2001_v57 = vsel %vm1416_vm0, %v1841_v45, 0.0  ;;  %1455 = vst.msk [vmem:[%s3007_s10 + $0x130] sm:$0xff] %vm1416_vm0, %v2598_v52  ;;  %v1846_v27 = vmul.f32 %v2598_v52, %v2598_v52  ;;  %v1620_v45 = vsel %vm1416_vm0, %v2598_v52, 0.0 }
 0x13f   : > { %v1613_v60 = vadd.f32 %v1612_v54, %v1611_v50  ;;  %v2002_v1 = vadd.f32 %v2001_v57, %v2000_v48  ;;  %v1049_v2 = vpop.f32.mrf.mxu0  ;;  %v3348_v54 = vpop.f32.mrf.mxu1 }
 0x140   : > { %1453 = vst.msk [vmem:[%s3007_s10 + $0x120] sm:$0xff] %vm1416_vm0, %v1049_v2  ;;  %v1844_v5 = vmul.f32 %v1049_v2, %v1049_v2  ;;  %v1616_v17 = vsel %vm1416_vm0, %v1049_v2, 0.0  ;;  %1519 = vst.msk [vmem:[%s3007_s10 + $0x330] sm:$0xff] %vm1416_vm0, %v3348_v54 }
 0x141   : > { %v2004_v11 = vadd.f32 %v2003_v4, %v2002_v1  ;;  %v1615_v12 = vadd.f32 %v1614_v3, %v1613_v60  ;;  %v2599_v13 = vpop.f32.mrf.mxu0  ;;  %v2011_v1 = vsel %vm1416_vm0, %v1846_v27, 0.0  ;;  %v3357_v4 = vpop.f32.mrf.mxu1 }
 0x142   : > { %1456 = vst.msk [vmem:[%s3007_s10 + $0x138] sm:$0xff] %vm1416_vm0, %v2599_v13  ;;  %v2007_v31 = vsel %vm1416_vm0, %v1844_v5, 0.0  ;;  %v1847_v48 = vmul.f32 %v2599_v13, %v2599_v13  ;;  %v1622_v52 = vsel %vm1416_vm0, %v2599_v13, 0.0  ;;  %1517 = vst.msk [vmem:[%s3007_s10 + $0x320] sm:$0xff] %vm1416_vm0, %v3357_v4 }
 0x143   : > { %v1617_v21 = vadd.f32 %v1616_v17, %v1615_v12  ;;  %v2006_v24 = vadd.f32 %v2005_v14, %v2004_v11  ;;  %v1052_v26 = vpop.f32.mrf.mxu0  ;;  %v3366_v13 = vpop.f32.mrf.mxu1 }
 0x144   : > { %1454 = vst.msk [vmem:[%s3007_s10 + $0x128] sm:$0xff] %vm1416_vm0, %v1052_v26  ;;  %v1618_v34 = vsel %vm1416_vm0, %v1052_v26, 0.0  ;;  %v1845_v35 = vmul.f32 %v1052_v26, %v1052_v26  ;;  %v2013_v12 = vsel %vm1416_vm0, %v1847_v48, 0.0  ;;  %1520 = vst.msk [vmem:[%s3007_s10 + $0x338] sm:$0xff] %vm1416_vm0, %v3366_v13 }
 0x145   : > { %v2008_v38 = vadd.f32 %v2007_v31, %v2006_v24  ;;  %v1619_v41 = vadd.f32 %v1618_v34, %v1617_v21  ;;  %v2602_v42 = vpop.f32.mrf.mxu0 }
 0x146   : > { %v2009_v50 = vsel %vm1416_vm0, %v1845_v35, 0.0  ;;  %1459 = vst.msk [vmem:[%s3007_s10 + $0x150] sm:$0xff] %vm1416_vm0, %v2602_v42  ;;  %v1850_v26 = vmul.f32 %v2602_v42, %v2602_v42  ;;  %v3375_v35 = vpop.f32.mrf.mxu1  ;;  %v1628_v48 = vsel %vm1416_vm0, %v2602_v42, 0.0 }
 0x147   : > { %v1621_v56 = vadd.f32 %v1620_v45, %v1619_v41  ;;  %v2010_v57 = vadd.f32 %v2009_v50, %v2008_v38  ;;  %v1065_v60 = vpop.f32.mrf.mxu0  ;;  %1518 = vst.msk [vmem:[%s3007_s10 + $0x328] sm:$0xff] %vm1416_vm0, %v3375_v35 }
 0x148   : > { %1457 = vst.msk [vmem:[%s3007_s10 + $0x140] sm:$0xff] %vm1416_vm0, %v1065_v60  ;;  %v1848_v2 = vmul.f32 %v1065_v60, %v1065_v60  ;;  %v1624_v14 = vsel %vm1416_vm0, %v1065_v60, 0.0 }
 0x149   : > { %v2012_v3 = vadd.f32 %v2011_v1, %v2010_v57  ;;  %v1623_v5 = vadd.f32 %v1622_v52, %v1621_v56  ;;  %v2603_v11 = vpop.f32.mrf.mxu0  ;;  %v3384_v57 = vpop.f32.mrf.mxu1 }
 0x14a   : > { %1460 = vst.msk [vmem:[%s3007_s10 + $0x158] sm:$0xff] %vm1416_vm0, %v2603_v11  ;;  %v2015_v27 = vsel %vm1416_vm0, %v1848_v2, 0.0  ;;  %v1851_v50 = vmul.f32 %v2603_v11, %v2603_v11  ;;  %1523 = vst.msk [vmem:[%s3007_s10 + $0x350] sm:$0xff] %vm1416_vm0, %v3384_v57  ;;  %v2019_v2 = vsel %vm1416_vm0, %v1850_v26, 0.0  ;;  %v1630_v42 = vsel %vm1416_vm0, %v2603_v11, 0.0 }
 0x14b   : > { %v1625_v17 = vadd.f32 %v1624_v14, %v1623_v5  ;;  %v2014_v21 = vadd.f32 %v2013_v12, %v2012_v3  ;;  %v1068_v24 = vpop.f32.mrf.mxu0  ;;  %v3393_v5 = vpop.f32.mrf.mxu1 }
 0x14c   : > { %1458 = vst.msk [vmem:[%s3007_s10 + $0x148] sm:$0xff] %vm1416_vm0, %v1068_v24  ;;  %v1626_v31 = vsel %vm1416_vm0, %v1068_v24, 0.0  ;;  %v1849_v34 = vmul.f32 %v1068_v24, %v1068_v24  ;;  %1521 = vst.msk [vmem:[%s3007_s10 + $0x340] sm:$0xff] %vm1416_vm0, %v3393_v5 }
 0x14d   : > { %v2016_v38 = vadd.f32 %v2015_v27, %v2014_v21  ;;  %v1627_v41 = vadd.f32 %v1626_v31, %v1625_v17  ;;  %v2606_v45 = vpop.f32.mrf.mxu0  ;;  %v2021_v21 = vsel %vm1416_vm0, %v1851_v50, 0.0  ;;  %v3402_v11 = vpop.f32.mrf.mxu1 }
 0x14e   : > { %v2017_v56 = vsel %vm1416_vm0, %v1849_v34, 0.0  ;;  %1463 = vst.msk [vmem:[%s3007_s10 + $0x170] sm:$0xff] %vm1416_vm0, %v2606_v45  ;;  %1524 = vst.msk [vmem:[%s3007_s10 + $0x358] sm:$0xff] %vm1416_vm0, %v3402_v11  ;;  %v1854_v34 = vmul.f32 %v2606_v45, %v2606_v45 }
 0x14f   : > { %v1629_v60 = vadd.f32 %v1628_v48, %v1627_v41  ;;  %v2018_v1 = vadd.f32 %v2017_v56, %v2016_v38  ;;  %v1081_v52 = vpop.f32.mrf.mxu0  ;;  %v3411_v50 = vpop.f32.mrf.mxu1 }
 0x150   : > { %1461 = vst.msk [vmem:[%s3007_s10 + $0x160] sm:$0xff] %vm1416_vm0, %v1081_v52  ;;  %v1852_v3 = vmul.f32 %v1081_v52, %v1081_v52  ;;  %v1632_v24 = vsel %vm1416_vm0, %v1081_v52, 0.0  ;;  %1522 = vst.msk [vmem:[%s3007_s10 + $0x348] sm:$0xff] %vm1416_vm0, %v3411_v50  ;;  %v1636_v52 = vsel %vm1416_vm0, %v2606_v45, 0.0 }
 0x151   : > { %v2020_v12 = vadd.f32 %v2019_v2, %v2018_v1  ;;  %v1631_v14 = vadd.f32 %v1630_v42, %v1629_v60  ;;  %v2607_v17 = vpop.f32.mrf.mxu0 }
 0x152   : > { %1464 = vst.msk [vmem:[%s3007_s10 + $0x178] sm:$0xff] %vm1416_vm0, %v2607_v17  ;;  %v2023_v38 = vsel %vm1416_vm0, %v1852_v3, 0.0  ;;  %v1855_v2 = vmul.f32 %v2607_v17, %v2607_v17  ;;  %v3420_v3 = vpop.f32.mrf.mxu1  ;;  %v1638_v45 = vsel %vm1416_vm0, %v2607_v17, 0.0 }
 0x153   : > { %v1633_v26 = vadd.f32 %v1632_v24, %v1631_v14  ;;  %v2022_v27 = vadd.f32 %v2021_v21, %v2020_v12  ;;  %v1084_v31 = vpop.f32.mrf.mxu0  ;;  %3960 = vst [vmem:[#allocation2_spill] sm:$0xff] %v3420_v3  ;;  %1527 = vst.msk [vmem:[%s3007_s10 + $0x370] sm:$0xff] %vm1416_vm0, %v3420_v3  ;;  %v2027_v24 = vsel %vm1416_vm0, %v1854_v34, 0.0 }
 0x154   : > { %1462 = vst.msk [vmem:[%s3007_s10 + $0x168] sm:$0xff] %vm1416_vm0, %v1084_v31  ;;  %v1634_v41 = vsel %vm1416_vm0, %v1084_v31, 0.0  ;;  %v1853_v48 = vmul.f32 %v1084_v31, %v1084_v31 }
 0x155   : > { %v2024_v56 = vadd.f32 %v2023_v38, %v2022_v27  ;;  %v1635_v60 = vadd.f32 %v1634_v41, %v1633_v26  ;;  %v2610_v1 = vpop.f32.mrf.mxu0  ;;  %v3429_v27 = vpop.f32.mrf.mxu1 }
 0x156   : > { %v2025_v42 = vsel %vm1416_vm0, %v1853_v48, 0.0  ;;  %1467 = vst.msk [vmem:[%s3007_s10 + $0x190] sm:$0xff] %vm1416_vm0, %v2610_v1  ;;  %1525 = vst.msk [vmem:[%s3007_s10 + $0x360] sm:$0xff] %vm1416_vm0, %v3429_v27  ;;  %v2029_v48 = vsel %vm1416_vm0, %v1855_v2, 0.0 }
 0x157   : > { %v1637_v12 = vadd.f32 %v1636_v52, %v1635_v60  ;;  %v2026_v14 = vadd.f32 %v2025_v42, %v2024_v56  ;;  %v1097_v21 = vpop.f32.mrf.mxu0  ;;  %v3438_v17 = vpop.f32.mrf.mxu1  ;;  %v1858_v42 = vmul.f32 %v2610_v1, %v2610_v1 }
 0x158   : > { %1465 = vst.msk [vmem:[%s3007_s10 + $0x180] sm:$0xff] %vm1416_vm0, %v1097_v21  ;;  %v1856_v26 = vmul.f32 %v1097_v21, %v1097_v21  ;;  %v1640_v56 = vsel %vm1416_vm0, %v1097_v21, 0.0  ;;  %3961 = vst [vmem:[#allocation3_spill] sm:$0xff] %v3438_v17 }
 0x159   : > { %v2028_v31 = vadd.f32 %v2027_v24, %v2026_v14  ;;  %v1639_v38 = vadd.f32 %v1638_v45, %v1637_v12  ;;  %v2611_v41 = vpop.f32.mrf.mxu0  ;;  %1528 = vst.msk [vmem:[%s3007_s10 + $0x378] sm:$0xff] %vm1416_vm0, %v3438_v17  ;;  %v3447_v21 = vpop.f32.mrf.mxu1 }
 0x15a   : > { %1468 = vst.msk [vmem:[%s3007_s10 + $0x198] sm:$0xff] %vm1416_vm0, %v2611_v41  ;;  %v2031_v12 = vsel %vm1416_vm0, %v1856_v26, 0.0  ;;  %3962 = vst [vmem:[#allocation4_spill] sm:$0xff] %v3447_v21 }
 0x15b   : > { %v1641_v34 = vadd.f32 %v1640_v56, %v1639_v38  ;;  %v2030_v60 = vadd.f32 %v2029_v48, %v2028_v31  ;;  %v1100_v52 = vpop.f32.mrf.mxu0  ;;  %1526 = vst.msk [vmem:[%s3007_s10 + $0x368] sm:$0xff] %vm1416_vm0, %v3447_v21  ;;  %v1644_v38 = vsel %vm1416_vm0, %v2610_v1, 0.0  ;;  %v1859_v48 = vmul.f32 %v2611_v41, %v2611_v41  ;;  %v3456_v56 = vpop.f32.mrf.mxu1 }
 0x15c   : > { %1466 = vst.msk [vmem:[%s3007_s10 + $0x188] sm:$0xff] %vm1416_vm0, %v1100_v52  ;;  %v1642_v2 = vsel %vm1416_vm0, %v1100_v52, 0.0  ;;  %v1857_v14 = vmul.f32 %v1100_v52, %v1100_v52  ;;  %3963 = vst [vmem:[#allocation5_spill] sm:$0xff] %v3456_v56  ;;  %v1646_v1 = vsel %vm1416_vm0, %v2611_v41, 0.0 }
 0x15d   : > { %v2032_v24 = vadd.f32 %v2031_v12, %v2030_v60  ;;  %v1643_v45 = vadd.f32 %v1642_v2, %v1641_v34  ;;  %v2614_v31 = vpop.f32.mrf.mxu0  ;;  %1531 = vst.msk [vmem:[%s3007_s10 + $0x390] sm:$0xff] %vm1416_vm0, %v3456_v56  ;;  %v2035_v34 = vsel %vm1416_vm0, %v1858_v42, 0.0  ;;  %v3465_v12 = vpop.f32.mrf.mxu1 }
 0x15e   : > { %v2033_v26 = vsel %vm1416_vm0, %v1857_v14, 0.0  ;;  %1471 = vst.msk [vmem:[%s3007_s10 + $0x1b0] sm:$0xff] %vm1416_vm0, %v2614_v31  ;;  %3964 = vst [vmem:[#allocation6_spill] sm:$0xff] %v3465_v12 }
 0x15f   : > { %v1645_v52 = vadd.f32 %v1644_v38, %v1643_v45  ;;  %v2034_v17 = vadd.f32 %v2033_v26, %v2032_v24  ;;  %v1113_v3 = vpop.f32.mrf.mxu0  ;;  %1529 = vst.msk [vmem:[%s3007_s10 + $0x380] sm:$0xff] %vm1416_vm0, %v3465_v12  ;;  %v2037_v24 = vsel %vm1416_vm0, %v1859_v48, 0.0  ;;  %v3474_v41 = vpop.f32.mrf.mxu1 }
 0x160   : > { %1469 = vst.msk [vmem:[%s3007_s10 + $0x1a0] sm:$0xff] %vm1416_vm0, %v1113_v3  ;;  %v1860_v60 = vmul.f32 %v1113_v3, %v1113_v3  ;;  %v1648_v45 = vsel %vm1416_vm0, %v1113_v3, 0.0  ;;  %3965 = vst [vmem:[#allocation7_spill] sm:$0xff] %v3474_v41 }
 0x161   : > { %v2036_v2 = vadd.f32 %v2035_v34, %v2034_v17  ;;  %v1647_v14 = vadd.f32 %v1646_v1, %v1645_v52  ;;  %v2615_v21 = vpop.f32.mrf.mxu0  ;;  %1532 = vst.msk [vmem:[%s3007_s10 + $0x398] sm:$0xff] %vm1416_vm0, %v3474_v41  ;;  %v1862_v17 = vmul.f32 %v2614_v31, %v2614_v31  ;;  %v3483_v34 = vpop.f32.mrf.mxu1 }
 0x162   : > { %1472 = vst.msk [vmem:[%s3007_s10 + $0x1b8] sm:$0xff] %vm1416_vm0, %v2615_v21  ;;  %v2039_v52 = vsel %vm1416_vm0, %v1860_v60, 0.0  ;;  %3966 = vst [vmem:[#allocation8_spill] sm:$0xff] %v3483_v34 }
 0x163   : > { %v1649_v42 = vadd.f32 %v1648_v45, %v1647_v14  ;;  %v2038_v38 = vadd.f32 %v2037_v24, %v2036_v2  ;;  %v1116_v26 = vpop.f32.mrf.mxu0  ;;  %1530 = vst.msk [vmem:[%s3007_s10 + $0x388] sm:$0xff] %vm1416_vm0, %v3483_v34  ;;  %v1652_v24 = vsel %vm1416_vm0, %v2614_v31, 0.0  ;;  %v1863_v45 = vmul.f32 %v2615_v21, %v2615_v21  ;;  %v3492_v41 = vpop.f32.mrf.mxu1 }
 0x164   : > { %1470 = vst.msk [vmem:[%s3007_s10 + $0x1a8] sm:$0xff] %vm1416_vm0, %v1116_v26  ;;  %v1650_v3 = vsel %vm1416_vm0, %v1116_v26, 0.0  ;;  %v1861_v48 = vmul.f32 %v1116_v26, %v1116_v26  ;;  %3967 = vst [vmem:[#allocation9_spill] sm:$0xff] %v3492_v41  ;;  %v1654_v31 = vsel %vm1416_vm0, %v2615_v21, 0.0 }
 0x165   : > { %v2040_v1 = vadd.f32 %v2039_v52, %v2038_v38  ;;  %v1651_v14 = vadd.f32 %v1650_v3, %v1649_v42  ;;  %v2618_v2 = vpop.f32.mrf.mxu0  ;;  %1535 = vst.msk [vmem:[%s3007_s10 + $0x3b0] sm:$0xff] %vm1416_vm0, %v3492_v41  ;;  %v2043_v42 = vsel %vm1416_vm0, %v1862_v17, 0.0  ;;  %v3501_v52 = vpop.f32.mrf.mxu1 }
 0x166   : > { %v2041_v60 = vsel %vm1416_vm0, %v1861_v48, 0.0  ;;  %1475 = vst.msk [vmem:[%s3007_s10 + $0x1d0] sm:$0xff] %vm1416_vm0, %v2618_v2  ;;  %3968 = vst [vmem:[#allocation10_spill] sm:$0xff] %v3501_v52 }
 0x167   : > { %v1653_v26 = vadd.f32 %v1652_v24, %v1651_v14  ;;  %v2042_v56 = vadd.f32 %v2041_v60, %v2040_v1  ;;  %v1129_v12 = vpop.f32.mrf.mxu0  ;;  %1533 = vst.msk [vmem:[%s3007_s10 + $0x3a0] sm:$0xff] %vm1416_vm0, %v3501_v52  ;;  %v2045_v1 = vsel %vm1416_vm0, %v1863_v45, 0.0  ;;  %v3510_v21 = vpop.f32.mrf.mxu1 }
 0x168   : > { %1473 = vst.msk [vmem:[%s3007_s10 + $0x1c0] sm:$0xff] %vm1416_vm0, %v1129_v12  ;;  %v1864_v38 = vmul.f32 %v1129_v12, %v1129_v12  ;;  %v1656_v14 = vsel %vm1416_vm0, %v1129_v12, 0.0  ;;  %3969 = vst [vmem:[#allocation11_spill] sm:$0xff] %v3510_v21 }
 0x169   : > { %v2044_v3 = vadd.f32 %v2043_v42, %v2042_v56  ;;  %v1655_v48 = vadd.f32 %v1654_v31, %v1653_v26  ;;  %v2619_v34 = vpop.f32.mrf.mxu0  ;;  %1536 = vst.msk [vmem:[%s3007_s10 + $0x3b8] sm:$0xff] %vm1416_vm0, %v3510_v21  ;;  %v1866_v56 = vmul.f32 %v2618_v2, %v2618_v2  ;;  %v3519_v42 = vpop.f32.mrf.mxu1 }
 0x16a   : > { %1476 = vst.msk [vmem:[%s3007_s10 + $0x1d8] sm:$0xff] %vm1416_vm0, %v2619_v34  ;;  %v2047_v26 = vsel %vm1416_vm0, %v1864_v38, 0.0  ;;  %3970 = vst [vmem:[#allocation12_spill] sm:$0xff] %v3519_v42 }
 0x16b   : > { %v1657_v17 = vadd.f32 %v1656_v14, %v1655_v48  ;;  %v2046_v24 = vadd.f32 %v2045_v1, %v2044_v3  ;;  %v1132_v60 = vpop.f32.mrf.mxu0  ;;  %1534 = vst.msk [vmem:[%s3007_s10 + $0x3a8] sm:$0xff] %vm1416_vm0, %v3519_v42  ;;  %v1660_v1 = vsel %vm1416_vm0, %v2618_v2, 0.0  ;;  %v1867_v14 = vmul.f32 %v2619_v34, %v2619_v34  ;;  %v3528_v21 = vpop.f32.mrf.mxu1 }
 0x16c   : > { %1474 = vst.msk [vmem:[%s3007_s10 + $0x1c8] sm:$0xff] %vm1416_vm0, %v1132_v60  ;;  %v1658_v12 = vsel %vm1416_vm0, %v1132_v60, 0.0  ;;  %v1865_v45 = vmul.f32 %v1132_v60, %v1132_v60  ;;  %3971 = vst [vmem:[#allocation13_spill] sm:$0xff] %v3528_v21  ;;  %v1662_v2 = vsel %vm1416_vm0, %v2619_v34, 0.0 }
 0x16d   : > { %v2048_v31 = vadd.f32 %v2047_v26, %v2046_v24  ;;  %v1659_v48 = vadd.f32 %v1658_v12, %v1657_v17  ;;  %v2622_v3 = vpop.f32.mrf.mxu0  ;;  %1539 = vst.msk [vmem:[%s3007_s10 + $0x3d0] sm:$0xff] %vm1416_vm0, %v3528_v21  ;;  %v2051_v17 = vsel %vm1416_vm0, %v1866_v56, 0.0  ;;  %v3537_v26 = vpop.f32.mrf.mxu1 }
 0x16e   : > { %v2049_v38 = vsel %vm1416_vm0, %v1865_v45, 0.0  ;;  %1479 = vst.msk [vmem:[%s3007_s10 + $0x1f0] sm:$0xff] %vm1416_vm0, %v2622_v3  ;;  %1537 = vst.msk [vmem:[%s3007_s10 + $0x3c0] sm:$0xff] %vm1416_vm0, %v3537_v26 }
 0x16f   : > { %v1661_v60 = vadd.f32 %v1660_v1, %v1659_v48  ;;  %v2050_v41 = vadd.f32 %v2049_v38, %v2048_v31  ;;  %v1145_v52 = vpop.f32.mrf.mxu0  ;;  %v2053_v31 = vsel %vm1416_vm0, %v1867_v14, 0.0  ;;  %v3546_v34 = vpop.f32.mrf.mxu1 }
 0x170   : > { %1477 = vst.msk [vmem:[%s3007_s10 + $0x1e0] sm:$0xff] %vm1416_vm0, %v1145_v52  ;;  %v1868_v24 = vmul.f32 %v1145_v52, %v1145_v52  ;;  %v1664_v56 = vsel %vm1416_vm0, %v1145_v52, 0.0  ;;  %3972 = vst [vmem:[#allocation14_spill] sm:$0xff] %v3546_v34 }
 0x171   : > { %v2052_v12 = vadd.f32 %v2051_v17, %v2050_v41  ;;  %v1663_v45 = vadd.f32 %v1662_v2, %v1661_v60  ;;  %v2623_v42 = vpop.f32.mrf.mxu0  ;;  %1540 = vst.msk [vmem:[%s3007_s10 + $0x3d8] sm:$0xff] %vm1416_vm0, %v3546_v34  ;;  %v1870_v41 = vmul.f32 %v2622_v3, %v2622_v3  ;;  %v3555_v52 = vpop.f32.mrf.mxu1 }
 0x172   : > { %1480 = vst.msk [vmem:[%s3007_s10 + $0x1f8] sm:$0xff] %vm1416_vm0, %v2623_v42  ;;  %v2055_v60 = vsel %vm1416_vm0, %v1868_v24, 0.0  ;;  %1538 = vst.msk [vmem:[%s3007_s10 + $0x3c8] sm:$0xff] %vm1416_vm0, %v3555_v52 }
 0x173   : > { %v1665_v48 = vadd.f32 %v1664_v56, %v1663_v45  ;;  %v2054_v1 = vadd.f32 %v2053_v31, %v2052_v12  ;;  %v1148_v38 = vpop.f32.mrf.mxu0  ;;  %v1668_v12 = vsel %vm1416_vm0, %v2622_v3, 0.0  ;;  %v1871_v45 = vmul.f32 %v2623_v42, %v2623_v42  ;;  %v3562_v56 = vpop.f32.mrf.mxu1 }
 0x174   : > { %1478 = vst.msk [vmem:[%s3007_s10 + $0x1e8] sm:$0xff] %vm1416_vm0, %v1148_v38  ;;  %v1666_v14 = vsel %vm1416_vm0, %v1148_v38, 0.0  ;;  %v1869_v17 = vmul.f32 %v1148_v38, %v1148_v38  ;;  %1543 = vst.msk [vmem:[%s3007_s10 + $0x3f0] sm:$0xff] %vm1416_vm0, %v3562_v56  ;;  %v1872_v38 = vmul.f32 %v3033_v30, %v3033_v30 }
 0x175   : > { %v2056_v2 = vadd.f32 %v2055_v60, %v2054_v1  ;;  %v1667_v21 = vadd.f32 %v1666_v14, %v1665_v48  ;;  %v2059_v1 = vsel %vm1416_vm0, %v1870_v41, 0.0  ;;  %v1670_v48 = vsel %vm1416_vm0, %v2623_v42, 0.0  ;;  %v3571_v60 = vpop.f32.mrf.mxu1 }
 0x176   : > { %v2057_v31 = vsel %vm1416_vm0, %v1869_v17, 0.0  ;;  %1541 = vst.msk [vmem:[%s3007_s10 + $0x3e0] sm:$0xff] %vm1416_vm0, %v3571_v60  ;;  %v1672_v17 = vsel %vm1416_vm0, %v3033_v30, 0.0  ;;  %v1873_v41 = vmul.f32 %v3051_v44, %v3051_v44 }
 0x177   : > { %v1669_v24 = vadd.f32 %v1668_v12, %v1667_v21  ;;  %v2058_v34 = vadd.f32 %v2057_v31, %v2056_v2  ;;  %v2061_v21 = vsel %vm1416_vm0, %v1871_v45, 0.0  ;;  %v3581_v42 = vpop.f32.mrf.mxu1  ;;  %v2063_v31 = vsel %vm1416_vm0, %v1872_v38, 0.0 }
 0x178   : > { %1544 = vst.msk [vmem:[%s3007_s10 + $0x3f8] sm:$0xff] %vm1416_vm0, %v3581_v42  ;;  %v1674_v45 = vsel %vm1416_vm0, %v3051_v44, 0.0  ;;  %v1678_v44 = vsel %vm1416_vm0, %v3042_v36, 0.0 }
 0x179   : > { %v1671_v3 = vadd.f32 %v1670_v48, %v1669_v24  ;;  %v2060_v14 = vadd.f32 %v2059_v1, %v2058_v34  ;;  %v1874_v34 = vmul.f32 %v3024_v23, %v3024_v23  ;;  %v3591_v24 = vpop.f32.mrf.mxu1  ;;  %v1676_v48 = vsel %vm1416_vm0, %v3024_v23, 0.0 }
 0x17a   : > { %1542 = vst.msk [vmem:[%s3007_s10 + $0x3e8] sm:$0xff] %vm1416_vm0, %v3591_v24  ;;  %v1680_v23 = vsel %vm1416_vm0, %v3069_v58, 0.0 }
 0x17b   : > { %v1673_v2 = vadd.f32 %v1672_v17, %v1671_v3  ;;  %v2062_v12 = vadd.f32 %v2061_v21, %v2060_v14  ;;  %v1875_v3 = vmul.f32 %v3042_v36, %v3042_v36  ;;  %v2065_v14 = vsel %vm1416_vm0, %v1873_v41, 0.0 }
 0x17c   : > { %v2067_v17 = vsel %vm1416_vm0, %v1874_v34, 0.0  ;;  %v1877_v41 = vmul.f32 %v3087_v8, %v3087_v8  ;;  %v1878_v34 = vmul.f32 %v3060_v51, %v3060_v51 }
 0x17d   : > { %v2064_v30 = vadd.f32 %v2063_v31, %v2062_v12  ;;  %v1675_v1 = vadd.f32 %v1674_v45, %v1673_v2  ;;  %v1876_v2 = vmul.f32 %v3069_v58, %v3069_v58  ;;  %v2069_v45 = vsel %vm1416_vm0, %v1875_v3, 0.0 }
 0x17e   : > { %v1684_v3 = vsel %vm1416_vm0, %v3060_v51, 0.0  ;;  %v1879_v58 = vmul.f32 %v3078_v0, %v3078_v0  ;;  %v1688_v51 = vsel %vm1416_vm0, %v3105_v22, 0.0 }
 0x17f   : > { %v1677_v21 = vadd.f32 %v1676_v48, %v1675_v1  ;;  %v2066_v38 = vadd.f32 %v2065_v14, %v2064_v30  ;;  %v2071_v36 = vsel %vm1416_vm0, %v1876_v2, 0.0  ;;  %v1682_v48 = vsel %vm1416_vm0, %v3087_v8, 0.0 }
 0x180   : > { %v1686_v2 = vsel %vm1416_vm0, %v3078_v0, 0.0  ;;  %v1880_v8 = vmul.f32 %v3105_v22, %v3105_v22  ;;  %v1883_v22 = vmul.f32 %v3114_v29, %v3114_v29 }
 0x181   : > { %v2068_v12 = vadd.f32 %v2067_v17, %v2066_v38  ;;  %v1679_v31 = vadd.f32 %v1678_v44, %v1677_v21  ;;  %v2073_v38 = vsel %vm1416_vm0, %v1877_v41, 0.0  ;;  %v1881_v41 = vmul.f32 %v3123_v39, %v3123_v39 }
 0x182   : > { %v2079_v0 = vsel %vm1416_vm0, %v1880_v8, 0.0  ;;  %v2085_v8 = vsel %vm1416_vm0, %v1883_v22, 0.0 }
 0x183   : > { %v1681_v1 = vadd.f32 %v1680_v23, %v1679_v31  ;;  %v2070_v30 = vadd.f32 %v2069_v45, %v2068_v12  ;;  %v2075_v12 = vsel %vm1416_vm0, %v1878_v34, 0.0  ;;  %v2077_v23 = vsel %vm1416_vm0, %v1879_v58, 0.0 }
 0x184   : > { %v1882_v34 = vmul.f32 %v3096_v15, %v3096_v15 }
 0x185   : > { %v2072_v14 = vadd.f32 %v2071_v36, %v2070_v30  ;;  %v1683_v21 = vadd.f32 %v1682_v48, %v1681_v1  ;;  %v1690_v36 = vsel %vm1416_vm0, %v3123_v39, 0.0  ;;  %v1884_v39 = vmul.f32 %v3141_v55, %v3141_v55 }
 0x187   : > { %v1685_v17 = vadd.f32 %v1684_v3, %v1683_v21  ;;  %v2074_v44 = vadd.f32 %v2073_v38, %v2072_v14  ;;  %v1692_v21 = vsel %vm1416_vm0, %v3096_v15, 0.0  ;;  %v2081_v3 = vsel %vm1416_vm0, %v1881_v41, 0.0 }
 0x188   : > { %v1696_v15 = vsel %vm1416_vm0, %v3141_v55, 0.0  ;;  %v1698_v41 = vsel %vm1416_vm0, %v3159_v7, 0.0  ;;  %v1887_v55 = vmul.f32 %v3150_v62, %v3150_v62 }
 0x189   : > { %v2076_v31 = vadd.f32 %v2075_v12, %v2074_v44  ;;  %v1687_v45 = vadd.f32 %v1686_v2, %v1685_v17  ;;  %v2083_v17 = vsel %vm1416_vm0, %v1882_v34, 0.0  ;;  %v1694_v44 = vsel %vm1416_vm0, %v3114_v29, 0.0 }
 0x18a   : > { %v2087_v29 = vsel %vm1416_vm0, %v1884_v39, 0.0  ;;  %v1700_v34 = vsel %vm1416_vm0, %v3132_v47, 0.0  ;;  %v1890_v39 = vmul.f32 %v3168_v16, %v3168_v16 }
 0x18b   : > { %v1689_v1 = vadd.f32 %v1688_v51, %v1687_v45  ;;  %v2078_v30 = vadd.f32 %v2077_v23, %v2076_v31  ;;  %v1885_v31 = vmul.f32 %v3159_v7, %v3159_v7  ;;  %v1886_v51 = vmul.f32 %v3132_v47, %v3132_v47 }
 0x18c   : > { %v1888_v7 = vmul.f32 %v3177_v25, %v3177_v25  ;;  %v1704_v47 = vsel %vm1416_vm0, %v3177_v25, 0.0  ;;  %v1891_v25 = vmul.f32 %v3186_v33, %v3186_v33 }
 0x18d   : > { %v2080_v48 = vadd.f32 %v2079_v0, %v2078_v30  ;;  %v1691_v14 = vadd.f32 %v1690_v36, %v1689_v1  ;;  %v2089_v0 = vsel %vm1416_vm0, %v1885_v31, 0.0 }
 0x18f   : > { %v1693_v58 = vadd.f32 %v1692_v21, %v1691_v14  ;;  %v2082_v38 = vadd.f32 %v2081_v3, %v2080_v48  ;;  %v2091_v14 = vsel %vm1416_vm0, %v1886_v51, 0.0  ;;  %v1702_v21 = vsel %vm1416_vm0, %v3150_v62, 0.0 }
 0x190   : > { %v2095_v62 = vsel %vm1416_vm0, %v1888_v7, 0.0  ;;  %v2099_v51 = vsel %vm1416_vm0, %v1890_v39, 0.0  ;;  %v1716_v7 = vsel %vm1416_vm0, %v3204_v53, 0.0 }
 0x191   : > { %v2084_v12 = vadd.f32 %v2083_v17, %v2082_v38  ;;  %v1695_v2 = vadd.f32 %v1694_v44, %v1693_v58  ;;  %v2093_v58 = vsel %vm1416_vm0, %v1887_v55, 0.0  ;;  %v1889_v38 = vmul.f32 %v3195_v43, %v3195_v43 }
 0x193   : > { %v1697_v45 = vadd.f32 %v1696_v15, %v1695_v2  ;;  %v2086_v23 = vadd.f32 %v2085_v8, %v2084_v12  ;;  %v1706_v12 = vsel %vm1416_vm0, %v3195_v43, 0.0  ;;  %v1708_v15 = vsel %vm1416_vm0, %v3168_v16, 0.0 }
 0x194   : > { %v2097_v31 = vsel %vm1416_vm0, %v1889_v38, 0.0  ;;  %v1892_v43 = vmul.f32 %v3213_v63, %v3213_v63  ;;  %v1712_v16 = vsel %vm1416_vm0, %v3213_v63, 0.0  ;;  %v1895_v63 = vmul.f32 %v3222_v6, %v3222_v6 }
 0x195   : > { %v2088_v1 = vadd.f32 %v2087_v29, %v2086_v23  ;;  %v1699_v30 = vadd.f32 %v1698_v41, %v1697_v45  ;;  %v1710_v29 = vsel %vm1416_vm0, %v3186_v33, 0.0  ;;  %v1718_v38 = vsel %vm1416_vm0, %v3222_v6, 0.0 }
 0x196   : > { %v2103_v33 = vsel %vm1416_vm0, %v1892_v43, 0.0  ;;  %v2109_v39 = vsel %vm1416_vm0, %v1895_v63, 0.0 }
 0x197   : > { %v1701_v36 = vadd.f32 %v1700_v34, %v1699_v30  ;;  %v2090_v48 = vadd.f32 %v2089_v0, %v2088_v1  ;;  %v2101_v30 = vsel %vm1416_vm0, %v1891_v25, 0.0  ;;  %v1893_v34 = vmul.f32 %v3231_v18, %v3231_v18 }
 0x199   : > { %v2092_v22 = vadd.f32 %v2091_v14, %v2090_v48  ;;  %v1703_v3 = vadd.f32 %v1702_v21, %v1701_v36  ;;  %v1894_v36 = vmul.f32 %v3204_v53, %v3204_v53  ;;  %v1714_v48 = vsel %vm1416_vm0, %v3231_v18, 0.0 }
 0x19a   : > { %v1896_v18 = vmul.f32 %v3249_v40, %v3249_v40  ;;  %v1720_v53 = vsel %vm1416_vm0, %v3249_v40, 0.0  ;;  %v1899_v40 = vmul.f32 %v3258_v49, %v3258_v49 }
 0x19b   : > { %v1705_v17 = vadd.f32 %v1704_v47, %v1703_v3  ;;  %v2094_v44 = vadd.f32 %v2093_v58, %v2092_v22  ;;  %v2105_v22 = vsel %vm1416_vm0, %v1893_v34, 0.0  ;;  %v2107_v47 = vsel %vm1416_vm0, %v1894_v36, 0.0 }
 0x19c   : > { %v2111_v6 = vsel %vm1416_vm0, %v1896_v18, 0.0  ;;  %v1901_v34 = vmul.f32 %v3303_v46, %v3303_v46  ;;  %v1902_v36 = vmul.f32 %v3276_v10, %v3276_v10 }
 0x19d   : > { %v2096_v2 = vadd.f32 %v2095_v62, %v2094_v44  ;;  %v1707_v8 = vadd.f32 %v1706_v12, %v1705_v17  ;;  %v1897_v62 = vmul.f32 %v3267_v61, %v3267_v61 }
 0x19f   : > { %v1709_v45 = vadd.f32 %v1708_v15, %v1707_v8  ;;  %v2098_v23 = vadd.f32 %v2097_v31, %v2096_v2  ;;  %v1898_v8 = vmul.f32 %v3240_v28, %v3240_v28  ;;  %v1722_v15 = vsel %vm1416_vm0, %v3267_v61, 0.0 }
 0x1a0   : > { %v1900_v61 = vmul.f32 %v3285_v20, %v3285_v20 }
 0x1a1   : > { %v2100_v41 = vadd.f32 %v2099_v51, %v2098_v23  ;;  %v1711_v1 = vadd.f32 %v1710_v29, %v1709_v45  ;;  %v1724_v45 = vsel %vm1416_vm0, %v3240_v28, 0.0  ;;  %v2113_v23 = vsel %vm1416_vm0, %v1897_v62, 0.0 }
 0x1a2   : > { %v2115_v43 = vsel %vm1416_vm0, %v1898_v8, 0.0  ;;  %v1728_v28 = vsel %vm1416_vm0, %v3285_v20, 0.0  ;;  %v1903_v20 = vmul.f32 %v3294_v32, %v3294_v32  ;;  %v1738_v62 = vsel %vm1416_vm0, %v3339_v37, 0.0 }
 0x1a3   : > { %v1713_v55 = vadd.f32 %v1712_v16, %v1711_v1  ;;  %v2102_v0 = vadd.f32 %v2101_v30, %v2100_v41  ;;  %v1726_v41 = vsel %vm1416_vm0, %v3258_v49, 0.0  ;;  %v2117_v16 = vsel %vm1416_vm0, %v1899_v40, 0.0 }
 0x1a4   : > { %v2119_v49 = vsel %vm1416_vm0, %v1900_v61, 0.0  ;;  %v2125_v18 = vsel %vm1416_vm0, %v1903_v20, 0.0  ;;  %v1740_v8 = vsel %vm1416_vm0, %v3312_v59, 0.0  ;;  %v1910_v61 = vmul.f32 %v3348_v54, %v3348_v54 }
 0x1a5   : > { %v2104_v14 = vadd.f32 %v2103_v33, %v2102_v0  ;;  %v1715_v21 = vadd.f32 %v1714_v48, %v1713_v55  ;;  %v1730_v33 = vsel %vm1416_vm0, %v3303_v46, 0.0  ;;  %v1904_v46 = vmul.f32 %v3321_v9, %v3321_v9 }
 0x1a7   : > { %v1717_v3 = vadd.f32 %v1716_v7, %v1715_v21  ;;  %v2106_v58 = vadd.f32 %v2105_v22, %v2104_v14  ;;  %v1732_v21 = vsel %vm1416_vm0, %v3276_v10, 0.0  ;;  %v2121_v7 = vsel %vm1416_vm0, %v1901_v34, 0.0 }
 0x1a8   : > { %v1736_v10 = vsel %vm1416_vm0, %v3321_v9, 0.0  ;;  %v1907_v9 = vmul.f32 %v3330_v19, %v3330_v19 }
 0x1a9   : > { %v2108_v17 = vadd.f32 %v2107_v47, %v2106_v58  ;;  %v1719_v44 = vadd.f32 %v1718_v38, %v1717_v3  ;;  %v2123_v3 = vsel %vm1416_vm0, %v1902_v36, 0.0  ;;  %v1734_v58 = vsel %vm1416_vm0, %v3294_v32, 0.0 }
 0x1aa   : > { %v2127_v32 = vsel %vm1416_vm0, %v1904_v46, 0.0  ;;  %v2139_v36 = vsel %vm1416_vm0, %v1910_v61, 0.0  ;;  %v1756_v46 = vsel %vm1416_vm0, %v3384_v57, 0.0 }
 0x1ab   : > { %v1721_v12 = vadd.f32 %v1720_v53, %v1719_v44  ;;  %v2110_v2 = vadd.f32 %v2109_v39, %v2108_v17  ;;  %v1905_v17 = vmul.f32 %v3339_v37, %v3339_v37  ;;  %v1906_v53 = vmul.f32 %v3312_v59, %v3312_v59 }
 0x1ac   : > { %v1908_v37 = vmul.f32 %v3357_v4, %v3357_v4  ;;  %v1744_v59 = vsel %vm1416_vm0, %v3357_v4, 0.0  ;;  %v1911_v4 = vmul.f32 %v3366_v13, %v3366_v13 }
 0x1ad   : > { %v2112_v25 = vadd.f32 %v2111_v6, %v2110_v2  ;;  %v1723_v31 = vadd.f32 %v1722_v15, %v1721_v12  ;;  %v2129_v6 = vsel %vm1416_vm0, %v1905_v17, 0.0  ;;  %v1758_v17 = vsel %vm1416_vm0, %v3402_v11, 0.0 }
 0x1af   : > { %v1725_v51 = vadd.f32 %v1724_v45, %v1723_v31  ;;  %v2114_v29 = vadd.f32 %v2113_v23, %v2112_v25  ;;  %v2131_v31 = vsel %vm1416_vm0, %v1906_v53, 0.0  ;;  %v1742_v45 = vsel %vm1416_vm0, %v3330_v19, 0.0 }
 0x1b0   : > { %v2135_v19 = vsel %vm1416_vm0, %v1908_v37, 0.0 }
 0x1b1   : > { %v2116_v1 = vadd.f32 %v2115_v43, %v2114_v29  ;;  %v1727_v30 = vadd.f32 %v1726_v41, %v1725_v51  ;;  %v2133_v51 = vsel %vm1416_vm0, %v1907_v9, 0.0  ;;  %v1909_v29 = vmul.f32 %v3375_v35, %v3375_v35 }
 0x1b3   : > { %v1729_v55 = vadd.f32 %v1728_v28, %v1727_v30  ;;  %v2118_v0 = vadd.f32 %v2117_v16, %v2116_v1  ;;  %v1746_v1 = vsel %vm1416_vm0, %v3375_v35, 0.0  ;;  %v1748_v28 = vsel %vm1416_vm0, %v3348_v54, 0.0 }
 0x1b4   : > { %v2137_v34 = vsel %vm1416_vm0, %v1909_v29, 0.0  ;;  %v1912_v35 = vmul.f32 %v3393_v5, %v3393_v5  ;;  %v1752_v54 = vsel %vm1416_vm0, %v3393_v5, 0.0  ;;  %v1915_v5 = vmul.f32 %v3402_v11, %v3402_v11  ;;  %v3976_v29 = vld [vmem:[#allocation6_spill] sm:$0xff] }
 0x1b5   : > { %v2120_v48 = vadd.f32 %v2119_v49, %v2118_v0  ;;  %v1731_v14 = vadd.f32 %v1730_v33, %v1729_v55  ;;  %v1750_v49 = vsel %vm1416_vm0, %v3366_v13, 0.0 }
 0x1b6   : > { %v2143_v13 = vsel %vm1416_vm0, %v1912_v35, 0.0  ;;  %v2149_v53 = vsel %vm1416_vm0, %v1915_v5, 0.0 }
 0x1b7   : > { %v1733_v63 = vadd.f32 %v1732_v21, %v1731_v14  ;;  %v2122_v22 = vadd.f32 %v2121_v7, %v2120_v48  ;;  %v2141_v14 = vsel %vm1416_vm0, %v1911_v4, 0.0  ;;  %v1913_v21 = vmul.f32 %v3411_v50, %v3411_v50 }
 0x1b9   : > { %v2124_v47 = vadd.f32 %v2123_v3, %v2122_v22  ;;  %v1735_v38 = vadd.f32 %v1734_v58, %v1733_v63  ;;  %v1914_v63 = vmul.f32 %v3384_v57, %v3384_v57  ;;  %v1754_v22 = vsel %vm1416_vm0, %v3411_v50, 0.0 }
 0x1ba   : > { %v1916_v50 = vmul.f32 %v3429_v27, %v3429_v27  ;;  %v1760_v57 = vsel %vm1416_vm0, %v3429_v27, 0.0 }
 0x1bb   : > { %v1737_v44 = vadd.f32 %v1736_v10, %v1735_v38  ;;  %v2126_v39 = vadd.f32 %v2125_v18, %v2124_v47  ;;  %v2145_v47 = vsel %vm1416_vm0, %v1913_v21, 0.0  ;;  %v2147_v10 = vsel %vm1416_vm0, %v1914_v63, 0.0 }
 0x1bc   : > { %v2151_v11 = vsel %vm1416_vm0, %v1916_v50, 0.0 }
 0x1bd   : > { %v2128_v12 = vadd.f32 %v2127_v32, %v2126_v39  ;;  %v1739_v2 = vadd.f32 %v1738_v62, %v1737_v44  ;;  %v3973_v32 = vld [vmem:[#allocation4_spill] sm:$0xff] }
 0x1be   : > { %v1917_v62 = vmul.f32 %v3973_v32, %v3973_v32 }
 0x1bf   : > { %v1741_v15 = vadd.f32 %v1740_v8, %v1739_v2  ;;  %v2130_v25 = vadd.f32 %v2129_v6, %v2128_v12  ;;  %v3974_v8 = vld [vmem:[#allocation2_spill] sm:$0xff]  ;;  %v1762_v6 = vsel %vm1416_vm0, %v3973_v32, 0.0 }
 0x1c0   : > { %v1918_v9 = vmul.f32 %v3974_v8, %v3974_v8  ;;  %v2153_v37 = vsel %vm1416_vm0, %v1917_v62, 0.0  ;;  %v3983_v62 = vld [vmem:[#allocation11_spill] sm:$0xff] }
 0x1c1   : > { %v2132_v40 = vadd.f32 %v2131_v31, %v2130_v25  ;;  %v1743_v23 = vadd.f32 %v1742_v45, %v1741_v15  ;;  %v1764_v31 = vsel %vm1416_vm0, %v3974_v8, 0.0  ;;  %v3975_v45 = vld [vmem:[#allocation3_spill] sm:$0xff] }
 0x1c2   : > { %v1919_v27 = vmul.f32 %v3975_v45, %v3975_v45 }
 0x1c3   : > { %v1745_v43 = vadd.f32 %v1744_v59, %v1743_v23  ;;  %v2134_v41 = vadd.f32 %v2133_v51, %v2132_v40  ;;  %v2155_v51 = vsel %vm1416_vm0, %v1918_v9, 0.0  ;;  %v1766_v59 = vsel %vm1416_vm0, %v3975_v45, 0.0 }
 0x1c5   : > { %v2136_v30 = vadd.f32 %v2135_v19, %v2134_v41  ;;  %v1747_v16 = vadd.f32 %v1746_v1, %v1745_v43  ;;  %v1920_v43 = vmul.f32 %v3976_v29, %v3976_v29  ;;  %v2157_v19 = vsel %vm1416_vm0, %v1919_v27, 0.0 }
 0x1c6   : > { %v1768_v1 = vsel %vm1416_vm0, %v3976_v29, 0.0  ;;  %v1784_v27 = vsel %vm1416_vm0, %v3537_v26, 0.0 }
 0x1c7   : > { %v1749_v55 = vadd.f32 %v1748_v28, %v1747_v16  ;;  %v2138_v0 = vadd.f32 %v2137_v34, %v2136_v30  ;;  %v3977_v30 = vld [vmem:[#allocation8_spill] sm:$0xff]  ;;  %v3978_v34 = vld [vmem:[#allocation5_spill] sm:$0xff] }
 0x1c8   : > { %v1921_v16 = vmul.f32 %v3977_v30, %v3977_v30 }
 0x1c9   : > { %v2140_v33 = vadd.f32 %v2139_v36, %v2138_v0  ;;  %v1751_v48 = vadd.f32 %v1750_v49, %v1749_v55  ;;  %v1922_v55 = vmul.f32 %v3978_v34, %v3978_v34  ;;  %v2159_v0 = vsel %vm1416_vm0, %v1920_v43, 0.0 }
 0x1ca   : > { %v1770_v36 = vsel %vm1416_vm0, %v3977_v30, 0.0  ;;  %v1786_v43 = vsel %vm1416_vm0, %v3555_v52, 0.0 }
 0x1cb   : > { %v1753_v20 = vadd.f32 %v1752_v54, %v1751_v48  ;;  %v2142_v7 = vadd.f32 %v2141_v14, %v2140_v33  ;;  %v1772_v33 = vsel %vm1416_vm0, %v3978_v34, 0.0  ;;  %v3979_v48 = vld [vmem:[#allocation7_spill] sm:$0xff]  ;;  %v2161_v54 = vsel %vm1416_vm0, %v1921_v16, 0.0 }
 0x1cc   : > { %v1923_v14 = vmul.f32 %v3979_v48, %v3979_v48  ;;  %v1774_v63 = vsel %vm1416_vm0, %v3979_v48, 0.0 }
 0x1cd   : > { %v2144_v3 = vadd.f32 %v2143_v13, %v2142_v7  ;;  %v1755_v58 = vadd.f32 %v1754_v22, %v1753_v20  ;;  %v2163_v7 = vsel %vm1416_vm0, %v1922_v55, 0.0  ;;  %v3980_v13 = vld [vmem:[#allocation10_spill] sm:$0xff] }
 0x1ce   : > { %v1924_v22 = vmul.f32 %v3980_v13, %v3980_v13  ;;  %v1776_v5 = vsel %vm1416_vm0, %v3980_v13, 0.0 }
 0x1cf   : > { %v1757_v38 = vadd.f32 %v1756_v46, %v1755_v58  ;;  %v2146_v18 = vadd.f32 %v2145_v47, %v2144_v3  ;;  %v2165_v46 = vsel %vm1416_vm0, %v1923_v14, 0.0  ;;  %v3981_v47 = vld [vmem:[#allocation12_spill] sm:$0xff]  ;;  %v1934_v14 = vmul.f32 %v3562_v56, %v3562_v56 }
 0x1d1   : > { %v2148_v44 = vadd.f32 %v2147_v10, %v2146_v18  ;;  %v1759_v39 = vadd.f32 %v1758_v17, %v1757_v38  ;;  %v1925_v38 = vmul.f32 %v3981_v47, %v3981_v47  ;;  %v3982_v17 = vld [vmem:[#allocation9_spill] sm:$0xff] }
 0x1d2   : > { %v1926_v50 = vmul.f32 %v3982_v17, %v3982_v17  ;;  %v1780_v32 = vsel %vm1416_vm0, %v3982_v17, 0.0 }
 0x1d3   : > { %v1761_v12 = vadd.f32 %v1760_v57, %v1759_v39  ;;  %v2150_v2 = vadd.f32 %v2149_v53, %v2148_v44  ;;  %v2167_v44 = vsel %vm1416_vm0, %v1924_v22, 0.0  ;;  %v1778_v39 = vsel %vm1416_vm0, %v3981_v47, 0.0 }
 0x1d5   : > { %v2152_v15 = vadd.f32 %v2151_v11, %v2150_v2  ;;  %v1763_v25 = vadd.f32 %v1762_v6, %v1761_v12  ;;  %v1927_v12 = vmul.f32 %v3983_v62, %v3983_v62  ;;  %v2169_v2 = vsel %vm1416_vm0, %v1925_v38, 0.0 }
 0x1d6   : > { %v2171_v11 = vsel %vm1416_vm0, %v1926_v50, 0.0  ;;  %v1782_v6 = vsel %vm1416_vm0, %v3983_v62, 0.0 }
 0x1d7   : > { %v1765_v40 = vadd.f32 %v1764_v31, %v1763_v25  ;;  %v2154_v23 = vadd.f32 %v2153_v37, %v2152_v15  ;;  %v1928_v15 = vmul.f32 %v3537_v26, %v3537_v26  ;;  %v2173_v45 = vsel %vm1416_vm0, %v1927_v12, 0.0 }
 0x1d8   : > { %v1929_v37 = vmul.f32 %v3555_v52, %v3555_v52  ;;  %v1932_v52 = vmul.f32 %v3571_v60, %v3571_v60 }
 0x1d9   : > { %v2156_v41 = vadd.f32 %v2155_v51, %v2154_v23  ;;  %v1767_v61 = vadd.f32 %v1766_v59, %v1765_v40  ;;  %v3984_v51 = vld [vmem:[#allocation13_spill] sm:$0xff]  ;;  %v2175_v29 = vsel %vm1416_vm0, %v1928_v15, 0.0 }
 0x1da   : > { %v1930_v59 = vmul.f32 %v3984_v51, %v3984_v51  ;;  %v2177_v30 = vsel %vm1416_vm0, %v1929_v37, 0.0 }
 0x1db   : > { %v1769_v28 = vadd.f32 %v1768_v1, %v1767_v61  ;;  %v2158_v4 = vadd.f32 %v2157_v19, %v2156_v41  ;;  %v1788_v19 = vsel %vm1416_vm0, %v3984_v51, 0.0  ;;  %v3985_v1 = vld [vmem:[#allocation14_spill] sm:$0xff] }
 0x1dc   : > { %v1931_v26 = vmul.f32 %v3985_v1, %v3985_v1  ;;  %v1790_v34 = vsel %vm1416_vm0, %v3985_v1, 0.0 }
 0x1dd   : > { %v2160_v49 = vadd.f32 %v2159_v0, %v2158_v4  ;;  %v1771_v35 = vadd.f32 %v1770_v36, %v1769_v28  ;;  %v2179_v4 = vsel %vm1416_vm0, %v1930_v59, 0.0 }
 0x1de   : > { %v2181_v36 = vsel %vm1416_vm0, %v1931_v26, 0.0 }
 0x1df   : > { %v1773_v21 = vadd.f32 %v1772_v33, %v1771_v35  ;;  %v2162_v20 = vadd.f32 %v2161_v54, %v2160_v49  ;;  %v1792_v49 = vsel %vm1416_vm0, %v3571_v60, 0.0  ;;  %v1933_v35 = vmul.f32 %v3591_v24, %v3591_v24 }
 0x1e0   : > { %v2183_v54 = vsel %vm1416_vm0, %v1932_v52, 0.0  ;;  %v1796_v60 = vsel %vm1416_vm0, %v3562_v56, 0.0 }
 0x1e1   : > { %v2164_v3 = vadd.f32 %v2163_v7, %v2162_v20  ;;  %v1775_v58 = vadd.f32 %v1774_v63, %v1773_v21  ;;  %v1794_v21 = vsel %vm1416_vm0, %v3591_v24, 0.0  ;;  %v1935_v63 = vmul.f32 %v3581_v42, %v3581_v42 }
 0x1e2   : > { %v2185_v13 = vsel %vm1416_vm0, %v1933_v35, 0.0 }
 0x1e3   : > { %v1777_v18 = vadd.f32 %v1776_v5, %v1775_v58  ;;  %v2166_v10 = vadd.f32 %v2165_v46, %v2164_v3  ;;  %v2187_v58 = vsel %vm1416_vm0, %v1934_v14, 0.0  ;;  %v1798_v46 = vsel %vm1416_vm0, %v3581_v42, 0.0 }
 0x1e4   : > { %v2189_v47 = vsel %vm1416_vm0, %v1935_v63, 0.0 }
 0x1e5   : > { %v2168_v53 = vadd.f32 %v2167_v44, %v2166_v10  ;;  %v1779_v57 = vadd.f32 %v1778_v39, %v1777_v18 }
 0x1e7   : > { %v1781_v8 = vadd.f32 %v1780_v32, %v1779_v57  ;;  %v2170_v9 = vadd.f32 %v2169_v2, %v2168_v53 }
 0x1e9   : > { %v2172_v25 = vadd.f32 %v2171_v11, %v2170_v9  ;;  %v1783_v31 = vadd.f32 %v1782_v6, %v1781_v8 }
 0x1eb   : > { %v1785_v40 = vadd.f32 %v1784_v27, %v1783_v31  ;;  %v2174_v23 = vadd.f32 %v2173_v45, %v2172_v25 }
 0x1ed   : > { %v2176_v41 = vadd.f32 %v2175_v29, %v2174_v23  ;;  %v1787_v61 = vadd.f32 %v1786_v43, %v1785_v40 }
 0x1ef   : > { %v1789_v16 = vadd.f32 %v1788_v19, %v1787_v61  ;;  %v2178_v28 = vadd.f32 %v2177_v30, %v2176_v41 }
 0x1f1   : > { %v2180_v55 = vadd.f32 %v2179_v4, %v2178_v28  ;;  %v1791_v0 = vadd.f32 %v1790_v34, %v1789_v16 }
 0x1f3   : > { %v1793_v33 = vadd.f32 %v1792_v49, %v1791_v0  ;;  %v2182_v48 = vadd.f32 %v2181_v36, %v2180_v55 }
 0x1f5   : > { %v2184_v20 = vadd.f32 %v2183_v54, %v2182_v48  ;;  %v1795_v7 = vadd.f32 %v1794_v21, %v1793_v33 }
 0x1f7   : > { %v1797_v22 = vadd.f32 %v1796_v60, %v1795_v7  ;;  %v2186_v3 = vadd.f32 %v2185_v13, %v2184_v20 }
 0x1f9   : > { %v1799_v24 = vadd.f32 %v1798_v46, %v1797_v22  ;;  %v2188_v5 = vadd.f32 %v2187_v58, %v2186_v3 }
 0x1fb   : > { %v1800_v38 = vrot.slane %v1799_v24, 4  ;;  %v2190_v56 = vadd.f32 %v2189_v47, %v2188_v5 }
 0x1fd   : > { %v1801_v18 = vadd.f32 %v1800_v38, %v1799_v24  ;;  %v2191_v10 = vrot.slane %v2190_v56, 4 }
 0x1ff   : > { %v1802_v17 = vrot.slane %v1801_v18, 2  ;;  %v2192_v50 = vadd.f32 %v2191_v10, %v2190_v56 }
 0x201   : > { %v1803_v44 = vadd.f32 %v1802_v17, %v1801_v18  ;;  %v2193_v39 = vrot.slane %v2192_v50, 2 }
 0x203   : > { %v1804_v53 = vrot.slane %v1803_v44, 1  ;;  %v2194_v57 = vadd.f32 %v2193_v39, %v2192_v50 }
 0x205   : > { %v1805_v42 = vadd.f32 %v1804_v53, %v1803_v44  ;;  %v2195_v32 = vrot.slane %v2194_v57, 1 }
 0x207   : > { %1807 = vst.msk [vmem:[%s286_s22] sm:$0x1] %vm1806_vm1, %v1805_v42  ;;  %v2196_v62 = vadd.f32 %v2195_v32, %v2194_v57 }
 0x209   : > { %2197 = vst.msk [vmem:[%s293_s25] sm:$0x1] %vm1806_vm1, %v2196_v62 }
 0x20a PF: > { %s15_s19 = sadd.s32 1, %s2854_s19   ;;  %s3986_s15 = smov %s2846_s17 }
 0x20b   : > { %p12_p8 = scmp.ge.s32.totalorder %s15_s19, 10   ;;  %s3987_s16 = smov %s2850_s18 }
 0x20c   : > { %s3988_s17 = smov %s3991_s20  ;;  %s3989_s18 = smov %s3995_s21 }
 0x20d   :  { %14 = sbr.rel (!%p12_p8) target bundleno = 3 (0x3), region = 85 }

// kernel: decoder_block_forward.11
= control target key start
LH: loop header
LB: loop body
LE: loop exit
PB: predicated region body
PF: predicated region fallthrough
CT: control target
= control target key end

     0   :  { %s936_s12 = smov 0   ;;  %s1617_s0 = inlined_call_operand.vmem [shape: f32[8192,64], index: 0, kind: input, shape index: {}]   ;;  %s1618_s1 = inlined_call_operand.vmem [shape: f32[1,64], index: 1, kind: input, shape index: {}]   ;;  %s1619_s2 = inlined_call_operand.vmem [shape: f32[1,64], index: 2, kind: input, shape index: {}]   ;;  %s1620_s3 = inlined_call_operand.vmem [shape: f32[8192,64], index: 3, kind: output, shape index: {}]  }
   0x1 LB: > { %s885_s13 = sadd.s32 4294967295, %s914_s12   ;;  %p889_p0 = scmp.ge.s32.totalorder %s914_s12, 1  ;;  %s914_s12 = sphi %s936_s12, %s13_s12  }
   0x2   : > { %p138_p1 = scmp.lt.s32.totalorder %s914_s12, 9 }
   0x4   : > { %p139_p2 = pnand %p889_p0, %p138_p1 }
   0x5   : > { %s890_s14 = sshll.u32 (!%p139_p2), %s885_s13, 7 }
   0x6   : > { %142 = sbr.rel (%p139_p2) target bundleno = 116 (0x74), region = 32  ;;  %p163_p3 = scmp.lt.s32.totalorder (!%p139_p2), %s890_s14, 1023 }
   0xb   : > { %s1622_s14 = smov (!%p163_p3, %s890_s14), 1023  ;;  %v947_v0 = vld [vmem:[%s1618_s1] ss:$0 sm:$0xff]  ;;  %vm700_vm0 = vcmask 523264  }
   0xc   : > { %s891_s15 = sshll.u32 %s1622_s14, 3  ;;  %v957_v1 = vld [vmem:[%s1619_s2] ss:$0 sm:$0xff] }
   0xd   : > { %s952_s20 = scalar_lea.vmem %s1617_s0, %s891_s15  ;;  %s980_s25 = scalar_lea.vmem %s1620_s3, %s891_s15 }
   0xe   : > { %v174_v2 = vld [vmem:[%s952_s20] sm:$0xff]  ;;  %v175_v3 = vld [vmem:[%s952_s20 + $0x8] sm:$0xff]  ;;  %v176_v4 = vld [vmem:[%s952_s20 + $0x10] sm:$0xff] }
   0xf   : > { %v309_v5 = vmul.f32 %v947_v0, %v174_v2  ;;  %v310_v6 = vmul.f32 %v947_v0, %v175_v3  ;;  %v311_v7 = vmul.f32 %v947_v0, %v176_v4  ;;  %v177_v8 = vld [vmem:[%s952_s20 + $0x18] sm:$0xff]  ;;  %v178_v9 = vld [vmem:[%s952_s20 + $0x20] sm:$0xff]  ;;  %v179_v10 = vld [vmem:[%s952_s20 + $0x28] sm:$0xff] }
  0x10   : > { %v312_v11 = vmul.f32 %v947_v0, %v177_v8  ;;  %v313_v12 = vmul.f32 %v947_v0, %v178_v9  ;;  %v314_v13 = vmul.f32 %v947_v0, %v179_v10  ;;  %v180_v14 = vld [vmem:[%s952_s20 + $0x30] sm:$0xff]  ;;  %v181_v15 = vld [vmem:[%s952_s20 + $0x38] sm:$0xff]  ;;  %v182_v24 = vld [vmem:[%s952_s20 + $0x40] sm:$0xff] }
  0x11   : > { %v444_v16 = vadd.f32 %v957_v1, %v309_v5  ;;  %v445_v17 = vadd.f32 %v957_v1, %v310_v6  ;;  %v446_v18 = vadd.f32 %v957_v1, %v311_v7  ;;  %v315_v19 = vmul.f32 %v947_v0, %v180_v14  ;;  %v183_v25 = vld [vmem:[%s952_s20 + $0x48] sm:$0xff]  ;;  %v184_v26 = vld [vmem:[%s952_s20 + $0x50] sm:$0xff]  ;;  %v185_v31 = vld [vmem:[%s952_s20 + $0x58] sm:$0xff] }
  0x12   : > { %v447_v20 = vadd.f32 %v957_v1, %v312_v11  ;;  %v448_v21 = vadd.f32 %v957_v1, %v313_v12  ;;  %v449_v22 = vadd.f32 %v957_v1, %v314_v13  ;;  %v316_v23 = vmul.f32 %v947_v0, %v181_v15  ;;  %v186_v32 = vld [vmem:[%s952_s20 + $0x60] sm:$0xff]  ;;  %v187_v33 = vld [vmem:[%s952_s20 + $0x68] sm:$0xff]  ;;  %v188_v38 = vld [vmem:[%s952_s20 + $0x70] sm:$0xff] }
  0x13   : > { %v572_v27 = vmax.f32 %v444_v16, 0.0  ;;  %v573_v28 = vmax.f32 %v445_v17, 0.0  ;;  %v574_v29 = vmax.f32 %v446_v18, 0.0  ;;  %v450_v30 = vadd.f32 %v957_v1, %v315_v19  ;;  %v189_v43 = vld [vmem:[%s952_s20 + $0x78] sm:$0xff]  ;;  %v190_v56 = vld [vmem:[%s952_s20 + $0x80] sm:$0xff]  ;;  %v191_v57 = vld [vmem:[%s952_s20 + $0x88] sm:$0xff] }
  0x14   : > { %v575_v34 = vmax.f32 %v447_v20, 0.0  ;;  %v576_v35 = vmax.f32 %v448_v21, 0.0  ;;  %v577_v36 = vmax.f32 %v449_v22, 0.0  ;;  %v451_v37 = vadd.f32 %v957_v1, %v316_v23  ;;  %v192_v58 = vld [vmem:[%s952_s20 + $0x90] sm:$0xff]  ;;  %v193_v63 = vld [vmem:[%s952_s20 + $0x98] sm:$0xff]  ;;  %v194_v2 = vld [vmem:[%s952_s20 + $0xa0] sm:$0xff] }
  0x15   : > { %701 = vst.msk [vmem:[%s980_s25] sm:$0xff] %vm700_vm0, %v572_v27  ;;  %702 = vst.msk [vmem:[%s980_s25 + $0x8] sm:$0xff] %vm700_vm0, %v573_v28  ;;  %v578_v39 = vmax.f32 %v450_v30, 0.0  ;;  %v317_v40 = vmul.f32 %v947_v0, %v182_v24  ;;  %v318_v41 = vmul.f32 %v947_v0, %v183_v25  ;;  %v319_v42 = vmul.f32 %v947_v0, %v184_v26  ;;  %v195_v3 = vld [vmem:[%s952_s20 + $0xa8] sm:$0xff]  ;;  %v196_v8 = vld [vmem:[%s952_s20 + $0xb0] sm:$0xff] }
  0x16   : > { %703 = vst.msk [vmem:[%s980_s25 + $0x10] sm:$0xff] %vm700_vm0, %v574_v29  ;;  %704 = vst.msk [vmem:[%s980_s25 + $0x18] sm:$0xff] %vm700_vm0, %v575_v34  ;;  %v579_v44 = vmax.f32 %v451_v37, 0.0  ;;  %v320_v45 = vmul.f32 %v947_v0, %v185_v31  ;;  %v321_v46 = vmul.f32 %v947_v0, %v186_v32  ;;  %v322_v47 = vmul.f32 %v947_v0, %v187_v33  ;;  %v197_v13 = vld [vmem:[%s952_s20 + $0xb8] sm:$0xff]  ;;  %v198_v26 = vld [vmem:[%s952_s20 + $0xc0] sm:$0xff] }
  0x17   : > { %705 = vst.msk [vmem:[%s980_s25 + $0x20] sm:$0xff] %vm700_vm0, %v576_v35  ;;  %706 = vst.msk [vmem:[%s980_s25 + $0x28] sm:$0xff] %vm700_vm0, %v577_v36  ;;  %v452_v48 = vadd.f32 %v957_v1, %v317_v40  ;;  %v453_v49 = vadd.f32 %v957_v1, %v318_v41  ;;  %v454_v50 = vadd.f32 %v957_v1, %v319_v42  ;;  %v199_v27 = vld [vmem:[%s952_s20 + $0xc8] sm:$0xff]  ;;  %v200_v28 = vld [vmem:[%s952_s20 + $0xd0] sm:$0xff] }
  0x18   : > { %707 = vst.msk [vmem:[%s980_s25 + $0x30] sm:$0xff] %vm700_vm0, %v578_v39  ;;  %v323_v51 = vmul.f32 %v947_v0, %v188_v38  ;;  %708 = vst.msk [vmem:[%s980_s25 + $0x38] sm:$0xff] %vm700_vm0, %v579_v44  ;;  %v455_v52 = vadd.f32 %v957_v1, %v320_v45  ;;  %v456_v53 = vadd.f32 %v957_v1, %v321_v46  ;;  %v201_v33 = vld [vmem:[%s952_s20 + $0xd8] sm:$0xff]  ;;  %v202_v34 = vld [vmem:[%s952_s20 + $0xe0] sm:$0xff] }
  0x19   : > { %v457_v54 = vadd.f32 %v957_v1, %v322_v47  ;;  %v324_v55 = vmul.f32 %v947_v0, %v189_v43  ;;  %v580_v59 = vmax.f32 %v452_v48, 0.0  ;;  %v581_v60 = vmax.f32 %v453_v49, 0.0  ;;  %v203_v35 = vld [vmem:[%s952_s20 + $0xe8] sm:$0xff]  ;;  %v204_v40 = vld [vmem:[%s952_s20 + $0xf0] sm:$0xff]  ;;  %v205_v45 = vld [vmem:[%s952_s20 + $0xf8] sm:$0xff] }
  0x1a   : > { %v582_v61 = vmax.f32 %v454_v50, 0.0  ;;  %v458_v62 = vadd.f32 %v957_v1, %v323_v51  ;;  %v583_v4 = vmax.f32 %v455_v52, 0.0  ;;  %v584_v5 = vmax.f32 %v456_v53, 0.0 }
  0x1b   : > { %v585_v6 = vmax.f32 %v457_v54, 0.0  ;;  %v459_v7 = vadd.f32 %v957_v1, %v324_v55  ;;  %709 = vst.msk [vmem:[%s980_s25 + $0x40] sm:$0xff] %vm700_vm0, %v580_v59  ;;  %710 = vst.msk [vmem:[%s980_s25 + $0x48] sm:$0xff] %vm700_vm0, %v581_v60  ;;  %v325_v10 = vmul.f32 %v947_v0, %v190_v56  ;;  %v326_v11 = vmul.f32 %v947_v0, %v191_v57  ;;  %v207_v59 = vld [vmem:[%s952_s20 + $0x108] sm:$0xff]  ;;  %v208_v60 = vld [vmem:[%s952_s20 + $0x110] sm:$0xff] }
  0x1c   : > { %711 = vst.msk [vmem:[%s980_s25 + $0x50] sm:$0xff] %vm700_vm0, %v582_v61  ;;  %v586_v9 = vmax.f32 %v458_v62, 0.0  ;;  %v327_v12 = vmul.f32 %v947_v0, %v192_v58  ;;  %712 = vst.msk [vmem:[%s980_s25 + $0x58] sm:$0xff] %vm700_vm0, %v583_v4  ;;  %v328_v15 = vmul.f32 %v947_v0, %v193_v63  ;;  %v329_v16 = vmul.f32 %v947_v0, %v194_v2  ;;  %v206_v58 = vld [vmem:[%s952_s20 + $0x100] sm:$0xff] }
  0x1d   : > { %713 = vst.msk [vmem:[%s980_s25 + $0x60] sm:$0xff] %vm700_vm0, %v584_v5  ;;  %714 = vst.msk [vmem:[%s980_s25 + $0x68] sm:$0xff] %vm700_vm0, %v585_v6  ;;  %v587_v14 = vmax.f32 %v459_v7, 0.0  ;;  %v330_v17 = vmul.f32 %v947_v0, %v195_v3  ;;  %v460_v18 = vadd.f32 %v957_v1, %v325_v10  ;;  %v461_v19 = vadd.f32 %v957_v1, %v326_v11  ;;  %v209_v3 = vld [vmem:[%s952_s20 + $0x118] sm:$0xff]  ;;  %v210_v4 = vld [vmem:[%s952_s20 + $0x120] sm:$0xff] }
  0x1e   : > { %715 = vst.msk [vmem:[%s980_s25 + $0x70] sm:$0xff] %vm700_vm0, %v586_v9  ;;  %v462_v20 = vadd.f32 %v957_v1, %v327_v12  ;;  %v331_v21 = vmul.f32 %v947_v0, %v196_v8  ;;  %v463_v22 = vadd.f32 %v957_v1, %v328_v15  ;;  %v464_v23 = vadd.f32 %v957_v1, %v329_v16  ;;  %v211_v5 = vld [vmem:[%s952_s20 + $0x128] sm:$0xff]  ;;  %v212_v10 = vld [vmem:[%s952_s20 + $0x130] sm:$0xff]  ;;  %v213_v15 = vld [vmem:[%s952_s20 + $0x138] sm:$0xff] }
  0x1f   : > { %716 = vst.msk [vmem:[%s980_s25 + $0x78] sm:$0xff] %vm700_vm0, %v587_v14  ;;  %v465_v24 = vadd.f32 %v957_v1, %v330_v17  ;;  %v332_v25 = vmul.f32 %v947_v0, %v197_v13  ;;  %v588_v29 = vmax.f32 %v460_v18, 0.0  ;;  %v589_v30 = vmax.f32 %v461_v19, 0.0 }
  0x20   : > { %v590_v31 = vmax.f32 %v462_v20, 0.0  ;;  %v466_v32 = vadd.f32 %v957_v1, %v331_v21  ;;  %v591_v36 = vmax.f32 %v463_v22, 0.0  ;;  %v592_v37 = vmax.f32 %v464_v23, 0.0 }
  0x21   : > { %v593_v38 = vmax.f32 %v465_v24, 0.0  ;;  %v467_v39 = vadd.f32 %v957_v1, %v332_v25  ;;  %717 = vst.msk [vmem:[%s980_s25 + $0x80] sm:$0xff] %vm700_vm0, %v588_v29  ;;  %718 = vst.msk [vmem:[%s980_s25 + $0x88] sm:$0xff] %vm700_vm0, %v589_v30  ;;  %v333_v42 = vmul.f32 %v947_v0, %v198_v26  ;;  %v334_v43 = vmul.f32 %v947_v0, %v199_v27  ;;  %v215_v29 = vld [vmem:[%s952_s20 + $0x148] sm:$0xff]  ;;  %v216_v30 = vld [vmem:[%s952_s20 + $0x150] sm:$0xff] }
  0x22   : > { %719 = vst.msk [vmem:[%s980_s25 + $0x90] sm:$0xff] %vm700_vm0, %v590_v31  ;;  %v594_v41 = vmax.f32 %v466_v32, 0.0  ;;  %v335_v44 = vmul.f32 %v947_v0, %v200_v28  ;;  %720 = vst.msk [vmem:[%s980_s25 + $0x98] sm:$0xff] %vm700_vm0, %v591_v36  ;;  %v336_v47 = vmul.f32 %v947_v0, %v201_v33  ;;  %v337_v48 = vmul.f32 %v947_v0, %v202_v34  ;;  %v214_v28 = vld [vmem:[%s952_s20 + $0x140] sm:$0xff] }
  0x23   : > { %721 = vst.msk [vmem:[%s980_s25 + $0xa0] sm:$0xff] %vm700_vm0, %v592_v37  ;;  %722 = vst.msk [vmem:[%s980_s25 + $0xa8] sm:$0xff] %vm700_vm0, %v593_v38  ;;  %v595_v46 = vmax.f32 %v467_v39, 0.0  ;;  %v338_v49 = vmul.f32 %v947_v0, %v203_v35  ;;  %v468_v50 = vadd.f32 %v957_v1, %v333_v42  ;;  %v469_v51 = vadd.f32 %v957_v1, %v334_v43  ;;  %v217_v35 = vld [vmem:[%s952_s20 + $0x158] sm:$0xff]  ;;  %v218_v36 = vld [vmem:[%s952_s20 + $0x160] sm:$0xff] }
  0x24   : > { %723 = vst.msk [vmem:[%s980_s25 + $0xb0] sm:$0xff] %vm700_vm0, %v594_v41  ;;  %v470_v52 = vadd.f32 %v957_v1, %v335_v44  ;;  %v339_v53 = vmul.f32 %v947_v0, %v204_v40  ;;  %v471_v54 = vadd.f32 %v957_v1, %v336_v47  ;;  %v472_v55 = vadd.f32 %v957_v1, %v337_v48  ;;  %v219_v37 = vld [vmem:[%s952_s20 + $0x168] sm:$0xff]  ;;  %v220_v42 = vld [vmem:[%s952_s20 + $0x170] sm:$0xff]  ;;  %v221_v47 = vld [vmem:[%s952_s20 + $0x178] sm:$0xff] }
  0x25   : > { %724 = vst.msk [vmem:[%s980_s25 + $0xb8] sm:$0xff] %vm700_vm0, %v595_v46  ;;  %v473_v56 = vadd.f32 %v957_v1, %v338_v49  ;;  %v340_v57 = vmul.f32 %v947_v0, %v205_v45  ;;  %v596_v61 = vmax.f32 %v468_v50, 0.0  ;;  %v597_v62 = vmax.f32 %v469_v51, 0.0 }
  0x26   : > { %v598_v63 = vmax.f32 %v470_v52, 0.0  ;;  %v474_v2 = vadd.f32 %v957_v1, %v339_v53  ;;  %v599_v6 = vmax.f32 %v471_v54, 0.0  ;;  %v600_v7 = vmax.f32 %v472_v55, 0.0 }
  0x27   : > { %v601_v8 = vmax.f32 %v473_v56, 0.0  ;;  %v475_v9 = vadd.f32 %v957_v1, %v340_v57  ;;  %725 = vst.msk [vmem:[%s980_s25 + $0xc0] sm:$0xff] %vm700_vm0, %v596_v61  ;;  %726 = vst.msk [vmem:[%s980_s25 + $0xc8] sm:$0xff] %vm700_vm0, %v597_v62  ;;  %v341_v12 = vmul.f32 %v947_v0, %v206_v58  ;;  %v342_v13 = vmul.f32 %v947_v0, %v207_v59  ;;  %v223_v61 = vld [vmem:[%s952_s20 + $0x188] sm:$0xff]  ;;  %v224_v62 = vld [vmem:[%s952_s20 + $0x190] sm:$0xff] }
  0x28   : > { %727 = vst.msk [vmem:[%s980_s25 + $0xd0] sm:$0xff] %vm700_vm0, %v598_v63  ;;  %v602_v11 = vmax.f32 %v474_v2, 0.0  ;;  %v343_v14 = vmul.f32 %v947_v0, %v208_v60  ;;  %728 = vst.msk [vmem:[%s980_s25 + $0xd8] sm:$0xff] %vm700_vm0, %v599_v6  ;;  %v344_v17 = vmul.f32 %v947_v0, %v209_v3  ;;  %v345_v18 = vmul.f32 %v947_v0, %v210_v4  ;;  %v222_v60 = vld [vmem:[%s952_s20 + $0x180] sm:$0xff] }
  0x29   : > { %729 = vst.msk [vmem:[%s980_s25 + $0xe0] sm:$0xff] %vm700_vm0, %v600_v7  ;;  %730 = vst.msk [vmem:[%s980_s25 + $0xe8] sm:$0xff] %vm700_vm0, %v601_v8  ;;  %v603_v16 = vmax.f32 %v475_v9, 0.0  ;;  %v346_v19 = vmul.f32 %v947_v0, %v211_v5  ;;  %v476_v20 = vadd.f32 %v957_v1, %v341_v12  ;;  %v477_v21 = vadd.f32 %v957_v1, %v342_v13  ;;  %v225_v5 = vld [vmem:[%s952_s20 + $0x198] sm:$0xff]  ;;  %v226_v6 = vld [vmem:[%s952_s20 + $0x1a0] sm:$0xff] }
  0x2a   : > { %731 = vst.msk [vmem:[%s980_s25 + $0xf0] sm:$0xff] %vm700_vm0, %v602_v11  ;;  %v478_v22 = vadd.f32 %v957_v1, %v343_v14  ;;  %v347_v23 = vmul.f32 %v947_v0, %v212_v10  ;;  %v479_v24 = vadd.f32 %v957_v1, %v344_v17  ;;  %v480_v25 = vadd.f32 %v957_v1, %v345_v18  ;;  %v227_v7 = vld [vmem:[%s952_s20 + $0x1a8] sm:$0xff]  ;;  %v228_v12 = vld [vmem:[%s952_s20 + $0x1b0] sm:$0xff]  ;;  %v229_v17 = vld [vmem:[%s952_s20 + $0x1b8] sm:$0xff] }
  0x2b   : > { %732 = vst.msk [vmem:[%s980_s25 + $0xf8] sm:$0xff] %vm700_vm0, %v603_v16  ;;  %v481_v26 = vadd.f32 %v957_v1, %v346_v19  ;;  %v348_v27 = vmul.f32 %v947_v0, %v213_v15  ;;  %v604_v31 = vmax.f32 %v476_v20, 0.0  ;;  %v605_v32 = vmax.f32 %v477_v21, 0.0 }
  0x2c   : > { %v606_v33 = vmax.f32 %v478_v22, 0.0  ;;  %v482_v34 = vadd.f32 %v957_v1, %v347_v23  ;;  %v607_v38 = vmax.f32 %v479_v24, 0.0  ;;  %v608_v39 = vmax.f32 %v480_v25, 0.0 }
  0x2d   : > { %v609_v40 = vmax.f32 %v481_v26, 0.0  ;;  %v483_v41 = vadd.f32 %v957_v1, %v348_v27  ;;  %733 = vst.msk [vmem:[%s980_s25 + $0x100] sm:$0xff] %vm700_vm0, %v604_v31  ;;  %734 = vst.msk [vmem:[%s980_s25 + $0x108] sm:$0xff] %vm700_vm0, %v605_v32  ;;  %v349_v44 = vmul.f32 %v947_v0, %v214_v28  ;;  %v350_v45 = vmul.f32 %v947_v0, %v215_v29  ;;  %v231_v31 = vld [vmem:[%s952_s20 + $0x1c8] sm:$0xff]  ;;  %v232_v32 = vld [vmem:[%s952_s20 + $0x1d0] sm:$0xff] }
  0x2e   : > { %735 = vst.msk [vmem:[%s980_s25 + $0x110] sm:$0xff] %vm700_vm0, %v606_v33  ;;  %v610_v43 = vmax.f32 %v482_v34, 0.0  ;;  %v351_v46 = vmul.f32 %v947_v0, %v216_v30  ;;  %736 = vst.msk [vmem:[%s980_s25 + $0x118] sm:$0xff] %vm700_vm0, %v607_v38  ;;  %v352_v49 = vmul.f32 %v947_v0, %v217_v35  ;;  %v353_v50 = vmul.f32 %v947_v0, %v218_v36  ;;  %v230_v30 = vld [vmem:[%s952_s20 + $0x1c0] sm:$0xff] }
  0x2f   : > { %737 = vst.msk [vmem:[%s980_s25 + $0x120] sm:$0xff] %vm700_vm0, %v608_v39  ;;  %738 = vst.msk [vmem:[%s980_s25 + $0x128] sm:$0xff] %vm700_vm0, %v609_v40  ;;  %v611_v48 = vmax.f32 %v483_v41, 0.0  ;;  %v354_v51 = vmul.f32 %v947_v0, %v219_v37  ;;  %v484_v52 = vadd.f32 %v957_v1, %v349_v44  ;;  %v485_v53 = vadd.f32 %v957_v1, %v350_v45  ;;  %v233_v37 = vld [vmem:[%s952_s20 + $0x1d8] sm:$0xff]  ;;  %v234_v38 = vld [vmem:[%s952_s20 + $0x1e0] sm:$0xff] }
  0x30   : > { %739 = vst.msk [vmem:[%s980_s25 + $0x130] sm:$0xff] %vm700_vm0, %v610_v43  ;;  %v486_v54 = vadd.f32 %v957_v1, %v351_v46  ;;  %v355_v55 = vmul.f32 %v947_v0, %v220_v42  ;;  %v487_v56 = vadd.f32 %v957_v1, %v352_v49  ;;  %v488_v57 = vadd.f32 %v957_v1, %v353_v50  ;;  %v235_v39 = vld [vmem:[%s952_s20 + $0x1e8] sm:$0xff]  ;;  %v236_v44 = vld [vmem:[%s952_s20 + $0x1f0] sm:$0xff]  ;;  %v237_v49 = vld [vmem:[%s952_s20 + $0x1f8] sm:$0xff] }
  0x31   : > { %740 = vst.msk [vmem:[%s980_s25 + $0x138] sm:$0xff] %vm700_vm0, %v611_v48  ;;  %v489_v58 = vadd.f32 %v957_v1, %v354_v51  ;;  %v356_v59 = vmul.f32 %v947_v0, %v221_v47  ;;  %v612_v63 = vmax.f32 %v484_v52, 0.0  ;;  %v613_v2 = vmax.f32 %v485_v53, 0.0 }
  0x32   : > { %v614_v3 = vmax.f32 %v486_v54, 0.0  ;;  %v490_v4 = vadd.f32 %v957_v1, %v355_v55  ;;  %v615_v8 = vmax.f32 %v487_v56, 0.0  ;;  %v616_v9 = vmax.f32 %v488_v57, 0.0 }
  0x33   : > { %v617_v10 = vmax.f32 %v489_v58, 0.0  ;;  %v491_v11 = vadd.f32 %v957_v1, %v356_v59  ;;  %741 = vst.msk [vmem:[%s980_s25 + $0x140] sm:$0xff] %vm700_vm0, %v612_v63  ;;  %742 = vst.msk [vmem:[%s980_s25 + $0x148] sm:$0xff] %vm700_vm0, %v613_v2  ;;  %v357_v14 = vmul.f32 %v947_v0, %v222_v60  ;;  %v358_v15 = vmul.f32 %v947_v0, %v223_v61  ;;  %v239_v63 = vld [vmem:[%s952_s20 + $0x208] sm:$0xff]  ;;  %v240_v2 = vld [vmem:[%s952_s20 + $0x210] sm:$0xff] }
  0x34   : > { %743 = vst.msk [vmem:[%s980_s25 + $0x150] sm:$0xff] %vm700_vm0, %v614_v3  ;;  %v618_v13 = vmax.f32 %v490_v4, 0.0  ;;  %v359_v16 = vmul.f32 %v947_v0, %v224_v62  ;;  %744 = vst.msk [vmem:[%s980_s25 + $0x158] sm:$0xff] %vm700_vm0, %v615_v8  ;;  %v360_v19 = vmul.f32 %v947_v0, %v225_v5  ;;  %v361_v20 = vmul.f32 %v947_v0, %v226_v6  ;;  %v238_v62 = vld [vmem:[%s952_s20 + $0x200] sm:$0xff] }
  0x35   : > { %745 = vst.msk [vmem:[%s980_s25 + $0x160] sm:$0xff] %vm700_vm0, %v616_v9  ;;  %746 = vst.msk [vmem:[%s980_s25 + $0x168] sm:$0xff] %vm700_vm0, %v617_v10  ;;  %v619_v18 = vmax.f32 %v491_v11, 0.0  ;;  %v362_v21 = vmul.f32 %v947_v0, %v227_v7  ;;  %v492_v22 = vadd.f32 %v957_v1, %v357_v14  ;;  %v493_v23 = vadd.f32 %v957_v1, %v358_v15  ;;  %v241_v7 = vld [vmem:[%s952_s20 + $0x218] sm:$0xff]  ;;  %v242_v8 = vld [vmem:[%s952_s20 + $0x220] sm:$0xff] }
  0x36   : > { %747 = vst.msk [vmem:[%s980_s25 + $0x170] sm:$0xff] %vm700_vm0, %v618_v13  ;;  %v494_v24 = vadd.f32 %v957_v1, %v359_v16  ;;  %v363_v25 = vmul.f32 %v947_v0, %v228_v12  ;;  %v495_v26 = vadd.f32 %v957_v1, %v360_v19  ;;  %v496_v27 = vadd.f32 %v957_v1, %v361_v20  ;;  %v243_v9 = vld [vmem:[%s952_s20 + $0x228] sm:$0xff]  ;;  %v244_v14 = vld [vmem:[%s952_s20 + $0x230] sm:$0xff]  ;;  %v245_v19 = vld [vmem:[%s952_s20 + $0x238] sm:$0xff] }
  0x37   : > { %748 = vst.msk [vmem:[%s980_s25 + $0x178] sm:$0xff] %vm700_vm0, %v619_v18  ;;  %v497_v28 = vadd.f32 %v957_v1, %v362_v21  ;;  %v364_v29 = vmul.f32 %v947_v0, %v229_v17  ;;  %v620_v33 = vmax.f32 %v492_v22, 0.0  ;;  %v621_v34 = vmax.f32 %v493_v23, 0.0 }
  0x38   : > { %v622_v35 = vmax.f32 %v494_v24, 0.0  ;;  %v498_v36 = vadd.f32 %v957_v1, %v363_v25  ;;  %v623_v40 = vmax.f32 %v495_v26, 0.0  ;;  %v624_v41 = vmax.f32 %v496_v27, 0.0 }
  0x39   : > { %v625_v42 = vmax.f32 %v497_v28, 0.0  ;;  %v499_v43 = vadd.f32 %v957_v1, %v364_v29  ;;  %749 = vst.msk [vmem:[%s980_s25 + $0x180] sm:$0xff] %vm700_vm0, %v620_v33  ;;  %750 = vst.msk [vmem:[%s980_s25 + $0x188] sm:$0xff] %vm700_vm0, %v621_v34  ;;  %v365_v46 = vmul.f32 %v947_v0, %v230_v30  ;;  %v366_v47 = vmul.f32 %v947_v0, %v231_v31  ;;  %v247_v33 = vld [vmem:[%s952_s20 + $0x248] sm:$0xff]  ;;  %v248_v34 = vld [vmem:[%s952_s20 + $0x250] sm:$0xff] }
  0x3a   : > { %751 = vst.msk [vmem:[%s980_s25 + $0x190] sm:$0xff] %vm700_vm0, %v622_v35  ;;  %v626_v45 = vmax.f32 %v498_v36, 0.0  ;;  %v367_v48 = vmul.f32 %v947_v0, %v232_v32  ;;  %752 = vst.msk [vmem:[%s980_s25 + $0x198] sm:$0xff] %vm700_vm0, %v623_v40  ;;  %v368_v51 = vmul.f32 %v947_v0, %v233_v37  ;;  %v369_v52 = vmul.f32 %v947_v0, %v234_v38  ;;  %v246_v32 = vld [vmem:[%s952_s20 + $0x240] sm:$0xff] }
  0x3b   : > { %753 = vst.msk [vmem:[%s980_s25 + $0x1a0] sm:$0xff] %vm700_vm0, %v624_v41  ;;  %754 = vst.msk [vmem:[%s980_s25 + $0x1a8] sm:$0xff] %vm700_vm0, %v625_v42  ;;  %v627_v50 = vmax.f32 %v499_v43, 0.0  ;;  %v370_v53 = vmul.f32 %v947_v0, %v235_v39  ;;  %v500_v54 = vadd.f32 %v957_v1, %v365_v46  ;;  %v501_v55 = vadd.f32 %v957_v1, %v366_v47  ;;  %v249_v39 = vld [vmem:[%s952_s20 + $0x258] sm:$0xff]  ;;  %v250_v40 = vld [vmem:[%s952_s20 + $0x260] sm:$0xff] }
  0x3c   : > { %755 = vst.msk [vmem:[%s980_s25 + $0x1b0] sm:$0xff] %vm700_vm0, %v626_v45  ;;  %v502_v56 = vadd.f32 %v957_v1, %v367_v48  ;;  %v371_v57 = vmul.f32 %v947_v0, %v236_v44  ;;  %v503_v58 = vadd.f32 %v957_v1, %v368_v51  ;;  %v504_v59 = vadd.f32 %v957_v1, %v369_v52  ;;  %v251_v41 = vld [vmem:[%s952_s20 + $0x268] sm:$0xff]  ;;  %v252_v46 = vld [vmem:[%s952_s20 + $0x270] sm:$0xff]  ;;  %v253_v51 = vld [vmem:[%s952_s20 + $0x278] sm:$0xff] }
  0x3d   : > { %756 = vst.msk [vmem:[%s980_s25 + $0x1b8] sm:$0xff] %vm700_vm0, %v627_v50  ;;  %v505_v60 = vadd.f32 %v957_v1, %v370_v53  ;;  %v372_v61 = vmul.f32 %v947_v0, %v237_v49  ;;  %v628_v3 = vmax.f32 %v500_v54, 0.0  ;;  %v629_v4 = vmax.f32 %v501_v55, 0.0 }
  0x3e   : > { %v630_v5 = vmax.f32 %v502_v56, 0.0  ;;  %v506_v6 = vadd.f32 %v957_v1, %v371_v57  ;;  %v631_v10 = vmax.f32 %v503_v58, 0.0  ;;  %v632_v11 = vmax.f32 %v504_v59, 0.0 }
  0x3f   : > { %v633_v12 = vmax.f32 %v505_v60, 0.0  ;;  %v507_v13 = vadd.f32 %v957_v1, %v372_v61  ;;  %757 = vst.msk [vmem:[%s980_s25 + $0x1c0] sm:$0xff] %vm700_vm0, %v628_v3  ;;  %758 = vst.msk [vmem:[%s980_s25 + $0x1c8] sm:$0xff] %vm700_vm0, %v629_v4  ;;  %v373_v16 = vmul.f32 %v947_v0, %v238_v62  ;;  %v374_v17 = vmul.f32 %v947_v0, %v239_v63  ;;  %v255_v3 = vld [vmem:[%s952_s20 + $0x288] sm:$0xff]  ;;  %v256_v4 = vld [vmem:[%s952_s20 + $0x290] sm:$0xff] }
  0x40   : > { %759 = vst.msk [vmem:[%s980_s25 + $0x1d0] sm:$0xff] %vm700_vm0, %v630_v5  ;;  %v634_v15 = vmax.f32 %v506_v6, 0.0  ;;  %v375_v18 = vmul.f32 %v947_v0, %v240_v2  ;;  %760 = vst.msk [vmem:[%s980_s25 + $0x1d8] sm:$0xff] %vm700_vm0, %v631_v10  ;;  %v376_v21 = vmul.f32 %v947_v0, %v241_v7  ;;  %v377_v22 = vmul.f32 %v947_v0, %v242_v8  ;;  %v254_v2 = vld [vmem:[%s952_s20 + $0x280] sm:$0xff] }
  0x41   : > { %761 = vst.msk [vmem:[%s980_s25 + $0x1e0] sm:$0xff] %vm700_vm0, %v632_v11  ;;  %762 = vst.msk [vmem:[%s980_s25 + $0x1e8] sm:$0xff] %vm700_vm0, %v633_v12  ;;  %v635_v20 = vmax.f32 %v507_v13, 0.0  ;;  %v378_v23 = vmul.f32 %v947_v0, %v243_v9  ;;  %v508_v24 = vadd.f32 %v957_v1, %v373_v16  ;;  %v509_v25 = vadd.f32 %v957_v1, %v374_v17  ;;  %v257_v9 = vld [vmem:[%s952_s20 + $0x298] sm:$0xff]  ;;  %v258_v10 = vld [vmem:[%s952_s20 + $0x2a0] sm:$0xff] }
  0x42   : > { %763 = vst.msk [vmem:[%s980_s25 + $0x1f0] sm:$0xff] %vm700_vm0, %v634_v15  ;;  %v510_v26 = vadd.f32 %v957_v1, %v375_v18  ;;  %v379_v27 = vmul.f32 %v947_v0, %v244_v14  ;;  %v511_v28 = vadd.f32 %v957_v1, %v376_v21  ;;  %v512_v29 = vadd.f32 %v957_v1, %v377_v22  ;;  %v259_v11 = vld [vmem:[%s952_s20 + $0x2a8] sm:$0xff]  ;;  %v260_v16 = vld [vmem:[%s952_s20 + $0x2b0] sm:$0xff]  ;;  %v261_v21 = vld [vmem:[%s952_s20 + $0x2b8] sm:$0xff] }
  0x43   : > { %764 = vst.msk [vmem:[%s980_s25 + $0x1f8] sm:$0xff] %vm700_vm0, %v635_v20  ;;  %v513_v30 = vadd.f32 %v957_v1, %v378_v23  ;;  %v380_v31 = vmul.f32 %v947_v0, %v245_v19  ;;  %v636_v35 = vmax.f32 %v508_v24, 0.0  ;;  %v637_v36 = vmax.f32 %v509_v25, 0.0 }
  0x44   : > { %v638_v37 = vmax.f32 %v510_v26, 0.0  ;;  %v514_v38 = vadd.f32 %v957_v1, %v379_v27  ;;  %v639_v42 = vmax.f32 %v511_v28, 0.0  ;;  %v640_v43 = vmax.f32 %v512_v29, 0.0 }
  0x45   : > { %v641_v44 = vmax.f32 %v513_v30, 0.0  ;;  %v515_v45 = vadd.f32 %v957_v1, %v380_v31  ;;  %765 = vst.msk [vmem:[%s980_s25 + $0x200] sm:$0xff] %vm700_vm0, %v636_v35  ;;  %766 = vst.msk [vmem:[%s980_s25 + $0x208] sm:$0xff] %vm700_vm0, %v637_v36  ;;  %v381_v48 = vmul.f32 %v947_v0, %v246_v32  ;;  %v382_v49 = vmul.f32 %v947_v0, %v247_v33  ;;  %v263_v35 = vld [vmem:[%s952_s20 + $0x2c8] sm:$0xff]  ;;  %v264_v36 = vld [vmem:[%s952_s20 + $0x2d0] sm:$0xff] }
  0x46   : > { %767 = vst.msk [vmem:[%s980_s25 + $0x210] sm:$0xff] %vm700_vm0, %v638_v37  ;;  %v642_v47 = vmax.f32 %v514_v38, 0.0  ;;  %v383_v50 = vmul.f32 %v947_v0, %v248_v34  ;;  %768 = vst.msk [vmem:[%s980_s25 + $0x218] sm:$0xff] %vm700_vm0, %v639_v42  ;;  %v384_v53 = vmul.f32 %v947_v0, %v249_v39  ;;  %v385_v54 = vmul.f32 %v947_v0, %v250_v40  ;;  %v262_v34 = vld [vmem:[%s952_s20 + $0x2c0] sm:$0xff] }
  0x47   : > { %769 = vst.msk [vmem:[%s980_s25 + $0x220] sm:$0xff] %vm700_vm0, %v640_v43  ;;  %770 = vst.msk [vmem:[%s980_s25 + $0x228] sm:$0xff] %vm700_vm0, %v641_v44  ;;  %v643_v52 = vmax.f32 %v515_v45, 0.0  ;;  %v386_v55 = vmul.f32 %v947_v0, %v251_v41  ;;  %v516_v56 = vadd.f32 %v957_v1, %v381_v48  ;;  %v517_v57 = vadd.f32 %v957_v1, %v382_v49  ;;  %v265_v41 = vld [vmem:[%s952_s20 + $0x2d8] sm:$0xff]  ;;  %v266_v42 = vld [vmem:[%s952_s20 + $0x2e0] sm:$0xff] }
  0x48   : > { %771 = vst.msk [vmem:[%s980_s25 + $0x230] sm:$0xff] %vm700_vm0, %v642_v47  ;;  %v518_v58 = vadd.f32 %v957_v1, %v383_v50  ;;  %v387_v59 = vmul.f32 %v947_v0, %v252_v46  ;;  %v519_v60 = vadd.f32 %v957_v1, %v384_v53  ;;  %v520_v61 = vadd.f32 %v957_v1, %v385_v54  ;;  %v267_v43 = vld [vmem:[%s952_s20 + $0x2e8] sm:$0xff]  ;;  %v268_v48 = vld [vmem:[%s952_s20 + $0x2f0] sm:$0xff]  ;;  %v269_v53 = vld [vmem:[%s952_s20 + $0x2f8] sm:$0xff] }
  0x49   : > { %772 = vst.msk [vmem:[%s980_s25 + $0x238] sm:$0xff] %vm700_vm0, %v643_v52  ;;  %v521_v62 = vadd.f32 %v957_v1, %v386_v55  ;;  %v388_v63 = vmul.f32 %v947_v0, %v253_v51  ;;  %v644_v5 = vmax.f32 %v516_v56, 0.0  ;;  %v645_v6 = vmax.f32 %v517_v57, 0.0 }
  0x4a   : > { %v646_v7 = vmax.f32 %v518_v58, 0.0  ;;  %v522_v8 = vadd.f32 %v957_v1, %v387_v59  ;;  %v647_v12 = vmax.f32 %v519_v60, 0.0  ;;  %v648_v13 = vmax.f32 %v520_v61, 0.0 }
  0x4b   : > { %v649_v14 = vmax.f32 %v521_v62, 0.0  ;;  %v523_v15 = vadd.f32 %v957_v1, %v388_v63  ;;  %773 = vst.msk [vmem:[%s980_s25 + $0x240] sm:$0xff] %vm700_vm0, %v644_v5  ;;  %774 = vst.msk [vmem:[%s980_s25 + $0x248] sm:$0xff] %vm700_vm0, %v645_v6  ;;  %v389_v18 = vmul.f32 %v947_v0, %v254_v2  ;;  %v390_v19 = vmul.f32 %v947_v0, %v255_v3  ;;  %v271_v5 = vld [vmem:[%s952_s20 + $0x308] sm:$0xff]  ;;  %v272_v6 = vld [vmem:[%s952_s20 + $0x310] sm:$0xff] }
  0x4c   : > { %775 = vst.msk [vmem:[%s980_s25 + $0x250] sm:$0xff] %vm700_vm0, %v646_v7  ;;  %v650_v17 = vmax.f32 %v522_v8, 0.0  ;;  %v391_v20 = vmul.f32 %v947_v0, %v256_v4  ;;  %776 = vst.msk [vmem:[%s980_s25 + $0x258] sm:$0xff] %vm700_vm0, %v647_v12  ;;  %v392_v23 = vmul.f32 %v947_v0, %v257_v9  ;;  %v393_v24 = vmul.f32 %v947_v0, %v258_v10  ;;  %v270_v4 = vld [vmem:[%s952_s20 + $0x300] sm:$0xff] }
  0x4d   : > { %777 = vst.msk [vmem:[%s980_s25 + $0x260] sm:$0xff] %vm700_vm0, %v648_v13  ;;  %778 = vst.msk [vmem:[%s980_s25 + $0x268] sm:$0xff] %vm700_vm0, %v649_v14  ;;  %v651_v22 = vmax.f32 %v523_v15, 0.0  ;;  %v394_v25 = vmul.f32 %v947_v0, %v259_v11  ;;  %v524_v26 = vadd.f32 %v957_v1, %v389_v18  ;;  %v525_v27 = vadd.f32 %v957_v1, %v390_v19  ;;  %v273_v11 = vld [vmem:[%s952_s20 + $0x318] sm:$0xff]  ;;  %v274_v12 = vld [vmem:[%s952_s20 + $0x320] sm:$0xff] }
  0x4e   : > { %779 = vst.msk [vmem:[%s980_s25 + $0x270] sm:$0xff] %vm700_vm0, %v650_v17  ;;  %v526_v28 = vadd.f32 %v957_v1, %v391_v20  ;;  %v395_v29 = vmul.f32 %v947_v0, %v260_v16  ;;  %v527_v30 = vadd.f32 %v957_v1, %v392_v23  ;;  %v528_v31 = vadd.f32 %v957_v1, %v393_v24  ;;  %v275_v13 = vld [vmem:[%s952_s20 + $0x328] sm:$0xff]  ;;  %v276_v18 = vld [vmem:[%s952_s20 + $0x330] sm:$0xff]  ;;  %v277_v23 = vld [vmem:[%s952_s20 + $0x338] sm:$0xff] }
  0x4f   : > { %780 = vst.msk [vmem:[%s980_s25 + $0x278] sm:$0xff] %vm700_vm0, %v651_v22  ;;  %v529_v32 = vadd.f32 %v957_v1, %v394_v25  ;;  %v396_v33 = vmul.f32 %v947_v0, %v261_v21  ;;  %v652_v37 = vmax.f32 %v524_v26, 0.0  ;;  %v653_v38 = vmax.f32 %v525_v27, 0.0 }
  0x50   : > { %v654_v39 = vmax.f32 %v526_v28, 0.0  ;;  %v530_v40 = vadd.f32 %v957_v1, %v395_v29  ;;  %v655_v44 = vmax.f32 %v527_v30, 0.0  ;;  %v656_v45 = vmax.f32 %v528_v31, 0.0 }
  0x51   : > { %v657_v46 = vmax.f32 %v529_v32, 0.0  ;;  %v531_v47 = vadd.f32 %v957_v1, %v396_v33  ;;  %781 = vst.msk [vmem:[%s980_s25 + $0x280] sm:$0xff] %vm700_vm0, %v652_v37  ;;  %782 = vst.msk [vmem:[%s980_s25 + $0x288] sm:$0xff] %vm700_vm0, %v653_v38  ;;  %v397_v50 = vmul.f32 %v947_v0, %v262_v34  ;;  %v398_v51 = vmul.f32 %v947_v0, %v263_v35  ;;  %v279_v37 = vld [vmem:[%s952_s20 + $0x348] sm:$0xff]  ;;  %v280_v38 = vld [vmem:[%s952_s20 + $0x350] sm:$0xff] }
  0x52   : > { %783 = vst.msk [vmem:[%s980_s25 + $0x290] sm:$0xff] %vm700_vm0, %v654_v39  ;;  %v658_v49 = vmax.f32 %v530_v40, 0.0  ;;  %v399_v52 = vmul.f32 %v947_v0, %v264_v36  ;;  %784 = vst.msk [vmem:[%s980_s25 + $0x298] sm:$0xff] %vm700_vm0, %v655_v44  ;;  %v400_v55 = vmul.f32 %v947_v0, %v265_v41  ;;  %v401_v56 = vmul.f32 %v947_v0, %v266_v42  ;;  %v278_v36 = vld [vmem:[%s952_s20 + $0x340] sm:$0xff] }
  0x53   : > { %785 = vst.msk [vmem:[%s980_s25 + $0x2a0] sm:$0xff] %vm700_vm0, %v656_v45  ;;  %786 = vst.msk [vmem:[%s980_s25 + $0x2a8] sm:$0xff] %vm700_vm0, %v657_v46  ;;  %v659_v54 = vmax.f32 %v531_v47, 0.0  ;;  %v402_v57 = vmul.f32 %v947_v0, %v267_v43  ;;  %v532_v58 = vadd.f32 %v957_v1, %v397_v50  ;;  %v533_v59 = vadd.f32 %v957_v1, %v398_v51  ;;  %v281_v43 = vld [vmem:[%s952_s20 + $0x358] sm:$0xff]  ;;  %v282_v44 = vld [vmem:[%s952_s20 + $0x360] sm:$0xff] }
  0x54   : > { %787 = vst.msk [vmem:[%s980_s25 + $0x2b0] sm:$0xff] %vm700_vm0, %v658_v49  ;;  %v534_v60 = vadd.f32 %v957_v1, %v399_v52  ;;  %v403_v61 = vmul.f32 %v947_v0, %v268_v48  ;;  %v535_v62 = vadd.f32 %v957_v1, %v400_v55  ;;  %v536_v63 = vadd.f32 %v957_v1, %v401_v56  ;;  %v283_v45 = vld [vmem:[%s952_s20 + $0x368] sm:$0xff]  ;;  %v1476_v48 = vld [vmem:[%s1619_s2] ss:$0 sm:$0xff]  ;;  %v284_v50 = vld [vmem:[%s952_s20 + $0x370] sm:$0xff] }
  0x55   : > { %788 = vst.msk [vmem:[%s980_s25 + $0x2b8] sm:$0xff] %vm700_vm0, %v659_v54  ;;  %v537_v2 = vadd.f32 %v957_v1, %v402_v57  ;;  %v404_v3 = vmul.f32 %v947_v0, %v269_v53  ;;  %v660_v7 = vmax.f32 %v532_v58, 0.0  ;;  %v661_v8 = vmax.f32 %v533_v59, 0.0  ;;  %v1489_v51 = vld [vmem:[%s1618_s1] ss:$0 sm:$0xff]  ;;  %v285_v55 = vld [vmem:[%s952_s20 + $0x378] sm:$0xff] }
  0x56   : > { %v662_v9 = vmax.f32 %v534_v60, 0.0  ;;  %v538_v10 = vadd.f32 %v957_v1, %v403_v61  ;;  %v663_v14 = vmax.f32 %v535_v62, 0.0  ;;  %v664_v15 = vmax.f32 %v536_v63, 0.0 }
  0x57   : > { %v665_v16 = vmax.f32 %v537_v2, 0.0  ;;  %v539_v17 = vadd.f32 %v957_v1, %v404_v3  ;;  %789 = vst.msk [vmem:[%s980_s25 + $0x2c0] sm:$0xff] %vm700_vm0, %v660_v7  ;;  %790 = vst.msk [vmem:[%s980_s25 + $0x2c8] sm:$0xff] %vm700_vm0, %v661_v8  ;;  %v405_v20 = vmul.f32 %v947_v0, %v270_v4  ;;  %v406_v21 = vmul.f32 %v947_v0, %v271_v5  ;;  %v287_v7 = vld [vmem:[%s952_s20 + $0x388] sm:$0xff]  ;;  %v288_v8 = vld [vmem:[%s952_s20 + $0x390] sm:$0xff] }
  0x58   : > { %791 = vst.msk [vmem:[%s980_s25 + $0x2d0] sm:$0xff] %vm700_vm0, %v662_v9  ;;  %v666_v19 = vmax.f32 %v538_v10, 0.0  ;;  %v407_v22 = vmul.f32 %v947_v0, %v272_v6  ;;  %792 = vst.msk [vmem:[%s980_s25 + $0x2d8] sm:$0xff] %vm700_vm0, %v663_v14  ;;  %v408_v25 = vmul.f32 %v947_v0, %v273_v11  ;;  %v409_v26 = vmul.f32 %v947_v0, %v274_v12  ;;  %v286_v6 = vld [vmem:[%s952_s20 + $0x380] sm:$0xff] }
  0x59   : > { %793 = vst.msk [vmem:[%s980_s25 + $0x2e0] sm:$0xff] %vm700_vm0, %v664_v15  ;;  %794 = vst.msk [vmem:[%s980_s25 + $0x2e8] sm:$0xff] %vm700_vm0, %v665_v16  ;;  %v667_v24 = vmax.f32 %v539_v17, 0.0  ;;  %v410_v27 = vmul.f32 %v947_v0, %v275_v13  ;;  %v540_v28 = vadd.f32 %v957_v1, %v405_v20  ;;  %v541_v29 = vadd.f32 %v957_v1, %v406_v21  ;;  %v289_v13 = vld [vmem:[%s952_s20 + $0x398] sm:$0xff]  ;;  %v290_v14 = vld [vmem:[%s952_s20 + $0x3a0] sm:$0xff] }
  0x5a   : > { %795 = vst.msk [vmem:[%s980_s25 + $0x2f0] sm:$0xff] %vm700_vm0, %v666_v19  ;;  %v542_v30 = vadd.f32 %v957_v1, %v407_v22  ;;  %v411_v31 = vmul.f32 %v947_v0, %v276_v18  ;;  %v543_v32 = vadd.f32 %v957_v1, %v408_v25  ;;  %v544_v33 = vadd.f32 %v957_v1, %v409_v26  ;;  %v291_v15 = vld [vmem:[%s952_s20 + $0x3a8] sm:$0xff]  ;;  %v292_v20 = vld [vmem:[%s952_s20 + $0x3b0] sm:$0xff]  ;;  %v293_v25 = vld [vmem:[%s952_s20 + $0x3b8] sm:$0xff] }
  0x5b   : > { %796 = vst.msk [vmem:[%s980_s25 + $0x2f8] sm:$0xff] %vm700_vm0, %v667_v24  ;;  %v545_v34 = vadd.f32 %v957_v1, %v410_v27  ;;  %v412_v35 = vmul.f32 %v947_v0, %v277_v23  ;;  %v668_v39 = vmax.f32 %v540_v28, 0.0  ;;  %v669_v40 = vmax.f32 %v541_v29, 0.0 }
  0x5c   : > { %v670_v41 = vmax.f32 %v542_v30, 0.0  ;;  %v546_v42 = vadd.f32 %v957_v1, %v411_v31  ;;  %v671_v46 = vmax.f32 %v543_v32, 0.0  ;;  %v672_v0 = vmax.f32 %v544_v33, 0.0 }
  0x5d   : > { %v673_v47 = vmax.f32 %v545_v34, 0.0  ;;  %v547_v49 = vadd.f32 %v1476_v48, %v412_v35  ;;  %797 = vst.msk [vmem:[%s980_s25 + $0x300] sm:$0xff] %vm700_vm0, %v668_v39  ;;  %798 = vst.msk [vmem:[%s980_s25 + $0x308] sm:$0xff] %vm700_vm0, %v669_v40  ;;  %v413_v52 = vmul.f32 %v1489_v51, %v278_v36  ;;  %v414_v53 = vmul.f32 %v1489_v51, %v279_v37  ;;  %v295_v39 = vld [vmem:[%s952_s20 + $0x3c8] sm:$0xff]  ;;  %v296_v40 = vld [vmem:[%s952_s20 + $0x3d0] sm:$0xff] }
  0x5e   : > { %799 = vst.msk [vmem:[%s980_s25 + $0x310] sm:$0xff] %vm700_vm0, %v670_v41  ;;  %v674_v1 = vmax.f32 %v546_v42, 0.0  ;;  %v415_v54 = vmul.f32 %v1489_v51, %v280_v38  ;;  %800 = vst.msk [vmem:[%s980_s25 + $0x318] sm:$0xff] %vm700_vm0, %v671_v46  ;;  %v416_v57 = vmul.f32 %v1489_v51, %v281_v43  ;;  %v417_v58 = vmul.f32 %v1489_v51, %v282_v44  ;;  %v294_v38 = vld [vmem:[%s952_s20 + $0x3c0] sm:$0xff] }
  0x5f   : > { %801 = vst.msk [vmem:[%s980_s25 + $0x320] sm:$0xff] %vm700_vm0, %v672_v0  ;;  %802 = vst.msk [vmem:[%s980_s25 + $0x328] sm:$0xff] %vm700_vm0, %v673_v47  ;;  %v675_v56 = vmax.f32 %v547_v49, 0.0  ;;  %v418_v59 = vmul.f32 %v1489_v51, %v283_v45  ;;  %v548_v60 = vadd.f32 %v1476_v48, %v413_v52  ;;  %v549_v61 = vadd.f32 %v1476_v48, %v414_v53  ;;  %v297_v45 = vld [vmem:[%s952_s20 + $0x3d8] sm:$0xff]  ;;  %v298_v46 = vld [vmem:[%s952_s20 + $0x3e0] sm:$0xff] }
  0x60   : > { %803 = vst.msk [vmem:[%s980_s25 + $0x330] sm:$0xff] %vm700_vm0, %v674_v1  ;;  %v550_v62 = vadd.f32 %v1476_v48, %v415_v54  ;;  %v419_v63 = vmul.f32 %v1489_v51, %v284_v50  ;;  %v551_v2 = vadd.f32 %v1476_v48, %v416_v57  ;;  %v552_v3 = vadd.f32 %v1476_v48, %v417_v58  ;;  %v299_v0 = vld [vmem:[%s952_s20 + $0x3e8] sm:$0xff]  ;;  %v300_v52 = vld [vmem:[%s952_s20 + $0x3f0] sm:$0xff]  ;;  %v301_v57 = vld [vmem:[%s952_s20 + $0x3f8] sm:$0xff] }
  0x61   : > { %804 = vst.msk [vmem:[%s980_s25 + $0x338] sm:$0xff] %vm700_vm0, %v675_v56  ;;  %v553_v4 = vadd.f32 %v1476_v48, %v418_v59  ;;  %v420_v5 = vmul.f32 %v1489_v51, %v285_v55  ;;  %v676_v9 = vmax.f32 %v548_v60, 0.0  ;;  %v677_v10 = vmax.f32 %v549_v61, 0.0 }
  0x62   : > { %v678_v11 = vmax.f32 %v550_v62, 0.0  ;;  %v554_v12 = vadd.f32 %v1476_v48, %v419_v63  ;;  %v679_v16 = vmax.f32 %v551_v2, 0.0  ;;  %v680_v17 = vmax.f32 %v552_v3, 0.0 }
  0x63   : > { %v681_v18 = vmax.f32 %v553_v4, 0.0  ;;  %v555_v19 = vadd.f32 %v1476_v48, %v420_v5  ;;  %805 = vst.msk [vmem:[%s980_s25 + $0x340] sm:$0xff] %vm700_vm0, %v676_v9  ;;  %806 = vst.msk [vmem:[%s980_s25 + $0x348] sm:$0xff] %vm700_vm0, %v677_v10  ;;  %v421_v22 = vmul.f32 %v1489_v51, %v286_v6  ;;  %v422_v23 = vmul.f32 %v1489_v51, %v287_v7 }
  0x64   : > { %807 = vst.msk [vmem:[%s980_s25 + $0x350] sm:$0xff] %vm700_vm0, %v678_v11  ;;  %v682_v21 = vmax.f32 %v554_v12, 0.0  ;;  %v423_v24 = vmul.f32 %v1489_v51, %v288_v8  ;;  %808 = vst.msk [vmem:[%s980_s25 + $0x358] sm:$0xff] %vm700_vm0, %v679_v16  ;;  %v424_v27 = vmul.f32 %v1489_v51, %v289_v13  ;;  %v425_v28 = vmul.f32 %v1489_v51, %v290_v14 }
  0x65   : > { %809 = vst.msk [vmem:[%s980_s25 + $0x360] sm:$0xff] %vm700_vm0, %v680_v17  ;;  %810 = vst.msk [vmem:[%s980_s25 + $0x368] sm:$0xff] %vm700_vm0, %v681_v18  ;;  %v683_v26 = vmax.f32 %v555_v19, 0.0  ;;  %v426_v29 = vmul.f32 %v1489_v51, %v291_v15  ;;  %v556_v30 = vadd.f32 %v1476_v48, %v421_v22  ;;  %v557_v31 = vadd.f32 %v1476_v48, %v422_v23 }
  0x66   : > { %811 = vst.msk [vmem:[%s980_s25 + $0x370] sm:$0xff] %vm700_vm0, %v682_v21  ;;  %v558_v32 = vadd.f32 %v1476_v48, %v423_v24  ;;  %v427_v33 = vmul.f32 %v1489_v51, %v292_v20  ;;  %v559_v34 = vadd.f32 %v1476_v48, %v424_v27  ;;  %v560_v35 = vadd.f32 %v1476_v48, %v425_v28 }
  0x67   : > { %812 = vst.msk [vmem:[%s980_s25 + $0x378] sm:$0xff] %vm700_vm0, %v683_v26  ;;  %v561_v36 = vadd.f32 %v1476_v48, %v426_v29  ;;  %v428_v37 = vmul.f32 %v1489_v51, %v293_v25  ;;  %v684_v41 = vmax.f32 %v556_v30, 0.0  ;;  %v685_v42 = vmax.f32 %v557_v31, 0.0 }
  0x68   : > { %v686_v43 = vmax.f32 %v558_v32, 0.0  ;;  %v562_v44 = vadd.f32 %v1476_v48, %v427_v33  ;;  %v687_v47 = vmax.f32 %v559_v34, 0.0  ;;  %v688_v49 = vmax.f32 %v560_v35, 0.0 }
  0x69   : > { %v689_v50 = vmax.f32 %v561_v36, 0.0  ;;  %v563_v1 = vadd.f32 %v1476_v48, %v428_v37  ;;  %813 = vst.msk [vmem:[%s980_s25 + $0x380] sm:$0xff] %vm700_vm0, %v684_v41  ;;  %814 = vst.msk [vmem:[%s980_s25 + $0x388] sm:$0xff] %vm700_vm0, %v685_v42  ;;  %v429_v54 = vmul.f32 %v1489_v51, %v294_v38  ;;  %v430_v55 = vmul.f32 %v1489_v51, %v295_v39 }
  0x6a   : > { %815 = vst.msk [vmem:[%s980_s25 + $0x390] sm:$0xff] %vm700_vm0, %v686_v43  ;;  %v690_v53 = vmax.f32 %v562_v44, 0.0  ;;  %v431_v56 = vmul.f32 %v1489_v51, %v296_v40  ;;  %816 = vst.msk [vmem:[%s980_s25 + $0x398] sm:$0xff] %vm700_vm0, %v687_v47  ;;  %v432_v59 = vmul.f32 %v1489_v51, %v297_v45  ;;  %v433_v60 = vmul.f32 %v1489_v51, %v298_v46 }
  0x6b   : > { %817 = vst.msk [vmem:[%s980_s25 + $0x3a0] sm:$0xff] %vm700_vm0, %v688_v49  ;;  %818 = vst.msk [vmem:[%s980_s25 + $0x3a8] sm:$0xff] %vm700_vm0, %v689_v50  ;;  %v691_v58 = vmax.f32 %v563_v1, 0.0  ;;  %v434_v61 = vmul.f32 %v1489_v51, %v299_v0  ;;  %v564_v62 = vadd.f32 %v1476_v48, %v429_v54  ;;  %v565_v63 = vadd.f32 %v1476_v48, %v430_v55 }
  0x6c   : > { %819 = vst.msk [vmem:[%s980_s25 + $0x3b0] sm:$0xff] %vm700_vm0, %v690_v53  ;;  %v566_v2 = vadd.f32 %v1476_v48, %v431_v56  ;;  %v435_v3 = vmul.f32 %v1489_v51, %v300_v52  ;;  %v567_v4 = vadd.f32 %v1476_v48, %v432_v59  ;;  %v568_v5 = vadd.f32 %v1476_v48, %v433_v60 }
  0x6d   : > { %820 = vst.msk [vmem:[%s980_s25 + $0x3b8] sm:$0xff] %vm700_vm0, %v691_v58  ;;  %v569_v6 = vadd.f32 %v1476_v48, %v434_v61  ;;  %v436_v7 = vmul.f32 %v1489_v51, %v301_v57  ;;  %v692_v8 = vmax.f32 %v564_v62, 0.0  ;;  %v693_v9 = vmax.f32 %v565_v63, 0.0 }
  0x6e   : > { %v694_v10 = vmax.f32 %v566_v2, 0.0  ;;  %v570_v11 = vadd.f32 %v1476_v48, %v435_v3  ;;  %v695_v12 = vmax.f32 %v567_v4, 0.0  ;;  %v696_v13 = vmax.f32 %v568_v5, 0.0 }
  0x6f   : > { %v697_v14 = vmax.f32 %v569_v6, 0.0  ;;  %v571_v15 = vadd.f32 %v1476_v48, %v436_v7  ;;  %821 = vst.msk [vmem:[%s980_s25 + $0x3c0] sm:$0xff] %vm700_vm0, %v692_v8  ;;  %822 = vst.msk [vmem:[%s980_s25 + $0x3c8] sm:$0xff] %vm700_vm0, %v693_v9 }
  0x70   : > { %823 = vst.msk [vmem:[%s980_s25 + $0x3d0] sm:$0xff] %vm700_vm0, %v694_v10  ;;  %v698_v16 = vmax.f32 %v570_v11, 0.0  ;;  %824 = vst.msk [vmem:[%s980_s25 + $0x3d8] sm:$0xff] %vm700_vm0, %v695_v12 }
  0x71   : > { %825 = vst.msk [vmem:[%s980_s25 + $0x3e0] sm:$0xff] %vm700_vm0, %v696_v13  ;;  %826 = vst.msk [vmem:[%s980_s25 + $0x3e8] sm:$0xff] %vm700_vm0, %v697_v14  ;;  %v699_v51 = vmax.f32 %v571_v15, 0.0 }
  0x72   : > { %827 = vst.msk [vmem:[%s980_s25 + $0x3f0] sm:$0xff] %vm700_vm0, %v698_v16 }
  0x73   : > { %828 = vst.msk [vmem:[%s980_s25 + $0x3f8] sm:$0xff] %vm700_vm0, %v699_v51 }
  0x74 PF: > { %s13_s12 = sadd.s32 1, %s914_s12  }
  0x75   : > { %p10_p4 = scmp.ge.s32.totalorder %s13_s12, 10  }
  0x77   :  { %12 = sbr.rel (!%p10_p4) target bundleno = 1 (0x1), region = 62 }

// kernel: decoder_block_forward.10
= control target key start
LH: loop header
LB: loop body
LE: loop exit
PB: predicated region body
PF: predicated region fallthrough
CT: control target
= control target key end

     0   :  { %s2946_s15 = smov 0   ;;  %s2948_s16 = smov 0   ;;  %s4028_s0 = inlined_call_operand.vmem [shape: bf16[1,8192,32], index: 0, kind: input, shape index: {}]   ;;  %s4029_s1 = inlined_call_operand.vmem [shape: bf16[1,32,64], index: 1, kind: input, shape index: {}]   ;;  %s4030_s2 = inlined_call_operand.vmem [shape: f32[1,8192,64], index: 2, kind: output, shape index: {0}]   ;;  %s4031_s3 = inlined_call_operand.vmem [shape: f32[1,8,1,64], index: 3, kind: output, shape index: {1}]   ;;  %s4032_s4 = inlined_call_operand.vmem [shape: f32[1,8,1,64], index: 4, kind: output, shape index: {2}]  }
   0x1   :  { %s2950_s17 = smov 0  }
   0x2 LB: > { %s24_s18 = sadd.s32 1, %s2915_s16  ;;  %p2468_p0 = scmp.ge.s32.totalorder %s2919_s17, 1  ;;  %s2919_s17 = sphi %s2950_s17, %s15_s17   ;;  %s2915_s16 = sphi %s2948_s16, %s4042_s16   ;;  %s2911_s15 = sphi %s2946_s15, %s4041_s15  }
   0x3   : > { %p25_p1 = scmp.ge.s32.totalorder %s24_s18, 8  ;;  %p202_p2 = scmp.lt.s32.totalorder %s2919_s17, 9 }
   0x5   : > { %s4044_s18 = smov (%p25_p1, %s24_s18), 0  ;;  %p203_p3 = pnand %p2468_p0, %p202_p2 }
   0x7   : > { %206 = sbr.rel (%p203_p3) target bundleno = 490 (0x1ea), region = 28 }
   0xc   : > { %v2831_v0 = vld [vmem:[%s4029_s1 + $0x8] sm:$0xff]   ;;  %s2469_s21 = sshll.u32 %s2911_s15, 7  ;;  %v2832_v1 = vld [vmem:[%s4029_s1] sm:$0xff]   ;;  %vm759_vm0 = vcmask 261120   ;;  %vm1497_vm1 = vcmask 523264   ;;  %p282_p5 = scmp.lt.s32.totalorder %s2911_s15, 7 }
   0xd   : > { %p258_p4 = scmp.lt.s32.totalorder %s2469_s21, 1023  ;;  %2671 = vmatprep.subr.bf16.mxu0 %v2831_v0  ;;  %2803 = vmatprep.subr.bf16.mxu1 %v2831_v0  ;;  %vm1887_vm2 = vcmask 516096  }
   0xe   : > { %2672 = vmatpush3.bf16.msra.mxu0 %v2831_v0  ;;  %2805 = vmatpush3.bf16.msra.mxu1 %v2831_v0  ;;  %s4048_s15 = smov (!%p282_p5, %s2911_s15), 7 }
   0xf   : > { %s4046_s21 = smov (!%p258_p4, %s2469_s21), 1023  ;;  %2673 = vmatprep.subr.bf16.mxu0 %v2832_v1  ;;  %2804 = vmatprep.subr.bf16.mxu1 %v2832_v1  ;;  %s286_s8 = scalar_lea.vmem %s4031_s3, %s4048_s15 }
  0x10   : > { %s2470_s24 = sshll.u32 %s4046_s21, 2  ;;  %s2472_s28 = sshll.u32 %s4046_s21, 3 }
  0x11   : > { %s2979_s27 = scalar_lea.vmem %s4028_s0, %s2470_s24  ;;  %s3113_s5 = scalar_lea.vmem %s4030_s2, %s2472_s28 }
  0x12   : > { %2674 = vmatpush3.bf16.msra.mxu0 %v2832_v1  ;;  %v2833_v2 = vld [vmem:[%s2979_s27] sm:$0xff]   ;;  %2806 = vmatpush3.bf16.msra.mxu1 %v2832_v1  ;;  %v2834_v3 = vld [vmem:[%s2979_s27 + $0x8] sm:$0xff]   ;;  %v2835_v4 = vld [vmem:[%s2979_s27 + $0x10] sm:$0xff]   ;;  %s293_s11 = scalar_lea.vmem %s4032_s4, %s4048_s15 }
  0x13   : > { %2675 = vmatprep.mubr.msk.bf16.mxu0 %vm759_vm0, %v2833_v2  ;;  %v2836_v5 = vld [vmem:[%s2979_s27 + $0x18] sm:$0xff]   ;;  %v2837_v6 = vld [vmem:[%s2979_s27 + $0x20] sm:$0xff]   ;;  %v2838_v7 = vld [vmem:[%s2979_s27 + $0x28] sm:$0xff]  }
  0x14   : > { %v2839_v8 = vld [vmem:[%s2979_s27 + $0x30] sm:$0xff]   ;;  %v2840_v9 = vld [vmem:[%s2979_s27 + $0x38] sm:$0xff]   ;;  %v2841_v10 = vld [vmem:[%s2979_s27 + $0x40] sm:$0xff]  }
  0x15   : > { %2676 = vmatmul.mubr.msk.bf16.vlgmr.msra.gmra.mxu0 %vm759_vm0, %v2834_v3  ;;  %v2842_v11 = vld [vmem:[%s2979_s27 + $0x48] sm:$0xff]   ;;  %v2843_v12 = vld [vmem:[%s2979_s27 + $0x50] sm:$0xff]   ;;  %v2865_v13 = vld [vmem:[%s2979_s27 + $0x100] sm:$0xff]  }
  0x16   : > { %2679 = vmatprep.mubr.msk.bf16.mxu0 %vm759_vm0, %v2835_v4  ;;  %v2866_v14 = vld [vmem:[%s2979_s27 + $0x108] sm:$0xff]   ;;  %2739 = vmatprep.mubr.msk.bf16.mxu1 %vm759_vm0, %v2865_v13  ;;  %v2867_v15 = vld [vmem:[%s2979_s27 + $0x110] sm:$0xff]   ;;  %v2844_v16 = vld [vmem:[%s2979_s27 + $0x58] sm:$0xff]  }
  0x17   : > { %2740 = vmatmul.mubr.msk.bf16.vlgmr.msra.gmra.mxu1 %vm759_vm0, %v2866_v14  ;;  %v2845_v17 = vld [vmem:[%s2979_s27 + $0x60] sm:$0xff]   ;;  %v2868_v18 = vld [vmem:[%s2979_s27 + $0x118] sm:$0xff]   ;;  %v2846_v20 = vld [vmem:[%s2979_s27 + $0x68] sm:$0xff]  }
  0x18   : > { %2743 = vmatprep.mubr.msk.bf16.mxu1 %vm759_vm0, %v2867_v15  ;;  %v2869_v19 = vld [vmem:[%s2979_s27 + $0x120] sm:$0xff]   ;;  %v2847_v21 = vld [vmem:[%s2979_s27 + $0x70] sm:$0xff]   ;;  %v2870_v22 = vld [vmem:[%s2979_s27 + $0x128] sm:$0xff]  }
  0x19   : > { %v2871_v23 = vld [vmem:[%s2979_s27 + $0x130] sm:$0xff]   ;;  %v2848_v24 = vld [vmem:[%s2979_s27 + $0x78] sm:$0xff]   ;;  %v2849_v26 = vld [vmem:[%s2979_s27 + $0x80] sm:$0xff]  }
  0x1a   : > { %v2872_v25 = vld [vmem:[%s2979_s27 + $0x138] sm:$0xff]   ;;  %v2873_v27 = vld [vmem:[%s2979_s27 + $0x140] sm:$0xff]   ;;  %v2850_v28 = vld [vmem:[%s2979_s27 + $0x88] sm:$0xff]  }
  0x1b   : > { %v2874_v29 = vld [vmem:[%s2979_s27 + $0x148] sm:$0xff]   ;;  %v2851_v30 = vld [vmem:[%s2979_s27 + $0x90] sm:$0xff]   ;;  %v2852_v32 = vld [vmem:[%s2979_s27 + $0x98] sm:$0xff]  }
  0x1c   : > { %v2875_v31 = vld [vmem:[%s2979_s27 + $0x150] sm:$0xff]   ;;  %v2876_v33 = vld [vmem:[%s2979_s27 + $0x158] sm:$0xff]   ;;  %v2853_v34 = vld [vmem:[%s2979_s27 + $0xa0] sm:$0xff]  }
  0x1d   : > { %2680 = vmatmul.mubr.msk.bf16.gmra.mxu0 %vm759_vm0, %v2836_v5  ;;  %v2877_v35 = vld [vmem:[%s2979_s27 + $0x160] sm:$0xff]   ;;  %v2854_v36 = vld [vmem:[%s2979_s27 + $0xa8] sm:$0xff]   ;;  %v2855_v38 = vld [vmem:[%s2979_s27 + $0xb0] sm:$0xff]  }
  0x1e   : > { %2683 = vmatprep.mubr.msk.bf16.mxu0 %vm759_vm0, %v2837_v6  ;;  %v2878_v37 = vld [vmem:[%s2979_s27 + $0x168] sm:$0xff]   ;;  %v2879_v39 = vld [vmem:[%s2979_s27 + $0x170] sm:$0xff]   ;;  %v2856_v40 = vld [vmem:[%s2979_s27 + $0xb8] sm:$0xff]  }
  0x1f   : > { %2744 = vmatmul.mubr.msk.bf16.gmra.mxu1 %vm759_vm0, %v2868_v18  ;;  %v2880_v41 = vld [vmem:[%s2979_s27 + $0x178] sm:$0xff]   ;;  %v2857_v42 = vld [vmem:[%s2979_s27 + $0xc0] sm:$0xff]   ;;  %v2858_v44 = vld [vmem:[%s2979_s27 + $0xc8] sm:$0xff]  }
  0x20   : > { %2747 = vmatprep.mubr.msk.bf16.mxu1 %vm759_vm0, %v2869_v19  ;;  %v2881_v43 = vld [vmem:[%s2979_s27 + $0x180] sm:$0xff]   ;;  %v2882_v45 = vld [vmem:[%s2979_s27 + $0x188] sm:$0xff]   ;;  %v2859_v46 = vld [vmem:[%s2979_s27 + $0xd0] sm:$0xff]  }
  0x21   : > { %v2883_v47 = vld [vmem:[%s2979_s27 + $0x190] sm:$0xff]   ;;  %v2860_v48 = vld [vmem:[%s2979_s27 + $0xd8] sm:$0xff]   ;;  %v2861_v50 = vld [vmem:[%s2979_s27 + $0xe0] sm:$0xff]  }
  0x22   : > { %v2884_v49 = vld [vmem:[%s2979_s27 + $0x198] sm:$0xff]   ;;  %v2885_v51 = vld [vmem:[%s2979_s27 + $0x1a0] sm:$0xff]   ;;  %v2862_v52 = vld [vmem:[%s2979_s27 + $0xe8] sm:$0xff]  }
  0x23   : > { %v2886_v53 = vld [vmem:[%s2979_s27 + $0x1a8] sm:$0xff]   ;;  %v2863_v54 = vld [vmem:[%s2979_s27 + $0xf0] sm:$0xff]   ;;  %v2864_v56 = vld [vmem:[%s2979_s27 + $0xf8] sm:$0xff]  }
  0x24   : > { %v2887_v55 = vld [vmem:[%s2979_s27 + $0x1b0] sm:$0xff]   ;;  %v2888_v57 = vld [vmem:[%s2979_s27 + $0x1b8] sm:$0xff]   ;;  %v2889_v58 = vld [vmem:[%s2979_s27 + $0x1c0] sm:$0xff]  }
  0x25   : > { %2684 = vmatmul.mubr.msk.bf16.gmra.mxu0 %vm759_vm0, %v2838_v7  ;;  %v2890_v59 = vld [vmem:[%s2979_s27 + $0x1c8] sm:$0xff]   ;;  %v2891_v60 = vld [vmem:[%s2979_s27 + $0x1d0] sm:$0xff]   ;;  %v2892_v61 = vld [vmem:[%s2979_s27 + $0x1d8] sm:$0xff]  }
  0x26   : > { %2687 = vmatprep.mubr.msk.bf16.mxu0 %vm759_vm0, %v2839_v8  ;;  %v2893_v62 = vld [vmem:[%s2979_s27 + $0x1e0] sm:$0xff]   ;;  %v2894_v63 = vld [vmem:[%s2979_s27 + $0x1e8] sm:$0xff]   ;;  %v2895_v0 = vld [vmem:[%s2979_s27 + $0x1f0] sm:$0xff]  }
  0x27   : > { %2748 = vmatmul.mubr.msk.bf16.gmra.mxu1 %vm759_vm0, %v2870_v22  ;;  %v2896_v1 = vld [vmem:[%s2979_s27 + $0x1f8] sm:$0xff]  }
  0x28   : > { %2751 = vmatprep.mubr.msk.bf16.mxu1 %vm759_vm0, %v2871_v23 }
  0x2d   : > { %2688 = vmatmul.mubr.msk.bf16.gmra.mxu0 %vm759_vm0, %v2840_v9 }
  0x2e   : > { %2691 = vmatprep.mubr.msk.bf16.mxu0 %vm759_vm0, %v2841_v10 }
  0x2f   : > { %2752 = vmatmul.mubr.msk.bf16.gmra.mxu1 %vm759_vm0, %v2872_v25 }
  0x30   : > { %2755 = vmatprep.mubr.msk.bf16.mxu1 %vm759_vm0, %v2873_v27 }
  0x35   : > { %2692 = vmatmul.mubr.msk.bf16.gmra.mxu0 %vm759_vm0, %v2842_v11 }
  0x36   : > { %2695 = vmatprep.mubr.msk.bf16.mxu0 %vm759_vm0, %v2843_v12 }
  0x37   : > { %2756 = vmatmul.mubr.msk.bf16.gmra.mxu1 %vm759_vm0, %v2874_v29 }
  0x38   : > { %2759 = vmatprep.mubr.msk.bf16.mxu1 %vm759_vm0, %v2875_v31 }
  0x3d   : > { %2696 = vmatmul.mubr.msk.bf16.gmra.mxu0 %vm759_vm0, %v2844_v16 }
  0x3e   : > { %2699 = vmatprep.mubr.msk.bf16.mxu0 %vm759_vm0, %v2845_v17 }
  0x3f   : > { %2760 = vmatmul.mubr.msk.bf16.gmra.mxu1 %vm759_vm0, %v2876_v33 }
  0x40   : > { %2763 = vmatprep.mubr.msk.bf16.mxu1 %vm759_vm0, %v2877_v35 }
  0x45   : > { %2700 = vmatmul.mubr.msk.bf16.gmra.mxu0 %vm759_vm0, %v2846_v20 }
  0x46   : > { %2703 = vmatprep.mubr.msk.bf16.mxu0 %vm759_vm0, %v2847_v21 }
  0x47   : > { %2764 = vmatmul.mubr.msk.bf16.gmra.mxu1 %vm759_vm0, %v2878_v37 }
  0x48   : > { %2767 = vmatprep.mubr.msk.bf16.mxu1 %vm759_vm0, %v2879_v39 }
  0x4d   : > { %2704 = vmatmul.mubr.msk.bf16.gmra.mxu0 %vm759_vm0, %v2848_v24 }
  0x4e   : > { %2707 = vmatprep.mubr.msk.bf16.mxu0 %vm759_vm0, %v2849_v26 }
  0x4f   : > { %2768 = vmatmul.mubr.msk.bf16.gmra.mxu1 %vm759_vm0, %v2880_v41 }
  0x50   : > { %2771 = vmatprep.mubr.msk.bf16.mxu1 %vm759_vm0, %v2881_v43 }
  0x55   : > { %2708 = vmatmul.mubr.msk.bf16.gmra.mxu0 %vm759_vm0, %v2850_v28 }
  0x56   : > { %2711 = vmatprep.mubr.msk.bf16.mxu0 %vm759_vm0, %v2851_v30 }
  0x57   : > { %2772 = vmatmul.mubr.msk.bf16.gmra.mxu1 %vm759_vm0, %v2882_v45 }
  0x58   : > { %2775 = vmatprep.mubr.msk.bf16.mxu1 %vm759_vm0, %v2883_v47 }
  0x5d   : > { %2712 = vmatmul.mubr.msk.bf16.gmra.mxu0 %vm759_vm0, %v2852_v32 }
  0x5e   : > { %2715 = vmatprep.mubr.msk.bf16.mxu0 %vm759_vm0, %v2853_v34 }
  0x5f   : > { %2776 = vmatmul.mubr.msk.bf16.gmra.mxu1 %vm759_vm0, %v2884_v49 }
  0x60   : > { %2779 = vmatprep.mubr.msk.bf16.mxu1 %vm759_vm0, %v2885_v51 }
  0x65   : > { %2716 = vmatmul.mubr.msk.bf16.gmra.mxu0 %vm759_vm0, %v2854_v36 }
  0x66   : > { %2719 = vmatprep.mubr.msk.bf16.mxu0 %vm759_vm0, %v2855_v38 }
  0x67   : > { %2780 = vmatmul.mubr.msk.bf16.gmra.mxu1 %vm759_vm0, %v2886_v53 }
  0x68   : > { %2783 = vmatprep.mubr.msk.bf16.mxu1 %vm759_vm0, %v2887_v55 }
  0x6d   : > { %2720 = vmatmul.mubr.msk.bf16.gmra.mxu0 %vm759_vm0, %v2856_v40 }
  0x6e   : > { %2723 = vmatprep.mubr.msk.bf16.mxu0 %vm759_vm0, %v2857_v42 }
  0x6f   : > { %2784 = vmatmul.mubr.msk.bf16.gmra.mxu1 %vm759_vm0, %v2888_v57 }
  0x70   : > { %2787 = vmatprep.mubr.msk.bf16.mxu1 %vm759_vm0, %v2889_v58 }
  0x75   : > { %2724 = vmatmul.mubr.msk.bf16.gmra.mxu0 %vm759_vm0, %v2858_v44 }
  0x76   : > { %2727 = vmatprep.mubr.msk.bf16.mxu0 %vm759_vm0, %v2859_v46 }
  0x77   : > { %2788 = vmatmul.mubr.msk.bf16.gmra.mxu1 %vm759_vm0, %v2890_v59 }
  0x78   : > { %2791 = vmatprep.mubr.msk.bf16.mxu1 %vm759_vm0, %v2891_v60 }
  0x7d   : > { %2728 = vmatmul.mubr.msk.bf16.gmra.mxu0 %vm759_vm0, %v2860_v48 }
  0x7e   : > { %2731 = vmatprep.mubr.msk.bf16.mxu0 %vm759_vm0, %v2861_v50 }
  0x7f   : > { %2792 = vmatmul.mubr.msk.bf16.gmra.mxu1 %vm759_vm0, %v2892_v61 }
  0x80   : > { %2795 = vmatprep.mubr.msk.bf16.mxu1 %vm759_vm0, %v2893_v62 }
  0x85   : > { %2732 = vmatmul.mubr.msk.bf16.gmra.mxu0 %vm759_vm0, %v2862_v52 }
  0x86   : > { %2735 = vmatprep.mubr.msk.bf16.mxu0 %vm759_vm0, %v2863_v54 }
  0x87   : > { %2796 = vmatmul.mubr.msk.bf16.gmra.mxu1 %vm759_vm0, %v2894_v63 }
  0x88   : > { %2799 = vmatprep.mubr.msk.bf16.mxu1 %vm759_vm0, %v2895_v0 }
  0x8d   : > { %2736 = vmatmul.mubr.msk.bf16.gmra.mxu0 %vm759_vm0, %v2864_v56 }
  0x8f   : > { %2800 = vmatmul.mubr.msk.bf16.gmra.mxu1 %vm759_vm0, %v2896_v1 }
  0xd5   : > { %v2677_v2 = vpop.f32.mrf.mxu0 }
  0xd6   : > { %1500 = vst.msk [vmem:[%s3113_s5 + $0x10] sm:$0xff] %vm1497_vm1, %v2677_v2  ;;  %v1891_v7 = vmul.f32 %v2677_v2, %v2677_v2  ;;  %v1629_v13 = vsel %vm1497_vm1, %v2677_v2, 0.0 }
  0xd7   : > { %v986_v3 = vpop.f32.mrf.mxu0 }
  0xd8   : > { %1498 = vst.msk [vmem:[%s3113_s5] sm:$0xff] %vm1497_vm1, %v986_v3  ;;  %v1889_v5 = vmul.f32 %v986_v3, %v986_v3  ;;  %v1626_v8 = vsel %vm1497_vm1, %v986_v3, 0.0  ;;  %v2020_v20 = vsel %vm1497_vm1, %v1891_v7, 0.0 }
  0xd9   : > { %v2678_v4 = vpop.f32.mrf.mxu0 }
  0xda   : > { %1501 = vst.msk [vmem:[%s3113_s5 + $0x18] sm:$0xff] %vm1497_vm1, %v2678_v4  ;;  %v2017_v14 = vsel %vm1497_vm1, %v1889_v5, 0.0  ;;  %v1892_v15 = vmul.f32 %v2678_v4, %v2678_v4  ;;  %v1631_v21 = vsel %vm1497_vm1, %v2678_v4, 0.0 }
  0xdb   : > { %v989_v6 = vpop.f32.mrf.mxu0 }
  0xdc   : > { %1499 = vst.msk [vmem:[%s3113_s5 + $0x8] sm:$0xff] %vm1497_vm1, %v989_v6  ;;  %v1627_v9 = vsel %vm1497_vm1, %v989_v6, 0.0  ;;  %v1890_v10 = vmul.f32 %v989_v6, %v989_v6  ;;  %v2022_v26 = vsel %vm1497_vm1, %v1892_v15, 0.0 }
  0xdd   : > { %v1628_v11 = vadd.f32 %v1627_v9, %v1626_v8  ;;  %v2681_v12 = vpop.f32.mrf.mxu0 }
  0xde   : > { %v2018_v16 = vsel %vm1497_vm1, %v1890_v10, 0.0  ;;  %1504 = vst.msk [vmem:[%s3113_s5 + $0x30] sm:$0xff] %vm1497_vm1, %v2681_v12  ;;  %v1895_v31 = vmul.f32 %v2681_v12, %v2681_v12  ;;  %v1637_v38 = vsel %vm1497_vm1, %v2681_v12, 0.0 }
  0xdf   : > { %v1630_v17 = vadd.f32 %v1629_v13, %v1628_v11  ;;  %v2019_v18 = vadd.f32 %v2018_v16, %v2017_v14  ;;  %v1002_v19 = vpop.f32.mrf.mxu0 }
  0xe0   : > { %1502 = vst.msk [vmem:[%s3113_s5 + $0x20] sm:$0xff] %vm1497_vm1, %v1002_v19  ;;  %v1893_v22 = vmul.f32 %v1002_v19, %v1002_v19  ;;  %v1633_v27 = vsel %vm1497_vm1, %v1002_v19, 0.0  ;;  %v2028_v44 = vsel %vm1497_vm1, %v1895_v31, 0.0 }
  0xe1   : > { %v2021_v23 = vadd.f32 %v2020_v20, %v2019_v18  ;;  %v1632_v24 = vadd.f32 %v1631_v21, %v1630_v17  ;;  %v2682_v25 = vpop.f32.mrf.mxu0 }
  0xe2   : > { %1505 = vst.msk [vmem:[%s3113_s5 + $0x38] sm:$0xff] %vm1497_vm1, %v2682_v25  ;;  %v2024_v32 = vsel %vm1497_vm1, %v1893_v22, 0.0  ;;  %v1896_v39 = vmul.f32 %v2682_v25, %v2682_v25  ;;  %v1639_v45 = vsel %vm1497_vm1, %v2682_v25, 0.0  ;;  %v3174_v22 = vpop.f32.mrf.mxu1 }
  0xe3   : > { %v1634_v28 = vadd.f32 %v1633_v27, %v1632_v24  ;;  %v2023_v29 = vadd.f32 %v2022_v26, %v2021_v23  ;;  %v1005_v30 = vpop.f32.mrf.mxu0  ;;  %1564 = vst.msk [vmem:[%s3113_s5 + $0x210] sm:$0xff] %vm1497_vm1, %v3174_v22 }
  0xe4   : > { %1503 = vst.msk [vmem:[%s3113_s5 + $0x28] sm:$0xff] %vm1497_vm1, %v1005_v30  ;;  %v1635_v33 = vsel %vm1497_vm1, %v1005_v30, 0.0  ;;  %v1894_v34 = vmul.f32 %v1005_v30, %v1005_v30  ;;  %v2030_v50 = vsel %vm1497_vm1, %v1896_v39, 0.0 }
  0xe5   : > { %v2025_v35 = vadd.f32 %v2024_v32, %v2023_v29  ;;  %v1636_v36 = vadd.f32 %v1635_v33, %v1634_v28  ;;  %v2685_v37 = vpop.f32.mrf.mxu0  ;;  %v3183_v29 = vpop.f32.mrf.mxu1 }
  0xe6   : > { %v2026_v40 = vsel %vm1497_vm1, %v1894_v34, 0.0  ;;  %1508 = vst.msk [vmem:[%s3113_s5 + $0x50] sm:$0xff] %vm1497_vm1, %v2685_v37  ;;  %v1899_v55 = vmul.f32 %v2685_v37, %v2685_v37  ;;  %v1645_v62 = vsel %vm1497_vm1, %v2685_v37, 0.0  ;;  %1562 = vst.msk [vmem:[%s3113_s5 + $0x200] sm:$0xff] %vm1497_vm1, %v3183_v29 }
  0xe7   : > { %v1638_v41 = vadd.f32 %v1637_v38, %v1636_v36  ;;  %v2027_v42 = vadd.f32 %v2026_v40, %v2025_v35  ;;  %v1018_v43 = vpop.f32.mrf.mxu0  ;;  %v3192_v36 = vpop.f32.mrf.mxu1 }
  0xe8   : > { %1506 = vst.msk [vmem:[%s3113_s5 + $0x40] sm:$0xff] %vm1497_vm1, %v1018_v43  ;;  %v1897_v46 = vmul.f32 %v1018_v43, %v1018_v43  ;;  %v1641_v51 = vsel %vm1497_vm1, %v1018_v43, 0.0  ;;  %v2036_v4 = vsel %vm1497_vm1, %v1899_v55, 0.0  ;;  %1565 = vst.msk [vmem:[%s3113_s5 + $0x218] sm:$0xff] %vm1497_vm1, %v3192_v36 }
  0xe9   : > { %v2029_v47 = vadd.f32 %v2028_v44, %v2027_v42  ;;  %v1640_v48 = vadd.f32 %v1639_v45, %v1638_v41  ;;  %v2686_v49 = vpop.f32.mrf.mxu0  ;;  %v3201_v42 = vpop.f32.mrf.mxu1 }
  0xea   : > { %1509 = vst.msk [vmem:[%s3113_s5 + $0x58] sm:$0xff] %vm1497_vm1, %v2686_v49  ;;  %v2032_v56 = vsel %vm1497_vm1, %v1897_v46, 0.0  ;;  %v1900_v63 = vmul.f32 %v2686_v49, %v2686_v49  ;;  %v1647_v5 = vsel %vm1497_vm1, %v2686_v49, 0.0  ;;  %1563 = vst.msk [vmem:[%s3113_s5 + $0x208] sm:$0xff] %vm1497_vm1, %v3201_v42 }
  0xeb   : > { %v1642_v52 = vadd.f32 %v1641_v51, %v1640_v48  ;;  %v2031_v53 = vadd.f32 %v2030_v50, %v2029_v47  ;;  %v1021_v54 = vpop.f32.mrf.mxu0  ;;  %v3210_v50 = vpop.f32.mrf.mxu1 }
  0xec   : > { %1507 = vst.msk [vmem:[%s3113_s5 + $0x48] sm:$0xff] %vm1497_vm1, %v1021_v54  ;;  %v1643_v57 = vsel %vm1497_vm1, %v1021_v54, 0.0  ;;  %v1898_v58 = vmul.f32 %v1021_v54, %v1021_v54  ;;  %v2038_v10 = vsel %vm1497_vm1, %v1900_v63, 0.0  ;;  %1568 = vst.msk [vmem:[%s3113_s5 + $0x230] sm:$0xff] %vm1497_vm1, %v3210_v50 }
  0xed   : > { %v2033_v59 = vadd.f32 %v2032_v56, %v2031_v53  ;;  %v1644_v60 = vadd.f32 %v1643_v57, %v1642_v52  ;;  %v2689_v61 = vpop.f32.mrf.mxu0  ;;  %v3219_v57 = vpop.f32.mrf.mxu1 }
  0xee   : > { %v2034_v0 = vsel %vm1497_vm1, %v1898_v58, 0.0  ;;  %1512 = vst.msk [vmem:[%s3113_s5 + $0x70] sm:$0xff] %vm1497_vm1, %v2689_v61  ;;  %v1903_v15 = vmul.f32 %v2689_v61, %v2689_v61  ;;  %v1653_v23 = vsel %vm1497_vm1, %v2689_v61, 0.0  ;;  %1566 = vst.msk [vmem:[%s3113_s5 + $0x220] sm:$0xff] %vm1497_vm1, %v3219_v57 }
  0xef   : > { %v1646_v1 = vadd.f32 %v1645_v62, %v1644_v60  ;;  %v2035_v2 = vadd.f32 %v2034_v0, %v2033_v59  ;;  %v1034_v3 = vpop.f32.mrf.mxu0  ;;  %v3228_v0 = vpop.f32.mrf.mxu1 }
  0xf0   : > { %1510 = vst.msk [vmem:[%s3113_s5 + $0x60] sm:$0xff] %vm1497_vm1, %v1034_v3  ;;  %v1901_v6 = vmul.f32 %v1034_v3, %v1034_v3  ;;  %v1649_v11 = vsel %vm1497_vm1, %v1034_v3, 0.0  ;;  %v2044_v30 = vsel %vm1497_vm1, %v1903_v15, 0.0  ;;  %1569 = vst.msk [vmem:[%s3113_s5 + $0x238] sm:$0xff] %vm1497_vm1, %v3228_v0 }
  0xf1   : > { %v2037_v7 = vadd.f32 %v2036_v4, %v2035_v2  ;;  %v1648_v8 = vadd.f32 %v1647_v5, %v1646_v1  ;;  %v2690_v9 = vpop.f32.mrf.mxu0 }
  0xf2   : > { %1513 = vst.msk [vmem:[%s3113_s5 + $0x78] sm:$0xff] %vm1497_vm1, %v2690_v9  ;;  %v2040_v16 = vsel %vm1497_vm1, %v1901_v6, 0.0  ;;  %v1904_v24 = vmul.f32 %v2690_v9, %v2690_v9  ;;  %v1655_v31 = vsel %vm1497_vm1, %v2690_v9, 0.0  ;;  %v3237_v6 = vpop.f32.mrf.mxu1 }
  0xf3   : > { %v1650_v12 = vadd.f32 %v1649_v11, %v1648_v8  ;;  %v2039_v13 = vadd.f32 %v2038_v10, %v2037_v7  ;;  %v1037_v14 = vpop.f32.mrf.mxu0  ;;  %1567 = vst.msk [vmem:[%s3113_s5 + $0x228] sm:$0xff] %vm1497_vm1, %v3237_v6 }
  0xf4   : > { %1511 = vst.msk [vmem:[%s3113_s5 + $0x68] sm:$0xff] %vm1497_vm1, %v1037_v14  ;;  %v1651_v17 = vsel %vm1497_vm1, %v1037_v14, 0.0  ;;  %v1902_v18 = vmul.f32 %v1037_v14, %v1037_v14  ;;  %v2046_v37 = vsel %vm1497_vm1, %v1904_v24, 0.0  ;;  %v3246_v14 = vpop.f32.mrf.mxu1 }
  0xf5   : > { %v2041_v19 = vadd.f32 %v2040_v16, %v2039_v13  ;;  %v1652_v20 = vadd.f32 %v1651_v17, %v1650_v12  ;;  %v2693_v21 = vpop.f32.mrf.mxu0  ;;  %1572 = vst.msk [vmem:[%s3113_s5 + $0x250] sm:$0xff] %vm1497_vm1, %v3246_v14 }
  0xf6   : > { %v2042_v25 = vsel %vm1497_vm1, %v1902_v18, 0.0  ;;  %1516 = vst.msk [vmem:[%s3113_s5 + $0x90] sm:$0xff] %vm1497_vm1, %v2693_v21  ;;  %v1907_v43 = vmul.f32 %v2693_v21, %v2693_v21  ;;  %v1661_v51 = vsel %vm1497_vm1, %v2693_v21, 0.0  ;;  %v3255_v21 = vpop.f32.mrf.mxu1 }
  0xf7   : > { %v1654_v26 = vadd.f32 %v1653_v23, %v1652_v20  ;;  %v2043_v27 = vadd.f32 %v2042_v25, %v2041_v19  ;;  %v1050_v28 = vpop.f32.mrf.mxu0  ;;  %1570 = vst.msk [vmem:[%s3113_s5 + $0x240] sm:$0xff] %vm1497_vm1, %v3255_v21 }
  0xf8   : > { %1514 = vst.msk [vmem:[%s3113_s5 + $0x80] sm:$0xff] %vm1497_vm1, %v1050_v28  ;;  %v1905_v32 = vmul.f32 %v1050_v28, %v1050_v28  ;;  %v1657_v38 = vsel %vm1497_vm1, %v1050_v28, 0.0  ;;  %v2052_v58 = vsel %vm1497_vm1, %v1907_v43, 0.0 }
  0xf9   : > { %v2045_v33 = vadd.f32 %v2044_v30, %v2043_v27  ;;  %v1656_v34 = vadd.f32 %v1655_v31, %v1654_v26  ;;  %v2694_v35 = vpop.f32.mrf.mxu0  ;;  %v3264_v30 = vpop.f32.mrf.mxu1 }
  0xfa   : > { %1517 = vst.msk [vmem:[%s3113_s5 + $0x98] sm:$0xff] %vm1497_vm1, %v2694_v35  ;;  %v2048_v44 = vsel %vm1497_vm1, %v1905_v32, 0.0  ;;  %v1908_v52 = vmul.f32 %v2694_v35, %v2694_v35  ;;  %v1663_v59 = vsel %vm1497_vm1, %v2694_v35, 0.0  ;;  %1573 = vst.msk [vmem:[%s3113_s5 + $0x258] sm:$0xff] %vm1497_vm1, %v3264_v30 }
  0xfb   : > { %v1658_v39 = vadd.f32 %v1657_v38, %v1656_v34  ;;  %v2047_v40 = vadd.f32 %v2046_v37, %v2045_v33  ;;  %v1053_v41 = vpop.f32.mrf.mxu0  ;;  %v3273_v37 = vpop.f32.mrf.mxu1 }
  0xfc   : > { %1515 = vst.msk [vmem:[%s3113_s5 + $0x88] sm:$0xff] %vm1497_vm1, %v1053_v41  ;;  %v1659_v45 = vsel %vm1497_vm1, %v1053_v41, 0.0  ;;  %v1906_v46 = vmul.f32 %v1053_v41, %v1053_v41  ;;  %v2054_v1 = vsel %vm1497_vm1, %v1908_v52, 0.0  ;;  %1571 = vst.msk [vmem:[%s3113_s5 + $0x248] sm:$0xff] %vm1497_vm1, %v3273_v37 }
  0xfd   : > { %v2049_v47 = vadd.f32 %v2048_v44, %v2047_v40  ;;  %v1660_v48 = vadd.f32 %v1659_v45, %v1658_v39  ;;  %v2697_v49 = vpop.f32.mrf.mxu0 }
  0xfe   : > { %v2050_v53 = vsel %vm1497_vm1, %v1906_v46, 0.0  ;;  %1520 = vst.msk [vmem:[%s3113_s5 + $0xb0] sm:$0xff] %vm1497_vm1, %v2697_v49  ;;  %v1911_v7 = vmul.f32 %v2697_v49, %v2697_v49  ;;  %v1669_v15 = vsel %vm1497_vm1, %v2697_v49, 0.0  ;;  %v3282_v46 = vpop.f32.mrf.mxu1 }
  0xff   : > { %v1662_v54 = vadd.f32 %v1661_v51, %v1660_v48  ;;  %v2051_v55 = vadd.f32 %v2050_v53, %v2049_v47  ;;  %v1066_v56 = vpop.f32.mrf.mxu0  ;;  %1576 = vst.msk [vmem:[%s3113_s5 + $0x270] sm:$0xff] %vm1497_vm1, %v3282_v46 }
 0x100   : > { %1518 = vst.msk [vmem:[%s3113_s5 + $0xa0] sm:$0xff] %vm1497_vm1, %v1066_v56  ;;  %v1909_v60 = vmul.f32 %v1066_v56, %v1066_v56  ;;  %v1665_v2 = vsel %vm1497_vm1, %v1066_v56, 0.0  ;;  %v2060_v23 = vsel %vm1497_vm1, %v1911_v7, 0.0 }
 0x101   : > { %v2053_v61 = vadd.f32 %v2052_v58, %v2051_v55  ;;  %v1664_v62 = vadd.f32 %v1663_v59, %v1662_v54  ;;  %v2698_v63 = vpop.f32.mrf.mxu0  ;;  %v3291_v54 = vpop.f32.mrf.mxu1 }
 0x102   : > { %1521 = vst.msk [vmem:[%s3113_s5 + $0xb8] sm:$0xff] %vm1497_vm1, %v2698_v63  ;;  %v2056_v8 = vsel %vm1497_vm1, %v1909_v60, 0.0  ;;  %v1912_v16 = vmul.f32 %v2698_v63, %v2698_v63  ;;  %v1671_v24 = vsel %vm1497_vm1, %v2698_v63, 0.0  ;;  %1574 = vst.msk [vmem:[%s3113_s5 + $0x260] sm:$0xff] %vm1497_vm1, %v3291_v54 }
 0x103   : > { %v1666_v3 = vadd.f32 %v1665_v2, %v1664_v62  ;;  %v2055_v4 = vadd.f32 %v2054_v1, %v2053_v61  ;;  %v1069_v5 = vpop.f32.mrf.mxu0  ;;  %v3300_v62 = vpop.f32.mrf.mxu1 }
 0x104   : > { %1519 = vst.msk [vmem:[%s3113_s5 + $0xa8] sm:$0xff] %vm1497_vm1, %v1069_v5  ;;  %v1667_v9 = vsel %vm1497_vm1, %v1069_v5, 0.0  ;;  %v1910_v10 = vmul.f32 %v1069_v5, %v1069_v5  ;;  %v2062_v31 = vsel %vm1497_vm1, %v1912_v16, 0.0  ;;  %1577 = vst.msk [vmem:[%s3113_s5 + $0x278] sm:$0xff] %vm1497_vm1, %v3300_v62 }
 0x105   : > { %v2057_v11 = vadd.f32 %v2056_v8, %v2055_v4  ;;  %v1668_v12 = vadd.f32 %v1667_v9, %v1666_v3  ;;  %v2701_v13 = vpop.f32.mrf.mxu0  ;;  %v3309_v5 = vpop.f32.mrf.mxu1 }
 0x106   : > { %v2058_v17 = vsel %vm1497_vm1, %v1910_v10, 0.0  ;;  %1524 = vst.msk [vmem:[%s3113_s5 + $0xd0] sm:$0xff] %vm1497_vm1, %v2701_v13  ;;  %v1915_v38 = vmul.f32 %v2701_v13, %v2701_v13  ;;  %v1677_v47 = vsel %vm1497_vm1, %v2701_v13, 0.0  ;;  %1575 = vst.msk [vmem:[%s3113_s5 + $0x268] sm:$0xff] %vm1497_vm1, %v3309_v5 }
 0x107   : > { %v1670_v18 = vadd.f32 %v1669_v15, %v1668_v12  ;;  %v2059_v19 = vadd.f32 %v2058_v17, %v2057_v11  ;;  %v1082_v20 = vpop.f32.mrf.mxu0  ;;  %v3318_v15 = vpop.f32.mrf.mxu1 }
 0x108   : > { %1522 = vst.msk [vmem:[%s3113_s5 + $0xc0] sm:$0xff] %vm1497_vm1, %v1082_v20  ;;  %v1913_v25 = vmul.f32 %v1082_v20, %v1082_v20  ;;  %v1673_v32 = vsel %vm1497_vm1, %v1082_v20, 0.0  ;;  %v2068_v55 = vsel %vm1497_vm1, %v1915_v38, 0.0  ;;  %1580 = vst.msk [vmem:[%s3113_s5 + $0x290] sm:$0xff] %vm1497_vm1, %v3318_v15 }
 0x109   : > { %v2061_v26 = vadd.f32 %v2060_v23, %v2059_v19  ;;  %v1672_v27 = vadd.f32 %v1671_v24, %v1670_v18  ;;  %v2702_v28 = vpop.f32.mrf.mxu0  ;;  %v3327_v24 = vpop.f32.mrf.mxu1 }
 0x10a   : > { %1525 = vst.msk [vmem:[%s3113_s5 + $0xd8] sm:$0xff] %vm1497_vm1, %v2702_v28  ;;  %v2064_v39 = vsel %vm1497_vm1, %v1913_v25, 0.0  ;;  %v1916_v48 = vmul.f32 %v2702_v28, %v2702_v28  ;;  %v1679_v56 = vsel %vm1497_vm1, %v2702_v28, 0.0  ;;  %1578 = vst.msk [vmem:[%s3113_s5 + $0x280] sm:$0xff] %vm1497_vm1, %v3327_v24 }
 0x10b   : > { %v1674_v33 = vadd.f32 %v1673_v32, %v1672_v27  ;;  %v2063_v34 = vadd.f32 %v2062_v31, %v2061_v26  ;;  %v1085_v35 = vpop.f32.mrf.mxu0 }
 0x10c   : > { %1523 = vst.msk [vmem:[%s3113_s5 + $0xc8] sm:$0xff] %vm1497_vm1, %v1085_v35  ;;  %v1675_v40 = vsel %vm1497_vm1, %v1085_v35, 0.0  ;;  %v1914_v41 = vmul.f32 %v1085_v35, %v1085_v35  ;;  %v2070_v63 = vsel %vm1497_vm1, %v1916_v48, 0.0 }
 0x10d   : > { %v2065_v43 = vadd.f32 %v2064_v39, %v2063_v34  ;;  %v1676_v44 = vadd.f32 %v1675_v40, %v1674_v33  ;;  %v2705_v45 = vpop.f32.mrf.mxu0  ;;  %v3336_v33 = vpop.f32.mrf.mxu1 }
 0x10e   : > { %v2066_v49 = vsel %vm1497_vm1, %v1914_v41, 0.0  ;;  %1528 = vst.msk [vmem:[%s3113_s5 + $0xf0] sm:$0xff] %vm1497_vm1, %v2705_v45  ;;  %v1919_v7 = vmul.f32 %v2705_v45, %v2705_v45  ;;  %v1685_v16 = vsel %vm1497_vm1, %v2705_v45, 0.0  ;;  %1581 = vst.msk [vmem:[%s3113_s5 + $0x298] sm:$0xff] %vm1497_vm1, %v3336_v33 }
 0x10f   : > { %v1678_v51 = vadd.f32 %v1677_v47, %v1676_v44  ;;  %v2067_v52 = vadd.f32 %v2066_v49, %v2065_v43  ;;  %v1098_v53 = vpop.f32.mrf.mxu0  ;;  %v3345_v41 = vpop.f32.mrf.mxu1 }
 0x110   : > { %1526 = vst.msk [vmem:[%s3113_s5 + $0xe0] sm:$0xff] %vm1497_vm1, %v1098_v53  ;;  %v1917_v58 = vmul.f32 %v1098_v53, %v1098_v53  ;;  %v1681_v1 = vsel %vm1497_vm1, %v1098_v53, 0.0  ;;  %v2076_v25 = vsel %vm1497_vm1, %v1919_v7, 0.0  ;;  %1579 = vst.msk [vmem:[%s3113_s5 + $0x288] sm:$0xff] %vm1497_vm1, %v3345_v41 }
 0x111   : > { %v2069_v59 = vadd.f32 %v2068_v55, %v2067_v52  ;;  %v1680_v60 = vadd.f32 %v1679_v56, %v1678_v51  ;;  %v2706_v61 = vpop.f32.mrf.mxu0  ;;  %v3354_v52 = vpop.f32.mrf.mxu1 }
 0x112   : > { %1529 = vst.msk [vmem:[%s3113_s5 + $0xf8] sm:$0xff] %vm1497_vm1, %v2706_v61  ;;  %v2072_v8 = vsel %vm1497_vm1, %v1917_v58, 0.0  ;;  %v1920_v17 = vmul.f32 %v2706_v61, %v2706_v61  ;;  %v1687_v26 = vsel %vm1497_vm1, %v2706_v61, 0.0  ;;  %1584 = vst.msk [vmem:[%s3113_s5 + $0x2b0] sm:$0xff] %vm1497_vm1, %v3354_v52 }
 0x113   : > { %v1682_v2 = vadd.f32 %v1681_v1, %v1680_v60  ;;  %v2071_v3 = vadd.f32 %v2070_v63, %v2069_v59  ;;  %v1101_v4 = vpop.f32.mrf.mxu0  ;;  %v3363_v61 = vpop.f32.mrf.mxu1 }
 0x114   : > { %1527 = vst.msk [vmem:[%s3113_s5 + $0xe8] sm:$0xff] %vm1497_vm1, %v1101_v4  ;;  %v1683_v9 = vsel %vm1497_vm1, %v1101_v4, 0.0  ;;  %v1918_v10 = vmul.f32 %v1101_v4, %v1101_v4  ;;  %v2078_v34 = vsel %vm1497_vm1, %v1920_v17, 0.0  ;;  %1582 = vst.msk [vmem:[%s3113_s5 + $0x2a0] sm:$0xff] %vm1497_vm1, %v3363_v61 }
 0x115   : > { %v2073_v11 = vadd.f32 %v2072_v8, %v2071_v3  ;;  %v1684_v12 = vadd.f32 %v1683_v9, %v1682_v2  ;;  %v2709_v13 = vpop.f32.mrf.mxu0  ;;  %v3372_v8 = vpop.f32.mrf.mxu1 }
 0x116   : > { %v2074_v18 = vsel %vm1497_vm1, %v1918_v10, 0.0  ;;  %1532 = vst.msk [vmem:[%s3113_s5 + $0x110] sm:$0xff] %vm1497_vm1, %v2709_v13  ;;  %v1923_v43 = vmul.f32 %v2709_v13, %v2709_v13  ;;  %v1693_v53 = vsel %vm1497_vm1, %v2709_v13, 0.0  ;;  %1585 = vst.msk [vmem:[%s3113_s5 + $0x2b8] sm:$0xff] %vm1497_vm1, %v3372_v8 }
 0x117   : > { %v1686_v19 = vadd.f32 %v1685_v16, %v1684_v12  ;;  %v2075_v20 = vadd.f32 %v2074_v18, %v2073_v11  ;;  %v1114_v23 = vpop.f32.mrf.mxu0  ;;  %v3381_v16 = vpop.f32.mrf.mxu1 }
 0x118   : > { %1530 = vst.msk [vmem:[%s3113_s5 + $0x100] sm:$0xff] %vm1497_vm1, %v1114_v23  ;;  %v1921_v27 = vmul.f32 %v1114_v23, %v1114_v23  ;;  %v1689_v35 = vsel %vm1497_vm1, %v1114_v23, 0.0  ;;  %v2084_v63 = vsel %vm1497_vm1, %v1923_v43, 0.0  ;;  %1583 = vst.msk [vmem:[%s3113_s5 + $0x2a8] sm:$0xff] %vm1497_vm1, %v3381_v16 }
 0x119   : > { %v2077_v28 = vadd.f32 %v2076_v25, %v2075_v20  ;;  %v1688_v31 = vadd.f32 %v1687_v26, %v1686_v19  ;;  %v2710_v32 = vpop.f32.mrf.mxu0 }
 0x11a   : > { %1533 = vst.msk [vmem:[%s3113_s5 + $0x118] sm:$0xff] %vm1497_vm1, %v2710_v32  ;;  %v2080_v44 = vsel %vm1497_vm1, %v1921_v27, 0.0  ;;  %v1924_v55 = vmul.f32 %v2710_v32, %v2710_v32  ;;  %v1695_v1 = vsel %vm1497_vm1, %v2710_v32, 0.0  ;;  %v3390_v27 = vpop.f32.mrf.mxu1 }
 0x11b   : > { %v1690_v38 = vadd.f32 %v1689_v35, %v1688_v31  ;;  %v2079_v39 = vadd.f32 %v2078_v34, %v2077_v28  ;;  %v1117_v40 = vpop.f32.mrf.mxu0  ;;  %1588 = vst.msk [vmem:[%s3113_s5 + $0x2d0] sm:$0xff] %vm1497_vm1, %v3390_v27 }
 0x11c   : > { %1531 = vst.msk [vmem:[%s3113_s5 + $0x108] sm:$0xff] %vm1497_vm1, %v1117_v40  ;;  %v1691_v45 = vsel %vm1497_vm1, %v1117_v40, 0.0  ;;  %v1922_v47 = vmul.f32 %v1117_v40, %v1117_v40  ;;  %v2086_v9 = vsel %vm1497_vm1, %v1924_v55, 0.0 }
 0x11d   : > { %v2081_v48 = vadd.f32 %v2080_v44, %v2079_v39  ;;  %v1692_v49 = vadd.f32 %v1691_v45, %v1690_v38  ;;  %v2713_v51 = vpop.f32.mrf.mxu0  ;;  %v3399_v39 = vpop.f32.mrf.mxu1 }
 0x11e   : > { %v2082_v56 = vsel %vm1497_vm1, %v1922_v47, 0.0  ;;  %1536 = vst.msk [vmem:[%s3113_s5 + $0x130] sm:$0xff] %vm1497_vm1, %v2713_v51  ;;  %v1927_v17 = vmul.f32 %v2713_v51, %v2713_v51  ;;  %v1701_v28 = vsel %vm1497_vm1, %v2713_v51, 0.0  ;;  %1586 = vst.msk [vmem:[%s3113_s5 + $0x2c0] sm:$0xff] %vm1497_vm1, %v3399_v39 }
 0x11f   : > { %v1694_v58 = vadd.f32 %v1693_v53, %v1692_v49  ;;  %v2083_v59 = vadd.f32 %v2082_v56, %v2081_v48  ;;  %v1130_v60 = vpop.f32.mrf.mxu0  ;;  %v3408_v49 = vpop.f32.mrf.mxu1 }
 0x120   : > { %1534 = vst.msk [vmem:[%s3113_s5 + $0x120] sm:$0xff] %vm1497_vm1, %v1130_v60  ;;  %v1925_v2 = vmul.f32 %v1130_v60, %v1130_v60  ;;  %v1697_v10 = vsel %vm1497_vm1, %v1130_v60, 0.0  ;;  %v2092_v40 = vsel %vm1497_vm1, %v1927_v17, 0.0  ;;  %1589 = vst.msk [vmem:[%s3113_s5 + $0x2d8] sm:$0xff] %vm1497_vm1, %v3408_v49 }
 0x121   : > { %v2085_v3 = vadd.f32 %v2084_v63, %v2083_v59  ;;  %v1696_v4 = vadd.f32 %v1695_v1, %v1694_v58  ;;  %v2714_v7 = vpop.f32.mrf.mxu0  ;;  %v3417_v59 = vpop.f32.mrf.mxu1 }
 0x122   : > { %1537 = vst.msk [vmem:[%s3113_s5 + $0x138] sm:$0xff] %vm1497_vm1, %v2714_v7  ;;  %v2088_v18 = vsel %vm1497_vm1, %v1925_v2, 0.0  ;;  %v1928_v31 = vmul.f32 %v2714_v7, %v2714_v7  ;;  %v1703_v43 = vsel %vm1497_vm1, %v2714_v7, 0.0  ;;  %1587 = vst.msk [vmem:[%s3113_s5 + $0x2c8] sm:$0xff] %vm1497_vm1, %v3417_v59 }
 0x123   : > { %v1698_v11 = vadd.f32 %v1697_v10, %v1696_v4  ;;  %v2087_v12 = vadd.f32 %v2086_v9, %v2085_v3  ;;  %v1133_v13 = vpop.f32.mrf.mxu0  ;;  %v3426_v9 = vpop.f32.mrf.mxu1 }
 0x124   : > { %1535 = vst.msk [vmem:[%s3113_s5 + $0x128] sm:$0xff] %vm1497_vm1, %v1133_v13  ;;  %v1699_v19 = vsel %vm1497_vm1, %v1133_v13, 0.0  ;;  %v1926_v20 = vmul.f32 %v1133_v13, %v1133_v13  ;;  %v2094_v51 = vsel %vm1497_vm1, %v1928_v31, 0.0  ;;  %1592 = vst.msk [vmem:[%s3113_s5 + $0x2f0] sm:$0xff] %vm1497_vm1, %v3426_v9 }
 0x125   : > { %v2089_v23 = vadd.f32 %v2088_v18, %v2087_v12  ;;  %v1700_v25 = vadd.f32 %v1699_v19, %v1698_v11  ;;  %v2717_v26 = vpop.f32.mrf.mxu0  ;;  %v3435_v19 = vpop.f32.mrf.mxu1 }
 0x126   : > { %v2090_v32 = vsel %vm1497_vm1, %v1926_v20, 0.0  ;;  %1540 = vst.msk [vmem:[%s3113_s5 + $0x150] sm:$0xff] %vm1497_vm1, %v2717_v26  ;;  %v1931_v60 = vmul.f32 %v2717_v26, %v2717_v26  ;;  %v1709_v10 = vsel %vm1497_vm1, %v2717_v26, 0.0  ;;  %1590 = vst.msk [vmem:[%s3113_s5 + $0x2e0] sm:$0xff] %vm1497_vm1, %v3435_v19 }
 0x127   : > { %v1702_v34 = vadd.f32 %v1701_v28, %v1700_v25  ;;  %v2091_v35 = vadd.f32 %v2090_v32, %v2089_v23  ;;  %v1146_v38 = vpop.f32.mrf.mxu0  ;;  %v3444_v32 = vpop.f32.mrf.mxu1 }
 0x128   : > { %1538 = vst.msk [vmem:[%s3113_s5 + $0x140] sm:$0xff] %vm1497_vm1, %v1146_v38  ;;  %v1929_v44 = vmul.f32 %v1146_v38, %v1146_v38  ;;  %v1705_v53 = vsel %vm1497_vm1, %v1146_v38, 0.0  ;;  %v2100_v20 = vsel %vm1497_vm1, %v1931_v60, 0.0  ;;  %1593 = vst.msk [vmem:[%s3113_s5 + $0x2f8] sm:$0xff] %vm1497_vm1, %v3444_v32 }
 0x129   : > { %v2093_v45 = vadd.f32 %v2092_v40, %v2091_v35  ;;  %v1704_v47 = vadd.f32 %v1703_v43, %v1702_v34  ;;  %v2718_v48 = vpop.f32.mrf.mxu0 }
 0x12a   : > { %1541 = vst.msk [vmem:[%s3113_s5 + $0x158] sm:$0xff] %vm1497_vm1, %v2718_v48  ;;  %v2096_v63 = vsel %vm1497_vm1, %v1929_v44, 0.0  ;;  %v1932_v11 = vmul.f32 %v2718_v48, %v2718_v48  ;;  %v1711_v23 = vsel %vm1497_vm1, %v2718_v48, 0.0  ;;  %v3453_v44 = vpop.f32.mrf.mxu1 }
 0x12b   : > { %v1706_v55 = vadd.f32 %v1705_v53, %v1704_v47  ;;  %v2095_v56 = vadd.f32 %v2094_v51, %v2093_v45  ;;  %v1149_v58 = vpop.f32.mrf.mxu0  ;;  %1591 = vst.msk [vmem:[%s3113_s5 + $0x2e8] sm:$0xff] %vm1497_vm1, %v3453_v44 }
 0x12c   : > { %1539 = vst.msk [vmem:[%s3113_s5 + $0x148] sm:$0xff] %vm1497_vm1, %v1149_v58  ;;  %v1707_v1 = vsel %vm1497_vm1, %v1149_v58, 0.0  ;;  %v1930_v2 = vmul.f32 %v1149_v58, %v1149_v58  ;;  %v2102_v34 = vsel %vm1497_vm1, %v1932_v11, 0.0  ;;  %v3462_v58 = vpop.f32.mrf.mxu1 }
 0x12d   : > { %v2097_v3 = vadd.f32 %v2096_v63, %v2095_v56  ;;  %v1708_v4 = vadd.f32 %v1707_v1, %v1706_v55  ;;  %v2721_v7 = vpop.f32.mrf.mxu0  ;;  %1596 = vst.msk [vmem:[%s3113_s5 + $0x310] sm:$0xff] %vm1497_vm1, %v3462_v58 }
 0x12e   : > { %v2098_v12 = vsel %vm1497_vm1, %v1930_v2, 0.0  ;;  %1544 = vst.msk [vmem:[%s3113_s5 + $0x170] sm:$0xff] %vm1497_vm1, %v2721_v7  ;;  %v1935_v45 = vmul.f32 %v2721_v7, %v2721_v7  ;;  %v1717_v60 = vsel %vm1497_vm1, %v2721_v7, 0.0 }
 0x12f   : > { %v1710_v13 = vadd.f32 %v1709_v10, %v1708_v4  ;;  %v2099_v17 = vadd.f32 %v2098_v12, %v2097_v3  ;;  %v1162_v18 = vpop.f32.mrf.mxu0  ;;  %v3471_v10 = vpop.f32.mrf.mxu1 }
 0x130   : > { %1542 = vst.msk [vmem:[%s3113_s5 + $0x160] sm:$0xff] %vm1497_vm1, %v1162_v18  ;;  %v1933_v25 = vmul.f32 %v1162_v18, %v1162_v18  ;;  %v1713_v35 = vsel %vm1497_vm1, %v1162_v18, 0.0  ;;  %v2108_v11 = vsel %vm1497_vm1, %v1935_v45, 0.0  ;;  %1594 = vst.msk [vmem:[%s3113_s5 + $0x300] sm:$0xff] %vm1497_vm1, %v3471_v10 }
 0x131   : > { %v2101_v26 = vadd.f32 %v2100_v20, %v2099_v17  ;;  %v1712_v28 = vadd.f32 %v1711_v23, %v1710_v13  ;;  %v2722_v31 = vpop.f32.mrf.mxu0  ;;  %v3480_v20 = vpop.f32.mrf.mxu1 }
 0x132   : > { %1545 = vst.msk [vmem:[%s3113_s5 + $0x178] sm:$0xff] %vm1497_vm1, %v2722_v31  ;;  %v2104_v47 = vsel %vm1497_vm1, %v1933_v25, 0.0  ;;  %v1936_v63 = vmul.f32 %v2722_v31, %v2722_v31  ;;  %v1719_v12 = vsel %vm1497_vm1, %v2722_v31, 0.0  ;;  %1597 = vst.msk [vmem:[%s3113_s5 + $0x318] sm:$0xff] %vm1497_vm1, %v3480_v20 }
 0x133   : > { %v1714_v38 = vadd.f32 %v1713_v35, %v1712_v28  ;;  %v2103_v40 = vadd.f32 %v2102_v34, %v2101_v26  ;;  %v1165_v43 = vpop.f32.mrf.mxu0  ;;  %v3489_v34 = vpop.f32.mrf.mxu1 }
 0x134   : > { %1543 = vst.msk [vmem:[%s3113_s5 + $0x168] sm:$0xff] %vm1497_vm1, %v1165_v43  ;;  %v1715_v48 = vsel %vm1497_vm1, %v1165_v43, 0.0  ;;  %v1934_v51 = vmul.f32 %v1165_v43, %v1165_v43  ;;  %v2110_v23 = vsel %vm1497_vm1, %v1936_v63, 0.0  ;;  %1595 = vst.msk [vmem:[%s3113_s5 + $0x308] sm:$0xff] %vm1497_vm1, %v3489_v34 }
 0x135   : > { %v2105_v53 = vadd.f32 %v2104_v47, %v2103_v40  ;;  %v1716_v55 = vadd.f32 %v1715_v48, %v1714_v38  ;;  %v2725_v56 = vpop.f32.mrf.mxu0 }
 0x136   : > { %v2106_v1 = vsel %vm1497_vm1, %v1934_v51, 0.0  ;;  %1548 = vst.msk [vmem:[%s3113_s5 + $0x190] sm:$0xff] %vm1497_vm1, %v2725_v56  ;;  %v1939_v35 = vmul.f32 %v2725_v56, %v2725_v56  ;;  %v3498_v51 = vpop.f32.mrf.mxu1 }
 0x137   : > { %v1718_v2 = vadd.f32 %v1717_v60, %v1716_v55  ;;  %v2107_v3 = vadd.f32 %v2106_v1, %v2105_v53  ;;  %v1178_v4 = vpop.f32.mrf.mxu0  ;;  %v1725_v53 = vsel %vm1497_vm1, %v2725_v56, 0.0  ;;  %1600 = vst.msk [vmem:[%s3113_s5 + $0x330] sm:$0xff] %vm1497_vm1, %v3498_v51 }
 0x138   : > { %1546 = vst.msk [vmem:[%s3113_s5 + $0x180] sm:$0xff] %vm1497_vm1, %v1178_v4  ;;  %v1937_v7 = vmul.f32 %v1178_v4, %v1178_v4  ;;  %v1721_v25 = vsel %vm1497_vm1, %v1178_v4, 0.0  ;;  %v2116_v4 = vsel %vm1497_vm1, %v1939_v35, 0.0 }
 0x139   : > { %v2109_v13 = vadd.f32 %v2108_v11, %v2107_v3  ;;  %v1720_v17 = vadd.f32 %v1719_v12, %v1718_v2  ;;  %v2726_v18 = vpop.f32.mrf.mxu0  ;;  %v3507_v3 = vpop.f32.mrf.mxu1 }
 0x13a   : > { %1549 = vst.msk [vmem:[%s3113_s5 + $0x198] sm:$0xff] %vm1497_vm1, %v2726_v18  ;;  %v2112_v38 = vsel %vm1497_vm1, %v1937_v7, 0.0  ;;  %v1940_v55 = vmul.f32 %v2726_v18, %v2726_v18  ;;  %v1727_v11 = vsel %vm1497_vm1, %v2726_v18, 0.0  ;;  %1598 = vst.msk [vmem:[%s3113_s5 + $0x320] sm:$0xff] %vm1497_vm1, %v3507_v3 }
 0x13b   : > { %v1722_v26 = vadd.f32 %v1721_v25, %v1720_v17  ;;  %v2111_v28 = vadd.f32 %v2110_v23, %v2109_v13  ;;  %v1181_v31 = vpop.f32.mrf.mxu0  ;;  %v3516_v17 = vpop.f32.mrf.mxu1 }
 0x13c   : > { %1547 = vst.msk [vmem:[%s3113_s5 + $0x188] sm:$0xff] %vm1497_vm1, %v1181_v31  ;;  %v1723_v40 = vsel %vm1497_vm1, %v1181_v31, 0.0  ;;  %v1938_v43 = vmul.f32 %v1181_v31, %v1181_v31  ;;  %v2118_v23 = vsel %vm1497_vm1, %v1940_v55, 0.0  ;;  %1601 = vst.msk [vmem:[%s3113_s5 + $0x338] sm:$0xff] %vm1497_vm1, %v3516_v17 }
 0x13d   : > { %v2113_v45 = vadd.f32 %v2112_v38, %v2111_v28  ;;  %v1724_v47 = vadd.f32 %v1723_v40, %v1722_v26  ;;  %v2729_v48 = vpop.f32.mrf.mxu0  ;;  %v3525_v31 = vpop.f32.mrf.mxu1 }
 0x13e   : > { %v2114_v60 = vsel %vm1497_vm1, %v1938_v43, 0.0  ;;  %1552 = vst.msk [vmem:[%s3113_s5 + $0x1b0] sm:$0xff] %vm1497_vm1, %v2729_v48  ;;  %v1943_v35 = vmul.f32 %v2729_v48, %v2729_v48  ;;  %1599 = vst.msk [vmem:[%s3113_s5 + $0x328] sm:$0xff] %vm1497_vm1, %v3525_v31 }
 0x13f   : > { %v1726_v63 = vadd.f32 %v1725_v53, %v1724_v47  ;;  %v2115_v1 = vadd.f32 %v2114_v60, %v2113_v45  ;;  %v1194_v2 = vpop.f32.mrf.mxu0  ;;  %v3534_v55 = vpop.f32.mrf.mxu1  ;;  %v1733_v60 = vsel %vm1497_vm1, %v2729_v48, 0.0 }
 0x140   : > { %1550 = vst.msk [vmem:[%s3113_s5 + $0x1a0] sm:$0xff] %vm1497_vm1, %v1194_v2  ;;  %v1941_v56 = vmul.f32 %v1194_v2, %v1194_v2  ;;  %v1729_v25 = vsel %vm1497_vm1, %v1194_v2, 0.0  ;;  %1604 = vst.msk [vmem:[%s3113_s5 + $0x350] sm:$0xff] %vm1497_vm1, %v3534_v55 }
 0x141   : > { %v2117_v12 = vadd.f32 %v2116_v4, %v2115_v1  ;;  %v1728_v7 = vadd.f32 %v1727_v11, %v1726_v63  ;;  %v2730_v13 = vpop.f32.mrf.mxu0 }
 0x142   : > { %1553 = vst.msk [vmem:[%s3113_s5 + $0x1b8] sm:$0xff] %vm1497_vm1, %v2730_v13  ;;  %v2120_v38 = vsel %vm1497_vm1, %v1941_v56, 0.0  ;;  %v1944_v63 = vmul.f32 %v2730_v13, %v2730_v13  ;;  %v3543_v56 = vpop.f32.mrf.mxu1 }
 0x143   : > { %v1730_v18 = vadd.f32 %v1729_v25, %v1728_v7  ;;  %v2119_v26 = vadd.f32 %v2118_v23, %v2117_v12  ;;  %v1197_v28 = vpop.f32.mrf.mxu0  ;;  %v2124_v12 = vsel %vm1497_vm1, %v1943_v35, 0.0  ;;  %v1735_v7 = vsel %vm1497_vm1, %v2730_v13, 0.0  ;;  %1602 = vst.msk [vmem:[%s3113_s5 + $0x340] sm:$0xff] %vm1497_vm1, %v3543_v56 }
 0x144   : > { %1551 = vst.msk [vmem:[%s3113_s5 + $0x1a8] sm:$0xff] %vm1497_vm1, %v1197_v28  ;;  %v1731_v40 = vsel %vm1497_vm1, %v1197_v28, 0.0  ;;  %v1942_v43 = vmul.f32 %v1197_v28, %v1197_v28  ;;  %v2126_v28 = vsel %vm1497_vm1, %v1944_v63, 0.0 }
 0x145   : > { %v2121_v45 = vadd.f32 %v2120_v38, %v2119_v26  ;;  %v1732_v47 = vadd.f32 %v1731_v40, %v1730_v18  ;;  %v2733_v53 = vpop.f32.mrf.mxu0  ;;  %v3552_v26 = vpop.f32.mrf.mxu1 }
 0x146   : > { %v2122_v1 = vsel %vm1497_vm1, %v1942_v43, 0.0  ;;  %1556 = vst.msk [vmem:[%s3113_s5 + $0x1d0] sm:$0xff] %vm1497_vm1, %v2733_v53  ;;  %1605 = vst.msk [vmem:[%s3113_s5 + $0x358] sm:$0xff] %vm1497_vm1, %v3552_v26 }
 0x147   : > { %v1734_v2 = vadd.f32 %v1733_v60, %v1732_v47  ;;  %v2123_v4 = vadd.f32 %v2122_v1, %v2121_v45  ;;  %v1210_v11 = vpop.f32.mrf.mxu0  ;;  %v3561_v43 = vpop.f32.mrf.mxu1  ;;  %v1947_v45 = vmul.f32 %v2733_v53, %v2733_v53 }
 0x148   : > { %1554 = vst.msk [vmem:[%s3113_s5 + $0x1c0] sm:$0xff] %vm1497_vm1, %v1210_v11  ;;  %v1945_v48 = vmul.f32 %v1210_v11, %v1210_v11  ;;  %v1737_v38 = vsel %vm1497_vm1, %v1210_v11, 0.0  ;;  %1603 = vst.msk [vmem:[%s3113_s5 + $0x348] sm:$0xff] %vm1497_vm1, %v3561_v43 }
 0x149   : > { %v2125_v23 = vadd.f32 %v2124_v12, %v2123_v4  ;;  %v1736_v25 = vadd.f32 %v1735_v7, %v1734_v2  ;;  %v2734_v18 = vpop.f32.mrf.mxu0  ;;  %v3570_v11 = vpop.f32.mrf.mxu1  ;;  %v1741_v12 = vsel %vm1497_vm1, %v2733_v53, 0.0 }
 0x14a   : > { %1557 = vst.msk [vmem:[%s3113_s5 + $0x1d8] sm:$0xff] %vm1497_vm1, %v2734_v18  ;;  %v2128_v47 = vsel %vm1497_vm1, %v1945_v48, 0.0  ;;  %4037 = vst [vmem:[#allocation2_spill] sm:$0xff] %v3570_v11  ;;  %v1948_v7 = vmul.f32 %v2734_v18, %v2734_v18 }
 0x14b   : > { %v1738_v13 = vadd.f32 %v1737_v38, %v1736_v25  ;;  %v2127_v35 = vadd.f32 %v2126_v28, %v2125_v23  ;;  %v1213_v40 = vpop.f32.mrf.mxu0  ;;  %1608 = vst.msk [vmem:[%s3113_s5 + $0x370] sm:$0xff] %vm1497_vm1, %v3570_v11  ;;  %v3579_v38 = vpop.f32.mrf.mxu1 }
 0x14c   : > { %1555 = vst.msk [vmem:[%s3113_s5 + $0x1c8] sm:$0xff] %vm1497_vm1, %v1213_v40  ;;  %v1739_v60 = vsel %vm1497_vm1, %v1213_v40, 0.0  ;;  %v1946_v63 = vmul.f32 %v1213_v40, %v1213_v40  ;;  %1606 = vst.msk [vmem:[%s3113_s5 + $0x360] sm:$0xff] %vm1497_vm1, %v3579_v38 }
 0x14d   : > { %v2129_v1 = vadd.f32 %v2128_v47, %v2127_v35  ;;  %v1740_v2 = vadd.f32 %v1739_v60, %v1738_v13  ;;  %v2737_v4 = vpop.f32.mrf.mxu0  ;;  %v2132_v13 = vsel %vm1497_vm1, %v1947_v45, 0.0  ;;  %v1743_v35 = vsel %vm1497_vm1, %v2734_v18, 0.0 }
 0x14e   : > { %v2130_v48 = vsel %vm1497_vm1, %v1946_v63, 0.0  ;;  %1560 = vst.msk [vmem:[%s3113_s5 + $0x1f0] sm:$0xff] %vm1497_vm1, %v2737_v4  ;;  %v3588_v63 = vpop.f32.mrf.mxu1 }
 0x14f   : > { %v1742_v23 = vadd.f32 %v1741_v12, %v1740_v2  ;;  %v2131_v25 = vadd.f32 %v2130_v48, %v2129_v1  ;;  %v1226_v28 = vpop.f32.mrf.mxu0  ;;  %4038 = vst [vmem:[#allocation3_spill] sm:$0xff] %v3588_v63  ;;  %v2134_v1 = vsel %vm1497_vm1, %v1948_v7, 0.0  ;;  %1609 = vst.msk [vmem:[%s3113_s5 + $0x378] sm:$0xff] %vm1497_vm1, %v3588_v63 }
 0x150   : > { %1558 = vst.msk [vmem:[%s3113_s5 + $0x1e0] sm:$0xff] %vm1497_vm1, %v1226_v28  ;;  %v1949_v53 = vmul.f32 %v1226_v28, %v1226_v28  ;;  %v1745_v2 = vsel %vm1497_vm1, %v1226_v28, 0.0  ;;  %v3597_v48 = vpop.f32.mrf.mxu1 }
 0x151   : > { %v2133_v40 = vadd.f32 %v2132_v13, %v2131_v25  ;;  %v1744_v47 = vadd.f32 %v1743_v35, %v1742_v23  ;;  %v2738_v60 = vpop.f32.mrf.mxu0  ;;  %v1951_v23 = vmul.f32 %v2737_v4, %v2737_v4  ;;  %1607 = vst.msk [vmem:[%s3113_s5 + $0x368] sm:$0xff] %vm1497_vm1, %v3597_v48 }
 0x152   : > { %1561 = vst.msk [vmem:[%s3113_s5 + $0x1f8] sm:$0xff] %vm1497_vm1, %v2738_v60  ;;  %v2136_v25 = vsel %vm1497_vm1, %v1949_v53, 0.0 }
 0x153   : > { %v1746_v18 = vadd.f32 %v1745_v2, %v1744_v47  ;;  %v2135_v45 = vadd.f32 %v2134_v1, %v2133_v40  ;;  %v1229_v12 = vpop.f32.mrf.mxu0  ;;  %v3606_v47 = vpop.f32.mrf.mxu1  ;;  %v1749_v40 = vsel %vm1497_vm1, %v2737_v4, 0.0  ;;  %v1952_v1 = vmul.f32 %v2738_v60, %v2738_v60 }
 0x154   : > { %1559 = vst.msk [vmem:[%s3113_s5 + $0x1e8] sm:$0xff] %vm1497_vm1, %v1229_v12  ;;  %v1747_v7 = vsel %vm1497_vm1, %v1229_v12, 0.0  ;;  %v1950_v28 = vmul.f32 %v1229_v12, %v1229_v12  ;;  %1612 = vst.msk [vmem:[%s3113_s5 + $0x390] sm:$0xff] %vm1497_vm1, %v3606_v47  ;;  %v2140_v12 = vsel %vm1497_vm1, %v1951_v23, 0.0 }
 0x155   : > { %v2137_v13 = vadd.f32 %v2136_v25, %v2135_v45  ;;  %v1748_v35 = vadd.f32 %v1747_v7, %v1746_v18  ;;  %v3613_v11 = vpop.f32.mrf.mxu1  ;;  %v1751_v45 = vsel %vm1497_vm1, %v2738_v60, 0.0  ;;  %v1953_v18 = vmul.f32 %v3183_v29, %v3183_v29 }
 0x156   : > { %v2138_v2 = vsel %vm1497_vm1, %v1950_v28, 0.0  ;;  %1610 = vst.msk [vmem:[%s3113_s5 + $0x380] sm:$0xff] %vm1497_vm1, %v3613_v11  ;;  %v2142_v28 = vsel %vm1497_vm1, %v1952_v1, 0.0  ;;  %v1954_v60 = vmul.f32 %v3201_v42, %v3201_v42 }
 0x157   : > { %v1750_v53 = vadd.f32 %v1749_v40, %v1748_v35  ;;  %v2139_v63 = vadd.f32 %v2138_v2, %v2137_v13  ;;  %v3622_v7 = vpop.f32.mrf.mxu1  ;;  %v1753_v13 = vsel %vm1497_vm1, %v3183_v29, 0.0  ;;  %v2144_v2 = vsel %vm1497_vm1, %v1953_v18, 0.0 }
 0x158   : > { %1613 = vst.msk [vmem:[%s3113_s5 + $0x398] sm:$0xff] %vm1497_vm1, %v3622_v7  ;;  %v1755_v29 = vsel %vm1497_vm1, %v3201_v42, 0.0  ;;  %v2146_v18 = vsel %vm1497_vm1, %v1954_v60, 0.0 }
 0x159   : > { %v1752_v4 = vadd.f32 %v1751_v45, %v1750_v53  ;;  %v2141_v25 = vadd.f32 %v2140_v12, %v2139_v63  ;;  %v3632_v40 = vpop.f32.mrf.mxu1  ;;  %v1955_v63 = vmul.f32 %v3174_v22, %v3174_v22  ;;  %v1757_v45 = vsel %vm1497_vm1, %v3174_v22, 0.0 }
 0x15a   : > { %1611 = vst.msk [vmem:[%s3113_s5 + $0x388] sm:$0xff] %vm1497_vm1, %v3632_v40  ;;  %v1957_v22 = vmul.f32 %v3219_v57, %v3219_v57 }
 0x15b   : > { %v1754_v23 = vadd.f32 %v1753_v13, %v1752_v4  ;;  %v2143_v35 = vadd.f32 %v2142_v28, %v2141_v25  ;;  %v3642_v12 = vpop.f32.mrf.mxu1  ;;  %v1956_v4 = vmul.f32 %v3192_v36, %v3192_v36  ;;  %v2148_v13 = vsel %vm1497_vm1, %v1955_v63, 0.0 }
 0x15c   : > { %1616 = vst.msk [vmem:[%s3113_s5 + $0x3b0] sm:$0xff] %vm1497_vm1, %v3642_v12 }
 0x15d   : > { %v2145_v1 = vadd.f32 %v2144_v2, %v2143_v35  ;;  %v1756_v53 = vadd.f32 %v1755_v29, %v1754_v23  ;;  %v3652_v28 = vpop.f32.mrf.mxu1  ;;  %v1759_v23 = vsel %vm1497_vm1, %v3192_v36, 0.0  ;;  %v2150_v29 = vsel %vm1497_vm1, %v1956_v4, 0.0 }
 0x15e   : > { %1614 = vst.msk [vmem:[%s3113_s5 + $0x3a0] sm:$0xff] %vm1497_vm1, %v3652_v28  ;;  %v1958_v36 = vmul.f32 %v3237_v6, %v3237_v6 }
 0x15f   : > { %v1758_v42 = vadd.f32 %v1757_v45, %v1756_v53  ;;  %v2147_v25 = vadd.f32 %v2146_v18, %v2145_v1  ;;  %v3662_v2 = vpop.f32.mrf.mxu1  ;;  %v1761_v1 = vsel %vm1497_vm1, %v3219_v57, 0.0  ;;  %v1959_v18 = vmul.f32 %v3210_v50, %v3210_v50 }
 0x160   : > { %1617 = vst.msk [vmem:[%s3113_s5 + $0x3b8] sm:$0xff] %vm1497_vm1, %v3662_v2  ;;  %v1763_v57 = vsel %vm1497_vm1, %v3237_v6, 0.0 }
 0x161   : > { %v2149_v60 = vadd.f32 %v2148_v13, %v2147_v25  ;;  %v1760_v35 = vadd.f32 %v1759_v23, %v1758_v42  ;;  %v3672_v45 = vpop.f32.mrf.mxu1  ;;  %v2152_v42 = vsel %vm1497_vm1, %v1957_v22, 0.0  ;;  %v1765_v23 = vsel %vm1497_vm1, %v3210_v50, 0.0 }
 0x162   : > { %1615 = vst.msk [vmem:[%s3113_s5 + $0x3a8] sm:$0xff] %vm1497_vm1, %v3672_v45  ;;  %v2154_v22 = vsel %vm1497_vm1, %v1958_v36, 0.0  ;;  %v1961_v50 = vmul.f32 %v3255_v21, %v3255_v21 }
 0x163   : > { %v1762_v63 = vadd.f32 %v1761_v1, %v1760_v35  ;;  %v2151_v53 = vadd.f32 %v2150_v29, %v2149_v60  ;;  %v3682_v13 = vpop.f32.mrf.mxu1  ;;  %v1960_v60 = vmul.f32 %v3228_v0, %v3228_v0  ;;  %v2156_v1 = vsel %vm1497_vm1, %v1959_v18, 0.0 }
 0x164   : > { %1620 = vst.msk [vmem:[%s3113_s5 + $0x3d0] sm:$0xff] %vm1497_vm1, %v3682_v13 }
 0x165   : > { %v2153_v4 = vadd.f32 %v2152_v42, %v2151_v53  ;;  %v1764_v25 = vadd.f32 %v1763_v57, %v1762_v63  ;;  %v3692_v29 = vpop.f32.mrf.mxu1  ;;  %v1767_v63 = vsel %vm1497_vm1, %v3228_v0, 0.0  ;;  %v2158_v57 = vsel %vm1497_vm1, %v1960_v60, 0.0 }
 0x166   : > { %1618 = vst.msk [vmem:[%s3113_s5 + $0x3c0] sm:$0xff] %vm1497_vm1, %v3692_v29  ;;  %v1962_v0 = vmul.f32 %v3273_v37, %v3273_v37 }
 0x167   : > { %v1766_v6 = vadd.f32 %v1765_v23, %v1764_v25  ;;  %v2155_v35 = vadd.f32 %v2154_v22, %v2153_v4  ;;  %v3702_v42 = vpop.f32.mrf.mxu1  ;;  %v1769_v4 = vsel %vm1497_vm1, %v3255_v21, 0.0  ;;  %v1963_v22 = vmul.f32 %v3246_v14, %v3246_v14 }
 0x168   : > { %1621 = vst.msk [vmem:[%s3113_s5 + $0x3d8] sm:$0xff] %vm1497_vm1, %v3702_v42  ;;  %v1771_v21 = vsel %vm1497_vm1, %v3273_v37, 0.0 }
 0x169   : > { %v2157_v36 = vadd.f32 %v2156_v1, %v2155_v35  ;;  %v1768_v53 = vadd.f32 %v1767_v63, %v1766_v6  ;;  %v3712_v23 = vpop.f32.mrf.mxu1  ;;  %v2160_v6 = vsel %vm1497_vm1, %v1961_v50, 0.0  ;;  %v1773_v63 = vsel %vm1497_vm1, %v3246_v14, 0.0 }
 0x16a   : > { %1619 = vst.msk [vmem:[%s3113_s5 + $0x3c8] sm:$0xff] %vm1497_vm1, %v3712_v23  ;;  %v2162_v50 = vsel %vm1497_vm1, %v1962_v0, 0.0  ;;  %v1965_v14 = vmul.f32 %v3291_v54, %v3291_v54 }
 0x16b   : > { %v1770_v18 = vadd.f32 %v1769_v4, %v1768_v53  ;;  %v2159_v25 = vadd.f32 %v2158_v57, %v2157_v36  ;;  %v3722_v1 = vpop.f32.mrf.mxu1  ;;  %v1964_v36 = vmul.f32 %v3264_v30, %v3264_v30  ;;  %v2164_v4 = vsel %vm1497_vm1, %v1963_v22, 0.0 }
 0x16c   : > { %1624 = vst.msk [vmem:[%s3113_s5 + $0x3f0] sm:$0xff] %vm1497_vm1, %v3722_v1  ;;  %v1966_v22 = vmul.f32 %v3309_v5, %v3309_v5 }
 0x16d   : > { %v2161_v60 = vadd.f32 %v2160_v6, %v2159_v25  ;;  %v1772_v35 = vadd.f32 %v1771_v21, %v1770_v18  ;;  %v3732_v57 = vpop.f32.mrf.mxu1  ;;  %v1775_v18 = vsel %vm1497_vm1, %v3264_v30, 0.0  ;;  %v2166_v21 = vsel %vm1497_vm1, %v1964_v36, 0.0 }
 0x16e   : > { %1622 = vst.msk [vmem:[%s3113_s5 + $0x3e0] sm:$0xff] %vm1497_vm1, %v3732_v57  ;;  %v1779_v36 = vsel %vm1497_vm1, %v3309_v5, 0.0  ;;  %v1783_v5 = vsel %vm1497_vm1, %v3300_v62, 0.0 }
 0x16f   : > { %v1774_v37 = vadd.f32 %v1773_v63, %v1772_v35  ;;  %v2163_v53 = vadd.f32 %v2162_v50, %v2161_v60  ;;  %v3742_v6 = vpop.f32.mrf.mxu1  ;;  %v1777_v60 = vsel %vm1497_vm1, %v3291_v54, 0.0  ;;  %v1967_v50 = vmul.f32 %v3282_v46, %v3282_v46 }
 0x170   : > { %1625 = vst.msk [vmem:[%s3113_s5 + $0x3f8] sm:$0xff] %vm1497_vm1, %v3742_v6 }
 0x171   : > { %v2165_v0 = vadd.f32 %v2164_v4, %v2163_v53  ;;  %v1776_v25 = vadd.f32 %v1775_v18, %v1774_v37  ;;  %v3752_v63 = vpop.f32.mrf.mxu1  ;;  %v2168_v37 = vsel %vm1497_vm1, %v1965_v14, 0.0  ;;  %v1781_v4 = vsel %vm1497_vm1, %v3282_v46, 0.0 }
 0x172   : > { %1623 = vst.msk [vmem:[%s3113_s5 + $0x3e8] sm:$0xff] %vm1497_vm1, %v3752_v63  ;;  %v1968_v18 = vmul.f32 %v3300_v62, %v3300_v62  ;;  %v2172_v14 = vsel %vm1497_vm1, %v1967_v50, 0.0  ;;  %v1785_v46 = vsel %vm1497_vm1, %v3327_v24, 0.0  ;;  %v1971_v50 = vmul.f32 %v3318_v15, %v3318_v15 }
 0x173   : > { %v1778_v30 = vadd.f32 %v1777_v60, %v1776_v25  ;;  %v2167_v35 = vadd.f32 %v2166_v21, %v2165_v0  ;;  %v2170_v0 = vsel %vm1497_vm1, %v1966_v22, 0.0  ;;  %v1969_v60 = vmul.f32 %v3327_v24, %v3327_v24 }
 0x174   : > { %v1970_v22 = vmul.f32 %v3345_v41, %v3345_v41  ;;  %v1972_v24 = vmul.f32 %v3336_v33, %v3336_v33 }
 0x175   : > { %v2169_v54 = vadd.f32 %v2168_v37, %v2167_v35  ;;  %v1780_v53 = vadd.f32 %v1779_v36, %v1778_v30  ;;  %v2174_v37 = vsel %vm1497_vm1, %v1968_v18, 0.0  ;;  %v2176_v62 = vsel %vm1497_vm1, %v1969_v60, 0.0 }
 0x176   : > { %v1789_v18 = vsel %vm1497_vm1, %v3318_v15, 0.0  ;;  %v1791_v60 = vsel %vm1497_vm1, %v3336_v33, 0.0  ;;  %v1793_v15 = vsel %vm1497_vm1, %v3363_v61, 0.0 }
 0x177   : > { %v1782_v25 = vadd.f32 %v1781_v4, %v1780_v53  ;;  %v2171_v21 = vadd.f32 %v2170_v0, %v2169_v54  ;;  %v1787_v53 = vsel %vm1497_vm1, %v3345_v41, 0.0  ;;  %v1973_v41 = vmul.f32 %v3363_v61, %v3363_v61 }
 0x178   : > { %v1976_v61 = vmul.f32 %v3372_v8, %v3372_v8 }
 0x179   : > { %v2173_v35 = vadd.f32 %v2172_v14, %v2171_v21  ;;  %v1784_v30 = vadd.f32 %v1783_v5, %v1782_v25  ;;  %v2178_v25 = vsel %vm1497_vm1, %v1970_v22, 0.0  ;;  %v2180_v5 = vsel %vm1497_vm1, %v1971_v50, 0.0 }
 0x17a   : > { %v2184_v33 = vsel %vm1497_vm1, %v1973_v41, 0.0  ;;  %v1795_v50 = vsel %vm1497_vm1, %v3381_v16, 0.0  ;;  %v1978_v41 = vmul.f32 %v3417_v59, %v3417_v59 }
 0x17b   : > { %v1786_v36 = vadd.f32 %v1785_v46, %v1784_v30  ;;  %v2175_v54 = vadd.f32 %v2174_v37, %v2173_v35  ;;  %v2182_v37 = vsel %vm1497_vm1, %v1972_v24, 0.0  ;;  %v1974_v46 = vmul.f32 %v3381_v16, %v3381_v16 }
 0x17c   : > { %v1977_v16 = vmul.f32 %v3399_v39, %v3399_v39 }
 0x17d   : > { %v2177_v4 = vadd.f32 %v2176_v62, %v2175_v54  ;;  %v1788_v0 = vadd.f32 %v1787_v53, %v1786_v36  ;;  %v1975_v54 = vmul.f32 %v3354_v52, %v3354_v52 }
 0x17f   : > { %v1790_v21 = vadd.f32 %v1789_v18, %v1788_v0  ;;  %v2179_v14 = vadd.f32 %v2178_v25, %v2177_v4  ;;  %v1797_v4 = vsel %vm1497_vm1, %v3354_v52, 0.0  ;;  %v2186_v0 = vsel %vm1497_vm1, %v1974_v46, 0.0 }
 0x180   : > { %v2188_v25 = vsel %vm1497_vm1, %v1975_v54, 0.0  ;;  %v1801_v52 = vsel %vm1497_vm1, %v3399_v39, 0.0  ;;  %v1980_v39 = vmul.f32 %v3408_v49, %v3408_v49  ;;  %v2194_v54 = vsel %vm1497_vm1, %v1978_v41, 0.0 }
 0x181   : > { %v2181_v35 = vadd.f32 %v2180_v5, %v2179_v14  ;;  %v1792_v30 = vadd.f32 %v1791_v60, %v1790_v21  ;;  %v1799_v21 = vsel %vm1497_vm1, %v3372_v8, 0.0  ;;  %v2190_v60 = vsel %vm1497_vm1, %v1976_v61, 0.0 }
 0x182   : > { %v2192_v8 = vsel %vm1497_vm1, %v1977_v16, 0.0  ;;  %v1811_v16 = vsel %vm1497_vm1, %v3453_v44, 0.0 }
 0x183   : > { %v1794_v22 = vadd.f32 %v1793_v15, %v1792_v30  ;;  %v2183_v36 = vadd.f32 %v2182_v37, %v2181_v35  ;;  %v1979_v37 = vmul.f32 %v3390_v27, %v3390_v27  ;;  %v1803_v15 = vsel %vm1497_vm1, %v3417_v59, 0.0 }
 0x184   : > { %v1981_v59 = vmul.f32 %v3435_v19, %v3435_v19 }
 0x185   : > { %v2185_v62 = vadd.f32 %v2184_v33, %v2183_v36  ;;  %v1796_v53 = vadd.f32 %v1795_v50, %v1794_v22  ;;  %v1805_v36 = vsel %vm1497_vm1, %v3390_v27, 0.0  ;;  %v1809_v27 = vsel %vm1497_vm1, %v3435_v19, 0.0 }
 0x186   : > { %v1984_v19 = vmul.f32 %v3444_v32, %v3444_v32 }
 0x187   : > { %v1798_v18 = vadd.f32 %v1797_v4, %v1796_v53  ;;  %v2187_v24 = vadd.f32 %v2186_v0, %v2185_v62  ;;  %v2196_v62 = vsel %vm1497_vm1, %v1979_v37, 0.0  ;;  %v1807_v53 = vsel %vm1497_vm1, %v3408_v49, 0.0 }
 0x188   : > { %v2198_v0 = vsel %vm1497_vm1, %v1980_v39, 0.0  ;;  %v2200_v49 = vsel %vm1497_vm1, %v1981_v59, 0.0  ;;  %v1815_v37 = vsel %vm1497_vm1, %v3444_v32, 0.0 }
 0x189   : > { %v2189_v14 = vadd.f32 %v2188_v25, %v2187_v24  ;;  %v1800_v5 = vadd.f32 %v1799_v21, %v1798_v18  ;;  %v1982_v18 = vmul.f32 %v3453_v44, %v3453_v44  ;;  %v1983_v21 = vmul.f32 %v3426_v9, %v3426_v9 }
 0x18a   : > { %v1985_v44 = vmul.f32 %v3471_v10, %v3471_v10 }
 0x18b   : > { %v1802_v35 = vadd.f32 %v1801_v52, %v1800_v5  ;;  %v2191_v30 = vadd.f32 %v2190_v60, %v2189_v14  ;;  %v1813_v60 = vsel %vm1497_vm1, %v3426_v9, 0.0  ;;  %v2202_v52 = vsel %vm1497_vm1, %v1982_v18, 0.0 }
 0x18c   : > { %v1817_v9 = vsel %vm1497_vm1, %v3471_v10, 0.0  ;;  %v2208_v32 = vsel %vm1497_vm1, %v1985_v44, 0.0  ;;  %v1988_v10 = vmul.f32 %v3480_v20, %v3480_v20  ;;  %v1831_v44 = vsel %vm1497_vm1, %v3516_v17, 0.0 }
 0x18d   : > { %v2193_v46 = vadd.f32 %v2192_v8, %v2191_v30  ;;  %v1804_v22 = vadd.f32 %v1803_v15, %v1802_v35  ;;  %v2204_v30 = vsel %vm1497_vm1, %v1983_v21, 0.0  ;;  %v1990_v21 = vmul.f32 %v3525_v31, %v3525_v31 }
 0x18f   : > { %v1806_v33 = vadd.f32 %v1805_v36, %v1804_v22  ;;  %v2195_v50 = vadd.f32 %v2194_v54, %v2193_v46  ;;  %v2206_v46 = vsel %vm1497_vm1, %v1984_v19, 0.0  ;;  %v1986_v22 = vmul.f32 %v3489_v34, %v3489_v34 }
 0x190   : > { %v1987_v54 = vmul.f32 %v3462_v58, %v3462_v58 }
 0x191   : > { %v2197_v4 = vadd.f32 %v2196_v62, %v2195_v50  ;;  %v1808_v61 = vadd.f32 %v1807_v53, %v1806_v33  ;;  %v1819_v33 = vsel %vm1497_vm1, %v3489_v34, 0.0  ;;  %v1821_v53 = vsel %vm1497_vm1, %v3462_v58, 0.0 }
 0x192   : > { %v2210_v59 = vsel %vm1497_vm1, %v1986_v22, 0.0  ;;  %v1989_v34 = vmul.f32 %v3507_v3, %v3507_v3  ;;  %v1825_v58 = vsel %vm1497_vm1, %v3507_v3, 0.0  ;;  %v1992_v3 = vmul.f32 %v3516_v17, %v3516_v17 }
 0x193   : > { %v1810_v24 = vadd.f32 %v1809_v27, %v1808_v61  ;;  %v2199_v25 = vadd.f32 %v2198_v0, %v2197_v4  ;;  %v2212_v0 = vsel %vm1497_vm1, %v1987_v54, 0.0  ;;  %v1823_v27 = vsel %vm1497_vm1, %v3480_v20, 0.0 }
 0x194   : > { %v2216_v20 = vsel %vm1497_vm1, %v1989_v34, 0.0  ;;  %v1835_v54 = vsel %vm1497_vm1, %v3561_v43, 0.0  ;;  %v1998_v34 = vmul.f32 %v3597_v48, %v3597_v48 }
 0x195   : > { %v2201_v14 = vadd.f32 %v2200_v49, %v2199_v25  ;;  %v1812_v5 = vadd.f32 %v1811_v16, %v1810_v24  ;;  %v2214_v25 = vsel %vm1497_vm1, %v1988_v10, 0.0 }
 0x197   : > { %v1814_v41 = vadd.f32 %v1813_v60, %v1812_v5  ;;  %v2203_v35 = vadd.f32 %v2202_v52, %v2201_v14  ;;  %v1991_v14 = vmul.f32 %v3498_v51, %v3498_v51  ;;  %v1827_v5 = vsel %vm1497_vm1, %v3525_v31, 0.0 }
 0x198   : > { %v1829_v52 = vsel %vm1497_vm1, %v3498_v51, 0.0  ;;  %v1993_v31 = vmul.f32 %v3543_v56, %v3543_v56  ;;  %v1833_v51 = vsel %vm1497_vm1, %v3543_v56, 0.0  ;;  %v1996_v56 = vmul.f32 %v3552_v26, %v3552_v26 }
 0x199   : > { %v2205_v8 = vadd.f32 %v2204_v30, %v2203_v35  ;;  %v1816_v15 = vadd.f32 %v1815_v37, %v1814_v41  ;;  %v2218_v41 = vsel %vm1497_vm1, %v1990_v21, 0.0  ;;  %v2220_v37 = vsel %vm1497_vm1, %v1991_v14, 0.0 }
 0x19a   : > { %v2224_v17 = vsel %vm1497_vm1, %v1993_v31, 0.0  ;;  %v1843_v21 = vsel %vm1497_vm1, %v3597_v48, 0.0  ;;  %v2001_v48 = vmul.f32 %v3613_v11, %v3613_v11 }
 0x19b   : > { %v1818_v36 = vadd.f32 %v1817_v9, %v1816_v15  ;;  %v2207_v39 = vadd.f32 %v2206_v46, %v2205_v8  ;;  %v2222_v46 = vsel %vm1497_vm1, %v1992_v3, 0.0  ;;  %v1994_v9 = vmul.f32 %v3561_v43, %v3561_v43 }
 0x19c   : > { %v1997_v43 = vmul.f32 %v3579_v38, %v3579_v38 }
 0x19d   : > { %v2209_v50 = vadd.f32 %v2208_v32, %v2207_v39  ;;  %v1820_v62 = vadd.f32 %v1819_v33, %v1818_v36  ;;  %v1995_v39 = vmul.f32 %v3534_v55, %v3534_v55 }
 0x19f   : > { %v1822_v4 = vadd.f32 %v1821_v53, %v1820_v62  ;;  %v2211_v61 = vadd.f32 %v2210_v59, %v2209_v50  ;;  %v1837_v50 = vsel %vm1497_vm1, %v3534_v55, 0.0  ;;  %v2226_v62 = vsel %vm1497_vm1, %v1994_v9, 0.0 }
 0x1a0   : > { %v2228_v59 = vsel %vm1497_vm1, %v1995_v39, 0.0  ;;  %v1841_v55 = vsel %vm1497_vm1, %v3579_v38, 0.0 }
 0x1a1   : > { %v2213_v18 = vadd.f32 %v2212_v0, %v2211_v61  ;;  %v1824_v24 = vadd.f32 %v1823_v27, %v1822_v4  ;;  %v1839_v4 = vsel %vm1497_vm1, %v3552_v26, 0.0  ;;  %v2230_v27 = vsel %vm1497_vm1, %v1996_v56, 0.0 }
 0x1a2   : > { %v2232_v26 = vsel %vm1497_vm1, %v1997_v43, 0.0  ;;  %v1859_v43 = vsel %vm1497_vm1, %v3672_v45, 0.0 }
 0x1a3   : > { %v1826_v49 = vadd.f32 %v1825_v58, %v1824_v24  ;;  %v2215_v16 = vadd.f32 %v2214_v25, %v2213_v18  ;;  %v4039_v25 = vld [vmem:[#allocation2_spill] sm:$0xff] }
 0x1a4   : > { %v1999_v58 = vmul.f32 %v4039_v25, %v4039_v25  ;;  %v1845_v14 = vsel %vm1497_vm1, %v4039_v25, 0.0  ;;  %v1863_v25 = vsel %vm1497_vm1, %v3662_v2, 0.0 }
 0x1a5   : > { %v2217_v60 = vadd.f32 %v2216_v20, %v2215_v16  ;;  %v1828_v19 = vadd.f32 %v1827_v5, %v1826_v49  ;;  %v4040_v20 = vld [vmem:[#allocation3_spill] sm:$0xff]  ;;  %v2234_v5 = vsel %vm1497_vm1, %v1998_v34, 0.0 }
 0x1a6   : > { %v2000_v38 = vmul.f32 %v4040_v20, %v4040_v20  ;;  %v1847_v3 = vsel %vm1497_vm1, %v4040_v20, 0.0  ;;  %v2011_v20 = vmul.f32 %v3682_v13, %v3682_v13 }
 0x1a7   : > { %v1830_v35 = vadd.f32 %v1829_v52, %v1828_v19  ;;  %v2219_v30 = vadd.f32 %v2218_v41, %v2217_v60  ;;  %v2236_v52 = vsel %vm1497_vm1, %v1999_v58, 0.0 }
 0x1a9   : > { %v2221_v8 = vadd.f32 %v2220_v37, %v2219_v30  ;;  %v1832_v15 = vadd.f32 %v1831_v44, %v1830_v35  ;;  %v2238_v30 = vsel %vm1497_vm1, %v2000_v38, 0.0  ;;  %v1849_v37 = vsel %vm1497_vm1, %v3613_v11, 0.0 }
 0x1aa   : > { %v2002_v44 = vmul.f32 %v3632_v40, %v3632_v40  ;;  %v2004_v11 = vmul.f32 %v3622_v7, %v3622_v7  ;;  %v1867_v38 = vsel %vm1497_vm1, %v3712_v23, 0.0 }
 0x1ab   : > { %v1834_v22 = vadd.f32 %v1833_v51, %v1832_v15  ;;  %v2223_v36 = vadd.f32 %v2222_v46, %v2221_v8  ;;  %v2003_v15 = vmul.f32 %v3606_v47, %v3606_v47  ;;  %v2240_v46 = vsel %vm1497_vm1, %v2001_v48, 0.0 }
 0x1ac   : > { %v1851_v51 = vsel %vm1497_vm1, %v3632_v40, 0.0  ;;  %v2242_v39 = vsel %vm1497_vm1, %v2002_v44, 0.0  ;;  %v2005_v40 = vmul.f32 %v3652_v28, %v3652_v28 }
 0x1ad   : > { %v2225_v32 = vadd.f32 %v2224_v17, %v2223_v36  ;;  %v1836_v33 = vadd.f32 %v1835_v54, %v1834_v22  ;;  %v1853_v36 = vsel %vm1497_vm1, %v3606_v47, 0.0  ;;  %v1857_v47 = vsel %vm1497_vm1, %v3652_v28, 0.0 }
 0x1ae   : > { %v2008_v28 = vmul.f32 %v3662_v2, %v3662_v2 }
 0x1af   : > { %v1838_v53 = vadd.f32 %v1837_v50, %v1836_v33  ;;  %v2227_v10 = vadd.f32 %v2226_v62, %v2225_v32  ;;  %v2244_v32 = vsel %vm1497_vm1, %v2003_v15, 0.0  ;;  %v1855_v33 = vsel %vm1497_vm1, %v3622_v7, 0.0 }
 0x1b0   : > { %v2246_v62 = vsel %vm1497_vm1, %v2004_v11, 0.0  ;;  %v2248_v7 = vsel %vm1497_vm1, %v2005_v40, 0.0 }
 0x1b1   : > { %v2229_v61 = vadd.f32 %v2228_v59, %v2227_v10  ;;  %v1840_v0 = vadd.f32 %v1839_v4, %v1838_v53  ;;  %v2006_v53 = vmul.f32 %v3672_v45, %v3672_v45  ;;  %v2007_v4 = vmul.f32 %v3642_v12, %v3642_v12 }
 0x1b2   : > { %v2009_v45 = vmul.f32 %v3692_v29, %v3692_v29 }
 0x1b3   : > { %v1842_v18 = vadd.f32 %v1841_v55, %v1840_v0  ;;  %v2231_v24 = vadd.f32 %v2230_v27, %v2229_v61  ;;  %v1861_v27 = vsel %vm1497_vm1, %v3642_v12, 0.0  ;;  %v2250_v55 = vsel %vm1497_vm1, %v2006_v53, 0.0 }
 0x1b4   : > { %v1865_v12 = vsel %vm1497_vm1, %v3692_v29, 0.0  ;;  %v2256_v2 = vsel %vm1497_vm1, %v2009_v45, 0.0  ;;  %v2012_v29 = vmul.f32 %v3702_v42, %v3702_v42 }
 0x1b5   : > { %v2233_v49 = vadd.f32 %v2232_v26, %v2231_v24  ;;  %v1844_v16 = vadd.f32 %v1843_v21, %v1842_v18  ;;  %v2252_v24 = vsel %vm1497_vm1, %v2007_v4, 0.0  ;;  %v2254_v21 = vsel %vm1497_vm1, %v2008_v28, 0.0 }
 0x1b6   : > { %v2262_v44 = vsel %vm1497_vm1, %v2012_v29, 0.0 }
 0x1b7   : > { %v1846_v60 = vadd.f32 %v1845_v14, %v1844_v16  ;;  %v2235_v19 = vadd.f32 %v2234_v5, %v2233_v49  ;;  %v2010_v49 = vmul.f32 %v3712_v23, %v3712_v23  ;;  %v2013_v23 = vmul.f32 %v3732_v57, %v3732_v57 }
 0x1b9   : > { %v2237_v41 = vadd.f32 %v2236_v52, %v2235_v19  ;;  %v1848_v35 = vadd.f32 %v1847_v3, %v1846_v60  ;;  %v1869_v19 = vsel %vm1497_vm1, %v3682_v13, 0.0  ;;  %v2258_v52 = vsel %vm1497_vm1, %v2010_v49, 0.0 }
 0x1ba   : > { %v1873_v13 = vsel %vm1497_vm1, %v3732_v57, 0.0  ;;  %v2016_v57 = vmul.f32 %v3742_v6, %v3742_v6 }
 0x1bb   : > { %v1850_v31 = vadd.f32 %v1849_v37, %v1848_v35  ;;  %v2239_v8 = vadd.f32 %v2238_v30, %v2237_v41  ;;  %v2260_v41 = vsel %vm1497_vm1, %v2011_v20, 0.0  ;;  %v1871_v35 = vsel %vm1497_vm1, %v3702_v42, 0.0 }
 0x1bc   : > { %v2264_v42 = vsel %vm1497_vm1, %v2013_v23, 0.0  ;;  %v2270_v40 = vsel %vm1497_vm1, %v2016_v57, 0.0 }
 0x1bd   : > { %v2241_v9 = vadd.f32 %v2240_v46, %v2239_v8  ;;  %v1852_v22 = vadd.f32 %v1851_v51, %v1850_v31  ;;  %v2014_v31 = vmul.f32 %v3752_v63, %v3752_v63  ;;  %v2015_v46 = vmul.f32 %v3722_v1, %v3722_v1 }
 0x1be   : > { %v1875_v51 = vsel %vm1497_vm1, %v3752_v63, 0.0 }
 0x1bf   : > { %v1854_v17 = vadd.f32 %v1853_v36, %v1852_v22  ;;  %v2243_v54 = vadd.f32 %v2242_v39, %v2241_v9  ;;  %v1877_v36 = vsel %vm1497_vm1, %v3722_v1, 0.0  ;;  %v2266_v11 = vsel %vm1497_vm1, %v2014_v31, 0.0 }
 0x1c1   : > { %v2245_v50 = vadd.f32 %v2244_v32, %v2243_v54  ;;  %v1856_v56 = vadd.f32 %v1855_v33, %v1854_v17  ;;  %v2268_v54 = vsel %vm1497_vm1, %v2015_v46, 0.0  ;;  %v1879_v32 = vsel %vm1497_vm1, %v3742_v6, 0.0 }
 0x1c3   : > { %v1858_v10 = vadd.f32 %v1857_v47, %v1856_v56  ;;  %v2247_v59 = vadd.f32 %v2246_v62, %v2245_v50 }
 0x1c5   : > { %v2249_v61 = vadd.f32 %v2248_v7, %v2247_v59  ;;  %v1860_v0 = vadd.f32 %v1859_v43, %v1858_v10 }
 0x1c7   : > { %v1862_v34 = vadd.f32 %v1861_v27, %v1860_v0  ;;  %v2251_v18 = vadd.f32 %v2250_v55, %v2249_v61 }
 0x1c9   : > { %v2253_v58 = vadd.f32 %v2252_v24, %v2251_v18  ;;  %v1864_v26 = vadd.f32 %v1863_v25, %v1862_v34 }
 0x1cb   : > { %v1866_v16 = vadd.f32 %v1865_v12, %v1864_v26  ;;  %v2255_v14 = vadd.f32 %v2254_v21, %v2253_v58 }
 0x1cd   : > { %v2257_v5 = vadd.f32 %v2256_v2, %v2255_v14  ;;  %v1868_v60 = vadd.f32 %v1867_v38, %v1866_v16 }
 0x1cf   : > { %v1870_v3 = vadd.f32 %v1869_v19, %v1868_v60  ;;  %v2259_v48 = vadd.f32 %v2258_v52, %v2257_v5 }
 0x1d1   : > { %v2261_v30 = vadd.f32 %v2260_v41, %v2259_v48  ;;  %v1872_v37 = vadd.f32 %v1871_v35, %v1870_v3 }
 0x1d3   : > { %v1874_v8 = vadd.f32 %v1873_v13, %v1872_v37  ;;  %v2263_v15 = vadd.f32 %v2262_v44, %v2261_v30 }
 0x1d5   : > { %v2265_v9 = vadd.f32 %v2264_v42, %v2263_v15  ;;  %v1876_v22 = vadd.f32 %v1875_v51, %v1874_v8 }
 0x1d7   : > { %v1878_v39 = vadd.f32 %v1877_v36, %v1876_v22  ;;  %v2267_v17 = vadd.f32 %v2266_v11, %v2265_v9 }
 0x1d9   : > { %v1880_v33 = vadd.f32 %v1879_v32, %v1878_v39  ;;  %v2269_v63 = vadd.f32 %v2268_v54, %v2267_v17 }
 0x1db   : > { %v1881_v50 = vrot.slane %v1880_v33, 4  ;;  %v2271_v56 = vadd.f32 %v2270_v40, %v2269_v63 }
 0x1dd   : > { %v1882_v1 = vadd.f32 %v1881_v50, %v1880_v33  ;;  %v2272_v62 = vrot.slane %v2271_v56, 4 }
 0x1df   : > { %v1883_v47 = vrot.slane %v1882_v1, 2  ;;  %v2273_v53 = vadd.f32 %v2272_v62, %v2271_v56 }
 0x1e1   : > { %v1884_v10 = vadd.f32 %v1883_v47, %v1882_v1  ;;  %v2274_v59 = vrot.slane %v2273_v53, 2 }
 0x1e3   : > { %v1885_v4 = vrot.slane %v1884_v10, 1  ;;  %v2275_v7 = vadd.f32 %v2274_v59, %v2273_v53 }
 0x1e5   : > { %v1886_v6 = vadd.f32 %v1885_v4, %v1884_v10  ;;  %v2276_v43 = vrot.slane %v2275_v7, 1 }
 0x1e7   : > { %1888 = vst.msk [vmem:[%s286_s8] sm:$0x1] %vm1887_vm2, %v1886_v6  ;;  %v2277_v61 = vadd.f32 %v2276_v43, %v2275_v7 }
 0x1e9   : > { %2278 = vst.msk [vmem:[%s293_s11] sm:$0x1] %vm1887_vm2, %v2277_v61 }
 0x1ea PF: > { %s15_s17 = sadd.s32 1, %s2919_s17   ;;  %s4041_s15 = smov %s2915_s16 }
 0x1eb   : > { %p12_p6 = scmp.ge.s32.totalorder %s15_s17, 10   ;;  %s4042_s16 = smov %s4044_s18 }
 0x1ed   :  { %14 = sbr.rel (!%p12_p6) target bundleno = 2 (0x2), region = 85 }

</bundles_post_ra>
